<compile_context>
chip_gen: v7x
topology: tpu7x:2x2x1
jax: 0.10.0
libtpu: 0.0.40
codegen_flags: <defaults>
</compile_context>

<pallas_src>
import jax
import jax.numpy as jnp
import numpy as np
from jax.experimental import pallas as pl
from jax.experimental.pallas import tpu as pltpu

EPS_BN = 1e-5
EPS_RMS = 1e-5


# ----------------------------------------------------------------------------
# Fused unit kernel: stage(BN*scale+shift, ReLU) -> 27-tap shifted conv matmuls
# -> bias -> Vim epilogue (mixer = identity).  All tensors are (channels, L).
# ----------------------------------------------------------------------------
def _make_unit_kernel(piece_channels, cout, D, H, W, margin):
    L = D * H * W
    n_pieces = len(piece_channels)
    offs = [0]
    for c in piece_channels:
        offs.append(offs[-1] + c)
    cin = offs[-1]
    # lane offset of tap (kd, kh, kw) relative to the output token, in flat (d,h,w) order
    tap_offsets = [(kd - 1) * H * W + (kh - 1) * W + (kw - 1)
                   for kd in range(3) for kh in range(3) for kw in range(3)]

    def kernel(*refs):
        scale_ref, shift_ref, w_ref, b_ref, pos_ref, g_ref, mask_ref = refs[:7]
        piece_refs = refs[7:7 + n_pieces]
        o_ref = refs[7 + n_pieces]
        xcf_ref = refs[7 + n_pieces + 1]          # (cin, L + 2*margin) f32 staging scratch

        # ---- stage BN(batch-stats)+ReLU activations, zero margins == zero padding -------
        xcf_ref[...] = jnp.zeros_like(xcf_ref)
        for j in range(n_pieces):
            c0, c1 = offs[j], offs[j + 1]
            xp = piece_refs[j][0]                                          # (c_j, L) f32
            xn = jnp.maximum(xp * scale_ref[c0:c1, :] + shift_ref[c0:c1, :], 0.0)
            xcf_ref[c0:c1, margin:margin + L] = xn

        # ---- Conv3d(k=3, pad=1): 27 shifted matmuls, bf16 MXU, f32 accumulation ---------
        acc = jnp.zeros((cout, L), jnp.float32)
        for t in range(27):
            s = margin + tap_offsets[t]
            xs = xcf_ref[:, s:s + L].astype(jnp.bfloat16)                  # (cin, L)
            contrib = jnp.dot(w_ref[t], xs, preferred_element_type=jnp.float32)  # (cout, L)
            acc = acc + contrib * mask_ref[t]                              # boundary mask

        # ---- fused Vim_Block epilogue (fused_add_norm, residual=None, drop_path=0) ------
        y = acc + b_ref[...]                                               # conv tokens (cout, L)
        pos = pos_ref[...]
        h = y + pos
        ms = jnp.mean(h * h, axis=0, keepdims=True)                        # RMS over channels
        normed = h * jax.lax.rsqrt(ms + EPS_RMS) * g_ref[...]
        # TODO(synk): Mamba_FFT mixer (SSM/FFT gating) is not defined in the provided source;
        # it is treated as identity here.
        o_ref[0] = normed + pos + y

    return kernel


def conv_vim_unit(pieces, scale, shift, w27, bias, posT, rms_w, masks, D, H, W, margin):
    B = pieces[0].shape[0]
    L = D * H * W
    cout, cin = int(w27.shape[1]), int(w27.shape[2])
    piece_channels = tuple(int(p.shape[1]) for p in pieces)
    kernel = _make_unit_kernel(piece_channels, cout, D, H, W, margin)

    in_specs = [
        pl.BlockSpec((cin, 1), lambda b: (0, 0)),            # scale
        pl.BlockSpec((cin, 1), lambda b: (0, 0)),            # shift
        pl.BlockSpec((27, cout, cin), lambda b: (0, 0, 0)),  # conv taps (bf16)
        pl.BlockSpec((cout, 1), lambda b: (0, 0)),           # bias
        pl.BlockSpec((cout, L), lambda b: (0, 0)),           # pos embed (C, L)
        pl.BlockSpec((cout, 1), lambda b: (0, 0)),           # rms weight
        pl.BlockSpec((27, 1, L), lambda b: (0, 0, 0)),       # tap boundary masks
    ]
    for c in piece_channels:
        in_specs.append(pl.BlockSpec((1, c, L), lambda b: (b, 0, 0)))

    return pl.pallas_call(
        kernel,
        out_shape=jax.ShapeDtypeStruct((B, cout, L), jnp.float32),
        grid=(B,),
        in_specs=in_specs,
        out_specs=pl.BlockSpec((1, cout, L), lambda b: (b, 0, 0)),
        scratch_shapes=[pltpu.VMEM((cin, L + 2 * margin), jnp.float32)],
        compiler_params=pltpu.CompilerParams(
            dimension_semantics=("parallel",),      # megacore shards batches (v7x)
            vmem_limit_bytes=32 * 1024 * 1024,      # explicit, safe on v5e/v6e/v7x
        ),
    )(scale, shift, w27, bias, posT, rms_w, masks, *pieces)


# ----------------------------------------------------------------------------
# Glue.
# ----------------------------------------------------------------------------
def _make_tap_masks(D, H, W):
    d = np.arange(D)[:, None, None]
    h = np.arange(H)[None, :, None]
    w = np.arange(W)[None, None, :]
    masks = []
    for kd in range(3):
        for kh in range(3):
            for kw in range(3):
                vd = (d + kd - 1 >= 0) & (d + kd - 1 < D)
                vh = (h + kh - 1 >= 0) & (h + kh - 1 < H)
                vw = (w + kw - 1 >= 0) & (w + kw - 1 < W)
                masks.append((vd & vh & vw).astype(np.float32).reshape(-1))
    return jnp.asarray(np.stack(masks)[:, None, :])          # (27, 1, L)


def _channel_stats(piece):
    # training-mode BatchNorm3d statistics (biased variance), per channel
    return jnp.mean(piece, axis=(0, 2)), jnp.var(piece, axis=(0, 2))


def dense_feature_stack(x_ncdhw, params, pos_embed):
    x = x_ncdhw.astype(jnp.float32)
    B, C0, D, H, W = x.shape
    L = D * H * W
    margin = ((H * W + W + 1 + 127) // 128) * 128             # lane-aligned shift margin
    masks = _make_tap_masks(D, H, W)
    posT = jnp.transpose(pos_embed.astype(jnp.float32))       # (growth, L)

    pieces = [x.reshape(B, C0, L)]                            # channels-first token rows
    stats = [_channel_stats(pieces[0])]                       # per-piece BN batch stats
    for p in params:
        mean = jnp.concatenate([m for m, _ in stats])
        var = jnp.concatenate([v for _, v in stats])
        inv = jax.lax.rsqrt(var + EPS_BN)
        scale = (p["bn_gamma"] * inv)[:, None]                # fold BN into scale/shift
        shift = (p["bn_beta"] - mean * p["bn_gamma"] * inv)[:, None]

        cout, cin = p["conv_w"].shape[0], p["conv_w"].shape[1]
        # torch (Cout, Cin, kd, kh, kw) -> (27, Cout, Cin), kd-major tap order, bf16 MXU operand
        w27 = jnp.transpose(p["conv_w"], (2, 3, 4, 0, 1)).reshape(27, cout, cin)
        w27 = w27.astype(jnp.bfloat16)

        out = conv_vim_unit(pieces, scale, shift, w27, p["conv_b"][:, None],
                            posT, p["rms_w"][:, None], masks, D, H, W, margin)
        pieces.append(out)
        stats.append(_channel_stats(out))                     # unused for last unit -> DCE'd

    y = jnp.concatenate(pieces, axis=1)                       # single final concat (module output)
    return y.reshape(B, y.shape[1], D, H, W)                  # NCDHW, matches PyTorch


if __name__ == "__main__":
    key = jax.random.PRNGKey(0)
    B, C0, D, H, W = 2, 4, 8, 8, 8
    units, growth, ksz = 2, 8, 3
    L = D * H * W

    keys = jax.random.split(key, 2 + 2 * units)
    x = jax.random.normal(keys[0], (B, C0, D, H, W), dtype=jnp.float32)
    pos_embed = 0.02 * jax.random.normal(keys[1], (L, growth), dtype=jnp.float32)

    params = []
    cin = C0
    for i in range(units):
        wk, bk = keys[2 + 2 * i], keys[3 + 2 * i]
        params.append(dict(
            bn_gamma=jnp.ones((cin,), jnp.float32),                 # torch BN init
            bn_beta=jnp.zeros((cin,), jnp.float32),
            conv_w=0.1 * jax.random.normal(wk, (growth, cin, ksz, ksz, ksz), jnp.float32),
            conv_b=0.01 * jax.random.normal(bk, (growth,), jnp.float32),
            rms_w=jnp.ones((growth,), jnp.float32),                 # mamba RMSNorm init
        ))
        cin += growth

    fwd = jax.jit(dense_feature_stack)
    out = fwd(x, params, pos_embed)
    jax.block_until_ready(out)
    assert out.shape == (B, C0 + units * growth, D, H, W), out.shape
    assert out.dtype == jnp.float32
    assert bool(jnp.all(jnp.isfinite(out)))
    print("KERNEL_OK")
</pallas_src>

<mosaic_0001>
module attributes {stable_mosaic.version = 11 : i64} {
  func.func @kernel(%arg0: i32, %arg1: memref<4x1xf32, #tpu.memory_space<vmem>>, %arg2: memref<4x1xf32, #tpu.memory_space<vmem>>, %arg3: memref<27x8x4xbf16, #tpu.memory_space<vmem>>, %arg4: memref<8x1xf32, #tpu.memory_space<vmem>>, %arg5: memref<8x512xf32, #tpu.memory_space<vmem>>, %arg6: memref<8x1xf32, #tpu.memory_space<vmem>>, %arg7: memref<27x1x512xf32, #tpu.memory_space<vmem>>, %arg8: memref<1x4x512xf32, #tpu.memory_space<vmem>>, %arg9: memref<1x8x512xf32, #tpu.memory_space<vmem>>, %arg10: memref<4x768xf32, #tpu.memory_space<vmem>>) attributes {dimension_semantics = [#tpu.dimension_semantics<parallel>], iteration_bounds = array<i64: 2>, scalar_prefetch = 0 : i64, scratch_operands = 1 : i64, tpu.core_type = #tpu.core_type<tc>, window_params = [{pipeline_mode = #tpu.pipeline_mode<synchronous>, transform_indices = @transform_0, window_bounds = array<i64: 4, 1>}, {pipeline_mode = #tpu.pipeline_mode<synchronous>, transform_indices = @transform_1, window_bounds = array<i64: 4, 1>}, {pipeline_mode = #tpu.pipeline_mode<synchronous>, transform_indices = @transform_2, window_bounds = array<i64: 27, 8, 4>}, {pipeline_mode = #tpu.pipeline_mode<synchronous>, transform_indices = @transform_3, window_bounds = array<i64: 8, 1>}, {pipeline_mode = #tpu.pipeline_mode<synchronous>, transform_indices = @transform_4, window_bounds = array<i64: 8, 512>}, {pipeline_mode = #tpu.pipeline_mode<synchronous>, transform_indices = @transform_5, window_bounds = array<i64: 8, 1>}, {pipeline_mode = #tpu.pipeline_mode<synchronous>, transform_indices = @transform_6, window_bounds = array<i64: 27, 1, 512>}, {transform_indices = @transform_7, window_bounds = array<i64: 1, 4, 512>}, {transform_indices = @transform_8, window_bounds = array<i64: 1, 8, 512>}]} {
    %cst = arith.constant 0.000000e+00 : f32
    %0 = vector.broadcast %cst : f32 to vector<4x768xf32>
    %c0 = arith.constant 0 : index
    %c0_0 = arith.constant 0 : index
    %1 = vector.load %arg10[%c0, %c0_0] : memref<4x768xf32, #tpu.memory_space<vmem>>, vector<4x768xf32>
    tpu.vector_store %arg10[%c0, %c0_0], %0 {strides = array<i32>} : memref<4x768xf32, #tpu.memory_space<vmem>>, vector<4x768xf32>,
    %c0_1 = arith.constant 0 : index
    %c0_2 = arith.constant 0 : index
    %c0_3 = arith.constant 0 : index
    %2 = vector.load %arg8[%c0_1, %c0_2, %c0_3] : memref<1x4x512xf32, #tpu.memory_space<vmem>>, vector<1x4x512xf32>
    %3 = vector.shape_cast %2 : vector<1x4x512xf32> to vector<4x512xf32>
    %c0_4 = arith.constant 0 : index
    %c0_5 = arith.constant 0 : index
    %4 = vector.load %arg1[%c0_4, %c0_5] : memref<4x1xf32, #tpu.memory_space<vmem>>, vector<4x1xf32>
    %5 = vector.broadcast %4 : vector<4x1xf32> to vector<4x512xf32>
    %6 = arith.mulf %3, %5 : vector<4x512xf32>
    %c0_6 = arith.constant 0 : index
    %c0_7 = arith.constant 0 : index
    %7 = vector.load %arg2[%c0_6, %c0_7] : memref<4x1xf32, #tpu.memory_space<vmem>>, vector<4x1xf32>
    %8 = vector.broadcast %7 : vector<4x1xf32> to vector<4x512xf32>
    %9 = arith.addf %6, %8 : vector<4x512xf32>
    %cst_8 = arith.constant 0.000000e+00 : f32
    %10 = vector.broadcast %cst_8 : f32 to vector<4x512xf32>
    %11 = arith.maximumf %9, %10 : vector<4x512xf32>
    %c0_9 = arith.constant 0 : index
    %c128 = arith.constant 128 : index
    %12 = vector.load %arg10[%c0_9, %c128] : memref<4x768xf32, #tpu.memory_space<vmem>>, vector<4x512xf32>
    tpu.vector_store %arg10[%c0_9, %c128], %11 {strides = array<i32>} : memref<4x768xf32, #tpu.memory_space<vmem>>, vector<4x512xf32>,
    %cst_10 = arith.constant 0.000000e+00 : f32
    %13 = vector.broadcast %cst_10 : f32 to vector<8x512xf32>
    %c0_11 = arith.constant 0 : index
    %c55 = arith.constant 55 : index
    %14 = vector.load %arg10[%c0_11, %c55] : memref<4x768xf32, #tpu.memory_space<vmem>>, vector<4x512xf32>
    %15 = arith.truncf %14 : vector<4x512xf32> to vector<4x512xbf16>
    %c0_12 = arith.constant 0 : index
    %c0_13 = arith.constant 0 : index
    %c0_14 = arith.constant 0 : index
    %16 = vector.load %arg3[%c0_12, %c0_13, %c0_14] : memref<27x8x4xbf16, #tpu.memory_space<vmem>>, vector<1x8x4xbf16>
    %17 = vector.shape_cast %16 : vector<1x8x4xbf16> to vector<8x4xbf16>
    %cst_15 = arith.constant dense<0.000000e+00> : vector<8x512xf32>
    %18 = tpu.matmul %17, %15, %cst_15 {dimension_numbers = #tpu.dot_dimension_numbers<[1], [0], [0], [1], [0, 0, 1, 1], [], []>} : vector<8x4xbf16>, vector<4x512xbf16>, vector<8x512xf32> -> vector<8x512xf32>
    %c0_16 = arith.constant 0 : index
    %c0_17 = arith.constant 0 : index
    %c0_18 = arith.constant 0 : index
    %19 = vector.load %arg7[%c0_16, %c0_17, %c0_18] : memref<27x1x512xf32, #tpu.memory_space<vmem>>, vector<1x1x512xf32>
    %20 = vector.shape_cast %19 : vector<1x1x512xf32> to vector<1x512xf32>
    %21 = vector.broadcast %20 : vector<1x512xf32> to vector<8x512xf32>
    %22 = arith.mulf %18, %21 : vector<8x512xf32>
    %23 = arith.addf %13, %22 : vector<8x512xf32>
    %c0_19 = arith.constant 0 : index
    %c56 = arith.constant 56 : index
    %24 = vector.load %arg10[%c0_19, %c56] : memref<4x768xf32, #tpu.memory_space<vmem>>, vector<4x512xf32>
    %25 = arith.truncf %24 : vector<4x512xf32> to vector<4x512xbf16>
    %c1 = arith.constant 1 : index
    %c0_20 = arith.constant 0 : index
    %c0_21 = arith.constant 0 : index
    %26 = vector.load %arg3[%c1, %c0_20, %c0_21] : memref<27x8x4xbf16, #tpu.memory_space<vmem>>, vector<1x8x4xbf16>
    %27 = vector.shape_cast %26 : vector<1x8x4xbf16> to vector<8x4xbf16>
    %cst_22 = arith.constant dense<0.000000e+00> : vector<8x512xf32>
    %28 = tpu.matmul %27, %25, %cst_22 {dimension_numbers = #tpu.dot_dimension_numbers<[1], [0], [0], [1], [0, 0, 1, 1], [], []>} : vector<8x4xbf16>, vector<4x512xbf16>, vector<8x512xf32> -> vector<8x512xf32>
    %c1_23 = arith.constant 1 : index
    %c0_24 = arith.constant 0 : index
    %c0_25 = arith.constant 0 : index
    %29 = vector.load %arg7[%c1_23, %c0_24, %c0_25] : memref<27x1x512xf32, #tpu.memory_space<vmem>>, vector<1x1x512xf32>
    %30 = vector.shape_cast %29 : vector<1x1x512xf32> to vector<1x512xf32>
    %31 = vector.broadcast %30 : vector<1x512xf32> to vector<8x512xf32>
    %32 = arith.mulf %28, %31 : vector<8x512xf32>
    %33 = arith.addf %23, %32 : vector<8x512xf32>
    %c0_26 = arith.constant 0 : index
    %c57 = arith.constant 57 : index
    %34 = vector.load %arg10[%c0_26, %c57] : memref<4x768xf32, #tpu.memory_space<vmem>>, vector<4x512xf32>
    %35 = arith.truncf %34 : vector<4x512xf32> to vector<4x512xbf16>
    %c2 = arith.constant 2 : index
    %c0_27 = arith.constant 0 : index
    %c0_28 = arith.constant 0 : index
    %36 = vector.load %arg3[%c2, %c0_27, %c0_28] : memref<27x8x4xbf16, #tpu.memory_space<vmem>>, vector<1x8x4xbf16>
    %37 = vector.shape_cast %36 : vector<1x8x4xbf16> to vector<8x4xbf16>
    %cst_29 = arith.constant dense<0.000000e+00> : vector<8x512xf32>
    %38 = tpu.matmul %37, %35, %cst_29 {dimension_numbers = #tpu.dot_dimension_numbers<[1], [0], [0], [1], [0, 0, 1, 1], [], []>} : vector<8x4xbf16>, vector<4x512xbf16>, vector<8x512xf32> -> vector<8x512xf32>
    %c2_30 = arith.constant 2 : index
    %c0_31 = arith.constant 0 : index
    %c0_32 = arith.constant 0 : index
    %39 = vector.load %arg7[%c2_30, %c0_31, %c0_32] : memref<27x1x512xf32, #tpu.memory_space<vmem>>, vector<1x1x512xf32>
    %40 = vector.shape_cast %39 : vector<1x1x512xf32> to vector<1x512xf32>
    %41 = vector.broadcast %40 : vector<1x512xf32> to vector<8x512xf32>
    %42 = arith.mulf %38, %41 : vector<8x512xf32>
    %43 = arith.addf %33, %42 : vector<8x512xf32>
    %c0_33 = arith.constant 0 : index
    %c63 = arith.constant 63 : index
    %44 = vector.load %arg10[%c0_33, %c63] : memref<4x768xf32, #tpu.memory_space<vmem>>, vector<4x512xf32>
    %45 = arith.truncf %44 : vector<4x512xf32> to vector<4x512xbf16>
    %c3 = arith.constant 3 : index
    %c0_34 = arith.constant 0 : index
    %c0_35 = arith.constant 0 : index
    %46 = vector.load %arg3[%c3, %c0_34, %c0_35] : memref<27x8x4xbf16, #tpu.memory_space<vmem>>, vector<1x8x4xbf16>
    %47 = vector.shape_cast %46 : vector<1x8x4xbf16> to vector<8x4xbf16>
    %cst_36 = arith.constant dense<0.000000e+00> : vector<8x512xf32>
    %48 = tpu.matmul %47, %45, %cst_36 {dimension_numbers = #tpu.dot_dimension_numbers<[1], [0], [0], [1], [0, 0, 1, 1], [], []>} : vector<8x4xbf16>, vector<4x512xbf16>, vector<8x512xf32> -> vector<8x512xf32>
    %c3_37 = arith.constant 3 : index
    %c0_38 = arith.constant 0 : index
    %c0_39 = arith.constant 0 : index
    %49 = vector.load %arg7[%c3_37, %c0_38, %c0_39] : memref<27x1x512xf32, #tpu.memory_space<vmem>>, vector<1x1x512xf32>
    %50 = vector.shape_cast %49 : vector<1x1x512xf32> to vector<1x512xf32>
    %51 = vector.broadcast %50 : vector<1x512xf32> to vector<8x512xf32>
    %52 = arith.mulf %48, %51 : vector<8x512xf32>
    %53 = arith.addf %43, %52 : vector<8x512xf32>
    %c0_40 = arith.constant 0 : index
    %c64 = arith.constant 64 : index
    %54 = vector.load %arg10[%c0_40, %c64] : memref<4x768xf32, #tpu.memory_space<vmem>>, vector<4x512xf32>
    %55 = arith.truncf %54 : vector<4x512xf32> to vector<4x512xbf16>
    %c4 = arith.constant 4 : index
    %c0_41 = arith.constant 0 : index
    %c0_42 = arith.constant 0 : index
    %56 = vector.load %arg3[%c4, %c0_41, %c0_42] : memref<27x8x4xbf16, #tpu.memory_space<vmem>>, vector<1x8x4xbf16>
    %57 = vector.shape_cast %56 : vector<1x8x4xbf16> to vector<8x4xbf16>
    %cst_43 = arith.constant dense<0.000000e+00> : vector<8x512xf32>
    %58 = tpu.matmul %57, %55, %cst_43 {dimension_numbers = #tpu.dot_dimension_numbers<[1], [0], [0], [1], [0, 0, 1, 1], [], []>} : vector<8x4xbf16>, vector<4x512xbf16>, vector<8x512xf32> -> vector<8x512xf32>
    %c4_44 = arith.constant 4 : index
    %c0_45 = arith.constant 0 : index
    %c0_46 = arith.constant 0 : index
    %59 = vector.load %arg7[%c4_44, %c0_45, %c0_46] : memref<27x1x512xf32, #tpu.memory_space<vmem>>, vector<1x1x512xf32>
    %60 = vector.shape_cast %59 : vector<1x1x512xf32> to vector<1x512xf32>
    %61 = vector.broadcast %60 : vector<1x512xf32> to vector<8x512xf32>
    %62 = arith.mulf %58, %61 : vector<8x512xf32>
    %63 = arith.addf %53, %62 : vector<8x512xf32>
    %c0_47 = arith.constant 0 : index
    %c65 = arith.constant 65 : index
    %64 = vector.load %arg10[%c0_47, %c65] : memref<4x768xf32, #tpu.memory_space<vmem>>, vector<4x512xf32>
    %65 = arith.truncf %64 : vector<4x512xf32> to vector<4x512xbf16>
    %c5 = arith.constant 5 : index
    %c0_48 = arith.constant 0 : index
    %c0_49 = arith.constant 0 : index
    %66 = vector.load %arg3[%c5, %c0_48, %c0_49] : memref<27x8x4xbf16, #tpu.memory_space<vmem>>, vector<1x8x4xbf16>
    %67 = vector.shape_cast %66 : vector<1x8x4xbf16> to vector<8x4xbf16>
    %cst_50 = arith.constant dense<0.000000e+00> : vector<8x512xf32>
    %68 = tpu.matmul %67, %65, %cst_50 {dimension_numbers = #tpu.dot_dimension_numbers<[1], [0], [0], [1], [0, 0, 1, 1], [], []>} : vector<8x4xbf16>, vector<4x512xbf16>, vector<8x512xf32> -> vector<8x512xf32>
    %c5_51 = arith.constant 5 : index
    %c0_52 = arith.constant 0 : index
    %c0_53 = arith.constant 0 : index
    %69 = vector.load %arg7[%c5_51, %c0_52, %c0_53] : memref<27x1x512xf32, #tpu.memory_space<vmem>>, vector<1x1x512xf32>
    %70 = vector.shape_cast %69 : vector<1x1x512xf32> to vector<1x512xf32>
    %71 = vector.broadcast %70 : vector<1x512xf32> to vector<8x512xf32>
    %72 = arith.mulf %68, %71 : vector<8x512xf32>
    %73 = arith.addf %63, %72 : vector<8x512xf32>
    %c0_54 = arith.constant 0 : index
    %c71 = arith.constant 71 : index
    %74 = vector.load %arg10[%c0_54, %c71] : memref<4x768xf32, #tpu.memory_space<vmem>>, vector<4x512xf32>
    %75 = arith.truncf %74 : vector<4x512xf32> to vector<4x512xbf16>
    %c6 = arith.constant 6 : index
    %c0_55 = arith.constant 0 : index
    %c0_56 = arith.constant 0 : index
    %76 = vector.load %arg3[%c6, %c0_55, %c0_56] : memref<27x8x4xbf16, #tpu.memory_space<vmem>>, vector<1x8x4xbf16>
    %77 = vector.shape_cast %76 : vector<1x8x4xbf16> to vector<8x4xbf16>
    %cst_57 = arith.constant dense<0.000000e+00> : vector<8x512xf32>
    %78 = tpu.matmul %77, %75, %cst_57 {dimension_numbers = #tpu.dot_dimension_numbers<[1], [0], [0], [1], [0, 0, 1, 1], [], []>} : vector<8x4xbf16>, vector<4x512xbf16>, vector<8x512xf32> -> vector<8x512xf32>
    %c6_58 = arith.constant 6 : index
    %c0_59 = arith.constant 0 : index
    %c0_60 = arith.constant 0 : index
    %79 = vector.load %arg7[%c6_58, %c0_59, %c0_60] : memref<27x1x512xf32, #tpu.memory_space<vmem>>, vector<1x1x512xf32>
    %80 = vector.shape_cast %79 : vector<1x1x512xf32> to vector<1x512xf32>
    %81 = vector.broadcast %80 : vector<1x512xf32> to vector<8x512xf32>
    %82 = arith.mulf %78, %81 : vector<8x512xf32>
    %83 = arith.addf %73, %82 : vector<8x512xf32>
    %c0_61 = arith.constant 0 : index
    %c72 = arith.constant 72 : index
    %84 = vector.load %arg10[%c0_61, %c72] : memref<4x768xf32, #tpu.memory_space<vmem>>, vector<4x512xf32>
    %85 = arith.truncf %84 : vector<4x512xf32> to vector<4x512xbf16>
    %c7 = arith.constant 7 : index
    %c0_62 = arith.constant 0 : index
    %c0_63 = arith.constant 0 : index
    %86 = vector.load %arg3[%c7, %c0_62, %c0_63] : memref<27x8x4xbf16, #tpu.memory_space<vmem>>, vector<1x8x4xbf16>
    %87 = vector.shape_cast %86 : vector<1x8x4xbf16> to vector<8x4xbf16>
    %cst_64 = arith.constant dense<0.000000e+00> : vector<8x512xf32>
    %88 = tpu.matmul %87, %85, %cst_64 {dimension_numbers = #tpu.dot_dimension_numbers<[1], [0], [0], [1], [0, 0, 1, 1], [], []>} : vector<8x4xbf16>, vector<4x512xbf16>, vector<8x512xf32> -> vector<8x512xf32>
    %c7_65 = arith.constant 7 : index
    %c0_66 = arith.constant 0 : index
    %c0_67 = arith.constant 0 : index
    %89 = vector.load %arg7[%c7_65, %c0_66, %c0_67] : memref<27x1x512xf32, #tpu.memory_space<vmem>>, vector<1x1x512xf32>
    %90 = vector.shape_cast %89 : vector<1x1x512xf32> to vector<1x512xf32>
    %91 = vector.broadcast %90 : vector<1x512xf32> to vector<8x512xf32>
    %92 = arith.mulf %88, %91 : vector<8x512xf32>
    %93 = arith.addf %83, %92 : vector<8x512xf32>
    %c0_68 = arith.constant 0 : index
    %c73 = arith.constant 73 : index
    %94 = vector.load %arg10[%c0_68, %c73] : memref<4x768xf32, #tpu.memory_space<vmem>>, vector<4x512xf32>
    %95 = arith.truncf %94 : vector<4x512xf32> to vector<4x512xbf16>
    %c8 = arith.constant 8 : index
    %c0_69 = arith.constant 0 : index
    %c0_70 = arith.constant 0 : index
    %96 = vector.load %arg3[%c8, %c0_69, %c0_70] : memref<27x8x4xbf16, #tpu.memory_space<vmem>>, vector<1x8x4xbf16>
    %97 = vector.shape_cast %96 : vector<1x8x4xbf16> to vector<8x4xbf16>
    %cst_71 = arith.constant dense<0.000000e+00> : vector<8x512xf32>
    %98 = tpu.matmul %97, %95, %cst_71 {dimension_numbers = #tpu.dot_dimension_numbers<[1], [0], [0], [1], [0, 0, 1, 1], [], []>} : vector<8x4xbf16>, vector<4x512xbf16>, vector<8x512xf32> -> vector<8x512xf32>
    %c8_72 = arith.constant 8 : index
    %c0_73 = arith.constant 0 : index
    %c0_74 = arith.constant 0 : index
    %99 = vector.load %arg7[%c8_72, %c0_73, %c0_74] : memref<27x1x512xf32, #tpu.memory_space<vmem>>, vector<1x1x512xf32>
    %100 = vector.shape_cast %99 : vector<1x1x512xf32> to vector<1x512xf32>
    %101 = vector.broadcast %100 : vector<1x512xf32> to vector<8x512xf32>
    %102 = arith.mulf %98, %101 : vector<8x512xf32>
    %103 = arith.addf %93, %102 : vector<8x512xf32>
    %c0_75 = arith.constant 0 : index
    %c119 = arith.constant 119 : index
    %104 = vector.load %arg10[%c0_75, %c119] : memref<4x768xf32, #tpu.memory_space<vmem>>, vector<4x512xf32>
    %105 = arith.truncf %104 : vector<4x512xf32> to vector<4x512xbf16>
    %c9 = arith.constant 9 : index
    %c0_76 = arith.constant 0 : index
    %c0_77 = arith.constant 0 : index
    %106 = vector.load %arg3[%c9, %c0_76, %c0_77] : memref<27x8x4xbf16, #tpu.memory_space<vmem>>, vector<1x8x4xbf16>
    %107 = vector.shape_cast %106 : vector<1x8x4xbf16> to vector<8x4xbf16>
    %cst_78 = arith.constant dense<0.000000e+00> : vector<8x512xf32>
    %108 = tpu.matmul %107, %105, %cst_78 {dimension_numbers = #tpu.dot_dimension_numbers<[1], [0], [0], [1], [0, 0, 1, 1], [], []>} : vector<8x4xbf16>, vector<4x512xbf16>, vector<8x512xf32> -> vector<8x512xf32>
    %c9_79 = arith.constant 9 : index
    %c0_80 = arith.constant 0 : index
    %c0_81 = arith.constant 0 : index
    %109 = vector.load %arg7[%c9_79, %c0_80, %c0_81] : memref<27x1x512xf32, #tpu.memory_space<vmem>>, vector<1x1x512xf32>
    %110 = vector.shape_cast %109 : vector<1x1x512xf32> to vector<1x512xf32>
    %111 = vector.broadcast %110 : vector<1x512xf32> to vector<8x512xf32>
    %112 = arith.mulf %108, %111 : vector<8x512xf32>
    %113 = arith.addf %103, %112 : vector<8x512xf32>
    %c0_82 = arith.constant 0 : index
    %c120 = arith.constant 120 : index
    %114 = vector.load %arg10[%c0_82, %c120] : memref<4x768xf32, #tpu.memory_space<vmem>>, vector<4x512xf32>
    %115 = arith.truncf %114 : vector<4x512xf32> to vector<4x512xbf16>
    %c10 = arith.constant 10 : index
    %c0_83 = arith.constant 0 : index
    %c0_84 = arith.constant 0 : index
    %116 = vector.load %arg3[%c10, %c0_83, %c0_84] : memref<27x8x4xbf16, #tpu.memory_space<vmem>>, vector<1x8x4xbf16>
    %117 = vector.shape_cast %116 : vector<1x8x4xbf16> to vector<8x4xbf16>
    %cst_85 = arith.constant dense<0.000000e+00> : vector<8x512xf32>
    %118 = tpu.matmul %117, %115, %cst_85 {dimension_numbers = #tpu.dot_dimension_numbers<[1], [0], [0], [1], [0, 0, 1, 1], [], []>} : vector<8x4xbf16>, vector<4x512xbf16>, vector<8x512xf32> -> vector<8x512xf32>
    %c10_86 = arith.constant 10 : index
    %c0_87 = arith.constant 0 : index
    %c0_88 = arith.constant 0 : index
    %119 = vector.load %arg7[%c10_86, %c0_87, %c0_88] : memref<27x1x512xf32, #tpu.memory_space<vmem>>, vector<1x1x512xf32>
    %120 = vector.shape_cast %119 : vector<1x1x512xf32> to vector<1x512xf32>
    %121 = vector.broadcast %120 : vector<1x512xf32> to vector<8x512xf32>
    %122 = arith.mulf %118, %121 : vector<8x512xf32>
    %123 = arith.addf %113, %122 : vector<8x512xf32>
    %c0_89 = arith.constant 0 : index
    %c121 = arith.constant 121 : index
    %124 = vector.load %arg10[%c0_89, %c121] : memref<4x768xf32, #tpu.memory_space<vmem>>, vector<4x512xf32>
    %125 = arith.truncf %124 : vector<4x512xf32> to vector<4x512xbf16>
    %c11 = arith.constant 11 : index
    %c0_90 = arith.constant 0 : index
    %c0_91 = arith.constant 0 : index
    %126 = vector.load %arg3[%c11, %c0_90, %c0_91] : memref<27x8x4xbf16, #tpu.memory_space<vmem>>, vector<1x8x4xbf16>
    %127 = vector.shape_cast %126 : vector<1x8x4xbf16> to vector<8x4xbf16>
    %cst_92 = arith.constant dense<0.000000e+00> : vector<8x512xf32>
    %128 = tpu.matmul %127, %125, %cst_92 {dimension_numbers = #tpu.dot_dimension_numbers<[1], [0], [0], [1], [0, 0, 1, 1], [], []>} : vector<8x4xbf16>, vector<4x512xbf16>, vector<8x512xf32> -> vector<8x512xf32>
    %c11_93 = arith.constant 11 : index
    %c0_94 = arith.constant 0 : index
    %c0_95 = arith.constant 0 : index
    %129 = vector.load %arg7[%c11_93, %c0_94, %c0_95] : memref<27x1x512xf32, #tpu.memory_space<vmem>>, vector<1x1x512xf32>
    %130 = vector.shape_cast %129 : vector<1x1x512xf32> to vector<1x512xf32>
    %131 = vector.broadcast %130 : vector<1x512xf32> to vector<8x512xf32>
    %132 = arith.mulf %128, %131 : vector<8x512xf32>
    %133 = arith.addf %123, %132 : vector<8x512xf32>
    %c0_96 = arith.constant 0 : index
    %c127 = arith.constant 127 : index
    %134 = vector.load %arg10[%c0_96, %c127] : memref<4x768xf32, #tpu.memory_space<vmem>>, vector<4x512xf32>
    %135 = arith.truncf %134 : vector<4x512xf32> to vector<4x512xbf16>
    %c12 = arith.constant 12 : index
    %c0_97 = arith.constant 0 : index
    %c0_98 = arith.constant 0 : index
    %136 = vector.load %arg3[%c12, %c0_97, %c0_98] : memref<27x8x4xbf16, #tpu.memory_space<vmem>>, vector<1x8x4xbf16>
    %137 = vector.shape_cast %136 : vector<1x8x4xbf16> to vector<8x4xbf16>
    %cst_99 = arith.constant dense<0.000000e+00> : vector<8x512xf32>
    %138 = tpu.matmul %137, %135, %cst_99 {dimension_numbers = #tpu.dot_dimension_numbers<[1], [0], [0], [1], [0, 0, 1, 1], [], []>} : vector<8x4xbf16>, vector<4x512xbf16>, vector<8x512xf32> -> vector<8x512xf32>
    %c12_100 = arith.constant 12 : index
    %c0_101 = arith.constant 0 : index
    %c0_102 = arith.constant 0 : index
    %139 = vector.load %arg7[%c12_100, %c0_101, %c0_102] : memref<27x1x512xf32, #tpu.memory_space<vmem>>, vector<1x1x512xf32>
    %140 = vector.shape_cast %139 : vector<1x1x512xf32> to vector<1x512xf32>
    %141 = vector.broadcast %140 : vector<1x512xf32> to vector<8x512xf32>
    %142 = arith.mulf %138, %141 : vector<8x512xf32>
    %143 = arith.addf %133, %142 : vector<8x512xf32>
    %c0_103 = arith.constant 0 : index
    %c128_104 = arith.constant 128 : index
    %144 = vector.load %arg10[%c0_103, %c128_104] : memref<4x768xf32, #tpu.memory_space<vmem>>, vector<4x512xf32>
    %145 = arith.truncf %144 : vector<4x512xf32> to vector<4x512xbf16>
    %c13 = arith.constant 13 : index
    %c0_105 = arith.constant 0 : index
    %c0_106 = arith.constant 0 : index
    %146 = vector.load %arg3[%c13, %c0_105, %c0_106] : memref<27x8x4xbf16, #tpu.memory_space<vmem>>, vector<1x8x4xbf16>
    %147 = vector.shape_cast %146 : vector<1x8x4xbf16> to vector<8x4xbf16>
    %cst_107 = arith.constant dense<0.000000e+00> : vector<8x512xf32>
    %148 = tpu.matmul %147, %145, %cst_107 {dimension_numbers = #tpu.dot_dimension_numbers<[1], [0], [0], [1], [0, 0, 1, 1], [], []>} : vector<8x4xbf16>, vector<4x512xbf16>, vector<8x512xf32> -> vector<8x512xf32>
    %c13_108 = arith.constant 13 : index
    %c0_109 = arith.constant 0 : index
    %c0_110 = arith.constant 0 : index
    %149 = vector.load %arg7[%c13_108, %c0_109, %c0_110] : memref<27x1x512xf32, #tpu.memory_space<vmem>>, vector<1x1x512xf32>
    %150 = vector.shape_cast %149 : vector<1x1x512xf32> to vector<1x512xf32>
    %151 = vector.broadcast %150 : vector<1x512xf32> to vector<8x512xf32>
    %152 = arith.mulf %148, %151 : vector<8x512xf32>
    %153 = arith.addf %143, %152 : vector<8x512xf32>
    %c0_111 = arith.constant 0 : index
    %c129 = arith.constant 129 : index
    %154 = vector.load %arg10[%c0_111, %c129] : memref<4x768xf32, #tpu.memory_space<vmem>>, vector<4x512xf32>
    %155 = arith.truncf %154 : vector<4x512xf32> to vector<4x512xbf16>
    %c14 = arith.constant 14 : index
    %c0_112 = arith.constant 0 : index
    %c0_113 = arith.constant 0 : index
    %156 = vector.load %arg3[%c14, %c0_112, %c0_113] : memref<27x8x4xbf16, #tpu.memory_space<vmem>>, vector<1x8x4xbf16>
    %157 = vector.shape_cast %156 : vector<1x8x4xbf16> to vector<8x4xbf16>
    %cst_114 = arith.constant dense<0.000000e+00> : vector<8x512xf32>
    %158 = tpu.matmul %157, %155, %cst_114 {dimension_numbers = #tpu.dot_dimension_numbers<[1], [0], [0], [1], [0, 0, 1, 1], [], []>} : vector<8x4xbf16>, vector<4x512xbf16>, vector<8x512xf32> -> vector<8x512xf32>
    %c14_115 = arith.constant 14 : index
    %c0_116 = arith.constant 0 : index
    %c0_117 = arith.constant 0 : index
    %159 = vector.load %arg7[%c14_115, %c0_116, %c0_117] : memref<27x1x512xf32, #tpu.memory_space<vmem>>, vector<1x1x512xf32>
    %160 = vector.shape_cast %159 : vector<1x1x512xf32> to vector<1x512xf32>
    %161 = vector.broadcast %160 : vector<1x512xf32> to vector<8x512xf32>
    %162 = arith.mulf %158, %161 : vector<8x512xf32>
    %163 = arith.addf %153, %162 : vector<8x512xf32>
    %c0_118 = arith.constant 0 : index
    %c135 = arith.constant 135 : index
    %164 = vector.load %arg10[%c0_118, %c135] : memref<4x768xf32, #tpu.memory_space<vmem>>, vector<4x512xf32>
    %165 = arith.truncf %164 : vector<4x512xf32> to vector<4x512xbf16>
    %c15 = arith.constant 15 : index
    %c0_119 = arith.constant 0 : index
    %c0_120 = arith.constant 0 : index
    %166 = vector.load %arg3[%c15, %c0_119, %c0_120] : memref<27x8x4xbf16, #tpu.memory_space<vmem>>, vector<1x8x4xbf16>
    %167 = vector.shape_cast %166 : vector<1x8x4xbf16> to vector<8x4xbf16>
    %cst_121 = arith.constant dense<0.000000e+00> : vector<8x512xf32>
    %168 = tpu.matmul %167, %165, %cst_121 {dimension_numbers = #tpu.dot_dimension_numbers<[1], [0], [0], [1], [0, 0, 1, 1], [], []>} : vector<8x4xbf16>, vector<4x512xbf16>, vector<8x512xf32> -> vector<8x512xf32>
    %c15_122 = arith.constant 15 : index
    %c0_123 = arith.constant 0 : index
    %c0_124 = arith.constant 0 : index
    %169 = vector.load %arg7[%c15_122, %c0_123, %c0_124] : memref<27x1x512xf32, #tpu.memory_space<vmem>>, vector<1x1x512xf32>
    %170 = vector.shape_cast %169 : vector<1x1x512xf32> to vector<1x512xf32>
    %171 = vector.broadcast %170 : vector<1x512xf32> to vector<8x512xf32>
    %172 = arith.mulf %168, %171 : vector<8x512xf32>
    %173 = arith.addf %163, %172 : vector<8x512xf32>
    %c0_125 = arith.constant 0 : index
    %c136 = arith.constant 136 : index
    %174 = vector.load %arg10[%c0_125, %c136] : memref<4x768xf32, #tpu.memory_space<vmem>>, vector<4x512xf32>
    %175 = arith.truncf %174 : vector<4x512xf32> to vector<4x512xbf16>
    %c16 = arith.constant 16 : index
    %c0_126 = arith.constant 0 : index
    %c0_127 = arith.constant 0 : index
    %176 = vector.load %arg3[%c16, %c0_126, %c0_127] : memref<27x8x4xbf16, #tpu.memory_space<vmem>>, vector<1x8x4xbf16>
    %177 = vector.shape_cast %176 : vector<1x8x4xbf16> to vector<8x4xbf16>
    %cst_128 = arith.constant dense<0.000000e+00> : vector<8x512xf32>
    %178 = tpu.matmul %177, %175, %cst_128 {dimension_numbers = #tpu.dot_dimension_numbers<[1], [0], [0], [1], [0, 0, 1, 1], [], []>} : vector<8x4xbf16>, vector<4x512xbf16>, vector<8x512xf32> -> vector<8x512xf32>
    %c16_129 = arith.constant 16 : index
    %c0_130 = arith.constant 0 : index
    %c0_131 = arith.constant 0 : index
    %179 = vector.load %arg7[%c16_129, %c0_130, %c0_131] : memref<27x1x512xf32, #tpu.memory_space<vmem>>, vector<1x1x512xf32>
    %180 = vector.shape_cast %179 : vector<1x1x512xf32> to vector<1x512xf32>
    %181 = vector.broadcast %180 : vector<1x512xf32> to vector<8x512xf32>
    %182 = arith.mulf %178, %181 : vector<8x512xf32>
    %183 = arith.addf %173, %182 : vector<8x512xf32>
    %c0_132 = arith.constant 0 : index
    %c137 = arith.constant 137 : index
    %184 = vector.load %arg10[%c0_132, %c137] : memref<4x768xf32, #tpu.memory_space<vmem>>, vector<4x512xf32>
    %185 = arith.truncf %184 : vector<4x512xf32> to vector<4x512xbf16>
    %c17 = arith.constant 17 : index
    %c0_133 = arith.constant 0 : index
    %c0_134 = arith.constant 0 : index
    %186 = vector.load %arg3[%c17, %c0_133, %c0_134] : memref<27x8x4xbf16, #tpu.memory_space<vmem>>, vector<1x8x4xbf16>
    %187 = vector.shape_cast %186 : vector<1x8x4xbf16> to vector<8x4xbf16>
    %cst_135 = arith.constant dense<0.000000e+00> : vector<8x512xf32>
    %188 = tpu.matmul %187, %185, %cst_135 {dimension_numbers = #tpu.dot_dimension_numbers<[1], [0], [0], [1], [0, 0, 1, 1], [], []>} : vector<8x4xbf16>, vector<4x512xbf16>, vector<8x512xf32> -> vector<8x512xf32>
    %c17_136 = arith.constant 17 : index
    %c0_137 = arith.constant 0 : index
    %c0_138 = arith.constant 0 : index
    %189 = vector.load %arg7[%c17_136, %c0_137, %c0_138] : memref<27x1x512xf32, #tpu.memory_space<vmem>>, vector<1x1x512xf32>
    %190 = vector.shape_cast %189 : vector<1x1x512xf32> to vector<1x512xf32>
    %191 = vector.broadcast %190 : vector<1x512xf32> to vector<8x512xf32>
    %192 = arith.mulf %188, %191 : vector<8x512xf32>
    %193 = arith.addf %183, %192 : vector<8x512xf32>
    %c0_139 = arith.constant 0 : index
    %c183 = arith.constant 183 : index
    %194 = vector.load %arg10[%c0_139, %c183] : memref<4x768xf32, #tpu.memory_space<vmem>>, vector<4x512xf32>
    %195 = arith.truncf %194 : vector<4x512xf32> to vector<4x512xbf16>
    %c18 = arith.constant 18 : index
    %c0_140 = arith.constant 0 : index
    %c0_141 = arith.constant 0 : index
    %196 = vector.load %arg3[%c18, %c0_140, %c0_141] : memref<27x8x4xbf16, #tpu.memory_space<vmem>>, vector<1x8x4xbf16>
    %197 = vector.shape_cast %196 : vector<1x8x4xbf16> to vector<8x4xbf16>
    %cst_142 = arith.constant dense<0.000000e+00> : vector<8x512xf32>
    %198 = tpu.matmul %197, %195, %cst_142 {dimension_numbers = #tpu.dot_dimension_numbers<[1], [0], [0], [1], [0, 0, 1, 1], [], []>} : vector<8x4xbf16>, vector<4x512xbf16>, vector<8x512xf32> -> vector<8x512xf32>
    %c18_143 = arith.constant 18 : index
    %c0_144 = arith.constant 0 : index
    %c0_145 = arith.constant 0 : index
    %199 = vector.load %arg7[%c18_143, %c0_144, %c0_145] : memref<27x1x512xf32, #tpu.memory_space<vmem>>, vector<1x1x512xf32>
    %200 = vector.shape_cast %199 : vector<1x1x512xf32> to vector<1x512xf32>
    %201 = vector.broadcast %200 : vector<1x512xf32> to vector<8x512xf32>
    %202 = arith.mulf %198, %201 : vector<8x512xf32>
    %203 = arith.addf %193, %202 : vector<8x512xf32>
    %c0_146 = arith.constant 0 : index
    %c184 = arith.constant 184 : index
    %204 = vector.load %arg10[%c0_146, %c184] : memref<4x768xf32, #tpu.memory_space<vmem>>, vector<4x512xf32>
    %205 = arith.truncf %204 : vector<4x512xf32> to vector<4x512xbf16>
    %c19 = arith.constant 19 : index
    %c0_147 = arith.constant 0 : index
    %c0_148 = arith.constant 0 : index
    %206 = vector.load %arg3[%c19, %c0_147, %c0_148] : memref<27x8x4xbf16, #tpu.memory_space<vmem>>, vector<1x8x4xbf16>
    %207 = vector.shape_cast %206 : vector<1x8x4xbf16> to vector<8x4xbf16>
    %cst_149 = arith.constant dense<0.000000e+00> : vector<8x512xf32>
    %208 = tpu.matmul %207, %205, %cst_149 {dimension_numbers = #tpu.dot_dimension_numbers<[1], [0], [0], [1], [0, 0, 1, 1], [], []>} : vector<8x4xbf16>, vector<4x512xbf16>, vector<8x512xf32> -> vector<8x512xf32>
    %c19_150 = arith.constant 19 : index
    %c0_151 = arith.constant 0 : index
    %c0_152 = arith.constant 0 : index
    %209 = vector.load %arg7[%c19_150, %c0_151, %c0_152] : memref<27x1x512xf32, #tpu.memory_space<vmem>>, vector<1x1x512xf32>
    %210 = vector.shape_cast %209 : vector<1x1x512xf32> to vector<1x512xf32>
    %211 = vector.broadcast %210 : vector<1x512xf32> to vector<8x512xf32>
    %212 = arith.mulf %208, %211 : vector<8x512xf32>
    %213 = arith.addf %203, %212 : vector<8x512xf32>
    %c0_153 = arith.constant 0 : index
    %c185 = arith.constant 185 : index
    %214 = vector.load %arg10[%c0_153, %c185] : memref<4x768xf32, #tpu.memory_space<vmem>>, vector<4x512xf32>
    %215 = arith.truncf %214 : vector<4x512xf32> to vector<4x512xbf16>
    %c20 = arith.constant 20 : index
    %c0_154 = arith.constant 0 : index
    %c0_155 = arith.constant 0 : index
    %216 = vector.load %arg3[%c20, %c0_154, %c0_155] : memref<27x8x4xbf16, #tpu.memory_space<vmem>>, vector<1x8x4xbf16>
    %217 = vector.shape_cast %216 : vector<1x8x4xbf16> to vector<8x4xbf16>
    %cst_156 = arith.constant dense<0.000000e+00> : vector<8x512xf32>
    %218 = tpu.matmul %217, %215, %cst_156 {dimension_numbers = #tpu.dot_dimension_numbers<[1], [0], [0], [1], [0, 0, 1, 1], [], []>} : vector<8x4xbf16>, vector<4x512xbf16>, vector<8x512xf32> -> vector<8x512xf32>
    %c20_157 = arith.constant 20 : index
    %c0_158 = arith.constant 0 : index
    %c0_159 = arith.constant 0 : index
    %219 = vector.load %arg7[%c20_157, %c0_158, %c0_159] : memref<27x1x512xf32, #tpu.memory_space<vmem>>, vector<1x1x512xf32>
    %220 = vector.shape_cast %219 : vector<1x1x512xf32> to vector<1x512xf32>
    %221 = vector.broadcast %220 : vector<1x512xf32> to vector<8x512xf32>
    %222 = arith.mulf %218, %221 : vector<8x512xf32>
    %223 = arith.addf %213, %222 : vector<8x512xf32>
    %c0_160 = arith.constant 0 : index
    %c191 = arith.constant 191 : index
    %224 = vector.load %arg10[%c0_160, %c191] : memref<4x768xf32, #tpu.memory_space<vmem>>, vector<4x512xf32>
    %225 = arith.truncf %224 : vector<4x512xf32> to vector<4x512xbf16>
    %c21 = arith.constant 21 : index
    %c0_161 = arith.constant 0 : index
    %c0_162 = arith.constant 0 : index
    %226 = vector.load %arg3[%c21, %c0_161, %c0_162] : memref<27x8x4xbf16, #tpu.memory_space<vmem>>, vector<1x8x4xbf16>
    %227 = vector.shape_cast %226 : vector<1x8x4xbf16> to vector<8x4xbf16>
    %cst_163 = arith.constant dense<0.000000e+00> : vector<8x512xf32>
    %228 = tpu.matmul %227, %225, %cst_163 {dimension_numbers = #tpu.dot_dimension_numbers<[1], [0], [0], [1], [0, 0, 1, 1], [], []>} : vector<8x4xbf16>, vector<4x512xbf16>, vector<8x512xf32> -> vector<8x512xf32>
    %c21_164 = arith.constant 21 : index
    %c0_165 = arith.constant 0 : index
    %c0_166 = arith.constant 0 : index
    %229 = vector.load %arg7[%c21_164, %c0_165, %c0_166] : memref<27x1x512xf32, #tpu.memory_space<vmem>>, vector<1x1x512xf32>
    %230 = vector.shape_cast %229 : vector<1x1x512xf32> to vector<1x512xf32>
    %231 = vector.broadcast %230 : vector<1x512xf32> to vector<8x512xf32>
    %232 = arith.mulf %228, %231 : vector<8x512xf32>
    %233 = arith.addf %223, %232 : vector<8x512xf32>
    %c0_167 = arith.constant 0 : index
    %c192 = arith.constant 192 : index
    %234 = vector.load %arg10[%c0_167, %c192] : memref<4x768xf32, #tpu.memory_space<vmem>>, vector<4x512xf32>
    %235 = arith.truncf %234 : vector<4x512xf32> to vector<4x512xbf16>
    %c22 = arith.constant 22 : index
    %c0_168 = arith.constant 0 : index
    %c0_169 = arith.constant 0 : index
    %236 = vector.load %arg3[%c22, %c0_168, %c0_169] : memref<27x8x4xbf16, #tpu.memory_space<vmem>>, vector<1x8x4xbf16>
    %237 = vector.shape_cast %236 : vector<1x8x4xbf16> to vector<8x4xbf16>
    %cst_170 = arith.constant dense<0.000000e+00> : vector<8x512xf32>
    %238 = tpu.matmul %237, %235, %cst_170 {dimension_numbers = #tpu.dot_dimension_numbers<[1], [0], [0], [1], [0, 0, 1, 1], [], []>} : vector<8x4xbf16>, vector<4x512xbf16>, vector<8x512xf32> -> vector<8x512xf32>
    %c22_171 = arith.constant 22 : index
    %c0_172 = arith.constant 0 : index
    %c0_173 = arith.constant 0 : index
    %239 = vector.load %arg7[%c22_171, %c0_172, %c0_173] : memref<27x1x512xf32, #tpu.memory_space<vmem>>, vector<1x1x512xf32>
    %240 = vector.shape_cast %239 : vector<1x1x512xf32> to vector<1x512xf32>
    %241 = vector.broadcast %240 : vector<1x512xf32> to vector<8x512xf32>
    %242 = arith.mulf %238, %241 : vector<8x512xf32>
    %243 = arith.addf %233, %242 : vector<8x512xf32>
    %c0_174 = arith.constant 0 : index
    %c193 = arith.constant 193 : index
    %244 = vector.load %arg10[%c0_174, %c193] : memref<4x768xf32, #tpu.memory_space<vmem>>, vector<4x512xf32>
    %245 = arith.truncf %244 : vector<4x512xf32> to vector<4x512xbf16>
    %c23 = arith.constant 23 : index
    %c0_175 = arith.constant 0 : index
    %c0_176 = arith.constant 0 : index
    %246 = vector.load %arg3[%c23, %c0_175, %c0_176] : memref<27x8x4xbf16, #tpu.memory_space<vmem>>, vector<1x8x4xbf16>
    %247 = vector.shape_cast %246 : vector<1x8x4xbf16> to vector<8x4xbf16>
    %cst_177 = arith.constant dense<0.000000e+00> : vector<8x512xf32>
    %248 = tpu.matmul %247, %245, %cst_177 {dimension_numbers = #tpu.dot_dimension_numbers<[1], [0], [0], [1], [0, 0, 1, 1], [], []>} : vector<8x4xbf16>, vector<4x512xbf16>, vector<8x512xf32> -> vector<8x512xf32>
    %c23_178 = arith.constant 23 : index
    %c0_179 = arith.constant 0 : index
    %c0_180 = arith.constant 0 : index
    %249 = vector.load %arg7[%c23_178, %c0_179, %c0_180] : memref<27x1x512xf32, #tpu.memory_space<vmem>>, vector<1x1x512xf32>
    %250 = vector.shape_cast %249 : vector<1x1x512xf32> to vector<1x512xf32>
    %251 = vector.broadcast %250 : vector<1x512xf32> to vector<8x512xf32>
    %252 = arith.mulf %248, %251 : vector<8x512xf32>
    %253 = arith.addf %243, %252 : vector<8x512xf32>
    %c0_181 = arith.constant 0 : index
    %c199 = arith.constant 199 : index
    %254 = vector.load %arg10[%c0_181, %c199] : memref<4x768xf32, #tpu.memory_space<vmem>>, vector<4x512xf32>
    %255 = arith.truncf %254 : vector<4x512xf32> to vector<4x512xbf16>
    %c24 = arith.constant 24 : index
    %c0_182 = arith.constant 0 : index
    %c0_183 = arith.constant 0 : index
    %256 = vector.load %arg3[%c24, %c0_182, %c0_183] : memref<27x8x4xbf16, #tpu.memory_space<vmem>>, vector<1x8x4xbf16>
    %257 = vector.shape_cast %256 : vector<1x8x4xbf16> to vector<8x4xbf16>
    %cst_184 = arith.constant dense<0.000000e+00> : vector<8x512xf32>
    %258 = tpu.matmul %257, %255, %cst_184 {dimension_numbers = #tpu.dot_dimension_numbers<[1], [0], [0], [1], [0, 0, 1, 1], [], []>} : vector<8x4xbf16>, vector<4x512xbf16>, vector<8x512xf32> -> vector<8x512xf32>
    %c24_185 = arith.constant 24 : index
    %c0_186 = arith.constant 0 : index
    %c0_187 = arith.constant 0 : index
    %259 = vector.load %arg7[%c24_185, %c0_186, %c0_187] : memref<27x1x512xf32, #tpu.memory_space<vmem>>, vector<1x1x512xf32>
    %260 = vector.shape_cast %259 : vector<1x1x512xf32> to vector<1x512xf32>
    %261 = vector.broadcast %260 : vector<1x512xf32> to vector<8x512xf32>
    %262 = arith.mulf %258, %261 : vector<8x512xf32>
    %263 = arith.addf %253, %262 : vector<8x512xf32>
    %c0_188 = arith.constant 0 : index
    %c200 = arith.constant 200 : index
    %264 = vector.load %arg10[%c0_188, %c200] : memref<4x768xf32, #tpu.memory_space<vmem>>, vector<4x512xf32>
    %265 = arith.truncf %264 : vector<4x512xf32> to vector<4x512xbf16>
    %c25 = arith.constant 25 : index
    %c0_189 = arith.constant 0 : index
    %c0_190 = arith.constant 0 : index
    %266 = vector.load %arg3[%c25, %c0_189, %c0_190] : memref<27x8x4xbf16, #tpu.memory_space<vmem>>, vector<1x8x4xbf16>
    %267 = vector.shape_cast %266 : vector<1x8x4xbf16> to vector<8x4xbf16>
    %cst_191 = arith.constant dense<0.000000e+00> : vector<8x512xf32>
    %268 = tpu.matmul %267, %265, %cst_191 {dimension_numbers = #tpu.dot_dimension_numbers<[1], [0], [0], [1], [0, 0, 1, 1], [], []>} : vector<8x4xbf16>, vector<4x512xbf16>, vector<8x512xf32> -> vector<8x512xf32>
    %c25_192 = arith.constant 25 : index
    %c0_193 = arith.constant 0 : index
    %c0_194 = arith.constant 0 : index
    %269 = vector.load %arg7[%c25_192, %c0_193, %c0_194] : memref<27x1x512xf32, #tpu.memory_space<vmem>>, vector<1x1x512xf32>
    %270 = vector.shape_cast %269 : vector<1x1x512xf32> to vector<1x512xf32>
    %271 = vector.broadcast %270 : vector<1x512xf32> to vector<8x512xf32>
    %272 = arith.mulf %268, %271 : vector<8x512xf32>
    %273 = arith.addf %263, %272 : vector<8x512xf32>
    %c0_195 = arith.constant 0 : index
    %c201 = arith.constant 201 : index
    %274 = vector.load %arg10[%c0_195, %c201] : memref<4x768xf32, #tpu.memory_space<vmem>>, vector<4x512xf32>
    %275 = arith.truncf %274 : vector<4x512xf32> to vector<4x512xbf16>
    %c26 = arith.constant 26 : index
    %c0_196 = arith.constant 0 : index
    %c0_197 = arith.constant 0 : index
    %276 = vector.load %arg3[%c26, %c0_196, %c0_197] : memref<27x8x4xbf16, #tpu.memory_space<vmem>>, vector<1x8x4xbf16>
    %277 = vector.shape_cast %276 : vector<1x8x4xbf16> to vector<8x4xbf16>
    %cst_198 = arith.constant dense<0.000000e+00> : vector<8x512xf32>
    %278 = tpu.matmul %277, %275, %cst_198 {dimension_numbers = #tpu.dot_dimension_numbers<[1], [0], [0], [1], [0, 0, 1, 1], [], []>} : vector<8x4xbf16>, vector<4x512xbf16>, vector<8x512xf32> -> vector<8x512xf32>
    %c26_199 = arith.constant 26 : index
    %c0_200 = arith.constant 0 : index
    %c0_201 = arith.constant 0 : index
    %279 = vector.load %arg7[%c26_199, %c0_200, %c0_201] : memref<27x1x512xf32, #tpu.memory_space<vmem>>, vector<1x1x512xf32>
    %280 = vector.shape_cast %279 : vector<1x1x512xf32> to vector<1x512xf32>
    %281 = vector.broadcast %280 : vector<1x512xf32> to vector<8x512xf32>
    %282 = arith.mulf %278, %281 : vector<8x512xf32>
    %283 = arith.addf %273, %282 : vector<8x512xf32>
    %c0_202 = arith.constant 0 : index
    %c0_203 = arith.constant 0 : index
    %284 = vector.load %arg4[%c0_202, %c0_203] : memref<8x1xf32, #tpu.memory_space<vmem>>, vector<8x1xf32>
    %285 = vector.broadcast %284 : vector<8x1xf32> to vector<8x512xf32>
    %286 = arith.addf %283, %285 : vector<8x512xf32>
    %c0_204 = arith.constant 0 : index
    %c0_205 = arith.constant 0 : index
    %287 = vector.load %arg5[%c0_204, %c0_205] : memref<8x512xf32, #tpu.memory_space<vmem>>, vector<8x512xf32>
    %288 = arith.addf %286, %287 : vector<8x512xf32>
    %289 = arith.mulf %288, %288 : vector<8x512xf32>
    %cst_206 = arith.constant dense<0.000000e+00> : vector<512xf32>
    %290 = vector.multi_reduction <add>, %289, %cst_206 [0] : vector<8x512xf32> to vector<512xf32>
    %291 = vector.shape_cast %290 : vector<512xf32> to vector<1x512xf32>
    %cst_207 = arith.constant 8.000000e+00 : f32
    %292 = vector.broadcast %cst_207 : f32 to vector<1x512xf32>
    %293 = arith.divf %291, %292 : vector<1x512xf32>
    %cst_208 = arith.constant 9.99999974E-6 : f32
    %294 = vector.broadcast %cst_208 : f32 to vector<1x512xf32>
    %295 = arith.addf %293, %294 : vector<1x512xf32>
    %296 = math.rsqrt %295 : vector<1x512xf32>
    %297 = vector.broadcast %296 : vector<1x512xf32> to vector<8x512xf32>
    %298 = arith.mulf %288, %297 : vector<8x512xf32>
    %c0_209 = arith.constant 0 : index
    %c0_210 = arith.constant 0 : index
    %299 = vector.load %arg6[%c0_209, %c0_210] : memref<8x1xf32, #tpu.memory_space<vmem>>, vector<8x1xf32>
    %300 = vector.broadcast %299 : vector<8x1xf32> to vector<8x512xf32>
    %301 = arith.mulf %298, %300 : vector<8x512xf32>
    %302 = arith.addf %301, %287 : vector<8x512xf32>
    %303 = arith.addf %302, %286 : vector<8x512xf32>
    %c0_211 = arith.constant 0 : index
    %c0_212 = arith.constant 0 : index
    %c0_213 = arith.constant 0 : index
    %304 = vector.load %arg9[%c0_211, %c0_212, %c0_213] : memref<1x8x512xf32, #tpu.memory_space<vmem>>, vector<1x8x512xf32>
    %305 = vector.shape_cast %304 : vector<1x8x512xf32> to vector<8x512xf32>
    %306 = vector.shape_cast %303 : vector<8x512xf32> to vector<1x8x512xf32>
    tpu.vector_store %arg9[%c0_211, %c0_212, %c0_213], %306 {strides = array<i32>} : memref<1x8x512xf32, #tpu.memory_space<vmem>>, vector<1x8x512xf32>,
    return
  }
  func.func @transform_0(%arg0: i32) -> (i32, i32) {
    %c0_i32 = arith.constant 0 : i32
    %c0_i32_0 = arith.constant 0 : i32
    %c0_i32_1 = arith.constant 0 : i32
    return %c0_i32, %c0_i32_0 : i32, i32
  }
  func.func @transform_1(%arg0: i32) -> (i32, i32) {
    %c0_i32 = arith.constant 0 : i32
    %c0_i32_0 = arith.constant 0 : i32
    %c0_i32_1 = arith.constant 0 : i32
    return %c0_i32, %c0_i32_0 : i32, i32
  }
  func.func @transform_2(%arg0: i32) -> (i32, i32, i32) {
    %c0_i32 = arith.constant 0 : i32
    %c0_i32_0 = arith.constant 0 : i32
    %c0_i32_1 = arith.constant 0 : i32
    %c0_i32_2 = arith.constant 0 : i32
    return %c0_i32, %c0_i32_0, %c0_i32_1 : i32, i32, i32
  }
  func.func @transform_3(%arg0: i32) -> (i32, i32) {
    %c0_i32 = arith.constant 0 : i32
    %c0_i32_0 = arith.constant 0 : i32
    %c0_i32_1 = arith.constant 0 : i32
    return %c0_i32, %c0_i32_0 : i32, i32
  }
  func.func @transform_4(%arg0: i32) -> (i32, i32) {
    %c0_i32 = arith.constant 0 : i32
    %c0_i32_0 = arith.constant 0 : i32
    %c0_i32_1 = arith.constant 0 : i32
    return %c0_i32, %c0_i32_0 : i32, i32
  }
  func.func @transform_5(%arg0: i32) -> (i32, i32) {
    %c0_i32 = arith.constant 0 : i32
    %c0_i32_0 = arith.constant 0 : i32
    %c0_i32_1 = arith.constant 0 : i32
    return %c0_i32, %c0_i32_0 : i32, i32
  }
  func.func @transform_6(%arg0: i32) -> (i32, i32, i32) {
    %c0_i32 = arith.constant 0 : i32
    %c0_i32_0 = arith.constant 0 : i32
    %c0_i32_1 = arith.constant 0 : i32
    %c0_i32_2 = arith.constant 0 : i32
    return %c0_i32, %c0_i32_0, %c0_i32_1 : i32, i32, i32
  }
  func.func @transform_7(%arg0: i32) -> (i32, i32, i32) {
    %c0_i32 = arith.constant 0 : i32
    %c0_i32_0 = arith.constant 0 : i32
    %c0_i32_1 = arith.constant 0 : i32
    return %arg0, %c0_i32, %c0_i32_0 : i32, i32, i32
  }
  func.func @transform_8(%arg0: i32) -> (i32, i32, i32) {
    %c0_i32 = arith.constant 0 : i32
    %c0_i32_0 = arith.constant 0 : i32
    %c0_i32_1 = arith.constant 0 : i32
    return %arg0, %c0_i32, %c0_i32_0 : i32, i32, i32
  }
}

module attributes {stable_mosaic.version = 11 : i64} {
  func.func @kernel(%arg0: i32, %arg1: memref<12x1xf32, #tpu.memory_space<vmem>>, %arg2: memref<12x1xf32, #tpu.memory_space<vmem>>, %arg3: memref<27x8x12xbf16, #tpu.memory_space<vmem>>, %arg4: memref<8x1xf32, #tpu.memory_space<vmem>>, %arg5: memref<8x512xf32, #tpu.memory_space<vmem>>, %arg6: memref<8x1xf32, #tpu.memory_space<vmem>>, %arg7: memref<27x1x512xf32, #tpu.memory_space<vmem>>, %arg8: memref<1x4x512xf32, #tpu.memory_space<vmem>>, %arg9: memref<1x8x512xf32, #tpu.memory_space<vmem>>, %arg10: memref<1x8x512xf32, #tpu.memory_space<vmem>>, %arg11: memref<12x768xf32, #tpu.memory_space<vmem>>) attributes {dimension_semantics = [#tpu.dimension_semantics<parallel>], iteration_bounds = array<i64: 2>, scalar_prefetch = 0 : i64, scratch_operands = 1 : i64, tpu.core_type = #tpu.core_type<tc>, window_params = [{pipeline_mode = #tpu.pipeline_mode<synchronous>, transform_indices = @transform_0, window_bounds = array<i64: 12, 1>}, {pipeline_mode = #tpu.pipeline_mode<synchronous>, transform_indices = @transform_1, window_bounds = array<i64: 12, 1>}, {pipeline_mode = #tpu.pipeline_mode<synchronous>, transform_indices = @transform_2, window_bounds = array<i64: 27, 8, 12>}, {pipeline_mode = #tpu.pipeline_mode<synchronous>, transform_indices = @transform_3, window_bounds = array<i64: 8, 1>}, {pipeline_mode = #tpu.pipeline_mode<synchronous>, transform_indices = @transform_4, window_bounds = array<i64: 8, 512>}, {pipeline_mode = #tpu.pipeline_mode<synchronous>, transform_indices = @transform_5, window_bounds = array<i64: 8, 1>}, {pipeline_mode = #tpu.pipeline_mode<synchronous>, transform_indices = @transform_6, window_bounds = array<i64: 27, 1, 512>}, {transform_indices = @transform_7, window_bounds = array<i64: 1, 4, 512>}, {transform_indices = @transform_8, window_bounds = array<i64: 1, 8, 512>}, {transform_indices = @transform_9, window_bounds = array<i64: 1, 8, 512>}]} {
    %cst = arith.constant 0.000000e+00 : f32
    %0 = vector.broadcast %cst : f32 to vector<12x768xf32>
    %c0 = arith.constant 0 : index
    %c0_0 = arith.constant 0 : index
    %1 = vector.load %arg11[%c0, %c0_0] : memref<12x768xf32, #tpu.memory_space<vmem>>, vector<12x768xf32>
    tpu.vector_store %arg11[%c0, %c0_0], %0 {strides = array<i32>} : memref<12x768xf32, #tpu.memory_space<vmem>>, vector<12x768xf32>,
    %c0_1 = arith.constant 0 : index
    %c0_2 = arith.constant 0 : index
    %c0_3 = arith.constant 0 : index
    %2 = vector.load %arg8[%c0_1, %c0_2, %c0_3] : memref<1x4x512xf32, #tpu.memory_space<vmem>>, vector<1x4x512xf32>
    %3 = vector.shape_cast %2 : vector<1x4x512xf32> to vector<4x512xf32>
    %c0_4 = arith.constant 0 : index
    %c0_5 = arith.constant 0 : index
    %4 = vector.load %arg1[%c0_4, %c0_5] : memref<12x1xf32, #tpu.memory_space<vmem>>, vector<4x1xf32>
    %5 = vector.broadcast %4 : vector<4x1xf32> to vector<4x512xf32>
    %6 = arith.mulf %3, %5 : vector<4x512xf32>
    %c0_6 = arith.constant 0 : index
    %c0_7 = arith.constant 0 : index
    %7 = vector.load %arg2[%c0_6, %c0_7] : memref<12x1xf32, #tpu.memory_space<vmem>>, vector<4x1xf32>
    %8 = vector.broadcast %7 : vector<4x1xf32> to vector<4x512xf32>
    %9 = arith.addf %6, %8 : vector<4x512xf32>
    %cst_8 = arith.constant 0.000000e+00 : f32
    %10 = vector.broadcast %cst_8 : f32 to vector<4x512xf32>
    %11 = arith.maximumf %9, %10 : vector<4x512xf32>
    %c0_9 = arith.constant 0 : index
    %c128 = arith.constant 128 : index
    %12 = vector.load %arg11[%c0_9, %c128] : memref<12x768xf32, #tpu.memory_space<vmem>>, vector<4x512xf32>
    tpu.vector_store %arg11[%c0_9, %c128], %11 {strides = array<i32>} : memref<12x768xf32, #tpu.memory_space<vmem>>, vector<4x512xf32>,
    %c0_10 = arith.constant 0 : index
    %c0_11 = arith.constant 0 : index
    %c0_12 = arith.constant 0 : index
    %13 = vector.load %arg9[%c0_10, %c0_11, %c0_12] : memref<1x8x512xf32, #tpu.memory_space<vmem>>, vector<1x8x512xf32>
    %14 = vector.shape_cast %13 : vector<1x8x512xf32> to vector<8x512xf32>
    %c4 = arith.constant 4 : index
    %c0_13 = arith.constant 0 : index
    %15 = vector.load %arg1[%c4, %c0_13] : memref<12x1xf32, #tpu.memory_space<vmem>>, vector<8x1xf32>
    %16 = vector.broadcast %15 : vector<8x1xf32> to vector<8x512xf32>
    %17 = arith.mulf %14, %16 : vector<8x512xf32>
    %c4_14 = arith.constant 4 : index
    %c0_15 = arith.constant 0 : index
    %18 = vector.load %arg2[%c4_14, %c0_15] : memref<12x1xf32, #tpu.memory_space<vmem>>, vector<8x1xf32>
    %19 = vector.broadcast %18 : vector<8x1xf32> to vector<8x512xf32>
    %20 = arith.addf %17, %19 : vector<8x512xf32>
    %cst_16 = arith.constant 0.000000e+00 : f32
    %21 = vector.broadcast %cst_16 : f32 to vector<8x512xf32>
    %22 = arith.maximumf %20, %21 : vector<8x512xf32>
    %c4_17 = arith.constant 4 : index
    %c128_18 = arith.constant 128 : index
    %23 = vector.load %arg11[%c4_17, %c128_18] : memref<12x768xf32, #tpu.memory_space<vmem>>, vector<8x512xf32>
    tpu.vector_store %arg11[%c4_17, %c128_18], %22 {strides = array<i32>} : memref<12x768xf32, #tpu.memory_space<vmem>>, vector<8x512xf32>,
    %cst_19 = arith.constant 0.000000e+00 : f32
    %24 = vector.broadcast %cst_19 : f32 to vector<8x512xf32>
    %c0_20 = arith.constant 0 : index
    %c55 = arith.constant 55 : index
    %25 = vector.load %arg11[%c0_20, %c55] : memref<12x768xf32, #tpu.memory_space<vmem>>, vector<12x512xf32>
    %26 = arith.truncf %25 : vector<12x512xf32> to vector<12x512xbf16>
    %c0_21 = arith.constant 0 : index
    %c0_22 = arith.constant 0 : index
    %c0_23 = arith.constant 0 : index
    %27 = vector.load %arg3[%c0_21, %c0_22, %c0_23] : memref<27x8x12xbf16, #tpu.memory_space<vmem>>, vector<1x8x12xbf16>
    %28 = vector.shape_cast %27 : vector<1x8x12xbf16> to vector<8x12xbf16>
    %cst_24 = arith.constant dense<0.000000e+00> : vector<8x512xf32>
    %29 = tpu.matmul %28, %26, %cst_24 {dimension_numbers = #tpu.dot_dimension_numbers<[1], [0], [0], [1], [0, 0, 1, 1], [], []>} : vector<8x12xbf16>, vector<12x512xbf16>, vector<8x512xf32> -> vector<8x512xf32>
    %c0_25 = arith.constant 0 : index
    %c0_26 = arith.constant 0 : index
    %c0_27 = arith.constant 0 : index
    %30 = vector.load %arg7[%c0_25, %c0_26, %c0_27] : memref<27x1x512xf32, #tpu.memory_space<vmem>>, vector<1x1x512xf32>
    %31 = vector.shape_cast %30 : vector<1x1x512xf32> to vector<1x512xf32>
    %32 = vector.broadcast %31 : vector<1x512xf32> to vector<8x512xf32>
    %33 = arith.mulf %29, %32 : vector<8x512xf32>
    %34 = arith.addf %24, %33 : vector<8x512xf32>
    %c0_28 = arith.constant 0 : index
    %c56 = arith.constant 56 : index
    %35 = vector.load %arg11[%c0_28, %c56] : memref<12x768xf32, #tpu.memory_space<vmem>>, vector<12x512xf32>
    %36 = arith.truncf %35 : vector<12x512xf32> to vector<12x512xbf16>
    %c1 = arith.constant 1 : index
    %c0_29 = arith.constant 0 : index
    %c0_30 = arith.constant 0 : index
    %37 = vector.load %arg3[%c1, %c0_29, %c0_30] : memref<27x8x12xbf16, #tpu.memory_space<vmem>>, vector<1x8x12xbf16>
    %38 = vector.shape_cast %37 : vector<1x8x12xbf16> to vector<8x12xbf16>
    %cst_31 = arith.constant dense<0.000000e+00> : vector<8x512xf32>
    %39 = tpu.matmul %38, %36, %cst_31 {dimension_numbers = #tpu.dot_dimension_numbers<[1], [0], [0], [1], [0, 0, 1, 1], [], []>} : vector<8x12xbf16>, vector<12x512xbf16>, vector<8x512xf32> -> vector<8x512xf32>
    %c1_32 = arith.constant 1 : index
    %c0_33 = arith.constant 0 : index
    %c0_34 = arith.constant 0 : index
    %40 = vector.load %arg7[%c1_32, %c0_33, %c0_34] : memref<27x1x512xf32, #tpu.memory_space<vmem>>, vector<1x1x512xf32>
    %41 = vector.shape_cast %40 : vector<1x1x512xf32> to vector<1x512xf32>
    %42 = vector.broadcast %41 : vector<1x512xf32> to vector<8x512xf32>
    %43 = arith.mulf %39, %42 : vector<8x512xf32>
    %44 = arith.addf %34, %43 : vector<8x512xf32>
    %c0_35 = arith.constant 0 : index
    %c57 = arith.constant 57 : index
    %45 = vector.load %arg11[%c0_35, %c57] : memref<12x768xf32, #tpu.memory_space<vmem>>, vector<12x512xf32>
    %46 = arith.truncf %45 : vector<12x512xf32> to vector<12x512xbf16>
    %c2 = arith.constant 2 : index
    %c0_36 = arith.constant 0 : index
    %c0_37 = arith.constant 0 : index
    %47 = vector.load %arg3[%c2, %c0_36, %c0_37] : memref<27x8x12xbf16, #tpu.memory_space<vmem>>, vector<1x8x12xbf16>
    %48 = vector.shape_cast %47 : vector<1x8x12xbf16> to vector<8x12xbf16>
    %cst_38 = arith.constant dense<0.000000e+00> : vector<8x512xf32>
    %49 = tpu.matmul %48, %46, %cst_38 {dimension_numbers = #tpu.dot_dimension_numbers<[1], [0], [0], [1], [0, 0, 1, 1], [], []>} : vector<8x12xbf16>, vector<12x512xbf16>, vector<8x512xf32> -> vector<8x512xf32>
    %c2_39 = arith.constant 2 : index
    %c0_40 = arith.constant 0 : index
    %c0_41 = arith.constant 0 : index
    %50 = vector.load %arg7[%c2_39, %c0_40, %c0_41] : memref<27x1x512xf32, #tpu.memory_space<vmem>>, vector<1x1x512xf32>
    %51 = vector.shape_cast %50 : vector<1x1x512xf32> to vector<1x512xf32>
    %52 = vector.broadcast %51 : vector<1x512xf32> to vector<8x512xf32>
    %53 = arith.mulf %49, %52 : vector<8x512xf32>
    %54 = arith.addf %44, %53 : vector<8x512xf32>
    %c0_42 = arith.constant 0 : index
    %c63 = arith.constant 63 : index
    %55 = vector.load %arg11[%c0_42, %c63] : memref<12x768xf32, #tpu.memory_space<vmem>>, vector<12x512xf32>
    %56 = arith.truncf %55 : vector<12x512xf32> to vector<12x512xbf16>
    %c3 = arith.constant 3 : index
    %c0_43 = arith.constant 0 : index
    %c0_44 = arith.constant 0 : index
    %57 = vector.load %arg3[%c3, %c0_43, %c0_44] : memref<27x8x12xbf16, #tpu.memory_space<vmem>>, vector<1x8x12xbf16>
    %58 = vector.shape_cast %57 : vector<1x8x12xbf16> to vector<8x12xbf16>
    %cst_45 = arith.constant dense<0.000000e+00> : vector<8x512xf32>
    %59 = tpu.matmul %58, %56, %cst_45 {dimension_numbers = #tpu.dot_dimension_numbers<[1], [0], [0], [1], [0, 0, 1, 1], [], []>} : vector<8x12xbf16>, vector<12x512xbf16>, vector<8x512xf32> -> vector<8x512xf32>
    %c3_46 = arith.constant 3 : index
    %c0_47 = arith.constant 0 : index
    %c0_48 = arith.constant 0 : index
    %60 = vector.load %arg7[%c3_46, %c0_47, %c0_48] : memref<27x1x512xf32, #tpu.memory_space<vmem>>, vector<1x1x512xf32>
    %61 = vector.shape_cast %60 : vector<1x1x512xf32> to vector<1x512xf32>
    %62 = vector.broadcast %61 : vector<1x512xf32> to vector<8x512xf32>
    %63 = arith.mulf %59, %62 : vector<8x512xf32>
    %64 = arith.addf %54, %63 : vector<8x512xf32>
    %c0_49 = arith.constant 0 : index
    %c64 = arith.constant 64 : index
    %65 = vector.load %arg11[%c0_49, %c64] : memref<12x768xf32, #tpu.memory_space<vmem>>, vector<12x512xf32>
    %66 = arith.truncf %65 : vector<12x512xf32> to vector<12x512xbf16>
    %c4_50 = arith.constant 4 : index
    %c0_51 = arith.constant 0 : index
    %c0_52 = arith.constant 0 : index
    %67 = vector.load %arg3[%c4_50, %c0_51, %c0_52] : memref<27x8x12xbf16, #tpu.memory_space<vmem>>, vector<1x8x12xbf16>
    %68 = vector.shape_cast %67 : vector<1x8x12xbf16> to vector<8x12xbf16>
    %cst_53 = arith.constant dense<0.000000e+00> : vector<8x512xf32>
    %69 = tpu.matmul %68, %66, %cst_53 {dimension_numbers = #tpu.dot_dimension_numbers<[1], [0], [0], [1], [0, 0, 1, 1], [], []>} : vector<8x12xbf16>, vector<12x512xbf16>, vector<8x512xf32> -> vector<8x512xf32>
    %c4_54 = arith.constant 4 : index
    %c0_55 = arith.constant 0 : index
    %c0_56 = arith.constant 0 : index
    %70 = vector.load %arg7[%c4_54, %c0_55, %c0_56] : memref<27x1x512xf32, #tpu.memory_space<vmem>>, vector<1x1x512xf32>
    %71 = vector.shape_cast %70 : vector<1x1x512xf32> to vector<1x512xf32>
    %72 = vector.broadcast %71 : vector<1x512xf32> to vector<8x512xf32>
    %73 = arith.mulf %69, %72 : vector<8x512xf32>
    %74 = arith.addf %64, %73 : vector<8x512xf32>
    %c0_57 = arith.constant 0 : index
    %c65 = arith.constant 65 : index
    %75 = vector.load %arg11[%c0_57, %c65] : memref<12x768xf32, #tpu.memory_space<vmem>>, vector<12x512xf32>
    %76 = arith.truncf %75 : vector<12x512xf32> to vector<12x512xbf16>
    %c5 = arith.constant 5 : index
    %c0_58 = arith.constant 0 : index
    %c0_59 = arith.constant 0 : index
    %77 = vector.load %arg3[%c5, %c0_58, %c0_59] : memref<27x8x12xbf16, #tpu.memory_space<vmem>>, vector<1x8x12xbf16>
    %78 = vector.shape_cast %77 : vector<1x8x12xbf16> to vector<8x12xbf16>
    %cst_60 = arith.constant dense<0.000000e+00> : vector<8x512xf32>
    %79 = tpu.matmul %78, %76, %cst_60 {dimension_numbers = #tpu.dot_dimension_numbers<[1], [0], [0], [1], [0, 0, 1, 1], [], []>} : vector<8x12xbf16>, vector<12x512xbf16>, vector<8x512xf32> -> vector<8x512xf32>
    %c5_61 = arith.constant 5 : index
    %c0_62 = arith.constant 0 : index
    %c0_63 = arith.constant 0 : index
    %80 = vector.load %arg7[%c5_61, %c0_62, %c0_63] : memref<27x1x512xf32, #tpu.memory_space<vmem>>, vector<1x1x512xf32>
    %81 = vector.shape_cast %80 : vector<1x1x512xf32> to vector<1x512xf32>
    %82 = vector.broadcast %81 : vector<1x512xf32> to vector<8x512xf32>
    %83 = arith.mulf %79, %82 : vector<8x512xf32>
    %84 = arith.addf %74, %83 : vector<8x512xf32>
    %c0_64 = arith.constant 0 : index
    %c71 = arith.constant 71 : index
    %85 = vector.load %arg11[%c0_64, %c71] : memref<12x768xf32, #tpu.memory_space<vmem>>, vector<12x512xf32>
    %86 = arith.truncf %85 : vector<12x512xf32> to vector<12x512xbf16>
    %c6 = arith.constant 6 : index
    %c0_65 = arith.constant 0 : index
    %c0_66 = arith.constant 0 : index
    %87 = vector.load %arg3[%c6, %c0_65, %c0_66] : memref<27x8x12xbf16, #tpu.memory_space<vmem>>, vector<1x8x12xbf16>
    %88 = vector.shape_cast %87 : vector<1x8x12xbf16> to vector<8x12xbf16>
    %cst_67 = arith.constant dense<0.000000e+00> : vector<8x512xf32>
    %89 = tpu.matmul %88, %86, %cst_67 {dimension_numbers = #tpu.dot_dimension_numbers<[1], [0], [0], [1], [0, 0, 1, 1], [], []>} : vector<8x12xbf16>, vector<12x512xbf16>, vector<8x512xf32> -> vector<8x512xf32>
    %c6_68 = arith.constant 6 : index
    %c0_69 = arith.constant 0 : index
    %c0_70 = arith.constant 0 : index
    %90 = vector.load %arg7[%c6_68, %c0_69, %c0_70] : memref<27x1x512xf32, #tpu.memory_space<vmem>>, vector<1x1x512xf32>
    %91 = vector.shape_cast %90 : vector<1x1x512xf32> to vector<1x512xf32>
    %92 = vector.broadcast %91 : vector<1x512xf32> to vector<8x512xf32>
    %93 = arith.mulf %89, %92 : vector<8x512xf32>
    %94 = arith.addf %84, %93 : vector<8x512xf32>
    %c0_71 = arith.constant 0 : index
    %c72 = arith.constant 72 : index
    %95 = vector.load %arg11[%c0_71, %c72] : memref<12x768xf32, #tpu.memory_space<vmem>>, vector<12x512xf32>
    %96 = arith.truncf %95 : vector<12x512xf32> to vector<12x512xbf16>
    %c7 = arith.constant 7 : index
    %c0_72 = arith.constant 0 : index
    %c0_73 = arith.constant 0 : index
    %97 = vector.load %arg3[%c7, %c0_72, %c0_73] : memref<27x8x12xbf16, #tpu.memory_space<vmem>>, vector<1x8x12xbf16>
    %98 = vector.shape_cast %97 : vector<1x8x12xbf16> to vector<8x12xbf16>
    %cst_74 = arith.constant dense<0.000000e+00> : vector<8x512xf32>
    %99 = tpu.matmul %98, %96, %cst_74 {dimension_numbers = #tpu.dot_dimension_numbers<[1], [0], [0], [1], [0, 0, 1, 1], [], []>} : vector<8x12xbf16>, vector<12x512xbf16>, vector<8x512xf32> -> vector<8x512xf32>
    %c7_75 = arith.constant 7 : index
    %c0_76 = arith.constant 0 : index
    %c0_77 = arith.constant 0 : index
    %100 = vector.load %arg7[%c7_75, %c0_76, %c0_77] : memref<27x1x512xf32, #tpu.memory_space<vmem>>, vector<1x1x512xf32>
    %101 = vector.shape_cast %100 : vector<1x1x512xf32> to vector<1x512xf32>
    %102 = vector.broadcast %101 : vector<1x512xf32> to vector<8x512xf32>
    %103 = arith.mulf %99, %102 : vector<8x512xf32>
    %104 = arith.addf %94, %103 : vector<8x512xf32>
    %c0_78 = arith.constant 0 : index
    %c73 = arith.constant 73 : index
    %105 = vector.load %arg11[%c0_78, %c73] : memref<12x768xf32, #tpu.memory_space<vmem>>, vector<12x512xf32>
    %106 = arith.truncf %105 : vector<12x512xf32> to vector<12x512xbf16>
    %c8 = arith.constant 8 : index
    %c0_79 = arith.constant 0 : index
    %c0_80 = arith.constant 0 : index
    %107 = vector.load %arg3[%c8, %c0_79, %c0_80] : memref<27x8x12xbf16, #tpu.memory_space<vmem>>, vector<1x8x12xbf16>
    %108 = vector.shape_cast %107 : vector<1x8x12xbf16> to vector<8x12xbf16>
    %cst_81 = arith.constant dense<0.000000e+00> : vector<8x512xf32>
    %109 = tpu.matmul %108, %106, %cst_81 {dimension_numbers = #tpu.dot_dimension_numbers<[1], [0], [0], [1], [0, 0, 1, 1], [], []>} : vector<8x12xbf16>, vector<12x512xbf16>, vector<8x512xf32> -> vector<8x512xf32>
    %c8_82 = arith.constant 8 : index
    %c0_83 = arith.constant 0 : index
    %c0_84 = arith.constant 0 : index
    %110 = vector.load %arg7[%c8_82, %c0_83, %c0_84] : memref<27x1x512xf32, #tpu.memory_space<vmem>>, vector<1x1x512xf32>
    %111 = vector.shape_cast %110 : vector<1x1x512xf32> to vector<1x512xf32>
    %112 = vector.broadcast %111 : vector<1x512xf32> to vector<8x512xf32>
    %113 = arith.mulf %109, %112 : vector<8x512xf32>
    %114 = arith.addf %104, %113 : vector<8x512xf32>
    %c0_85 = arith.constant 0 : index
    %c119 = arith.constant 119 : index
    %115 = vector.load %arg11[%c0_85, %c119] : memref<12x768xf32, #tpu.memory_space<vmem>>, vector<12x512xf32>
    %116 = arith.truncf %115 : vector<12x512xf32> to vector<12x512xbf16>
    %c9 = arith.constant 9 : index
    %c0_86 = arith.constant 0 : index
    %c0_87 = arith.constant 0 : index
    %117 = vector.load %arg3[%c9, %c0_86, %c0_87] : memref<27x8x12xbf16, #tpu.memory_space<vmem>>, vector<1x8x12xbf16>
    %118 = vector.shape_cast %117 : vector<1x8x12xbf16> to vector<8x12xbf16>
    %cst_88 = arith.constant dense<0.000000e+00> : vector<8x512xf32>
    %119 = tpu.matmul %118, %116, %cst_88 {dimension_numbers = #tpu.dot_dimension_numbers<[1], [0], [0], [1], [0, 0, 1, 1], [], []>} : vector<8x12xbf16>, vector<12x512xbf16>, vector<8x512xf32> -> vector<8x512xf32>
    %c9_89 = arith.constant 9 : index
    %c0_90 = arith.constant 0 : index
    %c0_91 = arith.constant 0 : index
    %120 = vector.load %arg7[%c9_89, %c0_90, %c0_91] : memref<27x1x512xf32, #tpu.memory_space<vmem>>, vector<1x1x512xf32>
    %121 = vector.shape_cast %120 : vector<1x1x512xf32> to vector<1x512xf32>
    %122 = vector.broadcast %121 : vector<1x512xf32> to vector<8x512xf32>
    %123 = arith.mulf %119, %122 : vector<8x512xf32>
    %124 = arith.addf %114, %123 : vector<8x512xf32>
    %c0_92 = arith.constant 0 : index
    %c120 = arith.constant 120 : index
    %125 = vector.load %arg11[%c0_92, %c120] : memref<12x768xf32, #tpu.memory_space<vmem>>, vector<12x512xf32>
    %126 = arith.truncf %125 : vector<12x512xf32> to vector<12x512xbf16>
    %c10 = arith.constant 10 : index
    %c0_93 = arith.constant 0 : index
    %c0_94 = arith.constant 0 : index
    %127 = vector.load %arg3[%c10, %c0_93, %c0_94] : memref<27x8x12xbf16, #tpu.memory_space<vmem>>, vector<1x8x12xbf16>
    %128 = vector.shape_cast %127 : vector<1x8x12xbf16> to vector<8x12xbf16>
    %cst_95 = arith.constant dense<0.000000e+00> : vector<8x512xf32>
    %129 = tpu.matmul %128, %126, %cst_95 {dimension_numbers = #tpu.dot_dimension_numbers<[1], [0], [0], [1], [0, 0, 1, 1], [], []>} : vector<8x12xbf16>, vector<12x512xbf16>, vector<8x512xf32> -> vector<8x512xf32>
    %c10_96 = arith.constant 10 : index
    %c0_97 = arith.constant 0 : index
    %c0_98 = arith.constant 0 : index
    %130 = vector.load %arg7[%c10_96, %c0_97, %c0_98] : memref<27x1x512xf32, #tpu.memory_space<vmem>>, vector<1x1x512xf32>
    %131 = vector.shape_cast %130 : vector<1x1x512xf32> to vector<1x512xf32>
    %132 = vector.broadcast %131 : vector<1x512xf32> to vector<8x512xf32>
    %133 = arith.mulf %129, %132 : vector<8x512xf32>
    %134 = arith.addf %124, %133 : vector<8x512xf32>
    %c0_99 = arith.constant 0 : index
    %c121 = arith.constant 121 : index
    %135 = vector.load %arg11[%c0_99, %c121] : memref<12x768xf32, #tpu.memory_space<vmem>>, vector<12x512xf32>
    %136 = arith.truncf %135 : vector<12x512xf32> to vector<12x512xbf16>
    %c11 = arith.constant 11 : index
    %c0_100 = arith.constant 0 : index
    %c0_101 = arith.constant 0 : index
    %137 = vector.load %arg3[%c11, %c0_100, %c0_101] : memref<27x8x12xbf16, #tpu.memory_space<vmem>>, vector<1x8x12xbf16>
    %138 = vector.shape_cast %137 : vector<1x8x12xbf16> to vector<8x12xbf16>
    %cst_102 = arith.constant dense<0.000000e+00> : vector<8x512xf32>
    %139 = tpu.matmul %138, %136, %cst_102 {dimension_numbers = #tpu.dot_dimension_numbers<[1], [0], [0], [1], [0, 0, 1, 1], [], []>} : vector<8x12xbf16>, vector<12x512xbf16>, vector<8x512xf32> -> vector<8x512xf32>
    %c11_103 = arith.constant 11 : index
    %c0_104 = arith.constant 0 : index
    %c0_105 = arith.constant 0 : index
    %140 = vector.load %arg7[%c11_103, %c0_104, %c0_105] : memref<27x1x512xf32, #tpu.memory_space<vmem>>, vector<1x1x512xf32>
    %141 = vector.shape_cast %140 : vector<1x1x512xf32> to vector<1x512xf32>
    %142 = vector.broadcast %141 : vector<1x512xf32> to vector<8x512xf32>
    %143 = arith.mulf %139, %142 : vector<8x512xf32>
    %144 = arith.addf %134, %143 : vector<8x512xf32>
    %c0_106 = arith.constant 0 : index
    %c127 = arith.constant 127 : index
    %145 = vector.load %arg11[%c0_106, %c127] : memref<12x768xf32, #tpu.memory_space<vmem>>, vector<12x512xf32>
    %146 = arith.truncf %145 : vector<12x512xf32> to vector<12x512xbf16>
    %c12 = arith.constant 12 : index
    %c0_107 = arith.constant 0 : index
    %c0_108 = arith.constant 0 : index
    %147 = vector.load %arg3[%c12, %c0_107, %c0_108] : memref<27x8x12xbf16, #tpu.memory_space<vmem>>, vector<1x8x12xbf16>
    %148 = vector.shape_cast %147 : vector<1x8x12xbf16> to vector<8x12xbf16>
    %cst_109 = arith.constant dense<0.000000e+00> : vector<8x512xf32>
    %149 = tpu.matmul %148, %146, %cst_109 {dimension_numbers = #tpu.dot_dimension_numbers<[1], [0], [0], [1], [0, 0, 1, 1], [], []>} : vector<8x12xbf16>, vector<12x512xbf16>, vector<8x512xf32> -> vector<8x512xf32>
    %c12_110 = arith.constant 12 : index
    %c0_111 = arith.constant 0 : index
    %c0_112 = arith.constant 0 : index
    %150 = vector.load %arg7[%c12_110, %c0_111, %c0_112] : memref<27x1x512xf32, #tpu.memory_space<vmem>>, vector<1x1x512xf32>
    %151 = vector.shape_cast %150 : vector<1x1x512xf32> to vector<1x512xf32>
    %152 = vector.broadcast %151 : vector<1x512xf32> to vector<8x512xf32>
    %153 = arith.mulf %149, %152 : vector<8x512xf32>
    %154 = arith.addf %144, %153 : vector<8x512xf32>
    %c0_113 = arith.constant 0 : index
    %c128_114 = arith.constant 128 : index
    %155 = vector.load %arg11[%c0_113, %c128_114] : memref<12x768xf32, #tpu.memory_space<vmem>>, vector<12x512xf32>
    %156 = arith.truncf %155 : vector<12x512xf32> to vector<12x512xbf16>
    %c13 = arith.constant 13 : index
    %c0_115 = arith.constant 0 : index
    %c0_116 = arith.constant 0 : index
    %157 = vector.load %arg3[%c13, %c0_115, %c0_116] : memref<27x8x12xbf16, #tpu.memory_space<vmem>>, vector<1x8x12xbf16>
    %158 = vector.shape_cast %157 : vector<1x8x12xbf16> to vector<8x12xbf16>
    %cst_117 = arith.constant dense<0.000000e+00> : vector<8x512xf32>
    %159 = tpu.matmul %158, %156, %cst_117 {dimension_numbers = #tpu.dot_dimension_numbers<[1], [0], [0], [1], [0, 0, 1, 1], [], []>} : vector<8x12xbf16>, vector<12x512xbf16>, vector<8x512xf32> -> vector<8x512xf32>
    %c13_118 = arith.constant 13 : index
    %c0_119 = arith.constant 0 : index
    %c0_120 = arith.constant 0 : index
    %160 = vector.load %arg7[%c13_118, %c0_119, %c0_120] : memref<27x1x512xf32, #tpu.memory_space<vmem>>, vector<1x1x512xf32>
    %161 = vector.shape_cast %160 : vector<1x1x512xf32> to vector<1x512xf32>
    %162 = vector.broadcast %161 : vector<1x512xf32> to vector<8x512xf32>
    %163 = arith.mulf %159, %162 : vector<8x512xf32>
    %164 = arith.addf %154, %163 : vector<8x512xf32>
    %c0_121 = arith.constant 0 : index
    %c129 = arith.constant 129 : index
    %165 = vector.load %arg11[%c0_121, %c129] : memref<12x768xf32, #tpu.memory_space<vmem>>, vector<12x512xf32>
    %166 = arith.truncf %165 : vector<12x512xf32> to vector<12x512xbf16>
    %c14 = arith.constant 14 : index
    %c0_122 = arith.constant 0 : index
    %c0_123 = arith.constant 0 : index
    %167 = vector.load %arg3[%c14, %c0_122, %c0_123] : memref<27x8x12xbf16, #tpu.memory_space<vmem>>, vector<1x8x12xbf16>
    %168 = vector.shape_cast %167 : vector<1x8x12xbf16> to vector<8x12xbf16>
    %cst_124 = arith.constant dense<0.000000e+00> : vector<8x512xf32>
    %169 = tpu.matmul %168, %166, %cst_124 {dimension_numbers = #tpu.dot_dimension_numbers<[1], [0], [0], [1], [0, 0, 1, 1], [], []>} : vector<8x12xbf16>, vector<12x512xbf16>, vector<8x512xf32> -> vector<8x512xf32>
    %c14_125 = arith.constant 14 : index
    %c0_126 = arith.constant 0 : index
    %c0_127 = arith.constant 0 : index
    %170 = vector.load %arg7[%c14_125, %c0_126, %c0_127] : memref<27x1x512xf32, #tpu.memory_space<vmem>>, vector<1x1x512xf32>
    %171 = vector.shape_cast %170 : vector<1x1x512xf32> to vector<1x512xf32>
    %172 = vector.broadcast %171 : vector<1x512xf32> to vector<8x512xf32>
    %173 = arith.mulf %169, %172 : vector<8x512xf32>
    %174 = arith.addf %164, %173 : vector<8x512xf32>
    %c0_128 = arith.constant 0 : index
    %c135 = arith.constant 135 : index
    %175 = vector.load %arg11[%c0_128, %c135] : memref<12x768xf32, #tpu.memory_space<vmem>>, vector<12x512xf32>
    %176 = arith.truncf %175 : vector<12x512xf32> to vector<12x512xbf16>
    %c15 = arith.constant 15 : index
    %c0_129 = arith.constant 0 : index
    %c0_130 = arith.constant 0 : index
    %177 = vector.load %arg3[%c15, %c0_129, %c0_130] : memref<27x8x12xbf16, #tpu.memory_space<vmem>>, vector<1x8x12xbf16>
    %178 = vector.shape_cast %177 : vector<1x8x12xbf16> to vector<8x12xbf16>
    %cst_131 = arith.constant dense<0.000000e+00> : vector<8x512xf32>
    %179 = tpu.matmul %178, %176, %cst_131 {dimension_numbers = #tpu.dot_dimension_numbers<[1], [0], [0], [1], [0, 0, 1, 1], [], []>} : vector<8x12xbf16>, vector<12x512xbf16>, vector<8x512xf32> -> vector<8x512xf32>
    %c15_132 = arith.constant 15 : index
    %c0_133 = arith.constant 0 : index
    %c0_134 = arith.constant 0 : index
    %180 = vector.load %arg7[%c15_132, %c0_133, %c0_134] : memref<27x1x512xf32, #tpu.memory_space<vmem>>, vector<1x1x512xf32>
    %181 = vector.shape_cast %180 : vector<1x1x512xf32> to vector<1x512xf32>
    %182 = vector.broadcast %181 : vector<1x512xf32> to vector<8x512xf32>
    %183 = arith.mulf %179, %182 : vector<8x512xf32>
    %184 = arith.addf %174, %183 : vector<8x512xf32>
    %c0_135 = arith.constant 0 : index
    %c136 = arith.constant 136 : index
    %185 = vector.load %arg11[%c0_135, %c136] : memref<12x768xf32, #tpu.memory_space<vmem>>, vector<12x512xf32>
    %186 = arith.truncf %185 : vector<12x512xf32> to vector<12x512xbf16>
    %c16 = arith.constant 16 : index
    %c0_136 = arith.constant 0 : index
    %c0_137 = arith.constant 0 : index
    %187 = vector.load %arg3[%c16, %c0_136, %c0_137] : memref<27x8x12xbf16, #tpu.memory_space<vmem>>, vector<1x8x12xbf16>
    %188 = vector.shape_cast %187 : vector<1x8x12xbf16> to vector<8x12xbf16>
    %cst_138 = arith.constant dense<0.000000e+00> : vector<8x512xf32>
    %189 = tpu.matmul %188, %186, %cst_138 {dimension_numbers = #tpu.dot_dimension_numbers<[1], [0], [0], [1], [0, 0, 1, 1], [], []>} : vector<8x12xbf16>, vector<12x512xbf16>, vector<8x512xf32> -> vector<8x512xf32>
    %c16_139 = arith.constant 16 : index
    %c0_140 = arith.constant 0 : index
    %c0_141 = arith.constant 0 : index
    %190 = vector.load %arg7[%c16_139, %c0_140, %c0_141] : memref<27x1x512xf32, #tpu.memory_space<vmem>>, vector<1x1x512xf32>
    %191 = vector.shape_cast %190 : vector<1x1x512xf32> to vector<1x512xf32>
    %192 = vector.broadcast %191 : vector<1x512xf32> to vector<8x512xf32>
    %193 = arith.mulf %189, %192 : vector<8x512xf32>
    %194 = arith.addf %184, %193 : vector<8x512xf32>
    %c0_142 = arith.constant 0 : index
    %c137 = arith.constant 137 : index
    %195 = vector.load %arg11[%c0_142, %c137] : memref<12x768xf32, #tpu.memory_space<vmem>>, vector<12x512xf32>
    %196 = arith.truncf %195 : vector<12x512xf32> to vector<12x512xbf16>
    %c17 = arith.constant 17 : index
    %c0_143 = arith.constant 0 : index
    %c0_144 = arith.constant 0 : index
    %197 = vector.load %arg3[%c17, %c0_143, %c0_144] : memref<27x8x12xbf16, #tpu.memory_space<vmem>>, vector<1x8x12xbf16>
    %198 = vector.shape_cast %197 : vector<1x8x12xbf16> to vector<8x12xbf16>
    %cst_145 = arith.constant dense<0.000000e+00> : vector<8x512xf32>
    %199 = tpu.matmul %198, %196, %cst_145 {dimension_numbers = #tpu.dot_dimension_numbers<[1], [0], [0], [1], [0, 0, 1, 1], [], []>} : vector<8x12xbf16>, vector<12x512xbf16>, vector<8x512xf32> -> vector<8x512xf32>
    %c17_146 = arith.constant 17 : index
    %c0_147 = arith.constant 0 : index
    %c0_148 = arith.constant 0 : index
    %200 = vector.load %arg7[%c17_146, %c0_147, %c0_148] : memref<27x1x512xf32, #tpu.memory_space<vmem>>, vector<1x1x512xf32>
    %201 = vector.shape_cast %200 : vector<1x1x512xf32> to vector<1x512xf32>
    %202 = vector.broadcast %201 : vector<1x512xf32> to vector<8x512xf32>
    %203 = arith.mulf %199, %202 : vector<8x512xf32>
    %204 = arith.addf %194, %203 : vector<8x512xf32>
    %c0_149 = arith.constant 0 : index
    %c183 = arith.constant 183 : index
    %205 = vector.load %arg11[%c0_149, %c183] : memref<12x768xf32, #tpu.memory_space<vmem>>, vector<12x512xf32>
    %206 = arith.truncf %205 : vector<12x512xf32> to vector<12x512xbf16>
    %c18 = arith.constant 18 : index
    %c0_150 = arith.constant 0 : index
    %c0_151 = arith.constant 0 : index
    %207 = vector.load %arg3[%c18, %c0_150, %c0_151] : memref<27x8x12xbf16, #tpu.memory_space<vmem>>, vector<1x8x12xbf16>
    %208 = vector.shape_cast %207 : vector<1x8x12xbf16> to vector<8x12xbf16>
    %cst_152 = arith.constant dense<0.000000e+00> : vector<8x512xf32>
    %209 = tpu.matmul %208, %206, %cst_152 {dimension_numbers = #tpu.dot_dimension_numbers<[1], [0], [0], [1], [0, 0, 1, 1], [], []>} : vector<8x12xbf16>, vector<12x512xbf16>, vector<8x512xf32> -> vector<8x512xf32>
    %c18_153 = arith.constant 18 : index
    %c0_154 = arith.constant 0 : index
    %c0_155 = arith.constant 0 : index
    %210 = vector.load %arg7[%c18_153, %c0_154, %c0_155] : memref<27x1x512xf32, #tpu.memory_space<vmem>>, vector<1x1x512xf32>
    %211 = vector.shape_cast %210 : vector<1x1x512xf32> to vector<1x512xf32>
    %212 = vector.broadcast %211 : vector<1x512xf32> to vector<8x512xf32>
    %213 = arith.mulf %209, %212 : vector<8x512xf32>
    %214 = arith.addf %204, %213 : vector<8x512xf32>
    %c0_156 = arith.constant 0 : index
    %c184 = arith.constant 184 : index
    %215 = vector.load %arg11[%c0_156, %c184] : memref<12x768xf32, #tpu.memory_space<vmem>>, vector<12x512xf32>
    %216 = arith.truncf %215 : vector<12x512xf32> to vector<12x512xbf16>
    %c19 = arith.constant 19 : index
    %c0_157 = arith.constant 0 : index
    %c0_158 = arith.constant 0 : index
    %217 = vector.load %arg3[%c19, %c0_157, %c0_158] : memref<27x8x12xbf16, #tpu.memory_space<vmem>>, vector<1x8x12xbf16>
    %218 = vector.shape_cast %217 : vector<1x8x12xbf16> to vector<8x12xbf16>
    %cst_159 = arith.constant dense<0.000000e+00> : vector<8x512xf32>
    %219 = tpu.matmul %218, %216, %cst_159 {dimension_numbers = #tpu.dot_dimension_numbers<[1], [0], [0], [1], [0, 0, 1, 1], [], []>} : vector<8x12xbf16>, vector<12x512xbf16>, vector<8x512xf32> -> vector<8x512xf32>
    %c19_160 = arith.constant 19 : index
    %c0_161 = arith.constant 0 : index
    %c0_162 = arith.constant 0 : index
    %220 = vector.load %arg7[%c19_160, %c0_161, %c0_162] : memref<27x1x512xf32, #tpu.memory_space<vmem>>, vector<1x1x512xf32>
    %221 = vector.shape_cast %220 : vector<1x1x512xf32> to vector<1x512xf32>
    %222 = vector.broadcast %221 : vector<1x512xf32> to vector<8x512xf32>
    %223 = arith.mulf %219, %222 : vector<8x512xf32>
    %224 = arith.addf %214, %223 : vector<8x512xf32>
    %c0_163 = arith.constant 0 : index
    %c185 = arith.constant 185 : index
    %225 = vector.load %arg11[%c0_163, %c185] : memref<12x768xf32, #tpu.memory_space<vmem>>, vector<12x512xf32>
    %226 = arith.truncf %225 : vector<12x512xf32> to vector<12x512xbf16>
    %c20 = arith.constant 20 : index
    %c0_164 = arith.constant 0 : index
    %c0_165 = arith.constant 0 : index
    %227 = vector.load %arg3[%c20, %c0_164, %c0_165] : memref<27x8x12xbf16, #tpu.memory_space<vmem>>, vector<1x8x12xbf16>
    %228 = vector.shape_cast %227 : vector<1x8x12xbf16> to vector<8x12xbf16>
    %cst_166 = arith.constant dense<0.000000e+00> : vector<8x512xf32>
    %229 = tpu.matmul %228, %226, %cst_166 {dimension_numbers = #tpu.dot_dimension_numbers<[1], [0], [0], [1], [0, 0, 1, 1], [], []>} : vector<8x12xbf16>, vector<12x512xbf16>, vector<8x512xf32> -> vector<8x512xf32>
    %c20_167 = arith.constant 20 : index
    %c0_168 = arith.constant 0 : index
    %c0_169 = arith.constant 0 : index
    %230 = vector.load %arg7[%c20_167, %c0_168, %c0_169] : memref<27x1x512xf32, #tpu.memory_space<vmem>>, vector<1x1x512xf32>
    %231 = vector.shape_cast %230 : vector<1x1x512xf32> to vector<1x512xf32>
    %232 = vector.broadcast %231 : vector<1x512xf32> to vector<8x512xf32>
    %233 = arith.mulf %229, %232 : vector<8x512xf32>
    %234 = arith.addf %224, %233 : vector<8x512xf32>
    %c0_170 = arith.constant 0 : index
    %c191 = arith.constant 191 : index
    %235 = vector.load %arg11[%c0_170, %c191] : memref<12x768xf32, #tpu.memory_space<vmem>>, vector<12x512xf32>
    %236 = arith.truncf %235 : vector<12x512xf32> to vector<12x512xbf16>
    %c21 = arith.constant 21 : index
    %c0_171 = arith.constant 0 : index
    %c0_172 = arith.constant 0 : index
    %237 = vector.load %arg3[%c21, %c0_171, %c0_172] : memref<27x8x12xbf16, #tpu.memory_space<vmem>>, vector<1x8x12xbf16>
    %238 = vector.shape_cast %237 : vector<1x8x12xbf16> to vector<8x12xbf16>
    %cst_173 = arith.constant dense<0.000000e+00> : vector<8x512xf32>
    %239 = tpu.matmul %238, %236, %cst_173 {dimension_numbers = #tpu.dot_dimension_numbers<[1], [0], [0], [1], [0, 0, 1, 1], [], []>} : vector<8x12xbf16>, vector<12x512xbf16>, vector<8x512xf32> -> vector<8x512xf32>
    %c21_174 = arith.constant 21 : index
    %c0_175 = arith.constant 0 : index
    %c0_176 = arith.constant 0 : index
    %240 = vector.load %arg7[%c21_174, %c0_175, %c0_176] : memref<27x1x512xf32, #tpu.memory_space<vmem>>, vector<1x1x512xf32>
    %241 = vector.shape_cast %240 : vector<1x1x512xf32> to vector<1x512xf32>
    %242 = vector.broadcast %241 : vector<1x512xf32> to vector<8x512xf32>
    %243 = arith.mulf %239, %242 : vector<8x512xf32>
    %244 = arith.addf %234, %243 : vector<8x512xf32>
    %c0_177 = arith.constant 0 : index
    %c192 = arith.constant 192 : index
    %245 = vector.load %arg11[%c0_177, %c192] : memref<12x768xf32, #tpu.memory_space<vmem>>, vector<12x512xf32>
    %246 = arith.truncf %245 : vector<12x512xf32> to vector<12x512xbf16>
    %c22 = arith.constant 22 : index
    %c0_178 = arith.constant 0 : index
    %c0_179 = arith.constant 0 : index
    %247 = vector.load %arg3[%c22, %c0_178, %c0_179] : memref<27x8x12xbf16, #tpu.memory_space<vmem>>, vector<1x8x12xbf16>
    %248 = vector.shape_cast %247 : vector<1x8x12xbf16> to vector<8x12xbf16>
    %cst_180 = arith.constant dense<0.000000e+00> : vector<8x512xf32>
    %249 = tpu.matmul %248, %246, %cst_180 {dimension_numbers = #tpu.dot_dimension_numbers<[1], [0], [0], [1], [0, 0, 1, 1], [], []>} : vector<8x12xbf16>, vector<12x512xbf16>, vector<8x512xf32> -> vector<8x512xf32>
    %c22_181 = arith.constant 22 : index
    %c0_182 = arith.constant 0 : index
    %c0_183 = arith.constant 0 : index
    %250 = vector.load %arg7[%c22_181, %c0_182, %c0_183] : memref<27x1x512xf32, #tpu.memory_space<vmem>>, vector<1x1x512xf32>
    %251 = vector.shape_cast %250 : vector<1x1x512xf32> to vector<1x512xf32>
    %252 = vector.broadcast %251 : vector<1x512xf32> to vector<8x512xf32>
    %253 = arith.mulf %249, %252 : vector<8x512xf32>
    %254 = arith.addf %244, %253 : vector<8x512xf32>
    %c0_184 = arith.constant 0 : index
    %c193 = arith.constant 193 : index
    %255 = vector.load %arg11[%c0_184, %c193] : memref<12x768xf32, #tpu.memory_space<vmem>>, vector<12x512xf32>
    %256 = arith.truncf %255 : vector<12x512xf32> to vector<12x512xbf16>
    %c23 = arith.constant 23 : index
    %c0_185 = arith.constant 0 : index
    %c0_186 = arith.constant 0 : index
    %257 = vector.load %arg3[%c23, %c0_185, %c0_186] : memref<27x8x12xbf16, #tpu.memory_space<vmem>>, vector<1x8x12xbf16>
    %258 = vector.shape_cast %257 : vector<1x8x12xbf16> to vector<8x12xbf16>
    %cst_187 = arith.constant dense<0.000000e+00> : vector<8x512xf32>
    %259 = tpu.matmul %258, %256, %cst_187 {dimension_numbers = #tpu.dot_dimension_numbers<[1], [0], [0], [1], [0, 0, 1, 1], [], []>} : vector<8x12xbf16>, vector<12x512xbf16>, vector<8x512xf32> -> vector<8x512xf32>
    %c23_188 = arith.constant 23 : index
    %c0_189 = arith.constant 0 : index
    %c0_190 = arith.constant 0 : index
    %260 = vector.load %arg7[%c23_188, %c0_189, %c0_190] : memref<27x1x512xf32, #tpu.memory_space<vmem>>, vector<1x1x512xf32>
    %261 = vector.shape_cast %260 : vector<1x1x512xf32> to vector<1x512xf32>
    %262 = vector.broadcast %261 : vector<1x512xf32> to vector<8x512xf32>
    %263 = arith.mulf %259, %262 : vector<8x512xf32>
    %264 = arith.addf %254, %263 : vector<8x512xf32>
    %c0_191 = arith.constant 0 : index
    %c199 = arith.constant 199 : index
    %265 = vector.load %arg11[%c0_191, %c199] : memref<12x768xf32, #tpu.memory_space<vmem>>, vector<12x512xf32>
    %266 = arith.truncf %265 : vector<12x512xf32> to vector<12x512xbf16>
    %c24 = arith.constant 24 : index
    %c0_192 = arith.constant 0 : index
    %c0_193 = arith.constant 0 : index
    %267 = vector.load %arg3[%c24, %c0_192, %c0_193] : memref<27x8x12xbf16, #tpu.memory_space<vmem>>, vector<1x8x12xbf16>
    %268 = vector.shape_cast %267 : vector<1x8x12xbf16> to vector<8x12xbf16>
    %cst_194 = arith.constant dense<0.000000e+00> : vector<8x512xf32>
    %269 = tpu.matmul %268, %266, %cst_194 {dimension_numbers = #tpu.dot_dimension_numbers<[1], [0], [0], [1], [0, 0, 1, 1], [], []>} : vector<8x12xbf16>, vector<12x512xbf16>, vector<8x512xf32> -> vector<8x512xf32>
    %c24_195 = arith.constant 24 : index
    %c0_196 = arith.constant 0 : index
    %c0_197 = arith.constant 0 : index
    %270 = vector.load %arg7[%c24_195, %c0_196, %c0_197] : memref<27x1x512xf32, #tpu.memory_space<vmem>>, vector<1x1x512xf32>
    %271 = vector.shape_cast %270 : vector<1x1x512xf32> to vector<1x512xf32>
    %272 = vector.broadcast %271 : vector<1x512xf32> to vector<8x512xf32>
    %273 = arith.mulf %269, %272 : vector<8x512xf32>
    %274 = arith.addf %264, %273 : vector<8x512xf32>
    %c0_198 = arith.constant 0 : index
    %c200 = arith.constant 200 : index
    %275 = vector.load %arg11[%c0_198, %c200] : memref<12x768xf32, #tpu.memory_space<vmem>>, vector<12x512xf32>
    %276 = arith.truncf %275 : vector<12x512xf32> to vector<12x512xbf16>
    %c25 = arith.constant 25 : index
    %c0_199 = arith.constant 0 : index
    %c0_200 = arith.constant 0 : index
    %277 = vector.load %arg3[%c25, %c0_199, %c0_200] : memref<27x8x12xbf16, #tpu.memory_space<vmem>>, vector<1x8x12xbf16>
    %278 = vector.shape_cast %277 : vector<1x8x12xbf16> to vector<8x12xbf16>
    %cst_201 = arith.constant dense<0.000000e+00> : vector<8x512xf32>
    %279 = tpu.matmul %278, %276, %cst_201 {dimension_numbers = #tpu.dot_dimension_numbers<[1], [0], [0], [1], [0, 0, 1, 1], [], []>} : vector<8x12xbf16>, vector<12x512xbf16>, vector<8x512xf32> -> vector<8x512xf32>
    %c25_202 = arith.constant 25 : index
    %c0_203 = arith.constant 0 : index
    %c0_204 = arith.constant 0 : index
    %280 = vector.load %arg7[%c25_202, %c0_203, %c0_204] : memref<27x1x512xf32, #tpu.memory_space<vmem>>, vector<1x1x512xf32>
    %281 = vector.shape_cast %280 : vector<1x1x512xf32> to vector<1x512xf32>
    %282 = vector.broadcast %281 : vector<1x512xf32> to vector<8x512xf32>
    %283 = arith.mulf %279, %282 : vector<8x512xf32>
    %284 = arith.addf %274, %283 : vector<8x512xf32>
    %c0_205 = arith.constant 0 : index
    %c201 = arith.constant 201 : index
    %285 = vector.load %arg11[%c0_205, %c201] : memref<12x768xf32, #tpu.memory_space<vmem>>, vector<12x512xf32>
    %286 = arith.truncf %285 : vector<12x512xf32> to vector<12x512xbf16>
    %c26 = arith.constant 26 : index
    %c0_206 = arith.constant 0 : index
    %c0_207 = arith.constant 0 : index
    %287 = vector.load %arg3[%c26, %c0_206, %c0_207] : memref<27x8x12xbf16, #tpu.memory_space<vmem>>, vector<1x8x12xbf16>
    %288 = vector.shape_cast %287 : vector<1x8x12xbf16> to vector<8x12xbf16>
    %cst_208 = arith.constant dense<0.000000e+00> : vector<8x512xf32>
    %289 = tpu.matmul %288, %286, %cst_208 {dimension_numbers = #tpu.dot_dimension_numbers<[1], [0], [0], [1], [0, 0, 1, 1], [], []>} : vector<8x12xbf16>, vector<12x512xbf16>, vector<8x512xf32> -> vector<8x512xf32>
    %c26_209 = arith.constant 26 : index
    %c0_210 = arith.constant 0 : index
    %c0_211 = arith.constant 0 : index
    %290 = vector.load %arg7[%c26_209, %c0_210, %c0_211] : memref<27x1x512xf32, #tpu.memory_space<vmem>>, vector<1x1x512xf32>
    %291 = vector.shape_cast %290 : vector<1x1x512xf32> to vector<1x512xf32>
    %292 = vector.broadcast %291 : vector<1x512xf32> to vector<8x512xf32>
    %293 = arith.mulf %289, %292 : vector<8x512xf32>
    %294 = arith.addf %284, %293 : vector<8x512xf32>
    %c0_212 = arith.constant 0 : index
    %c0_213 = arith.constant 0 : index
    %295 = vector.load %arg4[%c0_212, %c0_213] : memref<8x1xf32, #tpu.memory_space<vmem>>, vector<8x1xf32>
    %296 = vector.broadcast %295 : vector<8x1xf32> to vector<8x512xf32>
    %297 = arith.addf %294, %296 : vector<8x512xf32>
    %c0_214 = arith.constant 0 : index
    %c0_215 = arith.constant 0 : index
    %298 = vector.load %arg5[%c0_214, %c0_215] : memref<8x512xf32, #tpu.memory_space<vmem>>, vector<8x512xf32>
    %299 = arith.addf %297, %298 : vector<8x512xf32>
    %300 = arith.mulf %299, %299 : vector<8x512xf32>
    %cst_216 = arith.constant dense<0.000000e+00> : vector<512xf32>
    %301 = vector.multi_reduction <add>, %300, %cst_216 [0] : vector<8x512xf32> to vector<512xf32>
    %302 = vector.shape_cast %301 : vector<512xf32> to vector<1x512xf32>
    %cst_217 = arith.constant 8.000000e+00 : f32
    %303 = vector.broadcast %cst_217 : f32 to vector<1x512xf32>
    %304 = arith.divf %302, %303 : vector<1x512xf32>
    %cst_218 = arith.constant 9.99999974E-6 : f32
    %305 = vector.broadcast %cst_218 : f32 to vector<1x512xf32>
    %306 = arith.addf %304, %305 : vector<1x512xf32>
    %307 = math.rsqrt %306 : vector<1x512xf32>
    %308 = vector.broadcast %307 : vector<1x512xf32> to vector<8x512xf32>
    %309 = arith.mulf %299, %308 : vector<8x512xf32>
    %c0_219 = arith.constant 0 : index
    %c0_220 = arith.constant 0 : index
    %310 = vector.load %arg6[%c0_219, %c0_220] : memref<8x1xf32, #tpu.memory_space<vmem>>, vector<8x1xf32>
    %311 = vector.broadcast %310 : vector<8x1xf32> to vector<8x512xf32>
    %312 = arith.mulf %309, %311 : vector<8x512xf32>
    %313 = arith.addf %312, %298 : vector<8x512xf32>
    %314 = arith.addf %313, %297 : vector<8x512xf32>
    %c0_221 = arith.constant 0 : index
    %c0_222 = arith.constant 0 : index
    %c0_223 = arith.constant 0 : index
    %315 = vector.load %arg10[%c0_221, %c0_222, %c0_223] : memref<1x8x512xf32, #tpu.memory_space<vmem>>, vector<1x8x512xf32>
    %316 = vector.shape_cast %315 : vector<1x8x512xf32> to vector<8x512xf32>
    %317 = vector.shape_cast %314 : vector<8x512xf32> to vector<1x8x512xf32>
    tpu.vector_store %arg10[%c0_221, %c0_222, %c0_223], %317 {strides = array<i32>} : memref<1x8x512xf32, #tpu.memory_space<vmem>>, vector<1x8x512xf32>,
    return
  }
  func.func @transform_0(%arg0: i32) -> (i32, i32) {
    %c0_i32 = arith.constant 0 : i32
    %c0_i32_0 = arith.constant 0 : i32
    %c0_i32_1 = arith.constant 0 : i32
    return %c0_i32, %c0_i32_0 : i32, i32
  }
  func.func @transform_1(%arg0: i32) -> (i32, i32) {
    %c0_i32 = arith.constant 0 : i32
    %c0_i32_0 = arith.constant 0 : i32
    %c0_i32_1 = arith.constant 0 : i32
    return %c0_i32, %c0_i32_0 : i32, i32
  }
  func.func @transform_2(%arg0: i32) -> (i32, i32, i32) {
    %c0_i32 = arith.constant 0 : i32
    %c0_i32_0 = arith.constant 0 : i32
    %c0_i32_1 = arith.constant 0 : i32
    %c0_i32_2 = arith.constant 0 : i32
    return %c0_i32, %c0_i32_0, %c0_i32_1 : i32, i32, i32
  }
  func.func @transform_3(%arg0: i32) -> (i32, i32) {
    %c0_i32 = arith.constant 0 : i32
    %c0_i32_0 = arith.constant 0 : i32
    %c0_i32_1 = arith.constant 0 : i32
    return %c0_i32, %c0_i32_0 : i32, i32
  }
  func.func @transform_4(%arg0: i32) -> (i32, i32) {
    %c0_i32 = arith.constant 0 : i32
    %c0_i32_0 = arith.constant 0 : i32
    %c0_i32_1 = arith.constant 0 : i32
    return %c0_i32, %c0_i32_0 : i32, i32
  }
  func.func @transform_5(%arg0: i32) -> (i32, i32) {
    %c0_i32 = arith.constant 0 : i32
    %c0_i32_0 = arith.constant 0 : i32
    %c0_i32_1 = arith.constant 0 : i32
    return %c0_i32, %c0_i32_0 : i32, i32
  }
  func.func @transform_6(%arg0: i32) -> (i32, i32, i32) {
    %c0_i32 = arith.constant 0 : i32
    %c0_i32_0 = arith.constant 0 : i32
    %c0_i32_1 = arith.constant 0 : i32
    %c0_i32_2 = arith.constant 0 : i32
    return %c0_i32, %c0_i32_0, %c0_i32_1 : i32, i32, i32
  }
  func.func @transform_7(%arg0: i32) -> (i32, i32, i32) {
    %c0_i32 = arith.constant 0 : i32
    %c0_i32_0 = arith.constant 0 : i32
    %c0_i32_1 = arith.constant 0 : i32
    return %arg0, %c0_i32, %c0_i32_0 : i32, i32, i32
  }
  func.func @transform_8(%arg0: i32) -> (i32, i32, i32) {
    %c0_i32 = arith.constant 0 : i32
    %c0_i32_0 = arith.constant 0 : i32
    %c0_i32_1 = arith.constant 0 : i32
    return %arg0, %c0_i32, %c0_i32_0 : i32, i32, i32
  }
  func.func @transform_9(%arg0: i32) -> (i32, i32, i32) {
    %c0_i32 = arith.constant 0 : i32
    %c0_i32_0 = arith.constant 0 : i32
    %c0_i32_1 = arith.constant 0 : i32
    return %arg0, %c0_i32, %c0_i32_0 : i32, i32, i32
  }
}

</mosaic_0001>

<bundles_post_ra>
// kernel: dense_feature_stack.3
= control target key start
LH: loop header
LB: loop body
LE: loop exit
PB: predicated region body
PF: predicated region fallthrough
CT: control target
= control target key end

     0   :  { %s4833_s30 = smov 0   ;;  %s5984_s0 = inlined_call_operand.vmem [shape: f32[12,1], index: 0, kind: input, shape index: {}]   ;;  %s5985_s1 = inlined_call_operand.vmem [shape: f32[12,1], index: 1, kind: input, shape index: {}]   ;;  %s5986_s2 = inlined_call_operand.vmem [shape: bf16[27,8,12], index: 2, kind: input, shape index: {}]   ;;  %s5987_s3 = inlined_call_operand.vmem [shape: f32[8,1], index: 3, kind: input, shape index: {}]   ;;  %s5988_s4 = inlined_call_operand.vmem [shape: f32[8,512], index: 4, kind: input, shape index: {}]   ;;  %s5989_s5 = inlined_call_operand.vmem [shape: f32[8,1], index: 5, kind: input, shape index: {}]   ;;  %s5990_s6 = inlined_call_operand.vmem [shape: f32[27,1,512], index: 6, kind: input, shape index: {}]   ;;  %s5991_s7 = inlined_call_operand.vmem [shape: f32[2,4,512], index: 7, kind: input, shape index: {}]   ;;  %s5992_s8 = inlined_call_operand.vmem [shape: f32[2,8,512], index: 8, kind: input, shape index: {}]   ;;  %s5993_s9 = inlined_call_operand.vmem [shape: f32[2,8,512], index: 9, kind: output, shape index: {}]  }
   0x1 LB: > { %s4541_s10 = sadd.s32 4294967295, %s4761_s30   ;;  %p4545_p0 = scmp.ge.s32.totalorder %s4761_s30, 1  ;;  %s4761_s30 = sphi %s4833_s30, %s19_s30  }
   0x2   : > { %p297_p1 = scmp.lt.s32.totalorder %s4761_s30, 3 }
   0x4   : > { %p298_p2 = pnand %p4545_p0, %p297_p1 }
   0x5   : > { %v414_v0 = vld [vmem:[%s5984_s0 + $0x4] sm:$0xff] (!%p298_p2)  ;;  %v368_v1 = vld [vmem:[%s5984_s0] sm:$0xf] (!%p298_p2)  ;;  %v4763_v2 = vmov (!%p298_p2), 0   ;;  %v4764_v3 = vmov (!%p298_p2), 0.0   ;;  %s4765_s19 = smov (!%p298_p2), 72   ;;  %v376_v10 = vlaneseq (!%p298_p2) }
   0x6   : > { %301 = sbr.rel (%p298_p2) target bundleno = 779 (0x30b), region = 56  ;;  %4746 = vset.pattern.permute.xlu1 (!%p298_p2), %v4763_v2  ;;  %4745 = vset.pattern.permute.xlu0 (!%p298_p2), %v4763_v2  ;;  %360 = vst [vmem:[#allocation2 + $0x30] sm:$0xf] (!%p298_p2), %v4764_v3  ;;  %361 = vst [vmem:[#allocation2 + $0x38] sm:$0xf] (!%p298_p2), %v4764_v3  ;;  %v424_v4 = vld [vmem:[%s5985_s1 + $0x4] sm:$0xff] (!%p298_p2) }
   0x7   : > { %417 = vperm.xlu1 (!%p298_p2), %4746, %v414_v0   ;;  %371 = vperm.xlu0 (!%p298_p2), %4745, %v368_v1   ;;  %362 = vst [vmem:[#allocation2 + $0x40] sm:$0xf] (!%p298_p2), %v4764_v3  ;;  %363 = vst [vmem:[#allocation2 + $0x48] sm:$0xf] (!%p298_p2), %v4764_v3  ;;  %v383_v5 = vld [vmem:[%s5985_s1] sm:$0xf] (!%p298_p2) }
   0x8   : > { %364 = vst [vmem:[#allocation2 + $0x50] sm:$0xf] (!%p298_p2), %v4764_v3  ;;  %365 = vst [vmem:[#allocation2 + $0x58] sm:$0xf] (!%p298_p2), %v4764_v3  ;;  %543 = vmatprep.mubr.bf16.mxu0 (!%p298_p2), %v4763_v2  ;;  %584 = vmatprep.mubr.bf16.mxu1 (!%p298_p2), %v4763_v2  ;;  %s4766_s20 = smov (!%p298_p2), 73   ;;  %s4767_s21 = smov (!%p298_p2), 65  }
   0x9   : > { %355 = vst [vmem:[#allocation2 + $0x8] sm:$0xff] (!%p298_p2), %v4764_v3  ;;  %356 = vst [vmem:[#allocation2 + $0x10] sm:$0xff] (!%p298_p2), %v4764_v3  ;;  %s4768_s22 = smov (!%p298_p2), 71   ;;  %s4769_s23 = smov (!%p298_p2), 63   ;;  %v4773_v8 = vmov (!%p298_p2), 839922192  }
   0xa   : > { %357 = vst [vmem:[#allocation2 + $0x18] sm:$0xff] (!%p298_p2), %v4764_v3  ;;  %358 = vst [vmem:[#allocation2 + $0x20] sm:$0xff] (!%p298_p2), %v4764_v3  ;;  %s4770_s24 = smov (!%p298_p2), 64   ;;  %s4771_s25 = smov (!%p298_p2), 56   ;;  %v374_v9 = vunpack.c.l.s4 (!%p298_p2), %v4773_v8  ;;  %v4893_v12 = vshrl.u32 (!%p298_p2), %v376_v10, 7  ;;  %vm489_vm0 = vcmask (!%p298_p2), 596992  }
   0xb   : > { %427 = vperm.xlu1 (!%p298_p2), %4746, %v424_v4   ;;  %386 = vperm.xlu0 (!%p298_p2), %4745, %v383_v5   ;;  %s4772_s26 = smov (!%p298_p2), 57   ;;  %p338_p3 = scmp.lt.s32.totalorder (!%p298_p2), %s4541_s10, 1  ;;  %vm498_vm1 = vcmask (!%p298_p2), 1045504   ;;  %vm494_vm2 = vcmask (!%p298_p2), 97280   ;;  %vm635_vm3 = vcmask (!%p298_p2), 588800   ;;  %vm780_vm4 = vcmask (!%p298_p2), 580608  }
   0xc   : > { %v375_v11 = vunpack.c.0.s8 (!%p298_p2), %v374_v9  ;;  %s4774_s16 = smov (!%p298_p2), 55   ;;  %s4775_s17 = smov (!%p298_p2), 9   ;;  %vm925_vm5 = vcmask (!%p298_p2), 531456   ;;  %vm1070_vm6 = vcmask (!%p298_p2), 523264   ;;  %vm1215_vm7 = vcmask (!%p298_p2), 515072  }
   0xd   : > { %v463_v6 = vld [vmem:[#allocation2 + $0x30] sm:$0xf]  ;;  %s5995_s10 = smov (!%p338_p3, %s4541_s10), 1  ;;  %s4776_s18 = smov 8   ;;  %vm1360_vm8 = vcmask 465920   ;;  %vm1505_vm9 = vcmask 457728  }
   0xe   : > { %v4868_v7 = vpack.c.bf16 %v463_v6, %v4764_v3  ;;  %s4715_s27 = sshll.u32 %s5995_s10, 5  ;;  %s4714_s12 = sshll.u32 %s5995_s10, 4  ;;  %v378_v13 = vsub.s32 %v375_v11, %v4893_v12  ;;  %vm1650_vm10 = vcmask 449536   ;;  %vm1795_vm11 = vcmask 72704  }
   0xf   : > { %s347_s11 = scalar_lea.vmem %s5992_s8, %s4715_s27  ;;  %s342_s15 = scalar_lea.vmem %s5991_s7, %s4714_s12  ;;  %v2502_v9 = vld [vmem:[#allocation2 + $0x58] sm:$0xf]  ;;  %vm1940_vm12 = vcmask 64512   ;;  %vm2085_vm13 = vcmask 56320   ;;  %vm2230_vm14 = vcmask 7168   ;;  %vm2525_vm15 = vcmask 1039360  }
  0x10   : > { %625 = vrot.lane.b32.xlu1 %v4868_v7, %s4765_s19  ;;  %479 = vrot.lane.b32.xlu0 %v4868_v7, %s4766_s20  ;;  %v410_v14 = vld [vmem:[%s347_s11] sm:$0xff]  ;;  %v411_v17 = vld [vmem:[%s347_s11 + $0x8] sm:$0xff]  ;;  %s4777_s28 = smov 7   ;;  %s4778_s29 = smov 1  }
  0x11   : > { %v412_v18 = vld [vmem:[%s347_s11 + $0x10] sm:$0xff]  ;;  %v413_v19 = vld [vmem:[%s347_s11 + $0x18] sm:$0xff]  ;;  %v366_v21 = vld [vmem:[%s342_s15] sm:$0xff]  ;;  %s4779_s11 = smov 127   ;;  %s4780_s12 = smov 121  }
  0x12   : > { %v367_v22 = vld [vmem:[%s342_s15 + $0x8] sm:$0xff]  ;;  %s4781_s13 = smov 120   ;;  %s4782_s14 = smov 119  }
  0x14   : > { %915 = vrot.lane.b32.xlu1 %v4868_v7, %s4767_s21  ;;  %770 = vrot.lane.b32.xlu0 %v4868_v7, %s4768_s22 }
  0x18   : > { %1205 = vrot.lane.b32.xlu1 %v4868_v7, %s4769_s23  ;;  %1060 = vrot.lane.b32.xlu0 %v4868_v7, %s4770_s24 }
  0x1c   : > { %1495 = vrot.lane.b32.xlu1 %v4868_v7, %s4771_s25  ;;  %1350 = vrot.lane.b32.xlu0 %v4868_v7, %s4772_s26 }
  0x86   : > { %v418_v15 = vpop.permute.xlu1 %417  ;;  %v372_v16 = vpop.permute.xlu0 %371 }
  0x87   : > { %v379_v20 = vrot.slane %v372_v16, %v378_v13  ;;  %v420_v23 = vmul.f32 %v418_v15, %v410_v14  ;;  %v421_v24 = vmul.f32 %v418_v15, %v411_v17  ;;  %v422_v25 = vmul.f32 %v418_v15, %v412_v18 }
  0x88   : > { %v423_v26 = vmul.f32 %v418_v15, %v413_v19  ;;  %v5060_v14 = vpack.c.bf16 %v2502_v9, %v4764_v3  ;;  %v4562_v9 = vld [vmem:[%s5986_s2 + $0x8] sm:$0xf] }
  0x89   : > { %v381_v33 = vmul.f32 %v379_v20, %v366_v21  ;;  %v382_v34 = vmul.f32 %v379_v20, %v367_v22 }
  0x8a   : > { %v428_v27 = vpop.permute.xlu1 %427  ;;  %v387_v28 = vpop.permute.xlu0 %386 }
  0x8b   : > { %v430_v29 = vadd.f32 %v428_v27, %v420_v23  ;;  %v431_v30 = vadd.f32 %v428_v27, %v421_v24  ;;  %v432_v31 = vadd.f32 %v428_v27, %v422_v25  ;;  %v433_v32 = vadd.f32 %v428_v27, %v423_v26 }
  0x8c   : > { %v394_v35 = vrot.slane %v387_v28, %v378_v13 }
  0x8d   : > { %v434_v36 = vmax.f32 %v430_v29, 0.0  ;;  %v435_v37 = vmax.f32 %v431_v30, 0.0  ;;  %v436_v38 = vmax.f32 %v432_v31, 0.0  ;;  %v437_v39 = vmax.f32 %v433_v32, 0.0 }
  0x8e   : > { %v396_v40 = vadd.f32 %v394_v35, %v381_v33  ;;  %v397_v41 = vadd.f32 %v394_v35, %v382_v34  ;;  %v5017_v62 = vpop.permute.xlu0 %479  ;;  %v5019_v63 = vpop.permute.xlu1 %625 }
  0x8f   : > { %v442_v42 = vrot.slane %v434_v36, 4  ;;  %v443_v43 = vrot.slane %v435_v37, 4  ;;  %v444_v44 = vrot.slane %v436_v38, 4  ;;  %v445_v45 = vrot.slane %v437_v39, 4  ;;  %v473_v37 = vld [vmem:[%s5986_s2] sm:$0xf] }
  0x90   : > { %v398_v46 = vmax.f32 %v396_v40, 0.0  ;;  %v399_v47 = vmax.f32 %v397_v41, 0.0 }
  0x91   : > { %454 = vst [vmem:[#allocation2 + $0x38] sm:$0xf] %v442_v42  ;;  %455 = vst [vmem:[#allocation2 + $0x40] sm:$0xf] %v443_v43 }
  0x92   : > { %456 = vst [vmem:[#allocation2 + $0x48] sm:$0xf] %v444_v44  ;;  %457 = vst [vmem:[#allocation2 + $0x50] sm:$0xf] %v445_v45  ;;  %v402_v48 = vcombine.high %v398_v46, %v398_v46  ;;  %v403_v49 = vcombine.high %v399_v47, %v399_v47  ;;  %v5030_v4 = vpop.permute.xlu0 %770  ;;  %v5034_v5 = vpop.permute.xlu1 %915 }
  0x93   : > { %450 = vst [vmem:[#allocation2 + $0x8] sm:$0xf0] %v442_v42  ;;  %451 = vst [vmem:[#allocation2 + $0x10] sm:$0xf0] %v443_v43 }
  0x94   : > { %452 = vst [vmem:[#allocation2 + $0x18] sm:$0xf0] %v444_v44  ;;  %453 = vst [vmem:[#allocation2 + $0x20] sm:$0xf0] %v445_v45 }
  0x95   : > { %406 = vst [vmem:[#allocation2 + $0x8] sm:$0xf] %v398_v46  ;;  %408 = vst [vmem:[#allocation2 + $0x18] sm:$0xf] %v399_v47 }
  0x96   : > { %407 = vst [vmem:[#allocation2 + $0x10] sm:$0xf] %v402_v48  ;;  %409 = vst [vmem:[#allocation2 + $0x20] sm:$0xf] %v403_v49  ;;  %v5040_v6 = vpop.permute.xlu0 %1060 }
  0x98   : > { %v464_v50 = vld [vmem:[#allocation2 + $0x38] sm:$0xf]  ;;  %v465_v57 = vld [vmem:[#allocation2 + $0x40] sm:$0xf] }
  0x99   : > { %v466_v54 = vld [vmem:[#allocation2 + $0x48] sm:$0xf]  ;;  %v467_v60 = vld [vmem:[#allocation2 + $0x50] sm:$0xf]  ;;  %v2498_v0 = vld [vmem:[#allocation2 + $0x38] sm:$0xf] }
  0x9a   : > { %v2500_v8 = vld [vmem:[#allocation2 + $0x48] sm:$0xf]  ;;  %v5053_v11 = vpop.permute.xlu0 %1350  ;;  %v2499_v17 = vld [vmem:[#allocation2 + $0x40] sm:$0xf]  ;;  %v2501_v20 = vld [vmem:[#allocation2 + $0x50] sm:$0xf] }
  0x9c   : > { %v4905_v51 = vld [vmem:[#allocation2 + $0x8] sm:$0xff]  ;;  %v4910_v53 = vld [vmem:[#allocation2 + $0x18] sm:$0xff] }
  0x9d   : > { %v4908_v52 = vpack.c.bf16 %v464_v50, %v4905_v51  ;;  %v4917_v55 = vpack.c.bf16 %v466_v54, %v4910_v53  ;;  %v4939_v56 = vld [vmem:[#allocation2 + $0x10] sm:$0xff]  ;;  %v4948_v59 = vld [vmem:[#allocation2 + $0x20] sm:$0xff]  ;;  %v5026_v1 = vpack.c.bf16 %v2498_v0, %v4905_v51  ;;  %v5049_v10 = vpack.c.bf16 %v2500_v8, %v4910_v53 }
  0x9e   : > { %v4946_v58 = vpack.c.bf16 %v465_v57, %v4939_v56  ;;  %v4955_v61 = vpack.c.bf16 %v467_v60, %v4948_v59  ;;  %v5073_v18 = vpack.c.bf16 %v2499_v17, %v4939_v56  ;;  %v5082_v21 = vpack.c.bf16 %v2501_v20, %v4948_v59  ;;  %v4556_v51 = vld [vmem:[%s5986_s2 + $0x4] sm:$0xf] }
  0x9f   : > { %627 = vrot.lane.b32.xlu0 %v4908_v52, %s4765_s19  ;;  %481 = vrot.lane.b32.xlu1 %v4908_v52, %s4766_s20 }
  0xa3   : > { %631 = vrot.lane.b32.xlu0 %v4917_v55, %s4765_s19  ;;  %485 = vrot.lane.b32.xlu1 %v4917_v55, %s4766_s20 }
  0xa7   : > { %917 = vrot.lane.b32.xlu0 %v4908_v52, %s4767_s21  ;;  %772 = vrot.lane.b32.xlu1 %v4908_v52, %s4768_s22 }
  0xab   : > { %921 = vrot.lane.b32.xlu0 %v4917_v55, %s4767_s21  ;;  %776 = vrot.lane.b32.xlu1 %v4917_v55, %s4768_s22 }
  0xaf   : > { %1207 = vrot.lane.b32.xlu0 %v4908_v52, %s4769_s23  ;;  %1062 = vrot.lane.b32.xlu1 %v4908_v52, %s4770_s24 }
  0xb3   : > { %1211 = vrot.lane.b32.xlu0 %v4917_v55, %s4769_s23  ;;  %1066 = vrot.lane.b32.xlu1 %v4917_v55, %s4770_s24 }
  0xb7   : > { %1497 = vrot.lane.b32.xlu0 %v4908_v52, %s4771_s25  ;;  %1352 = vrot.lane.b32.xlu1 %v4908_v52, %s4772_s26 }
  0xbb   : > { %483 = vrot.lane.b32.xlu0 %v4946_v58, %s4766_s20  ;;  %1356 = vrot.lane.b32.xlu1 %v4917_v55, %s4772_s26 }
  0xbf   : > { %487 = vrot.lane.b32.xlu0 %v4955_v61, %s4766_s20  ;;  %1642 = vrot.lane.b32.xlu1 %v4908_v52, %s4774_s16 }
  0xc3   : > { %1501 = vrot.lane.b32.xlu0 %v4917_v55, %s4771_s25  ;;  %629 = vrot.lane.b32.xlu1 %v4946_v58, %s4765_s19 }
  0xc7   : > { %1640 = vrot.lane.b32.xlu0 %v4868_v7, %s4774_s16  ;;  %633 = vrot.lane.b32.xlu1 %v4955_v61, %s4765_s19 }
  0xcb   : > { %774 = vrot.lane.b32.xlu0 %v4946_v58, %s4768_s22  ;;  %1646 = vrot.lane.b32.xlu1 %v4917_v55, %s4774_s16 }
  0xcf   : > { %778 = vrot.lane.b32.xlu0 %v4955_v61, %s4768_s22  ;;  %1785 = vrot.lane.b32.xlu1 %v4868_v7, %s4775_s17 }
  0xd3   : > { %1787 = vrot.lane.b32.xlu0 %v4908_v52, %s4775_s17  ;;  %919 = vrot.lane.b32.xlu1 %v4946_v58, %s4767_s21 }
  0xd7   : > { %1791 = vrot.lane.b32.xlu0 %v4917_v55, %s4775_s17  ;;  %923 = vrot.lane.b32.xlu1 %v4955_v61, %s4767_s21 }
  0xdb   : > { %1064 = vrot.lane.b32.xlu0 %v4946_v58, %s4770_s24  ;;  %1932 = vrot.lane.b32.xlu1 %v4908_v52, %s4776_s18 }
  0xdf   : > { %1068 = vrot.lane.b32.xlu0 %v4955_v61, %s4770_s24  ;;  %1936 = vrot.lane.b32.xlu1 %v4917_v55, %s4776_s18 }
  0xe3   : > { %1930 = vrot.lane.b32.xlu0 %v4868_v7, %s4776_s18  ;;  %1209 = vrot.lane.b32.xlu1 %v4946_v58, %s4769_s23 }
  0xe7   : > { %2077 = vrot.lane.b32.xlu0 %v4908_v52, %s4777_s28  ;;  %1213 = vrot.lane.b32.xlu1 %v4955_v61, %s4769_s23 }
  0xeb   : > { %1354 = vrot.lane.b32.xlu0 %v4946_v58, %s4772_s26  ;;  %2075 = vrot.lane.b32.xlu1 %v4868_v7, %s4777_s28 }
  0xef   : > { %1358 = vrot.lane.b32.xlu0 %v4955_v61, %s4772_s26  ;;  %2222 = vrot.lane.b32.xlu1 %v4908_v52, %s4778_s29 }
  0xf3   : > { %2081 = vrot.lane.b32.xlu0 %v4917_v55, %s4777_s28  ;;  %1499 = vrot.lane.b32.xlu1 %v4946_v58, %s4771_s25 }
  0xf7   : > { %2220 = vrot.lane.b32.xlu0 %v4868_v7, %s4778_s29  ;;  %1503 = vrot.lane.b32.xlu1 %v4955_v61, %s4771_s25  ;;  %v5042_v7 = vpop.permute.xlu1 %1205 }
  0xfb   : > { %1644 = vrot.lane.b32.xlu0 %v4946_v58, %s4774_s16  ;;  %2226 = vrot.lane.b32.xlu1 %v4917_v55, %s4778_s29  ;;  %v5057_v13 = vpop.permute.xlu1 %1495 }
  0xff   : > { %1648 = vrot.lane.b32.xlu0 %v4955_v61, %s4774_s16  ;;  %2515 = vrot.lane.b32.xlu1 %v5026_v1, %s4779_s11 }
 0x103   : > { %2660 = vrot.lane.b32.xlu0 %v5026_v1, %s4780_s12  ;;  %1789 = vrot.lane.b32.xlu1 %v4946_v58, %s4775_s17 }
 0x107   : > { %1934 = vrot.lane.b32.xlu0 %v4946_v58, %s4776_s18  ;;  %1793 = vrot.lane.b32.xlu1 %v4955_v61, %s4775_s17  ;;  %s352_s17 = scalar_lea.vmem %s5993_s9, %s4715_s27 }
 0x10b   : > { %1938 = vrot.lane.b32.xlu0 %v4955_v61, %s4776_s18  ;;  %2519 = vrot.lane.b32.xlu1 %v5049_v10, %s4779_s11 }
 0x10f   : > { %2224 = vrot.lane.b32.xlu0 %v4946_v58, %s4778_s29  ;;  %2523 = vrot.lane.b32.xlu1 %v5060_v14, %s4779_s11 }
 0x111   : > { %v5066_v15 = vpop.permute.xlu0 %627  ;;  %v482_v16 = vpop.permute.xlu1 %481 }
 0x112   : > { %v490_v32 = vsel %vm489_vm0, %v5017_v62, %v482_v16  ;;  %v636_v44 = vsel %vm635_vm3, %v5019_v63, %v5066_v15 }
 0x113   : > { %2228 = vrot.lane.b32.xlu0 %v4955_v61, %s4778_s29  ;;  %2079 = vrot.lane.b32.xlu1 %v4946_v58, %s4777_s28  ;;  %v500_v36 = vsel %vm498_vm1, %v490_v32, 0  ;;  %v644_v48 = vsel %vm498_vm1, %v636_v44, 0 }
 0x115   : > { %v5075_v3 = vpop.permute.xlu0 %631  ;;  %v486_v19 = vpop.permute.xlu1 %485 }
 0x117   : > { %2517 = vrot.lane.b32.xlu0 %v5073_v18, %s4779_s11  ;;  %2083 = vrot.lane.b32.xlu1 %v4955_v61, %s4777_s28 }
 0x119   : > { %v5084_v22 = vpop.permute.xlu0 %917  ;;  %v5086_v23 = vpop.permute.xlu1 %772 }
 0x11a   : > { %v781_v56 = vsel %vm780_vm4, %v5030_v4, %v5086_v23  ;;  %v926_v17 = vsel %vm925_vm5, %v5034_v5, %v5084_v22 }
 0x11b   : > { %2521 = vrot.lane.b32.xlu0 %v5082_v21, %s4779_s11  ;;  %2662 = vrot.lane.b32.xlu1 %v5073_v18, %s4780_s12  ;;  %v789_v63 = vsel %vm498_vm1, %v781_v56, 0  ;;  %v934_v5 = vsel %vm498_vm1, %v926_v17, 0 }
 0x11d   : > { %v5092_v24 = vpop.permute.xlu0 %921  ;;  %v5094_v25 = vpop.permute.xlu1 %776 }
 0x11f   : > { %2664 = vrot.lane.b32.xlu0 %v5049_v10, %s4780_s12  ;;  %2666 = vrot.lane.b32.xlu1 %v5082_v21, %s4780_s12 }
 0x121   : > { %v5100_v26 = vpop.permute.xlu0 %1207  ;;  %v5102_v27 = vpop.permute.xlu1 %1062 }
 0x123   : > { %2668 = vrot.lane.b32.xlu0 %v5060_v14, %s4780_s12  ;;  %2805 = vrot.lane.b32.xlu1 %v5026_v1, %s4781_s13 }
 0x125   : > { %v5107_v28 = vpop.permute.xlu0 %1211  ;;  %v5109_v29 = vpop.permute.xlu1 %1066 }
 0x127   : > { %2807 = vrot.lane.b32.xlu0 %v5073_v18, %s4781_s13  ;;  %2809 = vrot.lane.b32.xlu1 %v5049_v10, %s4781_s13 }
 0x129   : > { %v5113_v30 = vpop.permute.xlu0 %1497  ;;  %v5115_v31 = vpop.permute.xlu1 %1352 }
 0x12a   : > { %v1361_v56 = vsel %vm1360_vm8, %v5053_v11, %v5115_v31 }
 0x12b   : > { %2811 = vrot.lane.b32.xlu0 %v5082_v21, %s4781_s13  ;;  %2813 = vrot.lane.b32.xlu1 %v5060_v14, %s4781_s13  ;;  %v1369_v11 = vsel %vm498_vm1, %v1361_v56, 0 }
 0x12d   : > { %v484_v33 = vpop.permute.xlu0 %483  ;;  %v5121_v34 = vpop.permute.xlu1 %1356 }
 0x12e   : > { %v491_v35 = vsel %vm489_vm0, %v482_v16, %v484_v33  ;;  %v492_v39 = vsel %vm489_vm0, %v484_v33, %v486_v19 }
 0x12f   : > { %2950 = vrot.lane.b32.xlu0 %v5026_v1, %s4782_s14  ;;  %4552 = vmatprep.subr.msk.bf16.mxu0 %vm498_vm1, %v491_v35  ;;  %v506_v42 = vsel %vm498_vm1, %v492_v39, 0  ;;  %v1071_v35 = vsel %vm1070_vm6, %v5040_v6, %v5102_v27 }
 0x130   : > { %2952 = vrot.lane.b32.xlu1 %v5073_v18, %s4782_s14  ;;  %512 = vmatpush1.bf16.msra.mxu0 %v500_v36  ;;  %v1079_v6 = vsel %vm498_vm1, %v1071_v35, 0 }
 0x131   : > { %v488_v38 = vpop.permute.xlu0 %487  ;;  %v5132_v40 = vpop.permute.xlu1 %1642 }
 0x132   : > { %v493_v41 = vsel %vm489_vm0, %v486_v19, %v488_v38 }
 0x133   : > { %2954 = vrot.lane.b32.xlu0 %v5049_v10, %s4782_s14  ;;  %4553 = vmatmul.mubr.msk.bf16.vlgmr.msra.gmra.mrb[0].mxu0 %vm494_vm2, %v473_v37 }
 0x134   : > { %2956 = vrot.lane.b32.xlu1 %v5082_v21, %s4782_s14  ;;  %4554 = vmatprep.subr.msk.bf16.mxu1 %vm498_vm1, %v493_v41 }
 0x135   : > { %553 = vmatpush1.bf16.msra.mxu1 %v506_v42  ;;  %v5140_v43 = vpop.permute.xlu0 %1501  ;;  %687 = vmatprep.mubr.bf16.mxu0 %v4763_v2  ;;  %v630_v45 = vpop.permute.xlu1 %629  ;;  %v4574_v42 = vld [vmem:[%s5986_s2 + $0x10] sm:$0xf] }
 0x136   : > { %v637_v46 = vsel %vm635_vm3, %v5066_v15, %v630_v45  ;;  %v638_v47 = vsel %vm635_vm3, %v630_v45, %v5075_v3 }
 0x137   : > { %2958 = vrot.lane.b32.xlu0 %v5060_v14, %s4782_s14  ;;  %4557 = vmatprep.subr.msk.bf16.mxu0 %vm498_vm1, %v637_v46  ;;  %v650_v54 = vsel %vm498_vm1, %v638_v47, 0 }
 0x138   : > { %3095 = vrot.lane.b32.xlu1 %v5026_v1, %s4766_s20  ;;  %4555 = vmatmul.mubr.msk.bf16.vlgmr.msra.gmra.mrb[0].mxu1 %vm494_vm2, %v473_v37 }
 0x139   : > { %v5156_v49 = vpop.permute.xlu0 %1640  ;;  %728 = vmatprep.mubr.bf16.mxu1 %v4763_v2  ;;  %656 = vmatpush1.bf16.msra.mxu0 %v644_v48  ;;  %v634_v50 = vpop.permute.xlu1 %633 }
 0x13a   : > { %v639_v53 = vsel %vm635_vm3, %v5075_v3, %v634_v50 }
 0x13b   : > { %3097 = vrot.lane.b32.xlu0 %v5073_v18, %s4766_s20  ;;  %4559 = vmatprep.subr.msk.bf16.mxu1 %vm498_vm1, %v639_v53 }
 0x13c   : > { %3099 = vrot.lane.b32.xlu1 %v5049_v10, %s4766_s20  ;;  %4558 = vmatmul.mubr.msk.bf16.vlgmr.msra.gmra.mrb[4].mxu0 %vm494_vm2, %v4556_v51 }
 0x13d   : > { %697 = vmatpush1.bf16.msra.mxu1 %v650_v54  ;;  %v775_v57 = vpop.permute.xlu0 %774  ;;  %v5174_v59 = vpop.permute.xlu1 %1646  ;;  %832 = vmatprep.mubr.bf16.mxu0 %v4763_v2 }
 0x13e   : > { %v782_v60 = vsel %vm780_vm4, %v5086_v23, %v775_v57  ;;  %v783_v62 = vsel %vm780_vm4, %v775_v57, %v5094_v25 }
 0x13f   : > { %3101 = vrot.lane.b32.xlu0 %v5082_v21, %s4766_s20  ;;  %4563 = vmatprep.subr.msk.bf16.mxu0 %vm498_vm1, %v782_v60  ;;  %v795_v15 = vsel %vm498_vm1, %v783_v62, 0 }
 0x140   : > { %3103 = vrot.lane.b32.xlu1 %v5060_v14, %s4766_s20  ;;  %4560 = vmatmul.mubr.msk.bf16.vlgmr.msra.gmra.mrb[4].mxu1 %vm494_vm2, %v4556_v51  ;;  %v4580_v51 = vld [vmem:[%s5986_s2 + $0x14] sm:$0xf] }
 0x141   : > { %801 = vmatpush1.bf16.msra.mxu0 %v789_v63  ;;  %v779_v0 = vpop.permute.xlu0 %778  ;;  %873 = vmatprep.mubr.bf16.mxu1 %v4763_v2  ;;  %v5189_v4 = vpop.permute.xlu1 %1785 }
 0x142   : > { %v784_v8 = vsel %vm780_vm4, %v5094_v25, %v779_v0  ;;  %v4568_v25 = vld [vmem:[%s5986_s2 + $0xc] sm:$0xf] }
 0x143   : > { %3239 = vrot.lane.b32.xlu0 %v5026_v1, %s4765_s19  ;;  %4565 = vmatprep.subr.msk.bf16.mxu1 %vm498_vm1, %v784_v8  ;;  %v4586_v8 = vld [vmem:[%s5986_s2 + $0x18] sm:$0xf] }
 0x144   : > { %3241 = vrot.lane.b32.xlu1 %v5073_v18, %s4765_s19  ;;  %842 = vmatpush1.bf16.msra.mxu1 %v795_v15 }
 0x145   : > { %4564 = vmatmul.mubr.msk.bf16.vlgmr.msra.gmra.mrb[8].mxu0 %vm494_vm2, %v4562_v9  ;;  %v5203_v16 = vpop.permute.xlu0 %1787  ;;  %v920_v3 = vpop.permute.xlu1 %919 }
 0x146   : > { %977 = vmatprep.mubr.bf16.mxu0 %v4763_v2  ;;  %v927_v19 = vsel %vm925_vm5, %v5084_v22, %v920_v3  ;;  %v928_v20 = vsel %vm925_vm5, %v920_v3, %v5092_v24 }
 0x147   : > { %3243 = vrot.lane.b32.xlu0 %v5049_v10, %s4765_s19  ;;  %4569 = vmatprep.subr.msk.bf16.mxu0 %vm498_vm1, %v927_v19  ;;  %v940_v33 = vsel %vm498_vm1, %v928_v20, 0 }
 0x148   : > { %3245 = vrot.lane.b32.xlu1 %v5082_v21, %s4765_s19  ;;  %4566 = vmatmul.mubr.msk.bf16.vlgmr.msra.gmra.mrb[8].mxu1 %vm494_vm2, %v4562_v9 }
 0x149   : > { %v5220_v23 = vpop.permute.xlu0 %1791  ;;  %1018 = vmatprep.mubr.bf16.mxu1 %v4763_v2  ;;  %946 = vmatpush1.bf16.msra.mxu0 %v934_v5  ;;  %v924_v22 = vpop.permute.xlu1 %923  ;;  %v4592_v5 = vld [vmem:[%s5986_s2 + $0x1c] sm:$0xf] }
 0x14a   : > { %v929_v32 = vsel %vm925_vm5, %v5092_v24, %v924_v22 }
 0x14b   : > { %3247 = vrot.lane.b32.xlu0 %v5060_v14, %s4765_s19  ;;  %4571 = vmatprep.subr.msk.bf16.mxu1 %vm498_vm1, %v929_v32  ;;  %v1651_v32 = vsel %vm1650_vm10, %v5156_v49, %v5132_v40 }
 0x14c   : > { %3383 = vrot.lane.b32.xlu1 %v5026_v1, %s4768_s22  ;;  %987 = vmatpush1.bf16.msra.mxu1 %v940_v33 }
 0x14d   : > { %4570 = vmatmul.mubr.msk.bf16.vlgmr.msra.gmra.mrb[12].mxu0 %vm494_vm2, %v4568_v25  ;;  %v1065_v36 = vpop.permute.xlu0 %1064  ;;  %v5238_v37 = vpop.permute.xlu1 %1932 }
 0x14e   : > { %v1072_v24 = vsel %vm1070_vm6, %v5102_v27, %v1065_v36  ;;  %1122 = vmatprep.mubr.bf16.mxu0 %v4763_v2  ;;  %v1073_v38 = vsel %vm1070_vm6, %v1065_v36, %v5109_v29  ;;  %v1659_v36 = vsel %vm498_vm1, %v1651_v32, 0 }
 0x14f   : > { %3385 = vrot.lane.b32.xlu0 %v5073_v18, %s4768_s22  ;;  %4575 = vmatprep.subr.msk.bf16.mxu0 %vm498_vm1, %v1072_v24  ;;  %v1085_v44 = vsel %vm498_vm1, %v1073_v38, 0 }
 0x150   : > { %3387 = vrot.lane.b32.xlu1 %v5049_v10, %s4768_s22  ;;  %4572 = vmatmul.mubr.msk.bf16.vlgmr.msra.gmra.mrb[12].mxu1 %vm494_vm2, %v4568_v25 }
 0x151   : > { %1091 = vmatpush1.bf16.msra.mxu0 %v1079_v6  ;;  %v1069_v39 = vpop.permute.xlu0 %1068  ;;  %1163 = vmatprep.mubr.bf16.mxu1 %v4763_v2  ;;  %v5253_v27 = vpop.permute.xlu1 %1936  ;;  %v4598_v6 = vld [vmem:[%s5986_s2 + $0x20] sm:$0xf] }
 0x152   : > { %v1074_v41 = vsel %vm1070_vm6, %v5109_v29, %v1069_v39  ;;  %v1216_v29 = vsel %vm1215_vm7, %v5042_v7, %v5100_v26 }
 0x153   : > { %3389 = vrot.lane.b32.xlu0 %v5082_v21, %s4768_s22  ;;  %4577 = vmatprep.subr.msk.bf16.mxu1 %vm498_vm1, %v1074_v41  ;;  %v1224_v7 = vsel %vm498_vm1, %v1216_v29, 0 }
 0x154   : > { %3391 = vrot.lane.b32.xlu1 %v5060_v14, %s4768_s22  ;;  %1132 = vmatpush1.bf16.msra.mxu1 %v1085_v44 }
 0x155   : > { %4576 = vmatmul.mubr.msk.bf16.vlgmr.msra.gmra.mrb[16].mxu0 %vm494_vm2, %v4574_v42  ;;  %v5267_v45 = vpop.permute.xlu0 %1930  ;;  %v1210_v46 = vpop.permute.xlu1 %1209 }
 0x156   : > { %1267 = vmatprep.mubr.bf16.mxu0 %v4763_v2  ;;  %v1217_v47 = vsel %vm1215_vm7, %v5100_v26, %v1210_v46  ;;  %v1218_v48 = vsel %vm1215_vm7, %v1210_v46, %v5107_v28 }
 0x157   : > { %3527 = vrot.lane.b32.xlu0 %v5026_v1, %s4767_s21  ;;  %4581 = vmatprep.subr.msk.bf16.mxu0 %vm498_vm1, %v1217_v47  ;;  %v1230_v54 = vsel %vm498_vm1, %v1218_v48, 0 }
 0x158   : > { %3529 = vrot.lane.b32.xlu1 %v5073_v18, %s4767_s21  ;;  %4578 = vmatmul.mubr.msk.bf16.vlgmr.msra.gmra.mrb[16].mxu1 %vm494_vm2, %v4574_v42 }
 0x159   : > { %v5284_v50 = vpop.permute.xlu0 %2077  ;;  %1308 = vmatprep.mubr.bf16.mxu1 %v4763_v2  ;;  %1236 = vmatpush1.bf16.msra.mxu0 %v1224_v7  ;;  %v1214_v26 = vpop.permute.xlu1 %1213  ;;  %v4604_v7 = vld [vmem:[%s5986_s2 + $0x24] sm:$0xf] }
 0x15a   : > { %v1219_v53 = vsel %vm1215_vm7, %v5107_v28, %v1214_v26 }
 0x15b   : > { %3531 = vrot.lane.b32.xlu0 %v5049_v10, %s4767_s21  ;;  %4583 = vmatprep.subr.msk.bf16.mxu1 %vm498_vm1, %v1219_v53 }
 0x15c   : > { %3533 = vrot.lane.b32.xlu1 %v5082_v21, %s4767_s21  ;;  %1277 = vmatpush1.bf16.msra.mxu1 %v1230_v54 }
 0x15d   : > { %4582 = vmatmul.mubr.msk.bf16.vlgmr.msra.gmra.mrb[20].mxu0 %vm494_vm2, %v4580_v51  ;;  %v1355_v57 = vpop.permute.xlu0 %1354  ;;  %v5302_v60 = vpop.permute.xlu1 %2075 }
 0x15e   : > { %v1362_v28 = vsel %vm1360_vm8, %v5115_v31, %v1355_v57  ;;  %1412 = vmatprep.mubr.bf16.mxu0 %v4763_v2  ;;  %v1363_v62 = vsel %vm1360_vm8, %v1355_v57, %v5121_v34 }
 0x15f   : > { %3535 = vrot.lane.b32.xlu0 %v5060_v14, %s4767_s21  ;;  %4587 = vmatprep.subr.msk.bf16.mxu0 %vm498_vm1, %v1362_v28  ;;  %v1375_v9 = vsel %vm498_vm1, %v1363_v62, 0 }
 0x160   : > { %3671 = vrot.lane.b32.xlu1 %v5026_v1, %s4770_s24  ;;  %4584 = vmatmul.mubr.msk.bf16.vlgmr.msra.gmra.mrb[20].mxu1 %vm494_vm2, %v4580_v51 }
 0x161   : > { %1381 = vmatpush1.bf16.msra.mxu0 %v1369_v11  ;;  %v1359_v63 = vpop.permute.xlu0 %1358  ;;  %1453 = vmatprep.mubr.bf16.mxu1 %v4763_v2  ;;  %v5317_v31 = vpop.permute.xlu1 %2222  ;;  %v2086_v11 = vsel %vm2085_vm13, %v5302_v60, %v5284_v50 }
 0x162   : > { %v1364_v0 = vsel %vm1360_vm8, %v5121_v34, %v1359_v63  ;;  %v1506_v34 = vsel %vm1505_vm9, %v5057_v13, %v5113_v30 }
 0x163   : > { %3673 = vrot.lane.b32.xlu0 %v5073_v18, %s4770_s24  ;;  %4589 = vmatprep.subr.msk.bf16.mxu1 %vm498_vm1, %v1364_v0  ;;  %v1514_v13 = vsel %vm498_vm1, %v1506_v34, 0 }
 0x164   : > { %3675 = vrot.lane.b32.xlu1 %v5049_v10, %s4770_s24  ;;  %1422 = vmatpush1.bf16.msra.mxu1 %v1375_v9 }
 0x165   : > { %4588 = vmatmul.mubr.msk.bf16.vlgmr.msra.gmra.mrb[24].mxu0 %vm494_vm2, %v4586_v8  ;;  %v5331_v15 = vpop.permute.xlu0 %2081  ;;  %v1500_v17 = vpop.permute.xlu1 %1499 }
 0x166   : > { %1557 = vmatprep.mubr.bf16.mxu0 %v4763_v2  ;;  %v1507_v3 = vsel %vm1505_vm9, %v5113_v30, %v1500_v17  ;;  %v1508_v19 = vsel %vm1505_vm9, %v1500_v17, %v5140_v43  ;;  %v4616_v17 = vld [vmem:[%s5986_s2 + $0x2c] sm:$0xf] }
 0x167   : > { %3677 = vrot.lane.b32.xlu0 %v5082_v21, %s4770_s24  ;;  %4593 = vmatprep.subr.msk.bf16.mxu0 %vm498_vm1, %v1507_v3  ;;  %v1520_v25 = vsel %vm498_vm1, %v1508_v19, 0 }
 0x168   : > { %3679 = vrot.lane.b32.xlu1 %v5060_v14, %s4770_s24  ;;  %4590 = vmatmul.mubr.msk.bf16.vlgmr.msra.gmra.mrb[24].mxu1 %vm494_vm2, %v4586_v8  ;;  %v2094_v8 = vsel %vm498_vm1, %v2086_v11, 0 }
 0x169   : > { %v5348_v20 = vpop.permute.xlu0 %2220  ;;  %1598 = vmatprep.mubr.bf16.mxu1 %v4763_v2  ;;  %1526 = vmatpush1.bf16.msra.mxu0 %v1514_v13  ;;  %v1504_v30 = vpop.permute.xlu1 %1503 }
 0x16a   : > { %v1509_v22 = vsel %vm1505_vm9, %v5140_v43, %v1504_v30  ;;  %v4389_v30 = vld [vmem:[%s5987_s3] sm:$0xff] }
 0x16b   : > { %3815 = vrot.lane.b32.xlu0 %v5026_v1, %s4769_s23  ;;  %4595 = vmatprep.subr.msk.bf16.mxu1 %vm498_vm1, %v1509_v22  ;;  %v2369_v22 = vsel %vm498_vm1, %v4908_v52, 0 }
 0x16c   : > { %3817 = vrot.lane.b32.xlu1 %v5073_v18, %s4769_s23  ;;  %1567 = vmatpush1.bf16.msra.mxu1 %v1520_v25 }
 0x16d   : > { %4594 = vmatmul.mubr.msk.bf16.vlgmr.msra.gmra.mrb[28].mxu0 %vm494_vm2, %v4592_v5  ;;  %v1645_v33 = vpop.permute.xlu0 %1644  ;;  %v5366_v35 = vpop.permute.xlu1 %2226 }
 0x16e   : > { %v1652_v43 = vsel %vm1650_vm10, %v5132_v40, %v1645_v33  ;;  %1702 = vmatprep.mubr.bf16.mxu0 %v4763_v2  ;;  %v1653_v49 = vsel %vm1650_vm10, %v1645_v33, %v5174_v59  ;;  %v2375_v33 = vsel %vm498_vm1, %v4917_v55, 0 }
 0x16f   : > { %3819 = vrot.lane.b32.xlu0 %v5049_v10, %s4769_s23  ;;  %4599 = vmatprep.subr.msk.bf16.mxu0 %vm498_vm1, %v1652_v43  ;;  %v1665_v39 = vsel %vm498_vm1, %v1653_v49, 0  ;;  %v4628_v49 = vld [vmem:[%s5986_s2 + $0x34] sm:$0xf] }
 0x170   : > { %3821 = vrot.lane.b32.xlu1 %v5082_v21, %s4769_s23  ;;  %4596 = vmatmul.mubr.msk.bf16.vlgmr.msra.gmra.mrb[28].mxu1 %vm494_vm2, %v4592_v5 }
 0x171   : > { %1671 = vmatpush1.bf16.msra.mxu0 %v1659_v36  ;;  %v1649_v24 = vpop.permute.xlu0 %1648  ;;  %1743 = vmatprep.mubr.bf16.mxu1 %v4763_v2  ;;  %v5381_v40 = vpop.permute.xlu1 %2515 }
 0x172   : > { %v1654_v38 = vsel %vm1650_vm10, %v5174_v59, %v1649_v24  ;;  %v1796_v59 = vsel %vm1795_vm11, %v5189_v4, %v5203_v16 }
 0x173   : > { %3823 = vrot.lane.b32.xlu0 %v5060_v14, %s4769_s23  ;;  %4601 = vmatprep.subr.msk.bf16.mxu1 %vm498_vm1, %v1654_v38  ;;  %v1804_v29 = vsel %vm498_vm1, %v1796_v59, 0 }
 0x174   : > { %3959 = vrot.lane.b32.xlu1 %v5026_v1, %s4772_s26  ;;  %1712 = vmatpush1.bf16.msra.mxu1 %v1665_v39 }
 0x175   : > { %4600 = vmatmul.mubr.msk.bf16.vlgmr.msra.gmra.mrb[32].mxu0 %vm494_vm2, %v4598_v6  ;;  %v5395_v41 = vpop.permute.xlu0 %2660  ;;  %v1790_v42 = vpop.permute.xlu1 %1789 }
 0x176   : > { %1847 = vmatprep.mubr.bf16.mxu0 %v4763_v2  ;;  %v1797_v44 = vsel %vm1795_vm11, %v5203_v16, %v1790_v42  ;;  %v1798_v4 = vsel %vm1795_vm11, %v1790_v42, %v5220_v23  ;;  %v1941_v16 = vsel %vm1940_vm12, %v5267_v45, %v5238_v37 }
 0x177   : > { %3961 = vrot.lane.b32.xlu0 %v5073_v18, %s4772_s26  ;;  %4605 = vmatprep.subr.msk.bf16.mxu0 %vm498_vm1, %v1797_v44  ;;  %v1810_v51 = vsel %vm498_vm1, %v1798_v4, 0  ;;  %v4634_v4 = vld [vmem:[%s5986_s2 + $0x38] sm:$0xf] }
 0x178   : > { %3963 = vrot.lane.b32.xlu1 %v5049_v10, %s4772_s26  ;;  %4602 = vmatmul.mubr.msk.bf16.vlgmr.msra.gmra.mrb[32].mxu1 %vm494_vm2, %v4598_v6 }
 0x179   : > { %v1935_v46 = vpop.permute.xlu0 %1934  ;;  %1888 = vmatprep.mubr.bf16.mxu1 %v4763_v2  ;;  %1816 = vmatpush1.bf16.msra.mxu0 %v1804_v29  ;;  %v1794_v47 = vpop.permute.xlu1 %1793 }
 0x17a   : > { %v1942_v48 = vsel %vm1940_vm12, %v5238_v37, %v1935_v46  ;;  %v1799_v26 = vsel %vm1795_vm11, %v5220_v23, %v1794_v47  ;;  %v1949_v37 = vsel %vm498_vm1, %v1941_v16, 0  ;;  %v1943_v45 = vsel %vm1940_vm12, %v1935_v46, %v5253_v27 }
 0x17b   : > { %3965 = vrot.lane.b32.xlu0 %v5082_v21, %s4772_s26  ;;  %4611 = vmatprep.subr.msk.bf16.mxu0 %vm498_vm1, %v1942_v48  ;;  %v1955_v56 = vsel %vm498_vm1, %v1943_v45, 0  ;;  %vm2670_vm11 = vcmask 990208  }
 0x17c   : > { %3967 = vrot.lane.b32.xlu1 %v5060_v14, %s4772_s26  ;;  %4607 = vmatprep.subr.msk.bf16.mxu1 %vm498_vm1, %v1799_v26 }
 0x17d   : > { %4606 = vmatmul.mubr.msk.bf16.vlgmr.msra.gmra.mrb[36].mxu0 %vm494_vm2, %v4604_v7  ;;  %1857 = vmatpush1.bf16.msra.mxu1 %v1810_v51  ;;  %v1939_v23 = vpop.permute.xlu0 %1938  ;;  %v5434_v53 = vpop.permute.xlu1 %2519 }
 0x17e   : > { %1961 = vmatpush1.bf16.msra.mxu0 %v1949_v37  ;;  %v1944_v54 = vsel %vm1940_vm12, %v5253_v27, %v1939_v23  ;;  %1992 = vmatprep.mubr.bf16.mxu0 %v4763_v2  ;;  %v4610_v27 = vld [vmem:[%s5986_s2 + $0x28] sm:$0xf]  ;;  %vm2815_vm12 = vcmask 982016   ;;  %v4640_v23 = vld [vmem:[%s5986_s2 + $0x3c] sm:$0xf] }
 0x17f   : > { %4103 = vrot.lane.b32.xlu0 %v5026_v1, %s4771_s25  ;;  %4613 = vmatprep.subr.msk.bf16.mxu1 %vm498_vm1, %v1944_v54 }
 0x180   : > { %4105 = vrot.lane.b32.xlu1 %v5073_v18, %s4771_s25  ;;  %4608 = vmatmul.mubr.msk.bf16.vlgmr.msra.gmra.mrb[36].mxu1 %vm494_vm2, %v4604_v7 }
 0x181   : > { %2002 = vmatpush1.bf16.msra.mxu1 %v1955_v56  ;;  %v2225_v57 = vpop.permute.xlu0 %2224  ;;  %2033 = vmatprep.mubr.bf16.mxu1 %v4763_v2  ;;  %v5447_v28 = vpop.permute.xlu1 %2523 }
 0x182   : > { %v2232_v34 = vsel %vm2230_vm14, %v5317_v31, %v2225_v57  ;;  %v2233_v13 = vsel %vm2230_vm14, %v2225_v57, %v5366_v35 }
 0x183   : > { %4107 = vrot.lane.b32.xlu0 %v5049_v10, %s4771_s25 }
 0x184   : > { %4109 = vrot.lane.b32.xlu1 %v5082_v21, %s4771_s25 }
 0x185   : > { %4612 = vmatmul.mubr.msk.bf16.vlgmr.msra.gmra.mrb[40].mxu0 %vm494_vm2, %v4610_v27  ;;  %v2229_v62 = vpop.permute.xlu0 %2228  ;;  %v2080_v63 = vpop.permute.xlu1 %2079 }
 0x186   : > { %2137 = vmatprep.mubr.bf16.mxu0 %v4763_v2  ;;  %v2087_v0 = vsel %vm2085_vm13, %v5284_v50, %v2080_v63  ;;  %v2088_v60 = vsel %vm2085_vm13, %v2080_v63, %v5331_v15  ;;  %v2231_v50 = vsel %vm2230_vm14, %v5348_v20, %v5317_v31 }
 0x187   : > { %4111 = vrot.lane.b32.xlu0 %v5060_v14, %s4771_s25  ;;  %4617 = vmatprep.subr.msk.bf16.mxu0 %vm498_vm1, %v2087_v0  ;;  %v2100_v19 = vsel %vm498_vm1, %v2088_v60, 0  ;;  %v2239_v31 = vsel %vm498_vm1, %v2231_v50, 0 }
 0x188   : > { %4247 = vrot.lane.b32.xlu1 %v5026_v1, %s4774_s16  ;;  %4614 = vmatmul.mubr.msk.bf16.vlgmr.msra.gmra.mrb[40].mxu1 %vm494_vm2, %v4610_v27 }
 0x189   : > { %v2518_v9 = vpop.permute.xlu0 %2517  ;;  %2178 = vmatprep.mubr.bf16.mxu1 %v4763_v2  ;;  %2106 = vmatpush1.bf16.msra.mxu0 %v2094_v8  ;;  %v2084_v1 = vpop.permute.xlu1 %2083  ;;  %v4646_v8 = vld [vmem:[%s5986_s2 + $0x40] sm:$0xf] }
 0x18a   : > { %v2089_v3 = vsel %vm2085_vm13, %v5331_v15, %v2084_v1  ;;  %4623 = vmatprep.subr.msk.bf16.mxu0 %vm498_vm1, %v2232_v34  ;;  %v2234_v15 = vsel %vm2230_vm14, %v5366_v35, %v2229_v62  ;;  %v2527_v32 = vsel %vm2525_vm15, %v2518_v9, %v5434_v53  ;;  %v2526_v43 = vsel %vm2525_vm15, %v5381_v40, %v2518_v9 }
 0x18b   : > { %4249 = vrot.lane.b32.xlu0 %v5073_v18, %s4774_s16  ;;  %4619 = vmatprep.subr.msk.bf16.mxu1 %vm498_vm1, %v2089_v3  ;;  %v2534_v24 = vsel %vm498_vm1, %v2526_v43, 0  ;;  %vm2960_vm13 = vcmask 973824  }
 0x18c   : > { %4251 = vrot.lane.b32.xlu1 %v5049_v10, %s4774_s16  ;;  %2147 = vmatpush1.bf16.msra.mxu1 %v2100_v19  ;;  %v2245_v10 = vsel %vm498_vm1, %v2233_v13, 0 }
 0x18d   : > { %4618 = vmatmul.mubr.msk.bf16.vlgmr.msra.gmra.mrb[44].mxu0 %vm494_vm2, %v4616_v17  ;;  %v2522_v20 = vpop.permute.xlu0 %2521  ;;  %v2663_v18 = vpop.permute.xlu1 %2662  ;;  %4625 = vmatprep.subr.msk.bf16.mxu1 %vm498_vm1, %v2234_v15  ;;  %v4652_v15 = vld [vmem:[%s5986_s2 + $0x44] sm:$0xf] }
 0x18e   : > { %2251 = vmatpush1.bf16.msra.mxu0 %v2239_v31  ;;  %2282 = vmatprep.mubr.bf16.mxu0 %v4763_v2  ;;  %v2529_v35 = vsel %vm2525_vm15, %v2522_v20, %v5447_v28  ;;  %v2528_v55 = vsel %vm2525_vm15, %v5434_v53, %v2522_v20  ;;  %v2671_v44 = vsel %vm2670_vm11, %v5395_v41, %v2663_v18 }
 0x18f   : > { %4629 = vmatprep.subr.msk.bf16.mxu0 %vm498_vm1, %v4946_v58  ;;  %4253 = vrot.lane.b32.xlu0 %v5082_v21, %s4774_s16  ;;  %v4452_v58 = vld [vmem:[%s5989_s5] sm:$0xff]  ;;  %v2540_v39 = vsel %vm498_vm1, %v2528_v55, 0  ;;  %v2679_v46 = vsel %vm498_vm1, %v2671_v44, 0 }
 0x190   : > { %4255 = vrot.lane.b32.xlu1 %v5060_v14, %s4774_s16  ;;  %4620 = vmatmul.mubr.msk.bf16.vlgmr.msra.gmra.mrb[44].mxu1 %vm494_vm2, %v4616_v17  ;;  %v4622_v14 = vld [vmem:[%s5986_s2 + $0x30] sm:$0xf] }
 0x191   : > { %2292 = vmatpush1.bf16.msra.mxu1 %v2245_v10  ;;  %v2665_v5 = vpop.permute.xlu0 %2664  ;;  %v2667_v21 = vpop.permute.xlu1 %2666  ;;  %2323 = vmatprep.mubr.bf16.mxu1 %v4763_v2 }
 0x192   : > { %4631 = vmatprep.subr.msk.bf16.mxu1 %vm498_vm1, %v4955_v61  ;;  %v2672_v6 = vsel %vm2670_vm11, %v2663_v18, %v2665_v5  ;;  %v2673_v16 = vsel %vm2670_vm11, %v2665_v5, %v2667_v21 }
 0x193   : > { %4392 = vperm.xlu0 %4745, %v4389_v30   ;;  %v2685_v41 = vsel %vm498_vm1, %v2673_v16, 0 }
 0x194   : > { %4455 = vperm.xlu1 %4746, %v4452_v58  }
 0x195   : > { %4624 = vmatmul.mubr.msk.bf16.vlgmr.msra.gmra.mrb[48].mxu0 %vm494_vm2, %v4622_v14  ;;  %v2669_v25 = vpop.permute.xlu0 %2668  ;;  %v2806_v61 = vpop.permute.xlu1 %2805 }
 0x196   : > { %2381 = vmatpush1.bf16.msra.mxu0 %v2369_v22  ;;  %2412 = vmatprep.mubr.bf16.mxu0 %v4763_v2  ;;  %v2674_v59 = vsel %vm2670_vm11, %v2667_v21, %v2669_v25 }
 0x197   : > { %4635 = vmatprep.subr.msk.bf16.mxu0 %vm498_vm1, %v2527_v32  ;;  %v4658_v32 = vld [vmem:[%s5986_s2 + $0x48] sm:$0xf] }
 0x198   : > { %4626 = vmatmul.mubr.msk.bf16.vlgmr.msra.gmra.mrb[48].mxu1 %vm494_vm2, %v4622_v14 }
 0x199   : > { %2422 = vmatpush1.bf16.msra.mxu1 %v2375_v33  ;;  %v2808_v52 = vpop.permute.xlu0 %2807  ;;  %2453 = vmatprep.mubr.bf16.mxu1 %v4763_v2  ;;  %v2810_v36 = vpop.permute.xlu1 %2809 }
 0x19a   : > { %4637 = vmatprep.subr.msk.bf16.mxu1 %vm498_vm1, %v2529_v35  ;;  %v2817_v48 = vsel %vm2815_vm12, %v2808_v52, %v2810_v36  ;;  %v2816_v37 = vsel %vm2815_vm12, %v2806_v61, %v2808_v52 }
 0x19b   : > { %v2824_v53 = vsel %vm498_vm1, %v2816_v37, 0 }
 0x19d   : > { %4630 = vmatmul.mubr.msk.bf16.vlgmr.msra.gmra.mrb[52].mxu0 %vm494_vm2, %v4628_v49  ;;  %v2812_v38 = vpop.permute.xlu0 %2811  ;;  %v2814_v40 = vpop.permute.xlu1 %2813 }
 0x19e   : > { %2546 = vmatpush1.bf16.msra.mxu0 %v2534_v24  ;;  %2577 = vmatprep.mubr.bf16.mxu0 %v4763_v2  ;;  %v2819_v26 = vsel %vm2815_vm12, %v2812_v38, %v2814_v40  ;;  %v2818_v54 = vsel %vm2815_vm12, %v2810_v36, %v2812_v38 }
 0x19f   : > { %4641 = vmatprep.subr.msk.bf16.mxu0 %vm498_vm1, %v2672_v6  ;;  %v2830_v27 = vsel %vm498_vm1, %v2818_v54, 0  ;;  %v4664_v6 = vld [vmem:[%s5986_s2 + $0x4c] sm:$0xf] }
 0x1a0   : > { %4632 = vmatmul.mubr.msk.bf16.vlgmr.msra.gmra.mrb[52].mxu1 %vm494_vm2, %v4628_v49 }
 0x1a1   : > { %2587 = vmatpush1.bf16.msra.mxu1 %v2540_v39  ;;  %v2951_v42 = vpop.permute.xlu0 %2950  ;;  %2618 = vmatprep.mubr.bf16.mxu1 %v4763_v2 }
 0x1a2   : > { %4643 = vmatprep.subr.msk.bf16.mxu1 %vm498_vm1, %v2674_v59  ;;  %v2953_v29 = vpop.permute.xlu1 %2952 }
 0x1a3   : > { %v2961_v63 = vsel %vm2960_vm13, %v2951_v42, %v2953_v29 }
 0x1a4   : > { %v2969_v60 = vsel %vm498_vm1, %v2961_v63, 0 }
 0x1a5   : > { %4636 = vmatmul.mubr.msk.bf16.vlgmr.msra.gmra.mrb[56].mxu0 %vm494_vm2, %v4634_v4  ;;  %v2955_v47 = vpop.permute.xlu0 %2954 }
 0x1a6   : > { %2691 = vmatpush1.bf16.msra.mxu0 %v2679_v46  ;;  %v2957_v7 = vpop.permute.xlu1 %2956  ;;  %2722 = vmatprep.mubr.bf16.mxu0 %v4763_v2  ;;  %v2962_v57 = vsel %vm2960_vm13, %v2953_v29, %v2955_v47 }
 0x1a7   : > { %4647 = vmatprep.subr.msk.bf16.mxu0 %vm498_vm1, %v2817_v48  ;;  %v2963_v9 = vsel %vm2960_vm13, %v2955_v47, %v2957_v7  ;;  %v4670_v48 = vld [vmem:[%s5986_s2 + $0x50] sm:$0xf] }
 0x1a8   : > { %4638 = vmatmul.mubr.msk.bf16.vlgmr.msra.gmra.mrb[56].mxu1 %vm494_vm2, %v4634_v4  ;;  %v2975_v17 = vsel %vm498_vm1, %v2963_v9, 0 }
 0x1a9   : > { %2732 = vmatpush1.bf16.msra.mxu1 %v2685_v41  ;;  %v2959_v51 = vpop.permute.xlu0 %2958  ;;  %2763 = vmatprep.mubr.bf16.mxu1 %v4763_v2 }
 0x1aa   : > { %4649 = vmatprep.subr.msk.bf16.mxu1 %vm498_vm1, %v2819_v26  ;;  %v3096_v45 = vpop.permute.xlu1 %3095  ;;  %v2964_v62 = vsel %vm2960_vm13, %v2957_v7, %v2959_v51 }
 0x1ad   : > { %4642 = vmatmul.mubr.msk.bf16.vlgmr.msra.gmra.mrb[60].mxu0 %vm494_vm2, %v4640_v23  ;;  %v3098_v56 = vpop.permute.xlu0 %3097 }
 0x1ae   : > { %2836 = vmatpush1.bf16.msra.mxu0 %v2824_v53  ;;  %v3100_v28 = vpop.permute.xlu1 %3099  ;;  %2867 = vmatprep.mubr.bf16.mxu0 %v4763_v2  ;;  %v3105_v31 = vsel %vm489_vm0, %v3096_v45, %v3098_v56 }
 0x1af   : > { %4653 = vmatprep.subr.msk.bf16.mxu0 %vm498_vm1, %v2962_v57  ;;  %v3106_v34 = vsel %vm489_vm0, %v3098_v56, %v3100_v28  ;;  %v3113_v18 = vsel %vm498_vm1, %v3105_v31, 0  ;;  %v4676_v56 = vld [vmem:[%s5986_s2 + $0x54] sm:$0xf] }
 0x1b0   : > { %4644 = vmatmul.mubr.msk.bf16.vlgmr.msra.gmra.mrb[60].mxu1 %vm494_vm2, %v4640_v23 }
 0x1b1   : > { %2877 = vmatpush1.bf16.msra.mxu1 %v2830_v27  ;;  %v3102_v11 = vpop.permute.xlu0 %3101  ;;  %2908 = vmatprep.mubr.bf16.mxu1 %v4763_v2 }
 0x1b2   : > { %4655 = vmatprep.subr.msk.bf16.mxu1 %vm498_vm1, %v2964_v62  ;;  %v3104_v0 = vpop.permute.xlu1 %3103  ;;  %v3107_v10 = vsel %vm489_vm0, %v3100_v28, %v3102_v11 }
 0x1b3   : > { %v3108_v3 = vsel %vm489_vm0, %v3102_v11, %v3104_v0  ;;  %v3119_v21 = vsel %vm498_vm1, %v3107_v10, 0 }
 0x1b5   : > { %4648 = vmatmul.mubr.msk.bf16.vlgmr.msra.gmra.mrb[64].mxu0 %vm494_vm2, %v4646_v8  ;;  %v3240_v50 = vpop.permute.xlu0 %3239 }
 0x1b6   : > { %2981 = vmatpush1.bf16.msra.mxu0 %v2969_v60  ;;  %v3242_v1 = vpop.permute.xlu1 %3241  ;;  %3012 = vmatprep.mubr.bf16.mxu0 %v4763_v2 }
 0x1b7   : > { %4659 = vmatprep.subr.msk.bf16.mxu0 %vm498_vm1, %v3106_v34  ;;  %v3249_v22 = vsel %vm635_vm3, %v3240_v50, %v3242_v1  ;;  %v4682_v50 = vld [vmem:[%s5986_s2 + $0x58] sm:$0xf] }
 0x1b8   : > { %4650 = vmatmul.mubr.msk.bf16.vlgmr.msra.gmra.mrb[64].mxu1 %vm494_vm2, %v4646_v8  ;;  %v3257_v33 = vsel %vm498_vm1, %v3249_v22, 0 }
 0x1b9   : > { %3022 = vmatpush1.bf16.msra.mxu1 %v2975_v17  ;;  %v3244_v19 = vpop.permute.xlu0 %3243  ;;  %3053 = vmatprep.mubr.bf16.mxu1 %v4763_v2 }
 0x1ba   : > { %4661 = vmatprep.subr.msk.bf16.mxu1 %vm498_vm1, %v3108_v3  ;;  %v3246_v13 = vpop.permute.xlu1 %3245  ;;  %v3250_v20 = vsel %vm635_vm3, %v3242_v1, %v3244_v19 }
 0x1bb   : > { %v3251_v35 = vsel %vm635_vm3, %v3244_v19, %v3246_v13 }
 0x1bc   : > { %v3263_v49 = vsel %vm498_vm1, %v3251_v35, 0 }
 0x1bd   : > { %4654 = vmatmul.mubr.msk.bf16.vlgmr.msra.gmra.mrb[68].mxu0 %vm494_vm2, %v4652_v15  ;;  %v3248_v30 = vpop.permute.xlu0 %3247 }
 0x1be   : > { %3125 = vmatpush1.bf16.msra.mxu0 %v3113_v18  ;;  %v3384_v5 = vpop.permute.xlu1 %3383  ;;  %3156 = vmatprep.mubr.bf16.mxu0 %v4763_v2  ;;  %v3252_v58 = vsel %vm635_vm3, %v3246_v13, %v3248_v30  ;;  %v4688_v18 = vld [vmem:[%s5986_s2 + $0x5c] sm:$0xf] }
 0x1bf   : > { %4665 = vmatprep.subr.msk.bf16.mxu0 %vm498_vm1, %v3250_v20 }
 0x1c0   : > { %4656 = vmatmul.mubr.msk.bf16.vlgmr.msra.gmra.mrb[68].mxu1 %vm494_vm2, %v4652_v15 }
 0x1c1   : > { %3166 = vmatpush1.bf16.msra.mxu1 %v3119_v21  ;;  %v3386_v14 = vpop.permute.xlu0 %3385  ;;  %3197 = vmatprep.mubr.bf16.mxu1 %v4763_v2 }
 0x1c2   : > { %4667 = vmatprep.subr.msk.bf16.mxu1 %vm498_vm1, %v3252_v58  ;;  %v3388_v25 = vpop.permute.xlu1 %3387  ;;  %v3393_v55 = vsel %vm780_vm4, %v3384_v5, %v3386_v14 }
 0x1c3   : > { %v3394_v61 = vsel %vm780_vm4, %v3386_v14, %v3388_v25  ;;  %v3401_v40 = vsel %vm498_vm1, %v3393_v55, 0 }
 0x1c5   : > { %4660 = vmatmul.mubr.msk.bf16.vlgmr.msra.gmra.mrb[72].mxu0 %vm494_vm2, %v4658_v32  ;;  %v3390_v52 = vpop.permute.xlu0 %3389 }
 0x1c6   : > { %3269 = vmatpush1.bf16.msra.mxu0 %v3257_v33  ;;  %v3392_v43 = vpop.permute.xlu1 %3391  ;;  %3300 = vmatprep.mubr.bf16.mxu0 %v4763_v2  ;;  %v3395_v39 = vsel %vm780_vm4, %v3388_v25, %v3390_v52 }
 0x1c7   : > { %4671 = vmatprep.subr.msk.bf16.mxu0 %vm498_vm1, %v3394_v61  ;;  %v3396_v36 = vsel %vm780_vm4, %v3390_v52, %v3392_v43  ;;  %v3407_v29 = vsel %vm498_vm1, %v3395_v39, 0  ;;  %v4694_v61 = vld [vmem:[%s5986_s2 + $0x60] sm:$0xf] }
 0x1c8   : > { %4662 = vmatmul.mubr.msk.bf16.vlgmr.msra.gmra.mrb[72].mxu1 %vm494_vm2, %v4658_v32 }
 0x1c9   : > { %3310 = vmatpush1.bf16.msra.mxu1 %v3263_v49  ;;  %v3528_v24 = vpop.permute.xlu0 %3527  ;;  %3341 = vmatprep.mubr.bf16.mxu1 %v4763_v2 }
 0x1ca   : > { %4673 = vmatprep.subr.msk.bf16.mxu1 %vm498_vm1, %v3396_v36  ;;  %v3530_v38 = vpop.permute.xlu1 %3529 }
 0x1cb   : > { %v3537_v46 = vsel %vm925_vm5, %v3528_v24, %v3530_v38 }
 0x1cc   : > { %v3545_v7 = vsel %vm498_vm1, %v3537_v46, 0 }
 0x1cd   : > { %4666 = vmatmul.mubr.msk.bf16.vlgmr.msra.gmra.mrb[76].mxu0 %vm494_vm2, %v4664_v6  ;;  %v3532_v59 = vpop.permute.xlu0 %3531 }
 0x1ce   : > { %3413 = vmatpush1.bf16.msra.mxu0 %v3401_v40  ;;  %v3534_v42 = vpop.permute.xlu1 %3533  ;;  %v3538_v44 = vsel %vm925_vm5, %v3530_v38, %v3532_v59  ;;  %3444 = vmatprep.mubr.bf16.mxu0 %v4763_v2 }
 0x1cf   : > { %4677 = vmatprep.subr.msk.bf16.mxu0 %vm498_vm1, %v3538_v44  ;;  %v3539_v41 = vsel %vm925_vm5, %v3532_v59, %v3534_v42 }
 0x1d0   : > { %4668 = vmatmul.mubr.msk.bf16.vlgmr.msra.gmra.mrb[76].mxu1 %vm494_vm2, %v4664_v6  ;;  %v3551_v45 = vsel %vm498_vm1, %v3539_v41, 0  ;;  %v4700_v6 = vld [vmem:[%s5986_s2 + $0x64] sm:$0xf] }
 0x1d1   : > { %3454 = vmatpush1.bf16.msra.mxu1 %v3407_v29  ;;  %v3536_v4 = vpop.permute.xlu0 %3535  ;;  %3485 = vmatprep.mubr.bf16.mxu1 %v4763_v2 }
 0x1d2   : > { %v3672_v16 = vpop.permute.xlu1 %3671  ;;  %v3540_v47 = vsel %vm925_vm5, %v3534_v42, %v3536_v4 }
 0x1d3   : > { %4679 = vmatprep.subr.msk.bf16.mxu1 %vm498_vm1, %v3540_v47  ;;  %v4706_v47 = vld [vmem:[%s5986_s2 + $0x68] sm:$0xf] }
 0x1d5   : > { %4672 = vmatmul.mubr.msk.bf16.vlgmr.msra.gmra.mrb[80].mxu0 %vm494_vm2, %v4670_v48  ;;  %v3674_v26 = vpop.permute.xlu0 %3673 }
 0x1d6   : > { %3557 = vmatpush1.bf16.msra.mxu0 %v3545_v7  ;;  %v3676_v51 = vpop.permute.xlu1 %3675  ;;  %3588 = vmatprep.mubr.bf16.mxu0 %v4763_v2  ;;  %v3681_v53 = vsel %vm1070_vm6, %v3672_v16, %v3674_v26 }
 0x1d7   : > { %v3682_v37 = vsel %vm1070_vm6, %v3674_v26, %v3676_v51  ;;  %v3689_v28 = vsel %vm498_vm1, %v3681_v53, 0  ;;  %v4561_v53 = vld [vmem:[%s5990_s6 + $0x4] sm:$0xf] }
 0x1d8   : > { %4674 = vmatmul.mubr.msk.bf16.vlgmr.msra.gmra.mrb[80].mxu1 %vm494_vm2, %v4670_v48  ;;  %4683 = vmatprep.subr.msk.bf16.mxu0 %vm498_vm1, %v3682_v37 }
 0x1d9   : > { %3598 = vmatpush1.bf16.msra.mxu1 %v3551_v45  ;;  %v3678_v23 = vpop.permute.xlu0 %3677  ;;  %3629 = vmatprep.mubr.bf16.mxu1 %v4763_v2  ;;  %v593_v45 = vld [vmem:[%s5990_s6] sm:$0xf] }
 0x1da   : > { %v3680_v54 = vpop.permute.xlu1 %3679  ;;  %v3683_v27 = vsel %vm1070_vm6, %v3676_v51, %v3678_v23  ;;  %v5732_v51 = vsub.s32 0, %v4893_v12 }
 0x1db   : > { %v3684_v57 = vsel %vm1070_vm6, %v3678_v23, %v3680_v54  ;;  %v3695_v63 = vsel %vm498_vm1, %v3683_v27, 0  ;;  %v5738_v23 = vsub.s32 1, %v4893_v12  ;;  %v5748_v27 = vsub.s32 3, %v4893_v12 }
 0x1dc   : > { %4685 = vmatprep.subr.msk.bf16.mxu1 %vm498_vm1, %v3684_v57 }
 0x1dd   : > { %4678 = vmatmul.mubr.msk.bf16.vlgmr.msra.gmra.mrb[84].mxu0 %vm494_vm2, %v4676_v56  ;;  %v3816_v62 = vpop.permute.xlu0 %3815 }
 0x1de   : > { %3701 = vmatpush1.bf16.msra.mxu0 %v3689_v28  ;;  %v3818_v11 = vpop.permute.xlu1 %3817  ;;  %3732 = vmatprep.mubr.bf16.mxu0 %v4763_v2  ;;  %v598_v28 = vrot.slane %v593_v45, %v5732_v51 }
 0x1df   : > { %v3825_v8 = vsel %vm1215_vm7, %v3816_v62, %v3818_v11 }
 0x1e0   : > { %4680 = vmatmul.mubr.msk.bf16.vlgmr.msra.gmra.mrb[84].mxu1 %vm494_vm2, %v4676_v56  ;;  %v3833_v34 = vsel %vm498_vm1, %v3825_v8, 0  ;;  %v5744_v56 = vsub.s32 2, %v4893_v12  ;;  %v747_v8 = vrot.slane %v4561_v53, %v5738_v23  ;;  %v755_v12 = vrot.slane %v4561_v53, %v5748_v27 }
 0x1e1   : > { %3742 = vmatpush1.bf16.msra.mxu1 %v3695_v63  ;;  %v3820_v0 = vpop.permute.xlu0 %3819  ;;  %3773 = vmatprep.mubr.bf16.mxu1 %v4763_v2  ;;  %v602_v63 = vrot.slane %v593_v45, %v5738_v23 }
 0x1e2   : > { %v3822_v60 = vpop.permute.xlu1 %3821  ;;  %v3826_v9 = vsel %vm1215_vm7, %v3818_v11, %v3820_v0  ;;  %v743_v11 = vrot.slane %v4561_v53, %v5732_v51 }
 0x1e3   : > { %4689 = vmatprep.subr.msk.bf16.mxu0 %vm498_vm1, %v3826_v9  ;;  %v3827_v1 = vsel %vm1215_vm7, %v3820_v0, %v3822_v60 }
 0x1e4   : > { %v3839_v31 = vsel %vm498_vm1, %v3827_v1, 0  ;;  %v610_v1 = vrot.slane %v593_v45, %v5748_v27 }
 0x1e5   : > { %4684 = vmatmul.mubr.msk.bf16.vlgmr.msra.gmra.mrb[88].mxu0 %vm494_vm2, %v4682_v50  ;;  %v3824_v17 = vpop.permute.xlu0 %3823 }
 0x1e6   : > { %3845 = vmatpush1.bf16.msra.mxu0 %v3833_v34  ;;  %v3960_v3 = vpop.permute.xlu1 %3959  ;;  %v3828_v19 = vsel %vm1215_vm7, %v3822_v60, %v3824_v17  ;;  %3876 = vmatprep.mubr.bf16.mxu0 %v4763_v2  ;;  %v606_v60 = vrot.slane %v593_v45, %v5744_v56 }
 0x1e7   : > { %4691 = vmatprep.subr.msk.bf16.mxu1 %vm498_vm1, %v3828_v19 }
 0x1e8   : > { %4686 = vmatmul.mubr.msk.bf16.vlgmr.msra.gmra.mrb[88].mxu1 %vm494_vm2, %v4682_v50  ;;  %v751_v50 = vrot.slane %v4561_v53, %v5744_v56 }
 0x1e9   : > { %3886 = vmatpush1.bf16.msra.mxu1 %v3839_v31  ;;  %v3962_v13 = vpop.permute.xlu0 %3961  ;;  %3917 = vmatprep.mubr.bf16.mxu1 %v4763_v2 }
 0x1ea   : > { %v3964_v15 = vpop.permute.xlu1 %3963  ;;  %v3969_v20 = vsel %vm1360_vm8, %v3960_v3, %v3962_v13 }
 0x1eb   : > { %v3970_v10 = vsel %vm1360_vm8, %v3962_v13, %v3964_v15  ;;  %v3977_v30 = vsel %vm498_vm1, %v3969_v20, 0 }
 0x1ec   : > { %4695 = vmatprep.subr.msk.bf16.mxu0 %vm498_vm1, %v3970_v10 }
 0x1ed   : > { %4690 = vmatmul.mubr.msk.bf16.vlgmr.msra.gmra.mrb[92].mxu0 %vm494_vm2, %v4688_v18  ;;  %v3966_v5 = vpop.permute.xlu0 %3965 }
 0x1ee   : > { %3989 = vmatpush1.bf16.msra.mxu0 %v3977_v30  ;;  %v3968_v58 = vpop.permute.xlu1 %3967  ;;  %v3971_v21 = vsel %vm1360_vm8, %v3964_v15, %v3966_v5  ;;  %4020 = vmatprep.mubr.bf16.mxu0 %v4763_v2  ;;  %v4567_v15 = vld [vmem:[%s5990_s6 + $0x8] sm:$0xf] }
 0x1ef   : > { %v3972_v14 = vsel %vm1360_vm8, %v3966_v5, %v3968_v58  ;;  %v3983_v22 = vsel %vm498_vm1, %v3971_v21, 0 }
 0x1f0   : > { %4692 = vmatmul.mubr.msk.bf16.vlgmr.msra.gmra.mrb[92].mxu1 %vm494_vm2, %v4688_v18  ;;  %4697 = vmatprep.subr.msk.bf16.mxu1 %vm498_vm1, %v3972_v14 }
 0x1f1   : > { %4030 = vmatpush1.bf16.msra.mxu1 %v3983_v22  ;;  %v4104_v25 = vpop.permute.xlu0 %4103  ;;  %4061 = vmatprep.mubr.bf16.mxu1 %v4763_v2 }
 0x1f2   : > { %v4106_v32 = vpop.permute.xlu1 %4105 }
 0x1f3   : > { %v4113_v33 = vsel %vm1505_vm9, %v4104_v25, %v4106_v32 }
 0x1f4   : > { %v4121_v36 = vsel %vm498_vm1, %v4113_v33, 0 }
 0x1f5   : > { %4696 = vmatmul.mubr.msk.bf16.vlgmr.msra.gmra.mrb[96].mxu0 %vm494_vm2, %v4694_v61  ;;  %v4108_v35 = vpop.permute.xlu0 %4107 }
 0x1f6   : > { %v4110_v52 = vpop.permute.xlu1 %4109  ;;  %v4114_v43 = vsel %vm1505_vm9, %v4106_v32, %v4108_v35  ;;  %4164 = vmatprep.mubr.bf16.mxu0 %v4763_v2  ;;  %v888_v32 = vrot.slane %v4567_v15, %v5732_v51 }
 0x1f7   : > { %4701 = vmatprep.subr.msk.bf16.mxu0 %vm498_vm1, %v4114_v43  ;;  %v4115_v49 = vsel %vm1505_vm9, %v4108_v35, %v4110_v52  ;;  %v892_v35 = vrot.slane %v4567_v15, %v5738_v23 }
 0x1f8   : > { %4698 = vmatmul.mubr.msk.bf16.vlgmr.msra.gmra.mrb[96].mxu1 %vm494_vm2, %v4694_v61  ;;  %4133 = vmatpush1.bf16.msra.mxu0 %v4121_v36  ;;  %v4127_v40 = vsel %vm498_vm1, %v4115_v49, 0  ;;  %v896_v36 = vrot.slane %v4567_v15, %v5744_v56 }
 0x1f9   : > { %v4112_v24 = vpop.permute.xlu0 %4111  ;;  %4205 = vmatprep.mubr.bf16.mxu1 %v4763_v2 }
 0x1fa   : > { %v4248_v55 = vpop.permute.xlu1 %4247  ;;  %v4116_v38 = vsel %vm1505_vm9, %v4110_v52, %v4112_v24 }
 0x1fb   : > { %4703 = vmatprep.subr.msk.bf16.mxu1 %vm498_vm1, %v4116_v38 }
 0x1fc   : > { %4174 = vmatpush1.bf16.msra.mxu1 %v4127_v40  ;;  %v4573_v40 = vld [vmem:[%s5990_s6 + $0xc] sm:$0xf] }
 0x1fd   : > { %4702 = vmatmul.mubr.msk.bf16.vlgmr.msra.gmra.mrb[100].mxu0 %vm494_vm2, %v4700_v6  ;;  %v4250_v39 = vpop.permute.xlu0 %4249 }
 0x1fe   : > { %v4252_v59 = vpop.permute.xlu1 %4251  ;;  %v4257_v42 = vsel %vm1650_vm10, %v4248_v55, %v4250_v39  ;;  %4308 = vmatprep.mubr.bf16.mxu0 %v4763_v2  ;;  %v900_v55 = vrot.slane %v4567_v15, %v5748_v27 }
 0x1ff   : > { %v4258_v44 = vsel %vm1650_vm10, %v4250_v39, %v4252_v59  ;;  %v4265_v29 = vsel %vm498_vm1, %v4257_v42, 0 }
 0x200   : > { %4704 = vmatmul.mubr.msk.bf16.vlgmr.msra.gmra.mrb[100].mxu1 %vm494_vm2, %v4700_v6  ;;  %4707 = vmatprep.subr.msk.bf16.mxu0 %vm498_vm1, %v4258_v44 }
 0x201   : > { %4277 = vmatpush1.bf16.msra.mxu0 %v4265_v29  ;;  %v4254_v4 = vpop.permute.xlu0 %4253  ;;  %4349 = vmatprep.mubr.bf16.mxu1 %v4763_v2 }
 0x202   : > { %v4256_v46 = vpop.permute.xlu1 %4255  ;;  %v4259_v16 = vsel %vm1650_vm10, %v4252_v59, %v4254_v4 }
 0x203   : > { %v4260_v48 = vsel %vm1650_vm10, %v4254_v4, %v4256_v46  ;;  %v4271_v7 = vsel %vm498_vm1, %v4259_v16, 0 }
 0x204   : > { %4709 = vmatprep.subr.msk.bf16.mxu1 %vm498_vm1, %v4260_v48 }
 0x205   : > { %4708 = vmatmul.mubr.msk.bf16.vlgmr.msra.gmra.mrb[104].mxu0 %vm494_vm2, %v4706_v47  ;;  %4318 = vmatpush1.bf16.msra.mxu1 %v4271_v7 }
 0x206   : > { %v545_v41 = vpop.f32.mrb[0].mxu0 }
 0x207   : > { %v547_v26 = vpop.f32.mrb[1].mxu0  ;;  %v615_v34 = vmul.f32 %v598_v28, %v545_v41  ;;  %v1037_v41 = vrot.slane %v4573_v40, %v5738_v23 }
 0x208   : > { %4710 = vmatmul.mubr.msk.bf16.vlgmr.msra.gmra.mrb[104].mxu1 %vm494_vm2, %v4706_v47  ;;  %v549_v2 = vpop.f32.mrb[2].mxu0  ;;  %v616_v19 = vmul.f32 %v602_v63, %v547_v26  ;;  %v1033_v47 = vrot.slane %v4573_v40, %v5732_v51 }
 0x209   : > { %v550_v37 = vpop.f32.mrb[3].mxu0 }
 0x20a   : > { %v1041_v37 = vrot.slane %v4573_v40, %v5744_v56 }
 0x20b   : > { %v586_v54 = vpop.f32.mrb[0].mxu1 }
 0x20c   : > { %v588_v57 = vpop.f32.mrb[1].mxu1  ;;  %v617_v10 = vmul.f32 %v606_v60, %v586_v54  ;;  %v1045_v54 = vrot.slane %v4573_v40, %v5748_v27 }
 0x20d   : > { %v590_v62 = vpop.f32.mrb[2].mxu1  ;;  %v618_v14 = vmul.f32 %v610_v1, %v588_v57 }
 0x20e   : > { %v591_v0 = vpop.f32.mrb[3].mxu1  ;;  %v4579_v62 = vld [vmem:[%s5990_s6 + $0x10] sm:$0xf] }
 0x20f   : > { %v689_v9 = vpop.f32.mrb[4].mxu0  ;;  %v1178_v1 = vrot.slane %v4579_v62, %v5732_v51 }
 0x210   : > { %v760_v17 = vmul.f32 %v743_v11, %v689_v9  ;;  %v691_v3 = vpop.f32.mrb[5].mxu0 }
 0x211   : > { %v761_v31 = vmul.f32 %v747_v8, %v691_v3  ;;  %v693_v13 = vpop.f32.mrb[6].mxu0 }
 0x212   : > { %v764_v20 = vadd.f32 %v760_v17, %v615_v34  ;;  %v694_v21 = vpop.f32.mrb[7].mxu0  ;;  %v1186_v13 = vrot.slane %v4579_v62, %v5744_v56 }
 0x213   : > { %v730_v18 = vpop.f32.mrb[4].mxu1  ;;  %v765_v30 = vadd.f32 %v761_v31, %v616_v19 }
 0x214   : > { %v762_v5 = vmul.f32 %v751_v50, %v730_v18  ;;  %v732_v58 = vpop.f32.mrb[5].mxu1  ;;  %v1190_v18 = vrot.slane %v4579_v62, %v5748_v27 }
 0x215   : > { %v763_v22 = vmul.f32 %v755_v12, %v732_v58  ;;  %v734_v25 = vpop.f32.mrb[6].mxu1  ;;  %v1182_v12 = vrot.slane %v4579_v62, %v5738_v23 }
 0x216   : > { %v766_v61 = vadd.f32 %v762_v5, %v617_v10  ;;  %v735_v33 = vpop.f32.mrb[7].mxu1  ;;  %v4585_v5 = vld [vmem:[%s5990_s6 + $0x14] sm:$0xf] }
 0x217   : > { %v767_v52 = vadd.f32 %v763_v22, %v618_v14  ;;  %v1335_v40 = vrot.slane %v4585_v5, %v5748_v27 }
 0x218   : > { %v834_v43 = vpop.f32.mrb[8].mxu0 }
 0x219   : > { %v905_v49 = vmul.f32 %v888_v32, %v834_v43  ;;  %v836_v24 = vpop.f32.mrb[9].mxu0 }
 0x21a   : > { %v906_v38 = vmul.f32 %v892_v35, %v836_v24  ;;  %v838_v6 = vpop.f32.mrb[10].mxu0  ;;  %v1323_v35 = vrot.slane %v4585_v5, %v5732_v51 }
 0x21b   : > { %v909_v39 = vadd.f32 %v905_v49, %v764_v20  ;;  %v875_v59 = vpop.f32.mrb[8].mxu1  ;;  %v839_v42 = vpop.f32.mrb[11].mxu0 }
 0x21c   : > { %v910_v44 = vadd.f32 %v906_v38, %v765_v30  ;;  %v907_v29 = vmul.f32 %v896_v36, %v875_v59  ;;  %v877_v4 = vpop.f32.mrb[9].mxu1  ;;  %v1327_v36 = vrot.slane %v4585_v5, %v5738_v23  ;;  %v4591_v42 = vld [vmem:[%s5990_s6 + $0x18] sm:$0xf] }
 0x21d   : > { %v908_v46 = vmul.f32 %v900_v55, %v877_v4  ;;  %v879_v16 = vpop.f32.mrb[10].mxu1  ;;  %v1331_v55 = vrot.slane %v4585_v5, %v5744_v56  ;;  %v1480_v62 = vrot.slane %v4591_v42, %v5748_v27 }
 0x21e   : > { %v911_v48 = vadd.f32 %v907_v29, %v766_v61  ;;  %v880_v7 = vpop.f32.mrb[11].mxu1 }
 0x21f   : > { %v912_v26 = vadd.f32 %v908_v46, %v767_v52 }
 0x220   : > { %v979_v2 = vpop.f32.mrb[12].mxu0 }
 0x221   : > { %v1050_v45 = vmul.f32 %v1033_v47, %v979_v2  ;;  %v981_v53 = vpop.f32.mrb[13].mxu0 }
 0x222   : > { %v1051_v57 = vmul.f32 %v1037_v41, %v981_v53  ;;  %v983_v28 = vpop.f32.mrb[14].mxu0  ;;  %v1468_v41 = vrot.slane %v4591_v42, %v5732_v51 }
 0x223   : > { %v1054_v11 = vadd.f32 %v1050_v45, %v909_v39  ;;  %v1020_v63 = vpop.f32.mrb[12].mxu1  ;;  %v984_v0 = vpop.f32.mrb[15].mxu0 }
 0x224   : > { %v1055_v8 = vadd.f32 %v1051_v57, %v910_v44  ;;  %v1052_v60 = vmul.f32 %v1041_v37, %v1020_v63  ;;  %v1022_v9 = vpop.f32.mrb[13].mxu1  ;;  %v1472_v37 = vrot.slane %v4591_v42, %v5738_v23  ;;  %v4597_v0 = vld [vmem:[%s5990_s6 + $0x1c] sm:$0xf] }
 0x225   : > { %v1053_v50 = vmul.f32 %v1045_v54, %v1022_v9  ;;  %v1024_v34 = vpop.f32.mrb[14].mxu1  ;;  %v1476_v54 = vrot.slane %v4591_v42, %v5744_v56  ;;  %v1625_v5 = vrot.slane %v4597_v0, %v5748_v27 }
 0x226   : > { %v1056_v17 = vadd.f32 %v1052_v60, %v911_v48  ;;  %v1025_v3 = vpop.f32.mrb[15].mxu1 }
 0x227   : > { %v1057_v19 = vadd.f32 %v1053_v50, %v912_v26 }
 0x228   : > { %v1124_v31 = vpop.f32.mrb[16].mxu0 }
 0x229   : > { %v1195_v15 = vmul.f32 %v1178_v1, %v1124_v31  ;;  %v1126_v20 = vpop.f32.mrb[17].mxu0 }
 0x22a   : > { %v1196_v10 = vmul.f32 %v1182_v12, %v1126_v20  ;;  %v1128_v30 = vpop.f32.mrb[18].mxu0  ;;  %v1613_v12 = vrot.slane %v4597_v0, %v5732_v51 }
 0x22b   : > { %v1199_v58 = vadd.f32 %v1195_v15, %v1054_v11  ;;  %v1165_v21 = vpop.f32.mrb[16].mxu1  ;;  %v1129_v14 = vpop.f32.mrb[19].mxu0 }
 0x22c   : > { %v1200_v22 = vadd.f32 %v1196_v10, %v1055_v8  ;;  %v1197_v25 = vmul.f32 %v1186_v13, %v1165_v21  ;;  %v1167_v32 = vpop.f32.mrb[17].mxu1  ;;  %v1617_v13 = vrot.slane %v4597_v0, %v5738_v23  ;;  %v4603_v14 = vld [vmem:[%s5990_s6 + $0x20] sm:$0xf] }
 0x22d   : > { %v1198_v61 = vmul.f32 %v1190_v18, %v1167_v32  ;;  %v1169_v33 = vpop.f32.mrb[18].mxu1  ;;  %v1621_v18 = vrot.slane %v4597_v0, %v5744_v56  ;;  %v1770_v42 = vrot.slane %v4603_v14, %v5748_v27 }
 0x22e   : > { %v1201_v52 = vadd.f32 %v1197_v25, %v1056_v17  ;;  %v1170_v43 = vpop.f32.mrb[19].mxu1 }
 0x22f   : > { %v1202_v49 = vadd.f32 %v1198_v61, %v1057_v19 }
 0x230   : > { %v1269_v24 = vpop.f32.mrb[20].mxu0 }
 0x231   : > { %v1340_v38 = vmul.f32 %v1323_v35, %v1269_v24  ;;  %v1271_v6 = vpop.f32.mrb[21].mxu0 }
 0x232   : > { %v1341_v39 = vmul.f32 %v1327_v36, %v1271_v6  ;;  %v1273_v59 = vpop.f32.mrb[22].mxu0  ;;  %v1758_v36 = vrot.slane %v4603_v14, %v5732_v51 }
 0x233   : > { %v1344_v44 = vadd.f32 %v1340_v38, %v1199_v58  ;;  %v1310_v29 = vpop.f32.mrb[20].mxu1  ;;  %v1274_v4 = vpop.f32.mrb[23].mxu0 }
 0x234   : > { %v1345_v46 = vadd.f32 %v1341_v39, %v1200_v22  ;;  %v1342_v16 = vmul.f32 %v1331_v55, %v1310_v29  ;;  %v1312_v47 = vpop.f32.mrb[21].mxu1  ;;  %v1762_v55 = vrot.slane %v4603_v14, %v5738_v23  ;;  %v4609_v4 = vld [vmem:[%s5990_s6 + $0x24] sm:$0xf] }
 0x235   : > { %v1343_v48 = vmul.f32 %v1335_v40, %v1312_v47  ;;  %v1314_v7 = vpop.f32.mrb[22].mxu1  ;;  %v1766_v40 = vrot.slane %v4603_v14, %v5744_v56  ;;  %v1915_v0 = vrot.slane %v4609_v4, %v5748_v27 }
 0x236   : > { %v1346_v26 = vadd.f32 %v1342_v16, %v1201_v52  ;;  %v1315_v2 = vpop.f32.mrb[23].mxu1 }
 0x237   : > { %v1347_v45 = vadd.f32 %v1343_v48, %v1202_v49 }
 0x238   : > { %v1414_v53 = vpop.f32.mrb[24].mxu0 }
 0x239   : > { %v1485_v57 = vmul.f32 %v1468_v41, %v1414_v53  ;;  %v1416_v28 = vpop.f32.mrb[25].mxu0 }
 0x23a   : > { %v1486_v11 = vmul.f32 %v1472_v37, %v1416_v28  ;;  %v1418_v63 = vpop.f32.mrb[26].mxu0  ;;  %v1903_v37 = vrot.slane %v4609_v4, %v5732_v51 }
 0x23b   : > { %v1489_v8 = vadd.f32 %v1485_v57, %v1344_v44  ;;  %v1455_v60 = vpop.f32.mrb[24].mxu1  ;;  %v1419_v9 = vpop.f32.mrb[27].mxu0 }
 0x23c   : > { %v1490_v50 = vadd.f32 %v1486_v11, %v1345_v46  ;;  %v1487_v34 = vmul.f32 %v1476_v54, %v1455_v60  ;;  %v1457_v1 = vpop.f32.mrb[25].mxu1  ;;  %v1907_v54 = vrot.slane %v4609_v4, %v5738_v23  ;;  %v4615_v9 = vld [vmem:[%s5990_s6 + $0x28] sm:$0xf] }
 0x23d   : > { %v1488_v17 = vmul.f32 %v1480_v62, %v1457_v1  ;;  %v1459_v3 = vpop.f32.mrb[26].mxu1  ;;  %v1911_v62 = vrot.slane %v4609_v4, %v5744_v56  ;;  %v2060_v14 = vrot.slane %v4615_v9, %v5748_v27 }
 0x23e   : > { %v1491_v19 = vadd.f32 %v1487_v34, %v1346_v26  ;;  %v1460_v31 = vpop.f32.mrb[27].mxu1 }
 0x23f   : > { %v1492_v15 = vadd.f32 %v1488_v17, %v1347_v45 }
 0x240   : > { %v1559_v20 = vpop.f32.mrb[28].mxu0 }
 0x241   : > { %v1630_v10 = vmul.f32 %v1613_v12, %v1559_v20  ;;  %v1561_v30 = vpop.f32.mrb[29].mxu0 }
 0x242   : > { %v1631_v58 = vmul.f32 %v1617_v13, %v1561_v30  ;;  %v1563_v21 = vpop.f32.mrb[30].mxu0  ;;  %v2048_v13 = vrot.slane %v4615_v9, %v5732_v51 }
 0x243   : > { %v1634_v22 = vadd.f32 %v1630_v10, %v1489_v8  ;;  %v1600_v25 = vpop.f32.mrb[28].mxu1  ;;  %v1564_v32 = vpop.f32.mrb[31].mxu0 }
 0x244   : > { %v1635_v61 = vadd.f32 %v1631_v58, %v1490_v50  ;;  %v1632_v33 = vmul.f32 %v1621_v18, %v1600_v25  ;;  %v1602_v35 = vpop.f32.mrb[29].mxu1  ;;  %v2052_v18 = vrot.slane %v4615_v9, %v5738_v23  ;;  %v4621_v32 = vld [vmem:[%s5990_s6 + $0x2c] sm:$0xf] }
 0x245   : > { %v1633_v52 = vmul.f32 %v1625_v5, %v1602_v35  ;;  %v1604_v43 = vpop.f32.mrb[30].mxu1  ;;  %v2056_v5 = vrot.slane %v4615_v9, %v5744_v56  ;;  %v2205_v4 = vrot.slane %v4621_v32, %v5748_v27 }
 0x246   : > { %v1636_v49 = vadd.f32 %v1632_v33, %v1491_v19  ;;  %v1605_v24 = vpop.f32.mrb[31].mxu1 }
 0x247   : > { %v1637_v38 = vadd.f32 %v1633_v52, %v1492_v15 }
 0x248   : > { %v1704_v6 = vpop.f32.mrb[32].mxu0 }
 0x249   : > { %v1775_v39 = vmul.f32 %v1758_v36, %v1704_v6  ;;  %v1706_v59 = vpop.f32.mrb[33].mxu0 }
 0x24a   : > { %v1776_v44 = vmul.f32 %v1762_v55, %v1706_v59  ;;  %v1708_v29 = vpop.f32.mrb[34].mxu0  ;;  %v2193_v55 = vrot.slane %v4621_v32, %v5732_v51 }
 0x24b   : > { %v1779_v46 = vadd.f32 %v1775_v39, %v1634_v22  ;;  %v1745_v16 = vpop.f32.mrb[32].mxu1  ;;  %v1709_v47 = vpop.f32.mrb[35].mxu0 }
 0x24c   : > { %v1780_v48 = vadd.f32 %v1776_v44, %v1635_v61  ;;  %v1777_v7 = vmul.f32 %v1766_v40, %v1745_v16  ;;  %v1747_v41 = vpop.f32.mrb[33].mxu1  ;;  %v2197_v40 = vrot.slane %v4621_v32, %v5738_v23  ;;  %v4627_v47 = vld [vmem:[%s5990_s6 + $0x30] sm:$0xf] }
 0x24d   : > { %v1778_v26 = vmul.f32 %v1770_v42, %v1747_v41  ;;  %v1749_v2 = vpop.f32.mrb[34].mxu1  ;;  %v2201_v42 = vrot.slane %v4621_v32, %v5744_v56  ;;  %v2350_v9 = vrot.slane %v4627_v47, %v5748_v27 }
 0x24e   : > { %v1781_v45 = vadd.f32 %v1777_v7, %v1636_v49  ;;  %v1750_v53 = vpop.f32.mrb[35].mxu1 }
 0x24f   : > { %v1782_v57 = vadd.f32 %v1778_v26, %v1637_v38 }
 0x250   : > { %v1849_v28 = vpop.f32.mrb[36].mxu0 }
 0x251   : > { %v1920_v11 = vmul.f32 %v1903_v37, %v1849_v28  ;;  %v1851_v63 = vpop.f32.mrb[37].mxu0 }
 0x252   : > { %v1921_v8 = vmul.f32 %v1907_v54, %v1851_v63  ;;  %v1853_v60 = vpop.f32.mrb[38].mxu0  ;;  %v2338_v54 = vrot.slane %v4627_v47, %v5732_v51 }
 0x253   : > { %v1924_v50 = vadd.f32 %v1920_v11, %v1779_v46  ;;  %v1890_v34 = vpop.f32.mrb[36].mxu1  ;;  %v1854_v1 = vpop.f32.mrb[39].mxu0 }
 0x254   : > { %v1925_v17 = vadd.f32 %v1921_v8, %v1780_v48  ;;  %v1922_v3 = vmul.f32 %v1911_v62, %v1890_v34  ;;  %v1892_v12 = vpop.f32.mrb[37].mxu1  ;;  %v2342_v62 = vrot.slane %v4627_v47, %v5738_v23  ;;  %v4633_v1 = vld [vmem:[%s5990_s6 + $0x34] sm:$0xf] }
 0x255   : > { %v1923_v19 = vmul.f32 %v1915_v0, %v1892_v12  ;;  %v1894_v31 = vpop.f32.mrb[38].mxu1  ;;  %v2346_v0 = vrot.slane %v4627_v47, %v5744_v56  ;;  %v2480_v32 = vrot.slane %v4633_v1, %v5748_v27 }
 0x256   : > { %v1926_v15 = vadd.f32 %v1922_v3, %v1781_v45  ;;  %v1895_v20 = vpop.f32.mrb[39].mxu1 }
 0x257   : > { %v1927_v10 = vadd.f32 %v1923_v19, %v1782_v57 }
 0x258   : > { %v1994_v30 = vpop.f32.mrb[40].mxu0 }
 0x259   : > { %v2065_v58 = vmul.f32 %v2048_v13, %v1994_v30  ;;  %v1996_v21 = vpop.f32.mrb[41].mxu0 }
 0x25a   : > { %v2066_v22 = vmul.f32 %v2052_v18, %v1996_v21  ;;  %v1998_v25 = vpop.f32.mrb[42].mxu0  ;;  %v2468_v18 = vrot.slane %v4633_v1, %v5732_v51 }
 0x25b   : > { %v2069_v61 = vadd.f32 %v2065_v58, %v1924_v50  ;;  %v2035_v33 = vpop.f32.mrb[40].mxu1  ;;  %v1999_v35 = vpop.f32.mrb[43].mxu0 }
 0x25c   : > { %v2070_v52 = vadd.f32 %v2066_v22, %v1925_v17  ;;  %v2067_v43 = vmul.f32 %v2056_v5, %v2035_v33  ;;  %v2037_v36 = vpop.f32.mrb[41].mxu1  ;;  %v2472_v5 = vrot.slane %v4633_v1, %v5738_v23  ;;  %v4639_v35 = vld [vmem:[%s5990_s6 + $0x38] sm:$0xf] }
 0x25d   : > { %v2068_v49 = vmul.f32 %v2060_v14, %v2037_v36  ;;  %v2039_v24 = vpop.f32.mrb[42].mxu1  ;;  %v2476_v14 = vrot.slane %v4633_v1, %v5744_v56  ;;  %v2645_v47 = vrot.slane %v4639_v35, %v5748_v27 }
 0x25e   : > { %v2071_v38 = vadd.f32 %v2067_v43, %v1926_v15  ;;  %v2040_v6 = vpop.f32.mrb[43].mxu1 }
 0x25f   : > { %v2072_v39 = vadd.f32 %v2068_v49, %v1927_v10 }
 0x260   : > { %v2139_v59 = vpop.f32.mrb[44].mxu0 }
 0x261   : > { %v2210_v44 = vmul.f32 %v2193_v55, %v2139_v59  ;;  %v2141_v29 = vpop.f32.mrb[45].mxu0 }
 0x262   : > { %v2211_v46 = vmul.f32 %v2197_v40, %v2141_v29  ;;  %v2143_v16 = vpop.f32.mrb[46].mxu0  ;;  %v2633_v40 = vrot.slane %v4639_v35, %v5732_v51 }
 0x263   : > { %v2214_v48 = vadd.f32 %v2210_v44, %v2069_v61  ;;  %v2180_v7 = vpop.f32.mrb[44].mxu1  ;;  %v2144_v41 = vpop.f32.mrb[47].mxu0 }
 0x264   : > { %v2215_v26 = vadd.f32 %v2211_v46, %v2070_v52  ;;  %v2212_v2 = vmul.f32 %v2201_v42, %v2180_v7  ;;  %v2182_v37 = vpop.f32.mrb[45].mxu1  ;;  %v2637_v42 = vrot.slane %v4639_v35, %v5738_v23  ;;  %v4645_v41 = vld [vmem:[%s5990_s6 + $0x3c] sm:$0xf] }
 0x265   : > { %v2213_v45 = vmul.f32 %v2205_v4, %v2182_v37  ;;  %v2184_v53 = vpop.f32.mrb[46].mxu1  ;;  %v2641_v4 = vrot.slane %v4639_v35, %v5744_v56  ;;  %v2790_v1 = vrot.slane %v4645_v41, %v5748_v27 }
 0x266   : > { %v2216_v57 = vadd.f32 %v2212_v2, %v2071_v38  ;;  %v2185_v28 = vpop.f32.mrb[47].mxu1 }
 0x267   : > { %v2217_v11 = vadd.f32 %v2213_v45, %v2072_v39 }
 0x268   : > { %v2284_v63 = vpop.f32.mrb[48].mxu0 }
 0x269   : > { %v2355_v8 = vmul.f32 %v2338_v54, %v2284_v63  ;;  %v2286_v60 = vpop.f32.mrb[49].mxu0 }
 0x26a   : > { %v2356_v50 = vmul.f32 %v2342_v62, %v2286_v60  ;;  %v2288_v34 = vpop.f32.mrb[50].mxu0  ;;  %v2778_v62 = vrot.slane %v4645_v41, %v5732_v51 }
 0x26b   : > { %v2359_v17 = vadd.f32 %v2355_v8, %v2214_v48  ;;  %v2325_v3 = vpop.f32.mrb[48].mxu1  ;;  %v2289_v12 = vpop.f32.mrb[51].mxu0 }
 0x26c   : > { %v2360_v19 = vadd.f32 %v2356_v50, %v2215_v26  ;;  %v2357_v31 = vmul.f32 %v2346_v0, %v2325_v3  ;;  %v2327_v13 = vpop.f32.mrb[49].mxu1  ;;  %v2782_v0 = vrot.slane %v4645_v41, %v5738_v23  ;;  %v4651_v12 = vld [vmem:[%s5990_s6 + $0x40] sm:$0xf] }
 0x26d   : > { %v2358_v15 = vmul.f32 %v2350_v9, %v2327_v13  ;;  %v2329_v20 = vpop.f32.mrb[50].mxu1  ;;  %v2786_v9 = vrot.slane %v4645_v41, %v5744_v56  ;;  %v2935_v35 = vrot.slane %v4651_v12, %v5748_v27 }
 0x26e   : > { %v2361_v10 = vadd.f32 %v2357_v31, %v2216_v57  ;;  %v2330_v30 = vpop.f32.mrb[51].mxu1 }
 0x26f   : > { %v2362_v58 = vadd.f32 %v2358_v15, %v2217_v11 }
 0x270   : > { %v2414_v21 = vpop.f32.mrb[52].mxu0 }
 0x271   : > { %v2485_v22 = vmul.f32 %v2468_v18, %v2414_v21  ;;  %v2416_v25 = vpop.f32.mrb[53].mxu0 }
 0x272   : > { %v2486_v61 = vmul.f32 %v2472_v5, %v2416_v25  ;;  %v2418_v33 = vpop.f32.mrb[54].mxu0  ;;  %v2923_v5 = vrot.slane %v4651_v12, %v5732_v51 }
 0x273   : > { %v2489_v52 = vadd.f32 %v2485_v22, %v2359_v17  ;;  %v2455_v43 = vpop.f32.mrb[52].mxu1  ;;  %v2419_v36 = vpop.f32.mrb[55].mxu0 }
 0x274   : > { %v2490_v49 = vadd.f32 %v2486_v61, %v2360_v19  ;;  %v2487_v24 = vmul.f32 %v2476_v14, %v2455_v43  ;;  %v2457_v55 = vpop.f32.mrb[53].mxu1  ;;  %v2927_v14 = vrot.slane %v4651_v12, %v5738_v23  ;;  %v4657_v36 = vld [vmem:[%s5990_s6 + $0x44] sm:$0xf] }
 0x275   : > { %v2488_v38 = vmul.f32 %v2480_v32, %v2457_v55  ;;  %v2459_v6 = vpop.f32.mrb[54].mxu1  ;;  %v2931_v32 = vrot.slane %v4651_v12, %v5744_v56  ;;  %v3080_v41 = vrot.slane %v4657_v36, %v5748_v27 }
 0x276   : > { %v2491_v39 = vadd.f32 %v2487_v24, %v2361_v10  ;;  %v2460_v59 = vpop.f32.mrb[55].mxu1 }
 0x277   : > { %v2492_v44 = vadd.f32 %v2488_v38, %v2362_v58 }
 0x278   : > { %v2579_v29 = vpop.f32.mrb[56].mxu0 }
 0x279   : > { %v2650_v46 = vmul.f32 %v2633_v40, %v2579_v29  ;;  %v2581_v16 = vpop.f32.mrb[57].mxu0 }
 0x27a   : > { %v2651_v48 = vmul.f32 %v2637_v42, %v2581_v16  ;;  %v2583_v7 = vpop.f32.mrb[58].mxu0  ;;  %v3068_v42 = vrot.slane %v4657_v36, %v5732_v51 }
 0x27b   : > { %v2654_v26 = vadd.f32 %v2650_v46, %v2489_v52  ;;  %v2620_v2 = vpop.f32.mrb[56].mxu1  ;;  %v2584_v37 = vpop.f32.mrb[59].mxu0 }
 0x27c   : > { %v2655_v45 = vadd.f32 %v2651_v48, %v2490_v49  ;;  %v2652_v53 = vmul.f32 %v2641_v4, %v2620_v2  ;;  %v2622_v54 = vpop.f32.mrb[57].mxu1  ;;  %v3072_v4 = vrot.slane %v4657_v36, %v5738_v23  ;;  %v4663_v37 = vld [vmem:[%s5990_s6 + $0x48] sm:$0xf] }
 0x27d   : > { %v2653_v57 = vmul.f32 %v2645_v47, %v2622_v54  ;;  %v2624_v28 = vpop.f32.mrb[58].mxu1  ;;  %v3076_v47 = vrot.slane %v4657_v36, %v5744_v56  ;;  %v3224_v12 = vrot.slane %v4663_v37, %v5748_v27 }
 0x27e   : > { %v2656_v11 = vadd.f32 %v2652_v53, %v2491_v39  ;;  %v2625_v63 = vpop.f32.mrb[59].mxu1 }
 0x27f   : > { %v2657_v8 = vadd.f32 %v2653_v57, %v2492_v44 }
 0x280   : > { %v2724_v60 = vpop.f32.mrb[60].mxu0 }
 0x281   : > { %v2795_v50 = vmul.f32 %v2778_v62, %v2724_v60  ;;  %v2726_v34 = vpop.f32.mrb[61].mxu0 }
 0x282   : > { %v2796_v17 = vmul.f32 %v2782_v0, %v2726_v34  ;;  %v2728_v3 = vpop.f32.mrb[62].mxu0  ;;  %v3212_v0 = vrot.slane %v4663_v37, %v5732_v51 }
 0x283   : > { %v2799_v19 = vadd.f32 %v2795_v50, %v2654_v26  ;;  %v2765_v31 = vpop.f32.mrb[60].mxu1  ;;  %v2729_v13 = vpop.f32.mrb[63].mxu0 }
 0x284   : > { %v2800_v15 = vadd.f32 %v2796_v17, %v2655_v45  ;;  %v2797_v20 = vmul.f32 %v2786_v9, %v2765_v31  ;;  %v2767_v18 = vpop.f32.mrb[61].mxu1  ;;  %v3216_v9 = vrot.slane %v4663_v37, %v5738_v23  ;;  %v4669_v13 = vld [vmem:[%s5990_s6 + $0x4c] sm:$0xf] }
 0x285   : > { %v2798_v10 = vmul.f32 %v2790_v1, %v2767_v18  ;;  %v2769_v30 = vpop.f32.mrb[62].mxu1  ;;  %v3220_v1 = vrot.slane %v4663_v37, %v5744_v56  ;;  %v3368_v36 = vrot.slane %v4669_v13, %v5748_v27 }
 0x286   : > { %v2801_v58 = vadd.f32 %v2797_v20, %v2656_v11  ;;  %v2770_v21 = vpop.f32.mrb[63].mxu1 }
 0x287   : > { %v2802_v22 = vadd.f32 %v2798_v10, %v2657_v8 }
 0x288   : > { %v2869_v25 = vpop.f32.mrb[64].mxu0 }
 0x289   : > { %v2940_v61 = vmul.f32 %v2923_v5, %v2869_v25  ;;  %v2871_v33 = vpop.f32.mrb[65].mxu0 }
 0x28a   : > { %v2941_v52 = vmul.f32 %v2927_v14, %v2871_v33  ;;  %v2873_v43 = vpop.f32.mrb[66].mxu0  ;;  %v3356_v14 = vrot.slane %v4669_v13, %v5732_v51 }
 0x28b   : > { %v2944_v49 = vadd.f32 %v2940_v61, %v2799_v19  ;;  %v2910_v24 = vpop.f32.mrb[64].mxu1  ;;  %v2874_v55 = vpop.f32.mrb[67].mxu0 }
 0x28c   : > { %v2945_v38 = vadd.f32 %v2941_v52, %v2800_v15  ;;  %v2942_v6 = vmul.f32 %v2931_v32, %v2910_v24  ;;  %v2912_v40 = vpop.f32.mrb[65].mxu1  ;;  %v3360_v32 = vrot.slane %v4669_v13, %v5738_v23  ;;  %v4675_v55 = vld [vmem:[%s5990_s6 + $0x50] sm:$0xf] }
 0x28d   : > { %v2943_v39 = vmul.f32 %v2935_v35, %v2912_v40  ;;  %v2914_v59 = vpop.f32.mrb[66].mxu1  ;;  %v3364_v35 = vrot.slane %v4669_v13, %v5744_v56  ;;  %v3512_v37 = vrot.slane %v4675_v55, %v5748_v27 }
 0x28e   : > { %v2946_v44 = vadd.f32 %v2942_v6, %v2801_v58  ;;  %v2915_v29 = vpop.f32.mrb[67].mxu1 }
 0x28f   : > { %v2947_v46 = vadd.f32 %v2943_v39, %v2802_v22 }
 0x290   : > { %v3014_v16 = vpop.f32.mrb[68].mxu0 }
 0x291   : > { %v3085_v48 = vmul.f32 %v3068_v42, %v3014_v16  ;;  %v3016_v7 = vpop.f32.mrb[69].mxu0 }
 0x292   : > { %v3086_v26 = vmul.f32 %v3072_v4, %v3016_v7  ;;  %v3018_v2 = vpop.f32.mrb[70].mxu0  ;;  %v3500_v4 = vrot.slane %v4675_v55, %v5732_v51 }
 0x293   : > { %v3089_v45 = vadd.f32 %v3085_v48, %v2944_v49  ;;  %v3055_v53 = vpop.f32.mrb[68].mxu1  ;;  %v3019_v54 = vpop.f32.mrb[71].mxu0 }
 0x294   : > { %v3090_v57 = vadd.f32 %v3086_v26, %v2945_v38  ;;  %v3087_v28 = vmul.f32 %v3076_v47, %v3055_v53  ;;  %v3057_v62 = vpop.f32.mrb[69].mxu1  ;;  %v3504_v47 = vrot.slane %v4675_v55, %v5738_v23  ;;  %v4681_v54 = vld [vmem:[%s5990_s6 + $0x54] sm:$0xf] }
 0x295   : > { %v3088_v11 = vmul.f32 %v3080_v41, %v3057_v62  ;;  %v3059_v63 = vpop.f32.mrb[70].mxu1  ;;  %v3508_v41 = vrot.slane %v4675_v55, %v5744_v56  ;;  %v3656_v13 = vrot.slane %v4681_v54, %v5748_v27 }
 0x296   : > { %v3091_v8 = vadd.f32 %v3087_v28, %v2946_v44  ;;  %v3060_v60 = vpop.f32.mrb[71].mxu1 }
 0x297   : > { %v3092_v50 = vadd.f32 %v3088_v11, %v2947_v46 }
 0x298   : > { %v3158_v34 = vpop.f32.mrb[72].mxu0 }
 0x299   : > { %v3229_v17 = vmul.f32 %v3212_v0, %v3158_v34  ;;  %v3160_v3 = vpop.f32.mrb[73].mxu0 }
 0x29a   : > { %v3230_v19 = vmul.f32 %v3216_v9, %v3160_v3  ;;  %v3162_v31 = vpop.f32.mrb[74].mxu0  ;;  %v3644_v9 = vrot.slane %v4681_v54, %v5732_v51 }
 0x29b   : > { %v3233_v15 = vadd.f32 %v3229_v17, %v3089_v45  ;;  %v3199_v20 = vpop.f32.mrb[72].mxu1  ;;  %v3163_v18 = vpop.f32.mrb[75].mxu0 }
 0x29c   : > { %v3234_v10 = vadd.f32 %v3230_v19, %v3090_v57  ;;  %v3231_v30 = vmul.f32 %v3220_v1, %v3199_v20  ;;  %v3201_v5 = vpop.f32.mrb[73].mxu1  ;;  %v3648_v1 = vrot.slane %v4681_v54, %v5738_v23  ;;  %v4687_v18 = vld [vmem:[%s5990_s6 + $0x58] sm:$0xf] }
 0x29d   : > { %v3232_v58 = vmul.f32 %v3224_v12, %v3201_v5  ;;  %v3203_v21 = vpop.f32.mrb[74].mxu1  ;;  %v3652_v12 = vrot.slane %v4681_v54, %v5744_v56  ;;  %v3800_v55 = vrot.slane %v4687_v18, %v5748_v27 }
 0x29e   : > { %v3235_v22 = vadd.f32 %v3231_v30, %v3091_v8  ;;  %v3204_v25 = vpop.f32.mrb[75].mxu1 }
 0x29f   : > { %v3236_v61 = vadd.f32 %v3232_v58, %v3092_v50 }
 0x2a0   : > { %v3302_v33 = vpop.f32.mrb[76].mxu0 }
 0x2a1   : > { %v3373_v52 = vmul.f32 %v3356_v14, %v3302_v33  ;;  %v3304_v43 = vpop.f32.mrb[77].mxu0 }
 0x2a2   : > { %v3374_v49 = vmul.f32 %v3360_v32, %v3304_v43  ;;  %v3306_v24 = vpop.f32.mrb[78].mxu0  ;;  %v3788_v32 = vrot.slane %v4687_v18, %v5732_v51 }
 0x2a3   : > { %v3377_v38 = vadd.f32 %v3373_v52, %v3233_v15  ;;  %v3343_v6 = vpop.f32.mrb[76].mxu1  ;;  %v3307_v40 = vpop.f32.mrb[79].mxu0 }
 0x2a4   : > { %v3378_v39 = vadd.f32 %v3374_v49, %v3234_v10  ;;  %v3375_v59 = vmul.f32 %v3364_v35, %v3343_v6  ;;  %v3345_v42 = vpop.f32.mrb[77].mxu1  ;;  %v3792_v35 = vrot.slane %v4687_v18, %v5738_v23  ;;  %v4693_v40 = vld [vmem:[%s5990_s6 + $0x5c] sm:$0xf] }
 0x2a5   : > { %v3376_v44 = vmul.f32 %v3368_v36, %v3345_v42  ;;  %v3347_v29 = vpop.f32.mrb[78].mxu1  ;;  %v3796_v36 = vrot.slane %v4687_v18, %v5744_v56  ;;  %v3944_v54 = vrot.slane %v4693_v40, %v5748_v27 }
 0x2a6   : > { %v3379_v46 = vadd.f32 %v3375_v59, %v3235_v22  ;;  %v3348_v16 = vpop.f32.mrb[79].mxu1 }
 0x2a7   : > { %v3380_v48 = vadd.f32 %v3376_v44, %v3236_v61 }
 0x2a8   : > { %v3446_v7 = vpop.f32.mrb[80].mxu0 }
 0x2a9   : > { %v3517_v26 = vmul.f32 %v3500_v4, %v3446_v7  ;;  %v3448_v2 = vpop.f32.mrb[81].mxu0 }
 0x2aa   : > { %v3518_v45 = vmul.f32 %v3504_v47, %v3448_v2  ;;  %v3450_v53 = vpop.f32.mrb[82].mxu0  ;;  %v3932_v47 = vrot.slane %v4693_v40, %v5732_v51 }
 0x2ab   : > { %v3521_v57 = vadd.f32 %v3517_v26, %v3377_v38  ;;  %v3487_v28 = vpop.f32.mrb[80].mxu1  ;;  %v3451_v62 = vpop.f32.mrb[83].mxu0 }
 0x2ac   : > { %v3522_v11 = vadd.f32 %v3518_v45, %v3378_v39  ;;  %v3519_v63 = vmul.f32 %v3508_v41, %v3487_v28  ;;  %v3489_v0 = vpop.f32.mrb[81].mxu1  ;;  %v3936_v41 = vrot.slane %v4693_v40, %v5738_v23  ;;  %v4699_v62 = vld [vmem:[%s5990_s6 + $0x60] sm:$0xf] }
 0x2ad   : > { %v3520_v8 = vmul.f32 %v3512_v37, %v3489_v0  ;;  %v3491_v60 = vpop.f32.mrb[82].mxu1  ;;  %v3940_v37 = vrot.slane %v4693_v40, %v5744_v56  ;;  %v4088_v18 = vrot.slane %v4699_v62, %v5748_v27 }
 0x2ae   : > { %v3523_v50 = vadd.f32 %v3519_v63, %v3379_v46  ;;  %v3492_v34 = vpop.f32.mrb[83].mxu1 }
 0x2af   : > { %v3524_v17 = vadd.f32 %v3520_v8, %v3380_v48 }
 0x2b0   : > { %v3590_v3 = vpop.f32.mrb[84].mxu0 }
 0x2b1   : > { %v3661_v19 = vmul.f32 %v3644_v9, %v3590_v3  ;;  %v3592_v31 = vpop.f32.mrb[85].mxu0 }
 0x2b2   : > { %v3662_v15 = vmul.f32 %v3648_v1, %v3592_v31  ;;  %v3594_v20 = vpop.f32.mrb[86].mxu0  ;;  %v4076_v1 = vrot.slane %v4699_v62, %v5732_v51 }
 0x2b3   : > { %v3665_v10 = vadd.f32 %v3661_v19, %v3521_v57  ;;  %v3631_v30 = vpop.f32.mrb[84].mxu1  ;;  %v3595_v5 = vpop.f32.mrb[87].mxu0 }
 0x2b4   : > { %v3666_v58 = vadd.f32 %v3662_v15, %v3522_v11  ;;  %v3663_v21 = vmul.f32 %v3652_v12, %v3631_v30  ;;  %v3633_v14 = vpop.f32.mrb[85].mxu1  ;;  %v4080_v12 = vrot.slane %v4699_v62, %v5738_v23  ;;  %v4705_v5 = vld [vmem:[%s5990_s6 + $0x64] sm:$0xf] }
 0x2b5   : > { %v3664_v22 = vmul.f32 %v3656_v13, %v3633_v14  ;;  %v3635_v25 = vpop.f32.mrb[86].mxu1  ;;  %v4084_v13 = vrot.slane %v4699_v62, %v5744_v56  ;;  %v4232_v40 = vrot.slane %v4705_v5, %v5748_v27 }
 0x2b6   : > { %v3667_v61 = vadd.f32 %v3663_v21, %v3523_v50  ;;  %v3636_v33 = vpop.f32.mrb[87].mxu1 }
 0x2b7   : > { %v3668_v52 = vadd.f32 %v3664_v22, %v3524_v17 }
 0x2b8   : > { %v3734_v43 = vpop.f32.mrb[88].mxu0 }
 0x2b9   : > { %v3805_v49 = vmul.f32 %v3788_v32, %v3734_v43  ;;  %v3736_v24 = vpop.f32.mrb[89].mxu0 }
 0x2ba   : > { %v3806_v38 = vmul.f32 %v3792_v35, %v3736_v24  ;;  %v3738_v6 = vpop.f32.mrb[90].mxu0  ;;  %v4220_v35 = vrot.slane %v4705_v5, %v5732_v51 }
 0x2bb   : > { %v3809_v39 = vadd.f32 %v3805_v49, %v3665_v10  ;;  %v3775_v59 = vpop.f32.mrb[88].mxu1  ;;  %v3739_v42 = vpop.f32.mrb[91].mxu0 }
 0x2bc   : > { %v3810_v44 = vadd.f32 %v3806_v38, %v3666_v58  ;;  %v3807_v29 = vmul.f32 %v3796_v36, %v3775_v59  ;;  %v3777_v4 = vpop.f32.mrb[89].mxu1  ;;  %v4224_v36 = vrot.slane %v4705_v5, %v5738_v23  ;;  %v4711_v42 = vld [vmem:[%s5990_s6 + $0x68] sm:$0xf] }
 0x2bd   : > { %v3808_v46 = vmul.f32 %v3800_v55, %v3777_v4  ;;  %v3779_v16 = vpop.f32.mrb[90].mxu1  ;;  %v4228_v55 = vrot.slane %v4705_v5, %v5744_v56  ;;  %v4376_v62 = vrot.slane %v4711_v42, %v5748_v27 }
 0x2be   : > { %v3811_v48 = vadd.f32 %v3807_v29, %v3667_v61  ;;  %v3780_v7 = vpop.f32.mrb[91].mxu1 }
 0x2bf   : > { %v3812_v26 = vadd.f32 %v3808_v46, %v3668_v52 }
 0x2c0   : > { %v3878_v2 = vpop.f32.mrb[92].mxu0 }
 0x2c1   : > { %v3949_v45 = vmul.f32 %v3932_v47, %v3878_v2  ;;  %v3880_v53 = vpop.f32.mrb[93].mxu0 }
 0x2c2   : > { %v3950_v57 = vmul.f32 %v3936_v41, %v3880_v53  ;;  %v3882_v28 = vpop.f32.mrb[94].mxu0  ;;  %v4364_v41 = vrot.slane %v4711_v42, %v5732_v51  ;;  %v5935_v51 = vld [vmem:[%s5988_s4] sm:$0xff] }
 0x2c3   : > { %v3953_v11 = vadd.f32 %v3949_v45, %v3809_v39  ;;  %v3919_v63 = vpop.f32.mrb[92].mxu1  ;;  %v3883_v0 = vpop.f32.mrb[95].mxu0 }
 0x2c4   : > { %v3954_v8 = vadd.f32 %v3950_v57, %v3810_v44  ;;  %v3951_v60 = vmul.f32 %v3940_v37, %v3919_v63  ;;  %v3921_v9 = vpop.f32.mrb[93].mxu1  ;;  %v4368_v37 = vrot.slane %v4711_v42, %v5738_v23 }
 0x2c5   : > { %v3952_v50 = vmul.f32 %v3944_v54, %v3921_v9  ;;  %v3923_v34 = vpop.f32.mrb[94].mxu1  ;;  %v4372_v54 = vrot.slane %v4711_v42, %v5744_v56  ;;  %v4393_v9 = vpop.permute.xlu0 %4392  ;;  %v5942_v56 = vld [vmem:[%s5988_s4 + $0x8] sm:$0xff] }
 0x2c6   : > { %v3955_v17 = vadd.f32 %v3951_v60, %v3811_v48  ;;  %v3924_v3 = vpop.f32.mrb[95].mxu1 }
 0x2c7   : > { %v3956_v19 = vadd.f32 %v3952_v50, %v3812_v26 }
 0x2c8   : > { %v4022_v31 = vpop.f32.mrb[96].mxu0 }
 0x2c9   : > { %v4093_v15 = vmul.f32 %v4076_v1, %v4022_v31  ;;  %v4024_v20 = vpop.f32.mrb[97].mxu0 }
 0x2ca   : > { %v4094_v10 = vmul.f32 %v4080_v12, %v4024_v20  ;;  %v4026_v30 = vpop.f32.mrb[98].mxu0 }
 0x2cb   : > { %v4097_v58 = vadd.f32 %v4093_v15, %v3953_v11  ;;  %v4063_v21 = vpop.f32.mrb[96].mxu1  ;;  %v4027_v14 = vpop.f32.mrb[99].mxu0 }
 0x2cc   : > { %v4098_v22 = vadd.f32 %v4094_v10, %v3954_v8  ;;  %v4095_v25 = vmul.f32 %v4084_v13, %v4063_v21  ;;  %v4065_v32 = vpop.f32.mrb[97].mxu1  ;;  %v5951_v13 = vld [vmem:[%s5988_s4 + $0x10] sm:$0xff]  ;;  %v5960_v10 = vld [vmem:[%s5988_s4 + $0x18] sm:$0xff] }
 0x2cd   : > { %v4096_v61 = vmul.f32 %v4088_v18, %v4065_v32  ;;  %v4067_v33 = vpop.f32.mrb[98].mxu1 }
 0x2ce   : > { %v4099_v52 = vadd.f32 %v4095_v25, %v3955_v17  ;;  %v4068_v43 = vpop.f32.mrb[99].mxu1 }
 0x2cf   : > { %v4100_v49 = vadd.f32 %v4096_v61, %v3956_v19 }
 0x2d0   : > { %v4166_v24 = vpop.f32.mrb[100].mxu0 }
 0x2d1   : > { %v4237_v38 = vmul.f32 %v4220_v35, %v4166_v24  ;;  %v4168_v6 = vpop.f32.mrb[101].mxu0 }
 0x2d2   : > { %v4238_v39 = vmul.f32 %v4224_v36, %v4168_v6  ;;  %v4170_v59 = vpop.f32.mrb[102].mxu0 }
 0x2d3   : > { %v4241_v44 = vadd.f32 %v4237_v38, %v4097_v58  ;;  %v4207_v29 = vpop.f32.mrb[100].mxu1  ;;  %v4171_v4 = vpop.f32.mrb[103].mxu0 }
 0x2d4   : > { %v4242_v46 = vadd.f32 %v4238_v39, %v4098_v22  ;;  %v4239_v16 = vmul.f32 %v4228_v55, %v4207_v29  ;;  %v4209_v47 = vpop.f32.mrb[101].mxu1 }
 0x2d5   : > { %v4240_v48 = vmul.f32 %v4232_v40, %v4209_v47  ;;  %v4211_v7 = vpop.f32.mrb[102].mxu1 }
 0x2d6   : > { %v4243_v26 = vadd.f32 %v4239_v16, %v4099_v52  ;;  %v4212_v2 = vpop.f32.mrb[103].mxu1 }
 0x2d7   : > { %v4244_v45 = vadd.f32 %v4240_v48, %v4100_v49 }
 0x2d8   : > { %v4310_v53 = vpop.f32.mrb[104].mxu0 }
 0x2d9   : > { %v4381_v57 = vmul.f32 %v4364_v41, %v4310_v53  ;;  %v4312_v28 = vpop.f32.mrb[105].mxu0 }
 0x2da   : > { %v4382_v11 = vmul.f32 %v4368_v37, %v4312_v28  ;;  %v4314_v63 = vpop.f32.mrb[106].mxu0 }
 0x2db   : > { %v4385_v0 = vadd.f32 %v4381_v57, %v4241_v44  ;;  %v4351_v8 = vpop.f32.mrb[104].mxu1  ;;  %v4315_v60 = vpop.f32.mrb[107].mxu0 }
 0x2dc   : > { %v4386_v23 = vadd.f32 %v4382_v11, %v4242_v46  ;;  %v4383_v50 = vmul.f32 %v4372_v54, %v4351_v8  ;;  %v4353_v34 = vpop.f32.mrb[105].mxu1  ;;  %v4456_v63 = vpop.permute.xlu1 %4455 }
 0x2dd   : > { %v5937_v1 = vadd.f32 %v4393_v9, %v4385_v0  ;;  %v4384_v27 = vmul.f32 %v4376_v62, %v4353_v34  ;;  %v4355_v17 = vpop.f32.mrb[106].mxu1 }
 0x2de   : > { %v5944_v3 = vadd.f32 %v4393_v9, %v4386_v23  ;;  %v4387_v12 = vadd.f32 %v4383_v50, %v4243_v26  ;;  %v4356_v19 = vpop.f32.mrb[107].mxu1 }
 0x2df   : > { %v4403_v31 = vadd.f32 %v5935_v51, %v5937_v1  ;;  %v4388_v15 = vadd.f32 %v4384_v27, %v4244_v45 }
 0x2e0   : > { %v4404_v20 = vadd.f32 %v5942_v56, %v5944_v3  ;;  %v5955_v18 = vadd.f32 %v4393_v9, %v4387_v12 }
 0x2e1   : > { %v4407_v30 = vmul.f32 %v4403_v31, %v4403_v31  ;;  %v5962_v5 = vadd.f32 %v4393_v9, %v4388_v15 }
 0x2e2   : > { %v4408_v58 = vmul.f32 %v4404_v20, %v4404_v20  ;;  %v4405_v21 = vadd.f32 %v5951_v13, %v5955_v18 }
 0x2e3   : > { %v4411_v14 = vrot.slane %v4407_v30, 4  ;;  %v4406_v22 = vadd.f32 %v5960_v10, %v5962_v5 }
 0x2e4   : > { %v4417_v25 = vrot.slane %v4408_v58, 4  ;;  %v4409_v32 = vmul.f32 %v4405_v21, %v4405_v21 }
 0x2e5   : > { %v4412_v61 = vadd.f32 %v4411_v14, %v4407_v30  ;;  %v4410_v33 = vmul.f32 %v4406_v22, %v4406_v22 }
 0x2e6   : > { %v4418_v35 = vadd.f32 %v4417_v25, %v4408_v58  ;;  %v4423_v52 = vrot.slane %v4409_v32, 4 }
 0x2e7   : > { %v4413_v43 = vrot.slane %v4412_v61, 2  ;;  %v4429_v36 = vrot.slane %v4410_v33, 4 }
 0x2e8   : > { %v4419_v49 = vrot.slane %v4418_v35, 2  ;;  %v4424_v24 = vadd.f32 %v4423_v52, %v4409_v32 }
 0x2e9   : > { %v4414_v55 = vadd.f32 %v4413_v43, %v4412_v61  ;;  %v4430_v38 = vadd.f32 %v4429_v36, %v4410_v33 }
 0x2ea   : > { %v4420_v6 = vadd.f32 %v4419_v49, %v4418_v35  ;;  %v4425_v40 = vrot.slane %v4424_v24, 2 }
 0x2eb   : > { %v4415_v39 = vrot.slane %v4414_v55, 1  ;;  %v4431_v59 = vrot.slane %v4430_v38, 2 }
 0x2ec   : > { %v4421_v42 = vrot.slane %v4420_v6, 1  ;;  %v4426_v44 = vadd.f32 %v4425_v40, %v4424_v24 }
 0x2ed   : > { %v4416_v29 = vadd.f32 %v4415_v39, %v4414_v55  ;;  %v4432_v4 = vadd.f32 %v4431_v59, %v4430_v38 }
 0x2ee   : > { %v4422_v46 = vadd.f32 %v4421_v42, %v4420_v6  ;;  %v4427_v16 = vrot.slane %v4426_v44, 1 }
 0x2ef   : > { %v4436_v47 = vmul.f32 0.125, %v4416_v29  ;;  %v4433_v48 = vrot.slane %v4432_v4, 1 }
 0x2f0   : > { %v4437_v7 = vmul.f32 0.125, %v4422_v46  ;;  %v4428_v41 = vadd.f32 %v4427_v16, %v4426_v44 }
 0x2f1   : > { %v4440_v26 = vadd.f32 1e-05, %v4436_v47  ;;  %v4434_v2 = vadd.f32 %v4433_v48, %v4432_v4 }
 0x2f2   : > { %v4441_v37 = vadd.f32 1e-05, %v4437_v7  ;;  %v4438_v45 = vmul.f32 0.125, %v4428_v41 }
 0x2f3   : > { %4747 = vrsqrt.f32 %v4440_v26  ;;  %v4439_v53 = vmul.f32 0.125, %v4434_v2 }
 0x2f4   : > { %4749 = vrsqrt.f32 %v4441_v37  ;;  %v4442_v54 = vadd.f32 1e-05, %v4438_v45 }
 0x2f5   : > { %v4443_v57 = vadd.f32 1e-05, %v4439_v53 }
 0x2f6   : > { %4751 = vrsqrt.f32 %v4442_v54 }
 0x2f7   : > { %4753 = vrsqrt.f32 %v4443_v57 }
 0x2fd   : > { %v4748_v28 = vpop.eup %4747 }
 0x2fe   : > { %v4750_v62 = vpop.eup %4749  ;;  %v4448_v11 = vmul.f32 %v4748_v28, %v4403_v31 }
 0x2ff   : > { %v4449_v0 = vmul.f32 %v4750_v62, %v4404_v20 }
 0x300   : > { %v4752_v8 = vpop.eup %4751  ;;  %v4458_v60 = vmul.f32 %v4456_v63, %v4448_v11 }
 0x301   : > { %v4754_v9 = vpop.eup %4753  ;;  %v4459_v23 = vmul.f32 %v4456_v63, %v4449_v0  ;;  %v4450_v50 = vmul.f32 %v4752_v8, %v4405_v21 }
 0x302   : > { %v4462_v34 = vadd.f32 %v4458_v60, %v5935_v51  ;;  %v4451_v27 = vmul.f32 %v4754_v9, %v4406_v22 }
 0x303   : > { %v4463_v17 = vadd.f32 %v4459_v23, %v5942_v56  ;;  %v4460_v12 = vmul.f32 %v4456_v63, %v4450_v50 }
 0x304   : > { %v4466_v19 = vadd.f32 %v4462_v34, %v5937_v1  ;;  %v4461_v31 = vmul.f32 %v4456_v63, %v4451_v27 }
 0x305   : > { %v4467_v15 = vadd.f32 %v4463_v17, %v5944_v3  ;;  %v4464_v20 = vadd.f32 %v4460_v12, %v5951_v13 }
 0x306   : > { %4470 = vst [vmem:[%s352_s17] sm:$0xff] %v4466_v19  ;;  %v4465_v30 = vadd.f32 %v4461_v31, %v5960_v10 }
 0x307   : > { %4471 = vst [vmem:[%s352_s17 + $0x8] sm:$0xff] %v4467_v15  ;;  %v4468_v51 = vadd.f32 %v4464_v20, %v5955_v18 }
 0x308   : > { %v4469_v58 = vadd.f32 %v4465_v30, %v5962_v5 }
 0x309   : > { %4472 = vst [vmem:[%s352_s17 + $0x10] sm:$0xff] %v4468_v51 }
 0x30a   : > { %4473 = vst [vmem:[%s352_s17 + $0x18] sm:$0xff] %v4469_v58 }
 0x30b PF: > { %s19_s30 = sadd.s32 1, %s4761_s30  }
 0x30c   : > { %p16_p4 = scmp.ge.s32.totalorder %s19_s30, 4  }
 0x30e   :  { %18 = sbr.rel (!%p16_p4) target bundleno = 1 (0x1), region = 141 }

// kernel: dense_feature_stack.2
= control target key start
LH: loop header
LB: loop body
LE: loop exit
PB: predicated region body
PF: predicated region fallthrough
CT: control target
= control target key end

     0   :  { %s5171_s27 = smov 0   ;;  %s6273_s0 = inlined_call_operand.vmem [shape: f32[4,1], index: 0, kind: input, shape index: {}]   ;;  %s6274_s1 = inlined_call_operand.vmem [shape: f32[4,1], index: 1, kind: input, shape index: {}]   ;;  %s6275_s2 = inlined_call_operand.vmem [shape: bf16[27,8,4], index: 2, kind: input, shape index: {}]   ;;  %s6276_s3 = inlined_call_operand.vmem [shape: f32[8,1], index: 3, kind: input, shape index: {}]   ;;  %s6277_s4 = inlined_call_operand.vmem [shape: f32[8,512], index: 4, kind: input, shape index: {}]   ;;  %s6278_s5 = inlined_call_operand.vmem [shape: f32[8,1], index: 5, kind: input, shape index: {}]   ;;  %s6279_s6 = inlined_call_operand.vmem [shape: f32[27,1,512], index: 6, kind: input, shape index: {}]   ;;  %s6280_s7 = inlined_call_operand.vmem [shape: f32[2,4,512], index: 7, kind: input, shape index: {}]   ;;  %s6281_s8 = inlined_call_operand.vmem [shape: f32[2,8,512], index: 8, kind: output, shape index: {}]  }
   0x1 LB: > { %s4883_s28 = sadd.s32 4294967295, %s5104_s27   ;;  %p4887_p0 = scmp.ge.s32.totalorder %s5104_s27, 1  ;;  %s5104_s27 = sphi %s5171_s27, %s18_s27  }
   0x2   : > { %p262_p1 = scmp.lt.s32.totalorder %s5104_s27, 3 }
   0x4   : > { %p263_p2 = pnand %p4887_p0, %p262_p1 }
   0x5   : > { %v312_v0 = vld [vmem:[%s6273_s0] sm:$0xf] (!%p263_p2)  ;;  %v5106_v1 = vmov (!%p263_p2), 0   ;;  %v5107_v3 = vmov (!%p263_p2), 0.0   ;;  %p296_p3 = scmp.lt.s32.totalorder (!%p263_p2), %s4883_s28, 1  ;;  %v320_v6 = vlaneseq (!%p263_p2)  ;;  %s5109_s15 = smov (!%p263_p2), 73  }
   0x6   : > { %266 = sbr.rel (%p263_p2) target bundleno = 795 (0x31b), region = 52  ;;  %5084 = vset.pattern.permute.xlu0 (!%p263_p2), %v5106_v1  ;;  %430 = vmatprep.mubr.bf16.mxu0 (!%p263_p2), %v5106_v1  ;;  %v327_v2 = vld [vmem:[%s6274_s1] sm:$0xf] (!%p263_p2)  ;;  %307 = vst [vmem:[#allocation2] sm:$0xff] (!%p263_p2), %v5107_v3  ;;  %308 = vst [vmem:[#allocation2 + $0x8] sm:$0xff] (!%p263_p2), %v5107_v3  ;;  %s5110_s16 = smov (!%p263_p2), 72  }
   0x7   : > { %315 = vperm.xlu0 (!%p263_p2), %5084, %v312_v0   ;;  %471 = vmatprep.mubr.bf16.mxu1 (!%p263_p2), %v5106_v1  ;;  %309 = vst [vmem:[#allocation2 + $0x10] sm:$0xff] (!%p263_p2), %v5107_v3  ;;  %v5108_v4 = vmov (!%p263_p2), 839922192   ;;  %v5191_v8 = vshrl.u32 (!%p263_p2), %v320_v6, 7  ;;  %s5111_s17 = smov (!%p263_p2), 71   ;;  %s5112_s18 = smov (!%p263_p2), 65  }
   0x8   : > { %5085 = vset.pattern.permute.xlu1 (!%p263_p2), %v5106_v1  ;;  %v318_v5 = vunpack.c.l.s4 (!%p263_p2), %v5108_v4  ;;  %s5113_s19 = smov (!%p263_p2), 64   ;;  %s5114_s20 = smov (!%p263_p2), 63   ;;  %vm376_vm0 = vcmask (!%p263_p2), 596992   ;;  %vm541_vm1 = vcmask (!%p263_p2), 588800   ;;  %vm385_vm2 = vcmask (!%p263_p2), 1041408  }
   0x9   : > { %s5115_s21 = smov (!%p263_p2), 57   ;;  %s5116_s22 = smov (!%p263_p2), 56   ;;  %vm381_vm3 = vcmask (!%p263_p2), 31744   ;;  %vm705_vm4 = vcmask (!%p263_p2), 580608   ;;  %vm869_vm5 = vcmask (!%p263_p2), 531456   ;;  %vm1033_vm6 = vcmask (!%p263_p2), 523264  }
   0xa   : > { %v319_v7 = vunpack.c.0.s8 (!%p263_p2), %v318_v5  ;;  %s5117_s23 = smov (!%p263_p2), 55   ;;  %s5118_s24 = smov (!%p263_p2), 9   ;;  %vm1197_vm7 = vcmask (!%p263_p2), 515072   ;;  %vm1361_vm8 = vcmask (!%p263_p2), 465920   ;;  %vm1525_vm9 = vcmask (!%p263_p2), 457728  }
   0xb   : > { %330 = vperm.xlu0 (!%p263_p2), %5084, %v327_v2   ;;  %s5119_s25 = smov (!%p263_p2), 8   ;;  %s5120_s26 = smov (!%p263_p2), 7   ;;  %vm1689_vm10 = vcmask (!%p263_p2), 449536   ;;  %vm1853_vm11 = vcmask (!%p263_p2), 72704   ;;  %vm2017_vm12 = vcmask (!%p263_p2), 64512   ;;  %vm2181_vm13 = vcmask (!%p263_p2), 56320  }
   0xc   : > { %v322_v9 = vsub.s32 (!%p263_p2), %v319_v7, %v5191_v8  ;;  %s5121_s29 = smov (!%p263_p2), 1   ;;  %s5122_s30 = smov (!%p263_p2), 127   ;;  %vm2345_vm14 = vcmask (!%p263_p2), 7168   ;;  %vm2651_vm15 = vcmask (!%p263_p2), 1039360  }
   0xd   : > { %s6283_s28 = smov (!%p296_p3, %s4883_s28), 1  ;;  %s5123_s9 = smov 121  }
   0xe   : > { %s5054_s11 = sshll.u32 %s6283_s28, 4  ;;  %v2622_v59 = vld [vmem:[#allocation2 + $0x14] sm:$0xf]  ;;  %s5124_s10 = smov 120  }
   0xf   : > { %s300_s14 = scalar_lea.vmem %s6280_s7, %s5054_s11  ;;  %v2633_v63 = vpack.c.bf16 %v2622_v59, %v2622_v59  ;;  %s5125_s11 = smov 119  }
  0x10   : > { %v310_v12 = vld [vmem:[%s300_s14] sm:$0xff]  ;;  %v311_v13 = vld [vmem:[%s300_s14 + $0x8] sm:$0xff] }
  0x86   : > { %v316_v10 = vpop.permute.xlu0 %315 }
  0x87   : > { %v323_v11 = vrot.slane %v316_v10, %v322_v9 }
  0x89   : > { %v325_v15 = vmul.f32 %v323_v11, %v310_v12  ;;  %v326_v16 = vmul.f32 %v323_v11, %v311_v13  ;;  %v2786_v13 = vld [vmem:[#allocation2 + $0x14] sm:$0xf] }
  0x8a   : > { %v331_v14 = vpop.permute.xlu0 %330 }
  0x8b   : > { %v338_v17 = vrot.slane %v331_v14, %v322_v9 }
  0x8d   : > { %v340_v18 = vadd.f32 %v338_v17, %v325_v15  ;;  %v341_v19 = vadd.f32 %v338_v17, %v326_v16  ;;  %v2797_v17 = vpack.c.bf16 %v2786_v13, %v2786_v13  ;;  %v4902_v13 = vld [vmem:[%s6275_s2 + $0x8] sm:$0xf] }
  0x8f   : > { %v5198_v20 = vmax.f32 %v340_v18, 0.0  ;;  %v5200_v21 = vmax.f32 %v341_v19, 0.0 }
  0x91   : > { %344 = vst [vmem:[#allocation2 + $0x4] sm:$0xff] %v5198_v20  ;;  %345 = vst [vmem:[#allocation2 + $0xc] sm:$0xff] %v5200_v21  ;;  %v5310_v56 = vpack.c.bf16 %v5198_v20, %v5198_v20  ;;  %v5333_v62 = vpack.c.bf16 %v5200_v21, %v5200_v21  ;;  %v2625_v7 = vcombine.high %v5198_v20, %v5198_v20 }
  0x92   : > { %v2626_v12 = vcombine.high %v5200_v21, %v5200_v21 }
  0x93   : > { %v5368_v11 = vpack.c.bf16 %v2625_v7, %v2625_v7 }
  0x94   : > { %v5380_v16 = vpack.c.bf16 %v2626_v12, %v2626_v12 }
  0x98   : > { %v347_v22 = vld [vmem:[#allocation2 + $0x8] sm:$0xff]  ;;  %v346_v23 = vld [vmem:[#allocation2] sm:$0xff]  ;;  %v348_v26 = vld [vmem:[#allocation2 + $0x10] sm:$0xf] }
  0x99   : > { %v5204_v24 = vpack.c.bf16 %v347_v22, %v347_v22  ;;  %v5206_v25 = vpack.c.bf16 %v346_v23, %v346_v23  ;;  %v359_v27 = vpack.c.bf16 %v348_v26, %v348_v26  ;;  %v512_v28 = vld [vmem:[#allocation2 + $0x10] sm:$0xf]  ;;  %v351_v40 = vcombine.high %v346_v23, %v346_v23 }
  0x9a   : > { %v523_v29 = vpack.c.bf16 %v512_v28, %v512_v28  ;;  %v676_v30 = vld [vmem:[#allocation2 + $0x10] sm:$0xf]  ;;  %v516_v42 = vcombine.high %v347_v22, %v347_v22  ;;  %v3114_v28 = vld [vmem:[#allocation2 + $0x14] sm:$0xf] }
  0x9b   : > { %370 = vrot.lane.b32.xlu0 %v5204_v24, %s5109_s15  ;;  %366 = vrot.lane.b32.xlu1 %v5206_v25, %s5109_s15  ;;  %v687_v31 = vpack.c.bf16 %v676_v30, %v676_v30  ;;  %v840_v32 = vld [vmem:[#allocation2 + $0x10] sm:$0xf]  ;;  %v5249_v41 = vpack.c.bf16 %v351_v40, %v351_v40 }
  0x9c   : > { %v851_v33 = vpack.c.bf16 %v840_v32, %v840_v32  ;;  %v1004_v34 = vld [vmem:[#allocation2 + $0x10] sm:$0xf]  ;;  %v5255_v43 = vpack.c.bf16 %v516_v42, %v516_v42 }
  0x9d   : > { %v1015_v35 = vpack.c.bf16 %v1004_v34, %v1004_v34  ;;  %v1168_v36 = vld [vmem:[#allocation2 + $0x10] sm:$0xf] }
  0x9e   : > { %v1179_v37 = vpack.c.bf16 %v1168_v36, %v1168_v36  ;;  %v1332_v38 = vld [vmem:[#allocation2 + $0x10] sm:$0xf] }
  0x9f   : > { %374 = vrot.lane.b32.xlu0 %v359_v27, %s5109_s15  ;;  %531 = vrot.lane.b32.xlu1 %v5206_v25, %s5110_s16  ;;  %v1343_v39 = vpack.c.bf16 %v1332_v38, %v1332_v38  ;;  %v1496_v44 = vld [vmem:[#allocation2 + $0x10] sm:$0xf] }
  0xa0   : > { %v1507_v45 = vpack.c.bf16 %v1496_v44, %v1496_v44  ;;  %v1660_v46 = vld [vmem:[#allocation2 + $0x10] sm:$0xf] }
  0xa1   : > { %v1671_v47 = vpack.c.bf16 %v1660_v46, %v1660_v46  ;;  %v1824_v48 = vld [vmem:[#allocation2 + $0x10] sm:$0xf] }
  0xa2   : > { %v1835_v49 = vpack.c.bf16 %v1824_v48, %v1824_v48  ;;  %v1988_v50 = vld [vmem:[#allocation2 + $0x10] sm:$0xf] }
  0xa3   : > { %695 = vrot.lane.b32.xlu0 %v5206_v25, %s5111_s17  ;;  %535 = vrot.lane.b32.xlu1 %v5204_v24, %s5110_s16  ;;  %v1999_v51 = vpack.c.bf16 %v1988_v50, %v1988_v50  ;;  %v2152_v52 = vld [vmem:[#allocation2 + $0x10] sm:$0xf] }
  0xa4   : > { %v2163_v53 = vpack.c.bf16 %v2152_v52, %v2152_v52  ;;  %v2316_v54 = vld [vmem:[#allocation2 + $0x10] sm:$0xf] }
  0xa5   : > { %v2327_v55 = vpack.c.bf16 %v2316_v54, %v2316_v54  ;;  %v4896_v54 = vld [vmem:[%s6275_s2 + $0x4] sm:$0xf] }
  0xa7   : > { %699 = vrot.lane.b32.xlu0 %v5204_v24, %s5111_s17  ;;  %539 = vrot.lane.b32.xlu1 %v523_v29, %s5110_s16 }
  0xab   : > { %703 = vrot.lane.b32.xlu0 %v687_v31, %s5111_s17  ;;  %859 = vrot.lane.b32.xlu1 %v5206_v25, %s5112_s18  ;;  %v3125_v31 = vpack.c.bf16 %v3114_v28, %v3114_v28 }
  0xaf   : > { %1023 = vrot.lane.b32.xlu0 %v5206_v25, %s5113_s19  ;;  %863 = vrot.lane.b32.xlu1 %v5204_v24, %s5112_s18 }
  0xb3   : > { %1027 = vrot.lane.b32.xlu0 %v5204_v24, %s5113_s19  ;;  %867 = vrot.lane.b32.xlu1 %v851_v33, %s5112_s18 }
  0xb7   : > { %1031 = vrot.lane.b32.xlu0 %v1015_v35, %s5113_s19  ;;  %1187 = vrot.lane.b32.xlu1 %v5206_v25, %s5114_s20 }
  0xbb   : > { %1351 = vrot.lane.b32.xlu0 %v5206_v25, %s5115_s21  ;;  %1191 = vrot.lane.b32.xlu1 %v5204_v24, %s5114_s20 }
  0xbf   : > { %1355 = vrot.lane.b32.xlu0 %v5204_v24, %s5115_s21  ;;  %1195 = vrot.lane.b32.xlu1 %v1179_v37, %s5114_s20 }
  0xc3   : > { %1359 = vrot.lane.b32.xlu0 %v1343_v39, %s5115_s21  ;;  %1515 = vrot.lane.b32.xlu1 %v5206_v25, %s5116_s22 }
  0xc7   : > { %1679 = vrot.lane.b32.xlu0 %v5206_v25, %s5117_s23  ;;  %1519 = vrot.lane.b32.xlu1 %v5204_v24, %s5116_s22 }
  0xcb   : > { %533 = vrot.lane.b32.xlu0 %v5249_v41, %s5110_s16  ;;  %368 = vrot.lane.b32.xlu1 %v5249_v41, %s5109_s15 }
  0xcf   : > { %537 = vrot.lane.b32.xlu0 %v5255_v43, %s5110_s16  ;;  %372 = vrot.lane.b32.xlu1 %v5255_v43, %s5109_s15 }
  0xd3   : > { %1683 = vrot.lane.b32.xlu0 %v5204_v24, %s5117_s23  ;;  %1523 = vrot.lane.b32.xlu1 %v1507_v45, %s5116_s22 }
  0xd7   : > { %1687 = vrot.lane.b32.xlu0 %v1671_v47, %s5117_s23  ;;  %1843 = vrot.lane.b32.xlu1 %v5206_v25, %s5118_s24 }
  0xdb   : > { %861 = vrot.lane.b32.xlu0 %v5249_v41, %s5112_s18  ;;  %697 = vrot.lane.b32.xlu1 %v5249_v41, %s5111_s17 }
  0xdf   : > { %865 = vrot.lane.b32.xlu0 %v5255_v43, %s5112_s18  ;;  %701 = vrot.lane.b32.xlu1 %v5255_v43, %s5111_s17 }
  0xe3   : > { %2007 = vrot.lane.b32.xlu0 %v5206_v25, %s5119_s25  ;;  %1847 = vrot.lane.b32.xlu1 %v5204_v24, %s5118_s24 }
  0xe7   : > { %2011 = vrot.lane.b32.xlu0 %v5204_v24, %s5119_s25  ;;  %1851 = vrot.lane.b32.xlu1 %v1835_v49, %s5118_s24 }
  0xeb   : > { %1189 = vrot.lane.b32.xlu0 %v5249_v41, %s5114_s20  ;;  %1025 = vrot.lane.b32.xlu1 %v5249_v41, %s5113_s19 }
  0xef   : > { %1193 = vrot.lane.b32.xlu0 %v5255_v43, %s5114_s20  ;;  %1029 = vrot.lane.b32.xlu1 %v5255_v43, %s5113_s19 }
  0xf3   : > { %2015 = vrot.lane.b32.xlu0 %v1999_v51, %s5119_s25  ;;  %2171 = vrot.lane.b32.xlu1 %v5206_v25, %s5120_s26  ;;  %v3278_v51 = vld [vmem:[#allocation2 + $0x14] sm:$0xf] }
  0xf7   : > { %2335 = vrot.lane.b32.xlu0 %v5206_v25, %s5121_s29  ;;  %2175 = vrot.lane.b32.xlu1 %v5204_v24, %s5120_s26 }
  0xfb   : > { %1517 = vrot.lane.b32.xlu0 %v5249_v41, %s5116_s22  ;;  %1353 = vrot.lane.b32.xlu1 %v5249_v41, %s5115_s21 }
  0xff   : > { %1521 = vrot.lane.b32.xlu0 %v5255_v43, %s5116_s22  ;;  %1357 = vrot.lane.b32.xlu1 %v5255_v43, %s5115_s21 }
 0x103   : > { %2339 = vrot.lane.b32.xlu0 %v5204_v24, %s5121_s29  ;;  %2179 = vrot.lane.b32.xlu1 %v2163_v53, %s5120_s26  ;;  %v2950_v24 = vld [vmem:[#allocation2 + $0x14] sm:$0xf] }
 0x104   : > { %v2961_v27 = vpack.c.bf16 %v2950_v24, %v2950_v24 }
 0x107   : > { %2343 = vrot.lane.b32.xlu0 %v2327_v55, %s5121_s29  ;;  %2641 = vrot.lane.b32.xlu1 %v5310_v56, %s5122_s30  ;;  %v3289_v55 = vpack.c.bf16 %v3278_v51, %v3278_v51 }
 0x10b   : > { %1845 = vrot.lane.b32.xlu0 %v5249_v41, %s5118_s24  ;;  %1681 = vrot.lane.b32.xlu1 %v5249_v41, %s5117_s23 }
 0x10d   : > { %v5319_v57 = vpop.permute.xlu0 %370  ;;  %v5321_v58 = vpop.permute.xlu1 %366 }
 0x10f   : > { %1849 = vrot.lane.b32.xlu0 %v5255_v43, %s5118_s24  ;;  %1685 = vrot.lane.b32.xlu1 %v5255_v43, %s5117_s23 }
 0x111   : > { %v5327_v60 = vpop.permute.xlu0 %374  ;;  %v5329_v61 = vpop.permute.xlu1 %531 }
 0x113   : > { %2805 = vrot.lane.b32.xlu0 %v5310_v56, %s5123_s9  ;;  %2645 = vrot.lane.b32.xlu1 %v5333_v62, %s5122_s30 }
 0x115   : > { %v5339_v0 = vpop.permute.xlu0 %695  ;;  %v5341_v2 = vpop.permute.xlu1 %535 }
 0x117   : > { %2809 = vrot.lane.b32.xlu0 %v5333_v62, %s5123_s9  ;;  %2649 = vrot.lane.b32.xlu1 %v2633_v63, %s5122_s30 }
 0x119   : > { %v5346_v3 = vpop.permute.xlu0 %699  ;;  %v5348_v4 = vpop.permute.xlu1 %539 }
 0x11b   : > { %2173 = vrot.lane.b32.xlu0 %v5249_v41, %s5120_s26  ;;  %2009 = vrot.lane.b32.xlu1 %v5249_v41, %s5119_s25 }
 0x11d   : > { %v5354_v5 = vpop.permute.xlu0 %703  ;;  %v5356_v6 = vpop.permute.xlu1 %859 }
 0x11f   : > { %2177 = vrot.lane.b32.xlu0 %v5255_v43, %s5120_s26  ;;  %2013 = vrot.lane.b32.xlu1 %v5255_v43, %s5119_s25 }
 0x121   : > { %v5364_v9 = vpop.permute.xlu0 %1023  ;;  %v5366_v10 = vpop.permute.xlu1 %863 }
 0x123   : > { %2643 = vrot.lane.b32.xlu0 %v5368_v11, %s5122_s30  ;;  %2337 = vrot.lane.b32.xlu1 %v5249_v41, %s5121_s29  ;;  %v360_v41 = vld [vmem:[%s6275_s2] sm:$0xf] }
 0x125   : > { %v5376_v14 = vpop.permute.xlu0 %1027  ;;  %v5378_v15 = vpop.permute.xlu1 %867 }
 0x127   : > { %2647 = vrot.lane.b32.xlu0 %v5380_v16, %s5122_s30  ;;  %2341 = vrot.lane.b32.xlu1 %v5255_v43, %s5121_s29 }
 0x129   : > { %v5386_v18 = vpop.permute.xlu0 %1031  ;;  %v5388_v19 = vpop.permute.xlu1 %1187 }
 0x12b   : > { %2813 = vrot.lane.b32.xlu0 %v2797_v17, %s5123_s9  ;;  %2807 = vrot.lane.b32.xlu1 %v5368_v11, %s5123_s9 }
 0x12d   : > { %v5393_v20 = vpop.permute.xlu0 %1351  ;;  %v5395_v21 = vpop.permute.xlu1 %1191 }
 0x12f   : > { %2971 = vrot.lane.b32.xlu0 %v5368_v11, %s5124_s10  ;;  %2811 = vrot.lane.b32.xlu1 %v5380_v16, %s5123_s9 }
 0x131   : > { %v5400_v22 = vpop.permute.xlu0 %1355  ;;  %v5402_v23 = vpop.permute.xlu1 %1195 }
 0x133   : > { %2975 = vrot.lane.b32.xlu0 %v5380_v16, %s5124_s10  ;;  %2969 = vrot.lane.b32.xlu1 %v5310_v56, %s5124_s10 }
 0x135   : > { %v5406_v25 = vpop.permute.xlu0 %1359  ;;  %v5408_v26 = vpop.permute.xlu1 %1515 }
 0x137   : > { %3133 = vrot.lane.b32.xlu0 %v5310_v56, %s5125_s11  ;;  %2973 = vrot.lane.b32.xlu1 %v5333_v62, %s5124_s10 }
 0x139   : > { %v5413_v29 = vpop.permute.xlu0 %1679  ;;  %v5415_v30 = vpop.permute.xlu1 %1519 }
 0x13b   : > { %3137 = vrot.lane.b32.xlu0 %v5333_v62, %s5125_s11  ;;  %2977 = vrot.lane.b32.xlu1 %v2961_v27, %s5124_s10 }
 0x13d   : > { %v534_v32 = vpop.permute.xlu0 %533  ;;  %v369_v33 = vpop.permute.xlu1 %368 }
 0x13e   : > { %v378_v34 = vsel %vm376_vm0, %v369_v33, %v5319_v57  ;;  %v377_v35 = vsel %vm376_vm0, %v5321_v58, %v369_v33  ;;  %v542_v37 = vsel %vm541_vm1, %v5329_v61, %v534_v32  ;;  %v543_v39 = vsel %vm541_vm1, %v534_v32, %v5341_v2  ;;  %v4908_v33 = vld [vmem:[%s6275_s2 + $0xc] sm:$0xf] }
 0x13f   : > { %3141 = vrot.lane.b32.xlu0 %v3125_v31, %s5125_s11  ;;  %3135 = vrot.lane.b32.xlu1 %v5368_v11, %s5125_s11  ;;  %v387_v36 = vsel %vm385_vm2, %v377_v35, 0  ;;  %v550_v45 = vsel %vm385_vm2, %v542_v37, 0 }
 0x140   : > { %4892 = vmatprep.subr.msk.bf16.mxu0 %vm385_vm2, %v378_v34  ;;  %v3604_v34 = vld [vmem:[#allocation2 + $0x14] sm:$0xf] }
 0x141   : > { %399 = vmatpush1.bf16.msra.mxu0 %v387_v36  ;;  %v538_v38 = vpop.permute.xlu0 %537  ;;  %v373_v40 = vpop.permute.xlu1 %372 }
 0x142   : > { %4897 = vmatprep.subr.msk.bf16.mxu0 %vm385_vm2, %v543_v39  ;;  %v380_v42 = vsel %vm376_vm0, %v373_v40, %v5327_v60  ;;  %v379_v43 = vsel %vm376_vm0, %v5319_v57, %v373_v40  ;;  %v544_v46 = vsel %vm541_vm1, %v5341_v2, %v538_v38  ;;  %v545_v48 = vsel %vm541_vm1, %v538_v38, %v5348_v4  ;;  %v3441_v57 = vld [vmem:[#allocation2 + $0x14] sm:$0xf] }
 0x143   : > { %3299 = vrot.lane.b32.xlu0 %v5368_v11, %s5109_s15  ;;  %3139 = vrot.lane.b32.xlu1 %v5380_v16, %s5125_s11  ;;  %v393_v44 = vsel %vm385_vm2, %v379_v43, 0  ;;  %v556_v50 = vsel %vm385_vm2, %v544_v46, 0  ;;  %v3452_v2 = vpack.c.bf16 %v3441_v57, %v3441_v57  ;;  %v3615_v40 = vpack.c.bf16 %v3604_v34, %v3604_v34 }
 0x144   : > { %4893 = vmatmul.mubr.msk.bf16.vlgmr.msra.gmra.mrb[0].mxu0 %vm381_vm3, %v360_v41  ;;  %4894 = vmatprep.subr.msk.bf16.mxu1 %vm385_vm2, %v380_v42 }
 0x145   : > { %440 = vmatpush1.bf16.msra.mxu1 %v393_v44  ;;  %562 = vmatpush1.bf16.msra.mxu0 %v550_v45  ;;  %v5450_v47 = vpop.permute.xlu0 %1683  ;;  %v5454_v49 = vpop.permute.xlu1 %1523  ;;  %v4914_v45 = vld [vmem:[%s6275_s2 + $0x10] sm:$0xf] }
 0x146   : > { %4899 = vmatprep.subr.msk.bf16.mxu1 %vm385_vm2, %v545_v48  ;;  %593 = vmatprep.mubr.bf16.mxu0 %v5106_v1 }
 0x147   : > { %3303 = vrot.lane.b32.xlu0 %v5380_v16, %s5109_s15  ;;  %3297 = vrot.lane.b32.xlu1 %v5310_v56, %s5109_s15 }
 0x148   : > { %4895 = vmatmul.mubr.msk.bf16.vlgmr.msra.gmra.mrb[0].mxu1 %vm381_vm3, %v360_v41  ;;  %v3767_v41 = vld [vmem:[#allocation2 + $0x14] sm:$0xf] }
 0x149   : > { %603 = vmatpush1.bf16.msra.mxu1 %v556_v50  ;;  %v5464_v52 = vpop.permute.xlu0 %1687  ;;  %v5466_v53 = vpop.permute.xlu1 %1843  ;;  %634 = vmatprep.mubr.bf16.mxu1 %v5106_v1  ;;  %v3778_v50 = vpack.c.bf16 %v3767_v41, %v3767_v41 }
 0x14b   : > { %3460 = vrot.lane.b32.xlu0 %v5310_v56, %s5110_s16  ;;  %3301 = vrot.lane.b32.xlu1 %v5333_v62, %s5109_s15 }
 0x14c   : > { %4898 = vmatmul.mubr.msk.bf16.vlgmr.msra.gmra.mrb[4].mxu0 %vm381_vm3, %v4896_v54 }
 0x14d   : > { %v862_v58 = vpop.permute.xlu0 %861  ;;  %v698_v59 = vpop.permute.xlu1 %697  ;;  %757 = vmatprep.mubr.bf16.mxu0 %v5106_v1 }
 0x14e   : > { %v706_v60 = vsel %vm705_vm4, %v5339_v0, %v698_v59  ;;  %v707_v61 = vsel %vm705_vm4, %v698_v59, %v5346_v3  ;;  %v870_v4 = vsel %vm869_vm5, %v5356_v6, %v862_v58  ;;  %v871_v0 = vsel %vm869_vm5, %v862_v58, %v5366_v10  ;;  %v4920_v58 = vld [vmem:[%s6275_s2 + $0x14] sm:$0xf] }
 0x14f   : > { %3464 = vrot.lane.b32.xlu0 %v5333_v62, %s5110_s16  ;;  %3305 = vrot.lane.b32.xlu1 %v3289_v55, %s5109_s15  ;;  %v714_v63 = vsel %vm385_vm2, %v706_v60, 0  ;;  %v878_v27 = vsel %vm385_vm2, %v870_v4, 0  ;;  %v3930_v4 = vld [vmem:[#allocation2 + $0x14] sm:$0xf] }
 0x150   : > { %4900 = vmatmul.mubr.msk.bf16.vlgmr.msra.gmra.mrb[4].mxu1 %vm381_vm3, %v4896_v54  ;;  %4903 = vmatprep.subr.msk.bf16.mxu0 %vm385_vm2, %v707_v61 }
 0x151   : > { %726 = vmatpush1.bf16.msra.mxu0 %v714_v63  ;;  %v866_v7 = vpop.permute.xlu0 %865  ;;  %v702_v12 = vpop.permute.xlu1 %701  ;;  %798 = vmatprep.mubr.bf16.mxu1 %v5106_v1 }
 0x152   : > { %4909 = vmatprep.subr.msk.bf16.mxu0 %vm385_vm2, %v871_v0  ;;  %v708_v17 = vsel %vm705_vm4, %v5346_v3, %v702_v12  ;;  %v709_v6 = vsel %vm705_vm4, %v702_v12, %v5354_v5  ;;  %v872_v28 = vsel %vm869_vm5, %v5366_v10, %v866_v7  ;;  %v873_v3 = vsel %vm869_vm5, %v866_v7, %v5378_v15 }
 0x153   : > { %3468 = vrot.lane.b32.xlu0 %v3452_v2, %s5110_s16  ;;  %3462 = vrot.lane.b32.xlu1 %v5368_v11, %s5110_s16  ;;  %v720_v24 = vsel %vm385_vm2, %v708_v17, 0  ;;  %v884_v10 = vsel %vm385_vm2, %v872_v28, 0  ;;  %v4092_v17 = vld [vmem:[#allocation2 + $0xc] sm:$0xff] }
 0x154   : > { %4904 = vmatmul.mubr.msk.bf16.vlgmr.msra.gmra.mrb[8].mxu0 %vm381_vm3, %v4902_v13  ;;  %4905 = vmatprep.subr.msk.bf16.mxu1 %vm385_vm2, %v709_v6 }
 0x155   : > { %767 = vmatpush1.bf16.msra.mxu1 %v720_v24  ;;  %890 = vmatpush1.bf16.msra.mxu0 %v878_v27  ;;  %v5512_v5 = vpop.permute.xlu0 %2007  ;;  %v5514_v31 = vpop.permute.xlu1 %1847  ;;  %v3941_v24 = vpack.c.bf16 %v3930_v4, %v3930_v4 }
 0x156   : > { %4911 = vmatprep.subr.msk.bf16.mxu1 %vm385_vm2, %v873_v3  ;;  %921 = vmatprep.mubr.bf16.mxu0 %v5106_v1 }
 0x157   : > { %3625 = vrot.lane.b32.xlu0 %v5368_v11, %s5111_s17  ;;  %3466 = vrot.lane.b32.xlu1 %v5380_v16, %s5110_s16 }
 0x158   : > { %4906 = vmatmul.mubr.msk.bf16.vlgmr.msra.gmra.mrb[8].mxu1 %vm381_vm3, %v4902_v13 }
 0x159   : > { %931 = vmatpush1.bf16.msra.mxu1 %v884_v10  ;;  %v5524_v15 = vpop.permute.xlu0 %2011  ;;  %v5526_v32 = vpop.permute.xlu1 %1851  ;;  %962 = vmatprep.mubr.bf16.mxu1 %v5106_v1  ;;  %v4254_v10 = vld [vmem:[#allocation2 + $0x4] sm:$0xff] }
 0x15b   : > { %3629 = vrot.lane.b32.xlu0 %v5380_v16, %s5111_s17  ;;  %3623 = vrot.lane.b32.xlu1 %v5310_v56, %s5111_s17 }
 0x15c   : > { %4910 = vmatmul.mubr.msk.bf16.vlgmr.msra.gmra.mrb[12].mxu0 %vm381_vm3, %v4908_v33 }
 0x15d   : > { %v1190_v35 = vpop.permute.xlu0 %1189  ;;  %v1026_v36 = vpop.permute.xlu1 %1025  ;;  %1085 = vmatprep.mubr.bf16.mxu0 %v5106_v1 }
 0x15e   : > { %v1034_v37 = vsel %vm1033_vm6, %v5364_v9, %v1026_v36  ;;  %v1035_v38 = vsel %vm1033_vm6, %v1026_v36, %v5376_v14  ;;  %v1198_v9 = vsel %vm1197_vm7, %v5388_v19, %v1190_v35  ;;  %v1199_v42 = vsel %vm1197_vm7, %v1190_v35, %v5395_v21  ;;  %v4932_v35 = vld [vmem:[%s6275_s2 + $0x1c] sm:$0xf] }
 0x15f   : > { %v1042_v39 = vsel %vm385_vm2, %v1034_v37, 0  ;;  %3786 = vrot.lane.b32.xlu0 %v5310_v56, %s5112_s18  ;;  %3627 = vrot.lane.b32.xlu1 %v5333_v62, %s5111_s17  ;;  %v1206_v51 = vsel %vm385_vm2, %v1198_v9, 0  ;;  %v4259_v36 = vcombine.high %v4254_v10, %v4254_v10  ;;  %v4097_v37 = vcombine.high %v4092_v17, %v4092_v17 }
 0x160   : > { %4912 = vmatmul.mubr.msk.bf16.vlgmr.msra.gmra.mrb[12].mxu1 %vm381_vm3, %v4908_v33  ;;  %4915 = vmatprep.subr.msk.bf16.mxu0 %vm385_vm2, %v1035_v38 }
 0x161   : > { %1054 = vmatpush1.bf16.msra.mxu0 %v1042_v39  ;;  %v1194_v43 = vpop.permute.xlu0 %1193  ;;  %v1030_v44 = vpop.permute.xlu1 %1029  ;;  %1126 = vmatprep.mubr.bf16.mxu1 %v5106_v1  ;;  %v5661_v41 = vpack.c.bf16 %v4097_v37, %v4097_v37 }
 0x162   : > { %4921 = vmatprep.subr.msk.bf16.mxu0 %vm385_vm2, %v1199_v42  ;;  %v1036_v46 = vsel %vm1033_vm6, %v5376_v14, %v1030_v44  ;;  %v1037_v19 = vsel %vm1033_vm6, %v1030_v44, %v5386_v18  ;;  %v1200_v14 = vsel %vm1197_vm7, %v5395_v21, %v1194_v43  ;;  %v1201_v18 = vsel %vm1197_vm7, %v1194_v43, %v5402_v23 }
 0x163   : > { %v1048_v48 = vsel %vm385_vm2, %v1036_v46, 0  ;;  %3790 = vrot.lane.b32.xlu0 %v5333_v62, %s5112_s18  ;;  %3631 = vrot.lane.b32.xlu1 %v3615_v40, %s5111_s17  ;;  %v1212_v21 = vsel %vm385_vm2, %v1200_v14, 0  ;;  %v5659_v40 = vpack.c.bf16 %v4259_v36, %v4259_v36  ;;  %v5679_v46 = vpack.c.bf16 %v4254_v10, %v4254_v10  ;;  %v4256_v14 = vld [vmem:[#allocation2 + $0x14] sm:$0xf] }
 0x164   : > { %4916 = vmatmul.mubr.msk.bf16.vlgmr.msra.gmra.mrb[16].mxu0 %vm381_vm3, %v4914_v45  ;;  %4917 = vmatprep.subr.msk.bf16.mxu1 %vm385_vm2, %v1037_v19  ;;  %v4938_v19 = vld [vmem:[%s6275_s2 + $0x20] sm:$0xf] }
 0x165   : > { %1095 = vmatpush1.bf16.msra.mxu1 %v1048_v48  ;;  %1218 = vmatpush1.bf16.msra.mxu0 %v1206_v51  ;;  %v5573_v54 = vpop.permute.xlu0 %2015  ;;  %v5575_v55 = vpop.permute.xlu1 %2171 }
 0x166   : > { %4923 = vmatprep.subr.msk.bf16.mxu1 %vm385_vm2, %v1201_v18  ;;  %1249 = vmatprep.mubr.bf16.mxu0 %v5106_v1 }
 0x167   : > { %3794 = vrot.lane.b32.xlu0 %v3778_v50, %s5112_s18  ;;  %3788 = vrot.lane.b32.xlu1 %v5368_v11, %s5112_s18 }
 0x168   : > { %4918 = vmatmul.mubr.msk.bf16.vlgmr.msra.gmra.mrb[16].mxu1 %vm381_vm3, %v4914_v45 }
 0x169   : > { %1259 = vmatpush1.bf16.msra.mxu1 %v1212_v21  ;;  %v5584_v23 = vpop.permute.xlu0 %2335  ;;  %v5586_v57 = vpop.permute.xlu1 %2175  ;;  %1290 = vmatprep.mubr.bf16.mxu1 %v5106_v1 }
 0x16b   : > { %3951 = vrot.lane.b32.xlu0 %v5368_v11, %s5113_s19  ;;  %3792 = vrot.lane.b32.xlu1 %v5380_v16, %s5112_s18 }
 0x16c   : > { %4922 = vmatmul.mubr.msk.bf16.vlgmr.msra.gmra.mrb[20].mxu0 %vm381_vm3, %v4920_v58 }
 0x16d   : > { %v1518_v59 = vpop.permute.xlu0 %1517  ;;  %v1354_v60 = vpop.permute.xlu1 %1353  ;;  %1413 = vmatprep.mubr.bf16.mxu0 %v5106_v1 }
 0x16e   : > { %v1362_v61 = vsel %vm1361_vm8, %v5393_v20, %v1354_v60  ;;  %v1363_v63 = vsel %vm1361_vm8, %v1354_v60, %v5400_v22  ;;  %v1526_v0 = vsel %vm1525_vm9, %v5408_v26, %v1518_v59  ;;  %v1527_v20 = vsel %vm1525_vm9, %v1518_v59, %v5415_v30 }
 0x16f   : > { %v1370_v2 = vsel %vm385_vm2, %v1362_v61, 0  ;;  %3955 = vrot.lane.b32.xlu0 %v5380_v16, %s5113_s19  ;;  %3949 = vrot.lane.b32.xlu1 %v5310_v56, %s5113_s19  ;;  %v4926_v16 = vld [vmem:[%s6275_s2 + $0x18] sm:$0xf]  ;;  %v1534_v27 = vsel %vm385_vm2, %v1526_v0, 0  ;;  %v4944_v61 = vld [vmem:[%s6275_s2 + $0x24] sm:$0xf] }
 0x170   : > { %4924 = vmatmul.mubr.msk.bf16.vlgmr.msra.gmra.mrb[20].mxu1 %vm381_vm3, %v4920_v58  ;;  %4927 = vmatprep.subr.msk.bf16.mxu0 %vm385_vm2, %v1363_v63 }
 0x171   : > { %1382 = vmatpush1.bf16.msra.mxu0 %v1370_v2  ;;  %v1522_v7 = vpop.permute.xlu0 %1521  ;;  %v1358_v12 = vpop.permute.xlu1 %1357  ;;  %1454 = vmatprep.mubr.bf16.mxu1 %v5106_v1 }
 0x172   : > { %4933 = vmatprep.subr.msk.bf16.mxu0 %vm385_vm2, %v1527_v20  ;;  %v1364_v13 = vsel %vm1361_vm8, %v5400_v22, %v1358_v12  ;;  %v1365_v26 = vsel %vm1361_vm8, %v1358_v12, %v5406_v25  ;;  %v4093_v22 = vld [vmem:[#allocation2 + $0x14] sm:$0xf]  ;;  %v1528_v25 = vsel %vm1525_vm9, %v5415_v30, %v1522_v7  ;;  %v1529_v28 = vsel %vm1525_vm9, %v1522_v7, %v5454_v49 }
 0x173   : > { %v1376_v6 = vsel %vm385_vm2, %v1364_v13, 0  ;;  %4112 = vrot.lane.b32.xlu0 %v5310_v56, %s5114_s20  ;;  %3953 = vrot.lane.b32.xlu1 %v5333_v62, %s5113_s19  ;;  %v5638_v62 = vpack.c.bf16 %v4092_v17, %v4092_v17  ;;  %v4104_v30 = vpack.c.bf16 %v4093_v22, %v4093_v22  ;;  %v1540_v49 = vsel %vm385_vm2, %v1528_v25, 0 }
 0x174   : > { %4928 = vmatmul.mubr.msk.bf16.vlgmr.msra.gmra.mrb[24].mxu0 %vm381_vm3, %v4926_v16  ;;  %4929 = vmatprep.subr.msk.bf16.mxu1 %vm385_vm2, %v1365_v26  ;;  %v4950_v26 = vld [vmem:[%s6275_s2 + $0x28] sm:$0xf] }
 0x175   : > { %1423 = vmatpush1.bf16.msra.mxu1 %v1376_v6  ;;  %1546 = vmatpush1.bf16.msra.mxu0 %v1534_v27  ;;  %v5634_v56 = vpop.permute.xlu0 %2339  ;;  %v5636_v3 = vpop.permute.xlu1 %2179 }
 0x176   : > { %4935 = vmatprep.subr.msk.bf16.mxu1 %vm385_vm2, %v1529_v28  ;;  %1577 = vmatprep.mubr.bf16.mxu0 %v5106_v1  ;;  %v4743_v28 = vld [vmem:[%s6276_s3] sm:$0xff] }
 0x177   : > { %4116 = vrot.lane.b32.xlu0 %v5638_v62, %s5114_s20  ;;  %3957 = vrot.lane.b32.xlu1 %v3941_v24, %s5113_s19 }
 0x178   : > { %4930 = vmatmul.mubr.msk.bf16.vlgmr.msra.gmra.mrb[24].mxu1 %vm381_vm3, %v4926_v16 }
 0x179   : > { %1587 = vmatpush1.bf16.msra.mxu1 %v1540_v49  ;;  %v5647_v33 = vpop.permute.xlu0 %2343  ;;  %v5649_v34 = vpop.permute.xlu1 %2641  ;;  %1618 = vmatprep.mubr.bf16.mxu1 %v5106_v1 }
 0x17b   : > { %4120 = vrot.lane.b32.xlu0 %v4104_v30, %s5114_s20  ;;  %4114 = vrot.lane.b32.xlu1 %v5368_v11, %s5114_s20 }
 0x17c   : > { %4934 = vmatmul.mubr.msk.bf16.vlgmr.msra.gmra.mrb[28].mxu0 %vm381_vm3, %v4932_v35 }
 0x17d   : > { %v1846_v38 = vpop.permute.xlu0 %1845  ;;  %v1682_v39 = vpop.permute.xlu1 %1681  ;;  %1741 = vmatprep.mubr.bf16.mxu0 %v5106_v1 }
 0x17e   : > { %v1690_v9 = vsel %vm1689_vm10, %v5413_v29, %v1682_v39  ;;  %v1691_v42 = vsel %vm1689_vm10, %v1682_v39, %v5450_v47  ;;  %v1854_v43 = vsel %vm1853_vm11, %v5466_v53, %v1846_v38  ;;  %v1855_v29 = vsel %vm1853_vm11, %v1846_v38, %v5514_v31 }
 0x17f   : > { %v1698_v11 = vsel %vm385_vm2, %v1690_v9, 0  ;;  %4277 = vrot.lane.b32.xlu0 %v5659_v40, %s5115_s21  ;;  %4118 = vrot.lane.b32.xlu1 %v5661_v41, %s5114_s20  ;;  %v1862_v51 = vsel %vm385_vm2, %v1854_v43, 0 }
 0x180   : > { %4936 = vmatmul.mubr.msk.bf16.vlgmr.msra.gmra.mrb[28].mxu1 %vm381_vm3, %v4932_v35  ;;  %4939 = vmatprep.subr.msk.bf16.mxu0 %vm385_vm2, %v1691_v42  ;;  %v4956_v35 = vld [vmem:[%s6275_s2 + $0x2c] sm:$0xf] }
 0x181   : > { %1710 = vmatpush1.bf16.msra.mxu0 %v1698_v11  ;;  %v1850_v44 = vpop.permute.xlu0 %1849  ;;  %v1686_v45 = vpop.permute.xlu1 %1685  ;;  %1782 = vmatprep.mubr.bf16.mxu1 %v5106_v1 }
 0x182   : > { %4945 = vmatprep.subr.msk.bf16.mxu0 %vm385_vm2, %v1855_v29  ;;  %v1692_v48 = vsel %vm1689_vm10, %v5450_v47, %v1686_v45  ;;  %v1693_v53 = vsel %vm1689_vm10, %v1686_v45, %v5464_v52  ;;  %v1856_v47 = vsel %vm1853_vm11, %v5514_v31, %v1850_v44  ;;  %v1857_v52 = vsel %vm1853_vm11, %v1850_v44, %v5526_v32  ;;  %v4419_v32 = vld [vmem:[#allocation2 + $0x14] sm:$0xf] }
 0x183   : > { %v1704_v50 = vsel %vm385_vm2, %v1692_v48, 0  ;;  %4281 = vrot.lane.b32.xlu0 %v5661_v41, %s5115_s21  ;;  %4275 = vrot.lane.b32.xlu1 %v5679_v46, %s5115_s21  ;;  %v4267_v31 = vpack.c.bf16 %v4256_v14, %v4256_v14  ;;  %v1868_v58 = vsel %vm385_vm2, %v1856_v47, 0  ;;  %v4430_v63 = vpack.c.bf16 %v4419_v32, %v4419_v32  ;;  %v4974_v32 = vld [vmem:[%s6275_s2 + $0x38] sm:$0xf] }
 0x184   : > { %4940 = vmatmul.mubr.msk.bf16.vlgmr.msra.gmra.mrb[32].mxu0 %vm381_vm3, %v4938_v19  ;;  %4941 = vmatprep.subr.msk.bf16.mxu1 %vm385_vm2, %v1693_v53  ;;  %v4968_v53 = vld [vmem:[%s6275_s2 + $0x34] sm:$0xf]  ;;  %vm2815_vm11 = vcmask 990208  }
 0x185   : > { %1751 = vmatpush1.bf16.msra.mxu1 %v1704_v50  ;;  %1874 = vmatpush1.bf16.msra.mxu0 %v1862_v51  ;;  %v5702_v18 = vpop.permute.xlu0 %2805  ;;  %v5704_v21 = vpop.permute.xlu1 %2645 }
 0x186   : > { %4947 = vmatprep.subr.msk.bf16.mxu1 %vm385_vm2, %v1857_v52  ;;  %1905 = vmatprep.mubr.bf16.mxu0 %v5106_v1 }
 0x187   : > { %4438 = vrot.lane.b32.xlu0 %v5679_v46, %s5116_s22  ;;  %4279 = vrot.lane.b32.xlu1 %v5638_v62, %s5115_s21 }
 0x188   : > { %4942 = vmatmul.mubr.msk.bf16.vlgmr.msra.gmra.mrb[32].mxu1 %vm381_vm3, %v4938_v19 }
 0x189   : > { %1915 = vmatpush1.bf16.msra.mxu1 %v1868_v58  ;;  %v5714_v59 = vpop.permute.xlu0 %2809  ;;  %v5716_v60 = vpop.permute.xlu1 %2649  ;;  %1946 = vmatprep.mubr.bf16.mxu1 %v5106_v1 }
 0x18b   : > { %4442 = vrot.lane.b32.xlu0 %v5638_v62, %s5116_s22  ;;  %4283 = vrot.lane.b32.xlu1 %v4267_v31, %s5115_s21  ;;  %s5055_s21 = sshll.u32 %s6283_s28, 5 }
 0x18c   : > { %4946 = vmatmul.mubr.msk.bf16.vlgmr.msra.gmra.mrb[36].mxu0 %vm381_vm3, %v4944_v61  ;;  %s305_s25 = scalar_lea.vmem %s6281_s8, %s5055_s21 }
 0x18d   : > { %v2174_v2 = vpop.permute.xlu0 %2173  ;;  %v2010_v4 = vpop.permute.xlu1 %2009  ;;  %2069 = vmatprep.mubr.bf16.mxu0 %v5106_v1 }
 0x18e   : > { %v2018_v0 = vsel %vm2017_vm12, %v5512_v5, %v2010_v4  ;;  %v2019_v20 = vsel %vm2017_vm12, %v2010_v4, %v5524_v15  ;;  %v2182_v12 = vsel %vm2181_vm13, %v5575_v55, %v2174_v2  ;;  %v2183_v5 = vsel %vm2181_vm13, %v2174_v2, %v5586_v57 }
 0x18f   : > { %v2026_v7 = vsel %vm385_vm2, %v2018_v0, 0  ;;  %4446 = vrot.lane.b32.xlu0 %v4430_v63, %s5116_s22  ;;  %4440 = vrot.lane.b32.xlu1 %v5659_v40, %s5116_s22  ;;  %v2190_v24 = vsel %vm385_vm2, %v2182_v12, 0  ;;  %v4980_v12 = vld [vmem:[%s6275_s2 + $0x3c] sm:$0xf] }
 0x190   : > { %4948 = vmatmul.mubr.msk.bf16.vlgmr.msra.gmra.mrb[36].mxu1 %vm381_vm3, %v4944_v61  ;;  %4951 = vmatprep.subr.msk.bf16.mxu0 %vm385_vm2, %v2019_v20 }
 0x191   : > { %2038 = vmatpush1.bf16.msra.mxu0 %v2026_v7  ;;  %v2178_v16 = vpop.permute.xlu0 %2177  ;;  %v2014_v13 = vpop.permute.xlu1 %2013  ;;  %2110 = vmatprep.mubr.bf16.mxu1 %v5106_v1 }
 0x192   : > { %4957 = vmatprep.subr.msk.bf16.mxu0 %vm385_vm2, %v2183_v5  ;;  %v2020_v17 = vsel %vm2017_vm12, %v5524_v15, %v2014_v13  ;;  %v2021_v55 = vsel %vm2017_vm12, %v2014_v13, %v5573_v54  ;;  %v2184_v15 = vsel %vm2181_vm13, %v5586_v57, %v2178_v16  ;;  %v2185_v54 = vsel %vm2181_vm13, %v2178_v16, %v5636_v3  ;;  %v4582_v3 = vld [vmem:[#allocation2 + $0x14] sm:$0xf] }
 0x193   : > { %v2032_v6 = vsel %vm385_vm2, %v2020_v17, 0  ;;  %4603 = vrot.lane.b32.xlu0 %v5659_v40, %s5117_s23  ;;  %4444 = vrot.lane.b32.xlu1 %v5661_v41, %s5116_s22  ;;  %v2196_v57 = vsel %vm385_vm2, %v2184_v15, 0  ;;  %v4593_v37 = vpack.c.bf16 %v4582_v3, %v4582_v3  ;;  %vm2979_vm12 = vcmask 982016  }
 0x194   : > { %4952 = vmatmul.mubr.msk.bf16.vlgmr.msra.gmra.mrb[40].mxu0 %vm381_vm3, %v4950_v26  ;;  %4953 = vmatprep.subr.msk.bf16.mxu1 %vm385_vm2, %v2021_v55  ;;  %vm3143_vm13 = vcmask 973824  }
 0x195   : > { %2079 = vmatpush1.bf16.msra.mxu1 %v2032_v6  ;;  %2202 = vmatpush1.bf16.msra.mxu0 %v2190_v24  ;;  %v2644_v27 = vpop.permute.xlu0 %2643  ;;  %v2338_v22 = vpop.permute.xlu1 %2337 }
 0x196   : > { %4959 = vmatprep.subr.msk.bf16.mxu1 %vm385_vm2, %v2185_v54  ;;  %v2347_v25 = vsel %vm2345_vm14, %v2338_v22, %v5634_v56  ;;  %v2346_v10 = vsel %vm2345_vm14, %v5584_v23, %v2338_v22  ;;  %2233 = vmatprep.mubr.bf16.mxu0 %v5106_v1  ;;  %v2653_v43 = vsel %vm2651_vm15, %v2644_v27, %v5704_v21 }
 0x197   : > { %4607 = vrot.lane.b32.xlu0 %v5661_v41, %s5117_s23  ;;  %4601 = vrot.lane.b32.xlu1 %v5679_v46, %s5117_s23  ;;  %v2354_v23 = vsel %vm385_vm2, %v2346_v10, 0  ;;  %v2652_v45 = vsel %vm2651_vm15, %v5649_v34, %v2644_v27  ;;  %v4986_v27 = vld [vmem:[%s6275_s2 + $0x40] sm:$0xf] }
 0x198   : > { %4954 = vmatmul.mubr.msk.bf16.vlgmr.msra.gmra.mrb[40].mxu1 %vm381_vm3, %v4950_v26  ;;  %4963 = vmatprep.subr.msk.bf16.mxu0 %vm385_vm2, %v2347_v25 }
 0x199   : > { %2243 = vmatpush1.bf16.msra.mxu1 %v2196_v57  ;;  %v2648_v30 = vpop.permute.xlu0 %2647  ;;  %v2342_v49 = vpop.permute.xlu1 %2341  ;;  %2274 = vmatprep.mubr.bf16.mxu1 %v5106_v1 }
 0x19a   : > { %v2349_v36 = vsel %vm2345_vm14, %v2342_v49, %v5647_v33  ;;  %v2348_v38 = vsel %vm2345_vm14, %v5634_v56, %v2342_v49  ;;  %v4962_v56 = vld [vmem:[%s6275_s2 + $0x30] sm:$0xf]  ;;  %v2654_v34 = vsel %vm2651_vm15, %v5704_v21, %v2648_v30 }
 0x19b   : > { %4746 = vperm.xlu0 %5084, %v4743_v28   ;;  %4605 = vrot.lane.b32.xlu1 %v5638_v62, %s5117_s23  ;;  %v2360_v33 = vsel %vm385_vm2, %v2348_v38, 0  ;;  %v2666_v47 = vsel %vm385_vm2, %v2654_v34, 0 }
 0x19c   : > { %4958 = vmatmul.mubr.msk.bf16.vlgmr.msra.gmra.mrb[44].mxu0 %vm381_vm3, %v4956_v35  ;;  %4965 = vmatprep.subr.msk.bf16.mxu1 %vm385_vm2, %v2349_v36 }
 0x19d   : > { %2366 = vmatpush1.bf16.msra.mxu0 %v2354_v23  ;;  %v2814_v39 = vpop.permute.xlu0 %2813  ;;  %v2808_v9 = vpop.permute.xlu1 %2807  ;;  %2397 = vmatprep.mubr.bf16.mxu0 %v5106_v1 }
 0x19e   : > { %4969 = vmatprep.subr.msk.bf16.mxu0 %vm385_vm2, %v5659_v40  ;;  %v2496_v40 = vsel %vm385_vm2, %v5679_v46, 0  ;;  %v2655_v46 = vsel %vm2651_vm15, %v2648_v30, %v5716_v60  ;;  %v2817_v50 = vsel %vm2815_vm11, %v2808_v9, %v5714_v59  ;;  %v2816_v52 = vsel %vm2815_vm11, %v5702_v18, %v2808_v9 }
 0x19f   : > { %4609 = vrot.lane.b32.xlu1 %v4593_v37, %s5117_s23  ;;  %v2824_v60 = vsel %vm385_vm2, %v2816_v52, 0  ;;  %v4992_v37 = vld [vmem:[%s6275_s2 + $0x44] sm:$0xf] }
 0x1a0   : > { %4960 = vmatmul.mubr.msk.bf16.vlgmr.msra.gmra.mrb[44].mxu1 %vm381_vm3, %v4956_v35 }
 0x1a1   : > { %2407 = vmatpush1.bf16.msra.mxu1 %v2360_v33  ;;  %v2972_v42 = vpop.permute.xlu0 %2971  ;;  %v2812_v11 = vpop.permute.xlu1 %2811  ;;  %2438 = vmatprep.mubr.bf16.mxu1 %v5106_v1 }
 0x1a2   : > { %4971 = vmatprep.subr.msk.bf16.mxu1 %vm385_vm2, %v5661_v41  ;;  %v2502_v41 = vsel %vm385_vm2, %v5638_v62, 0  ;;  %v2660_v62 = vsel %vm385_vm2, %v2652_v45, 0  ;;  %v2819_v31 = vsel %vm2815_vm11, %v2812_v11, %v2814_v39  ;;  %v2818_v18 = vsel %vm2815_vm11, %v5714_v59, %v2812_v11 }
 0x1a3   : > { %v2830_v4 = vsel %vm385_vm2, %v2818_v18, 0 }
 0x1a4   : > { %4964 = vmatmul.mubr.msk.bf16.vlgmr.msra.gmra.mrb[48].mxu0 %vm381_vm3, %v4962_v56 }
 0x1a5   : > { %2508 = vmatpush1.bf16.msra.mxu0 %v2496_v40  ;;  %v2976_v29 = vpop.permute.xlu0 %2975  ;;  %v2970_v44 = vpop.permute.xlu1 %2969  ;;  %2539 = vmatprep.mubr.bf16.mxu0 %v5106_v1 }
 0x1a6   : > { %4975 = vmatprep.subr.msk.bf16.mxu0 %vm385_vm2, %v2653_v43  ;;  %v2980_v0 = vsel %vm2979_vm12, %v2970_v44, %v2972_v42 }
 0x1a7   : > { %v2988_v5 = vsel %vm385_vm2, %v2980_v0, 0 }
 0x1a8   : > { %4966 = vmatmul.mubr.msk.bf16.vlgmr.msra.gmra.mrb[48].mxu1 %vm381_vm3, %v4962_v56 }
 0x1a9   : > { %2549 = vmatpush1.bf16.msra.mxu1 %v2502_v41  ;;  %v3134_v19 = vpop.permute.xlu0 %3133  ;;  %v2974_v48 = vpop.permute.xlu1 %2973  ;;  %2580 = vmatprep.mubr.bf16.mxu1 %v5106_v1 }
 0x1aa   : > { %4977 = vmatprep.subr.msk.bf16.mxu1 %vm385_vm2, %v2655_v46  ;;  %v2981_v61 = vsel %vm2979_vm12, %v2972_v42, %v2974_v48  ;;  %v2982_v16 = vsel %vm2979_vm12, %v2974_v48, %v2976_v29 }
 0x1ab   : > { %v2994_v55 = vsel %vm385_vm2, %v2982_v16, 0 }
 0x1ac   : > { %4970 = vmatmul.mubr.msk.bf16.vlgmr.msra.gmra.mrb[52].mxu0 %vm381_vm3, %v4968_v53 }
 0x1ad   : > { %2672 = vmatpush1.bf16.msra.mxu0 %v2660_v62  ;;  %v3138_v51 = vpop.permute.xlu0 %3137  ;;  %v2978_v14 = vpop.permute.xlu1 %2977  ;;  %2703 = vmatprep.mubr.bf16.mxu0 %v5106_v1 }
 0x1ae   : > { %4981 = vmatprep.subr.msk.bf16.mxu0 %vm385_vm2, %v2817_v50  ;;  %v2983_v20 = vsel %vm2979_vm12, %v2976_v29, %v2978_v14  ;;  %v4998_v29 = vld [vmem:[%s6275_s2 + $0x48] sm:$0xf] }
 0x1b0   : > { %4972 = vmatmul.mubr.msk.bf16.vlgmr.msra.gmra.mrb[52].mxu1 %vm381_vm3, %v4968_v53 }
 0x1b1   : > { %2713 = vmatpush1.bf16.msra.mxu1 %v2666_v47  ;;  %v3142_v21 = vpop.permute.xlu0 %3141  ;;  %v3136_v58 = vpop.permute.xlu1 %3135  ;;  %2744 = vmatprep.mubr.bf16.mxu1 %v5106_v1 }
 0x1b2   : > { %4983 = vmatprep.subr.msk.bf16.mxu1 %vm385_vm2, %v2819_v31  ;;  %v3145_v13 = vsel %vm3143_vm13, %v3136_v58, %v3138_v51  ;;  %v3144_v6 = vsel %vm3143_vm13, %v3134_v19, %v3136_v58 }
 0x1b3   : > { %v3152_v22 = vsel %vm385_vm2, %v3144_v6, 0 }
 0x1b4   : > { %4976 = vmatmul.mubr.msk.bf16.vlgmr.msra.gmra.mrb[56].mxu0 %vm381_vm3, %v4974_v32 }
 0x1b5   : > { %2836 = vmatpush1.bf16.msra.mxu0 %v2824_v60  ;;  %v3300_v63 = vpop.permute.xlu0 %3299  ;;  %v3140_v2 = vpop.permute.xlu1 %3139  ;;  %2867 = vmatprep.mubr.bf16.mxu0 %v5106_v1 }
 0x1b6   : > { %4987 = vmatprep.subr.msk.bf16.mxu0 %vm385_vm2, %v2981_v61  ;;  %v3147_v24 = vsel %vm3143_vm13, %v3140_v2, %v3142_v21  ;;  %v3146_v25 = vsel %vm3143_vm13, %v3138_v51, %v3140_v2  ;;  %v5004_v51 = vld [vmem:[%s6275_s2 + $0x4c] sm:$0xf] }
 0x1b7   : > { %v3158_v10 = vsel %vm385_vm2, %v3146_v25, 0 }
 0x1b8   : > { %4978 = vmatmul.mubr.msk.bf16.vlgmr.msra.gmra.mrb[56].mxu1 %vm381_vm3, %v4974_v32 }
 0x1b9   : > { %2877 = vmatpush1.bf16.msra.mxu1 %v2830_v4  ;;  %v3304_v7 = vpop.permute.xlu0 %3303  ;;  %v3298_v59 = vpop.permute.xlu1 %3297  ;;  %2908 = vmatprep.mubr.bf16.mxu1 %v5106_v1 }
 0x1ba   : > { %4989 = vmatprep.subr.msk.bf16.mxu1 %vm385_vm2, %v2983_v20  ;;  %v3307_v30 = vsel %vm376_vm0, %v3298_v59, %v3300_v63 }
 0x1bb   : > { %v3315_v23 = vsel %vm385_vm2, %v3307_v30, 0 }
 0x1bc   : > { %4982 = vmatmul.mubr.msk.bf16.vlgmr.msra.gmra.mrb[60].mxu0 %vm381_vm3, %v4980_v12 }
 0x1bd   : > { %3000 = vmatpush1.bf16.msra.mxu0 %v2988_v5  ;;  %v3461_v26 = vpop.permute.xlu0 %3460  ;;  %v3302_v17 = vpop.permute.xlu1 %3301  ;;  %3031 = vmatprep.mubr.bf16.mxu0 %v5106_v1 }
 0x1be   : > { %4993 = vmatprep.subr.msk.bf16.mxu0 %vm385_vm2, %v3145_v13  ;;  %v3308_v57 = vsel %vm376_vm0, %v3300_v63, %v3302_v17  ;;  %v3309_v38 = vsel %vm376_vm0, %v3302_v17, %v3304_v7  ;;  %v5010_v63 = vld [vmem:[%s6275_s2 + $0x50] sm:$0xf]  ;;  %v5016_v13 = vld [vmem:[%s6275_s2 + $0x54] sm:$0xf] }
 0x1bf   : > { %v3321_v42 = vsel %vm385_vm2, %v3309_v38, 0  ;;  %v5028_v38 = vld [vmem:[%s6275_s2 + $0x5c] sm:$0xf] }
 0x1c0   : > { %4984 = vmatmul.mubr.msk.bf16.vlgmr.msra.gmra.mrb[60].mxu1 %vm381_vm3, %v4980_v12 }
 0x1c1   : > { %3041 = vmatpush1.bf16.msra.mxu1 %v2994_v55  ;;  %v3465_v15 = vpop.permute.xlu0 %3464  ;;  %v3306_v54 = vpop.permute.xlu1 %3305  ;;  %3072 = vmatprep.mubr.bf16.mxu1 %v5106_v1 }
 0x1c2   : > { %4995 = vmatprep.subr.msk.bf16.mxu1 %vm385_vm2, %v3147_v24  ;;  %v3310_v49 = vsel %vm376_vm0, %v3304_v7, %v3306_v54 }
 0x1c4   : > { %4988 = vmatmul.mubr.msk.bf16.vlgmr.msra.gmra.mrb[64].mxu0 %vm381_vm3, %v4986_v27 }
 0x1c5   : > { %3164 = vmatpush1.bf16.msra.mxu0 %v3152_v22  ;;  %v3469_v28 = vpop.permute.xlu0 %3468  ;;  %v3463_v3 = vpop.permute.xlu1 %3462  ;;  %3195 = vmatprep.mubr.bf16.mxu0 %v5106_v1 }
 0x1c6   : > { %4999 = vmatprep.subr.msk.bf16.mxu0 %vm385_vm2, %v3308_v57  ;;  %v3471_v39 = vsel %vm541_vm1, %v3463_v3, %v3465_v15  ;;  %v3470_v11 = vsel %vm541_vm1, %v3461_v26, %v3463_v3  ;;  %v5022_v57 = vld [vmem:[%s6275_s2 + $0x58] sm:$0xf] }
 0x1c7   : > { %v3478_v41 = vsel %vm385_vm2, %v3470_v11, 0 }
 0x1c8   : > { %4990 = vmatmul.mubr.msk.bf16.vlgmr.msra.gmra.mrb[64].mxu1 %vm381_vm3, %v4986_v27 }
 0x1c9   : > { %3205 = vmatpush1.bf16.msra.mxu1 %v3158_v10  ;;  %v3626_v35 = vpop.permute.xlu0 %3625  ;;  %v3467_v36 = vpop.permute.xlu1 %3466  ;;  %3236 = vmatprep.mubr.bf16.mxu1 %v5106_v1 }
 0x1ca   : > { %5001 = vmatprep.subr.msk.bf16.mxu1 %vm385_vm2, %v3310_v49  ;;  %v3473_v56 = vsel %vm541_vm1, %v3467_v36, %v3469_v28  ;;  %v3472_v45 = vsel %vm541_vm1, %v3465_v15, %v3467_v36 }
 0x1cb   : > { %v3484_v53 = vsel %vm385_vm2, %v3472_v45, 0 }
 0x1cc   : > { %4994 = vmatmul.mubr.msk.bf16.vlgmr.msra.gmra.mrb[68].mxu0 %vm381_vm3, %v4992_v37 }
 0x1cd   : > { %3327 = vmatpush1.bf16.msra.mxu0 %v3315_v23  ;;  %v3630_v9 = vpop.permute.xlu0 %3629  ;;  %v3624_v33 = vpop.permute.xlu1 %3623  ;;  %3358 = vmatprep.mubr.bf16.mxu0 %v5106_v1 }
 0x1ce   : > { %5005 = vmatprep.subr.msk.bf16.mxu0 %vm385_vm2, %v3471_v39  ;;  %v3633_v62 = vsel %vm705_vm4, %v3624_v33, %v3626_v35 }
 0x1cf   : > { %v3641_v47 = vsel %vm385_vm2, %v3633_v62, 0 }
 0x1d0   : > { %4996 = vmatmul.mubr.msk.bf16.vlgmr.msra.gmra.mrb[68].mxu1 %vm381_vm3, %v4992_v37 }
 0x1d1   : > { %3368 = vmatpush1.bf16.msra.mxu1 %v3321_v42  ;;  %v3787_v40 = vpop.permute.xlu0 %3786  ;;  %v3628_v43 = vpop.permute.xlu1 %3627  ;;  %3399 = vmatprep.mubr.bf16.mxu1 %v5106_v1 }
 0x1d2   : > { %5007 = vmatprep.subr.msk.bf16.mxu1 %vm385_vm2, %v3473_v56  ;;  %v3634_v44 = vsel %vm705_vm4, %v3626_v35, %v3628_v43  ;;  %v3635_v52 = vsel %vm705_vm4, %v3628_v43, %v3630_v9 }
 0x1d3   : > { %v3647_v32 = vsel %vm385_vm2, %v3635_v52, 0 }
 0x1d4   : > { %5000 = vmatmul.mubr.msk.bf16.vlgmr.msra.gmra.mrb[72].mxu0 %vm381_vm3, %v4998_v29 }
 0x1d5   : > { %3490 = vmatpush1.bf16.msra.mxu0 %v3478_v41  ;;  %v3791_v46 = vpop.permute.xlu0 %3790  ;;  %v3632_v19 = vpop.permute.xlu1 %3631  ;;  %3521 = vmatprep.mubr.bf16.mxu0 %v5106_v1 }
 0x1d6   : > { %5011 = vmatprep.subr.msk.bf16.mxu0 %vm385_vm2, %v3634_v44  ;;  %v3636_v48 = vsel %vm705_vm4, %v3630_v9, %v3632_v19 }
 0x1d8   : > { %5002 = vmatmul.mubr.msk.bf16.vlgmr.msra.gmra.mrb[72].mxu1 %vm381_vm3, %v4998_v29  ;;  %v5034_v29 = vld [vmem:[%s6275_s2 + $0x60] sm:$0xf] }
 0x1d9   : > { %3531 = vmatpush1.bf16.msra.mxu1 %v3484_v53  ;;  %v3795_v34 = vpop.permute.xlu0 %3794  ;;  %v3789_v50 = vpop.permute.xlu1 %3788  ;;  %3562 = vmatprep.mubr.bf16.mxu1 %v5106_v1 }
 0x1da   : > { %5013 = vmatprep.subr.msk.bf16.mxu1 %vm385_vm2, %v3636_v48  ;;  %v3797_v14 = vsel %vm869_vm5, %v3789_v50, %v3791_v46  ;;  %v3796_v60 = vsel %vm869_vm5, %v3787_v40, %v3789_v50 }
 0x1db   : > { %v3804_v2 = vsel %vm385_vm2, %v3796_v60, 0 }
 0x1dc   : > { %5006 = vmatmul.mubr.msk.bf16.vlgmr.msra.gmra.mrb[76].mxu0 %vm381_vm3, %v5004_v51 }
 0x1dd   : > { %3653 = vmatpush1.bf16.msra.mxu0 %v3641_v47  ;;  %v3952_v31 = vpop.permute.xlu0 %3951  ;;  %v3793_v21 = vpop.permute.xlu1 %3792  ;;  %3684 = vmatprep.mubr.bf16.mxu0 %v5106_v1 }
 0x1de   : > { %5017 = vmatprep.subr.msk.bf16.mxu0 %vm385_vm2, %v3797_v14  ;;  %v3799_v58 = vsel %vm869_vm5, %v3793_v21, %v3795_v34  ;;  %v3798_v4 = vsel %vm869_vm5, %v3791_v46, %v3793_v21 }
 0x1df   : > { %v3810_v59 = vsel %vm385_vm2, %v3798_v4, 0  ;;  %v6022_v4 = vsub.s32 0, %v5191_v8 }
 0x1e0   : > { %5008 = vmatmul.mubr.msk.bf16.vlgmr.msra.gmra.mrb[76].mxu1 %vm381_vm3, %v5004_v51  ;;  %v5040_v51 = vld [vmem:[%s6275_s2 + $0x64] sm:$0xf] }
 0x1e1   : > { %3694 = vmatpush1.bf16.msra.mxu1 %v3647_v32  ;;  %v3956_v18 = vpop.permute.xlu0 %3955  ;;  %v3950_v61 = vpop.permute.xlu1 %3949  ;;  %3725 = vmatprep.mubr.bf16.mxu1 %v5106_v1 }
 0x1e2   : > { %5019 = vmatprep.subr.msk.bf16.mxu1 %vm385_vm2, %v3799_v58  ;;  %v3959_v12 = vsel %vm1033_vm6, %v3950_v61, %v3952_v31  ;;  %v4806_v58 = vld [vmem:[%s6278_s5] sm:$0xff] }
 0x1e3   : > { %v3967_v17 = vsel %vm385_vm2, %v3959_v12, 0  ;;  %4809 = vperm.xlu1 %5085, %v4806_v58  }
 0x1e4   : > { %5012 = vmatmul.mubr.msk.bf16.vlgmr.msra.gmra.mrb[80].mxu0 %vm381_vm3, %v5010_v63 }
 0x1e5   : > { %3816 = vmatpush1.bf16.msra.mxu0 %v3804_v2  ;;  %v4113_v0 = vpop.permute.xlu0 %4112  ;;  %v3954_v20 = vpop.permute.xlu1 %3953  ;;  %3847 = vmatprep.mubr.bf16.mxu0 %v5106_v1 }
 0x1e6   : > { %v3960_v7 = vsel %vm1033_vm6, %v3952_v31, %v3954_v20  ;;  %v3961_v55 = vsel %vm1033_vm6, %v3954_v20, %v3956_v18  ;;  %v6028_v20 = vsub.s32 1, %v5191_v8 }
 0x1e7   : > { %5023 = vmatprep.subr.msk.bf16.mxu0 %vm385_vm2, %v3960_v7  ;;  %v3973_v54 = vsel %vm385_vm2, %v3961_v55, 0 }
 0x1e8   : > { %5014 = vmatmul.mubr.msk.bf16.vlgmr.msra.gmra.mrb[80].mxu1 %vm381_vm3, %v5010_v63 }
 0x1e9   : > { %3857 = vmatpush1.bf16.msra.mxu1 %v3810_v59  ;;  %v4117_v5 = vpop.permute.xlu0 %4116  ;;  %v3958_v16 = vpop.permute.xlu1 %3957  ;;  %3888 = vmatprep.mubr.bf16.mxu1 %v5106_v1  ;;  %v4901_v59 = vld [vmem:[%s6279_s6 + $0x4] sm:$0xf] }
 0x1ea   : > { %v3962_v26 = vsel %vm1033_vm6, %v3956_v18, %v3958_v16  ;;  %v5046_v18 = vld [vmem:[%s6275_s2 + $0x68] sm:$0xf] }
 0x1eb   : > { %5025 = vmatprep.subr.msk.bf16.mxu1 %vm385_vm2, %v3962_v26 }
 0x1ec   : > { %5018 = vmatmul.mubr.msk.bf16.vlgmr.msra.gmra.mrb[84].mxu0 %vm381_vm3, %v5016_v13 }
 0x1ed   : > { %3979 = vmatpush1.bf16.msra.mxu0 %v3967_v17  ;;  %v4121_v6 = vpop.permute.xlu0 %4120  ;;  %v4115_v24 = vpop.permute.xlu1 %4114  ;;  %4010 = vmatprep.mubr.bf16.mxu0 %v5106_v1  ;;  %v649_v17 = vrot.slane %v4901_v59, %v6022_v4 }
 0x1ee   : > { %v4123_v15 = vsel %vm1197_vm7, %v4115_v24, %v4117_v5  ;;  %v4122_v27 = vsel %vm1197_vm7, %v4113_v0, %v4115_v24 }
 0x1ef   : > { %5029 = vmatprep.subr.msk.bf16.mxu0 %vm385_vm2, %v4123_v15  ;;  %v4130_v3 = vsel %vm385_vm2, %v4122_v27, 0  ;;  %v653_v15 = vrot.slane %v4901_v59, %v6028_v20 }
 0x1f0   : > { %5020 = vmatmul.mubr.msk.bf16.vlgmr.msra.gmra.mrb[84].mxu1 %vm381_vm3, %v5016_v13  ;;  %v6035_v13 = vsub.s32 2, %v5191_v8 }
 0x1f1   : > { %4020 = vmatpush1.bf16.msra.mxu1 %v3973_v54  ;;  %v4278_v22 = vpop.permute.xlu0 %4277  ;;  %v4119_v25 = vpop.permute.xlu1 %4118  ;;  %4051 = vmatprep.mubr.bf16.mxu1 %v5106_v1 }
 0x1f2   : > { %v4125_v28 = vsel %vm1197_vm7, %v4119_v25, %v4121_v6  ;;  %v4124_v10 = vsel %vm1197_vm7, %v4117_v5, %v4119_v25  ;;  %v6040_v6 = vsub.s32 3, %v5191_v8 }
 0x1f3   : > { %5031 = vmatprep.subr.msk.bf16.mxu1 %vm385_vm2, %v4125_v28  ;;  %v4136_v35 = vsel %vm385_vm2, %v4124_v10, 0 }
 0x1f4   : > { %5024 = vmatmul.mubr.msk.bf16.vlgmr.msra.gmra.mrb[88].mxu0 %vm381_vm3, %v5022_v57 }
 0x1f5   : > { %4142 = vmatpush1.bf16.msra.mxu0 %v4130_v3  ;;  %v4282_v30 = vpop.permute.xlu0 %4281  ;;  %v4276_v49 = vpop.permute.xlu1 %4275  ;;  %4173 = vmatprep.mubr.bf16.mxu0 %v5106_v1  ;;  %v657_v3 = vrot.slane %v4901_v59, %v6035_v13 }
 0x1f6   : > { %v4285_v36 = vsel %vm1361_vm8, %v4276_v49, %v4278_v22 }
 0x1f7   : > { %v4293_v9 = vsel %vm385_vm2, %v4285_v36, 0  ;;  %v4907_v36 = vld [vmem:[%s6279_s6 + $0x8] sm:$0xf] }
 0x1f8   : > { %5026 = vmatmul.mubr.msk.bf16.vlgmr.msra.gmra.mrb[88].mxu1 %vm381_vm3, %v5022_v57 }
 0x1f9   : > { %4183 = vmatpush1.bf16.msra.mxu1 %v4136_v35  ;;  %v4439_v37 = vpop.permute.xlu0 %4438  ;;  %v4280_v23 = vpop.permute.xlu1 %4279  ;;  %4214 = vmatprep.mubr.bf16.mxu1 %v5106_v1  ;;  %v661_v35 = vrot.slane %v4901_v59, %v6040_v6 }
 0x1fa   : > { %v4286_v39 = vsel %vm1361_vm8, %v4278_v22, %v4280_v23  ;;  %v4287_v33 = vsel %vm1361_vm8, %v4280_v23, %v4282_v30 }
 0x1fb   : > { %5035 = vmatprep.subr.msk.bf16.mxu0 %vm385_vm2, %v4286_v39  ;;  %v4299_v40 = vsel %vm385_vm2, %v4287_v33, 0 }
 0x1fc   : > { %5030 = vmatmul.mubr.msk.bf16.vlgmr.msra.gmra.mrb[92].mxu0 %vm381_vm3, %v5028_v38 }
 0x1fd   : > { %4305 = vmatpush1.bf16.msra.mxu0 %v4293_v9  ;;  %v4443_v42 = vpop.permute.xlu0 %4442  ;;  %v4284_v11 = vpop.permute.xlu1 %4283  ;;  %4336 = vmatprep.mubr.bf16.mxu0 %v5106_v1 }
 0x1fe   : > { %v4288_v56 = vsel %vm1361_vm8, %v4282_v30, %v4284_v11  ;;  %v813_v11 = vrot.slane %v4907_v36, %v6022_v4 }
 0x1ff   : > { %5037 = vmatprep.subr.msk.bf16.mxu1 %vm385_vm2, %v4288_v56 }
 0x200   : > { %5032 = vmatmul.mubr.msk.bf16.vlgmr.msra.gmra.mrb[92].mxu1 %vm381_vm3, %v5028_v38 }
 0x201   : > { %4346 = vmatpush1.bf16.msra.mxu1 %v4299_v40  ;;  %v4441_v43 = vpop.permute.xlu1 %4440  ;;  %4377 = vmatprep.mubr.bf16.mxu1 %v5106_v1  ;;  %v4447_v45 = vpop.permute.xlu0 %4446 }
 0x202   : > { %v4448_v44 = vsel %vm1525_vm9, %v4439_v37, %v4441_v43  ;;  %v4449_v41 = vsel %vm1525_vm9, %v4441_v43, %v4443_v42 }
 0x203   : > { %v4456_v46 = vsel %vm385_vm2, %v4448_v44, 0  ;;  %5041 = vmatprep.subr.msk.bf16.mxu0 %vm385_vm2, %v4449_v41 }
 0x204   : > { %5036 = vmatmul.mubr.msk.bf16.vlgmr.msra.gmra.mrb[96].mxu0 %vm381_vm3, %v5034_v29 }
 0x205   : > { %4468 = vmatpush1.bf16.msra.mxu0 %v4456_v46  ;;  %v4445_v19 = vpop.permute.xlu1 %4444  ;;  %4499 = vmatprep.mubr.bf16.mxu0 %v5106_v1  ;;  %v4604_v34 = vpop.permute.xlu0 %4603 }
 0x206   : > { %v4450_v48 = vsel %vm1525_vm9, %v4443_v42, %v4445_v19  ;;  %v4451_v53 = vsel %vm1525_vm9, %v4445_v19, %v4447_v45 }
 0x207   : > { %v4462_v62 = vsel %vm385_vm2, %v4450_v48, 0  ;;  %5043 = vmatprep.subr.msk.bf16.mxu1 %vm385_vm2, %v4451_v53  ;;  %v821_v53 = vrot.slane %v4907_v36, %v6035_v13 }
 0x208   : > { %5038 = vmatmul.mubr.msk.bf16.vlgmr.msra.gmra.mrb[96].mxu1 %vm381_vm3, %v5034_v29  ;;  %v817_v29 = vrot.slane %v4907_v36, %v6028_v20 }
 0x209   : > { %4509 = vmatpush1.bf16.msra.mxu1 %v4462_v62  ;;  %v4602_v50 = vpop.permute.xlu1 %4601  ;;  %4540 = vmatprep.mubr.bf16.mxu1 %v5106_v1  ;;  %v4608_v31 = vpop.permute.xlu0 %4607 }
 0x20a   : > { %v4611_v14 = vsel %vm1689_vm10, %v4602_v50, %v4604_v34 }
 0x20b   : > { %v4619_v21 = vsel %vm385_vm2, %v4611_v14, 0 }
 0x20c   : > { %5042 = vmatmul.mubr.msk.bf16.vlgmr.msra.gmra.mrb[100].mxu0 %vm381_vm3, %v5040_v51 }
 0x20d   : > { %v4606_v47 = vpop.permute.xlu1 %4605  ;;  %4662 = vmatprep.mubr.bf16.mxu0 %v5106_v1 }
 0x20e   : > { %v4612_v52 = vsel %vm1689_vm10, %v4604_v34, %v4606_v47  ;;  %v4613_v32 = vsel %vm1689_vm10, %v4606_v47, %v4608_v31  ;;  %v825_v34 = vrot.slane %v4907_v36, %v6040_v6 }
 0x20f   : > { %5047 = vmatprep.subr.msk.bf16.mxu0 %vm385_vm2, %v4612_v52  ;;  %v4625_v63 = vsel %vm385_vm2, %v4613_v32, 0 }
 0x210   : > { %5044 = vmatmul.mubr.msk.bf16.vlgmr.msra.gmra.mrb[100].mxu1 %vm381_vm3, %v5040_v51  ;;  %4631 = vmatpush1.bf16.msra.mxu0 %v4619_v21  ;;  %v4913_v51 = vld [vmem:[%s6279_s6 + $0xc] sm:$0xf] }
 0x211   : > { %v4610_v60 = vpop.permute.xlu1 %4609  ;;  %4703 = vmatprep.mubr.bf16.mxu1 %v5106_v1  ;;  %v480_v1 = vld [vmem:[%s6279_s6] sm:$0xf]  ;;  %v977_v32 = vrot.slane %v4913_v51, %v6022_v4 }
 0x212   : > { %v4614_v61 = vsel %vm1689_vm10, %v4608_v31, %v4610_v60  ;;  %v485_v16 = vrot.slane %v480_v1, %v6022_v4  ;;  %v489_v55 = vrot.slane %v480_v1, %v6028_v20  ;;  %v493_v25 = vrot.slane %v480_v1, %v6035_v13 }
 0x213   : > { %5049 = vmatprep.subr.msk.bf16.mxu1 %vm385_vm2, %v4614_v61  ;;  %v497_v30 = vrot.slane %v480_v1, %v6040_v6  ;;  %v981_v61 = vrot.slane %v4913_v51, %v6028_v20 }
 0x214   : > { %5048 = vmatmul.mubr.msk.bf16.vlgmr.msra.gmra.mrb[104].mxu0 %vm381_vm3, %v5046_v18  ;;  %4672 = vmatpush1.bf16.msra.mxu1 %v4625_v63 }
 0x217   : > { %v432_v2 = vpop.f32.mrb[0].mxu0 }
 0x218   : > { %5050 = vmatmul.mubr.msk.bf16.vlgmr.msra.gmra.mrb[104].mxu1 %vm381_vm3, %v5046_v18  ;;  %v434_v0 = vpop.f32.mrb[1].mxu0  ;;  %v502_v22 = vmul.f32 %v485_v16, %v432_v2  ;;  %v989_v16 = vrot.slane %v4913_v51, %v6040_v6 }
 0x219   : > { %v436_v7 = vpop.f32.mrb[2].mxu0  ;;  %v503_v10 = vmul.f32 %v489_v55, %v434_v0 }
 0x21a   : > { %v437_v12 = vpop.f32.mrb[3].mxu0 }
 0x21b   : > { %v473_v5 = vpop.f32.mrb[0].mxu1  ;;  %v985_v12 = vrot.slane %v4913_v51, %v6035_v13 }
 0x21c   : > { %v475_v26 = vpop.f32.mrb[1].mxu1  ;;  %v504_v9 = vmul.f32 %v493_v25, %v473_v5 }
 0x21d   : > { %v477_v24 = vpop.f32.mrb[2].mxu1  ;;  %v505_v56 = vmul.f32 %v497_v30, %v475_v26 }
 0x21e   : > { %v478_v54 = vpop.f32.mrb[3].mxu1 }
 0x21f   : > { %v595_v27 = vpop.f32.mrb[4].mxu0 }
 0x220   : > { %v666_v57 = vmul.f32 %v649_v17, %v595_v27  ;;  %v597_v28 = vpop.f32.mrb[5].mxu0  ;;  %v4919_v17 = vld [vmem:[%s6279_s6 + $0x10] sm:$0xf] }
 0x221   : > { %v667_v49 = vmul.f32 %v653_v15, %v597_v28  ;;  %v599_v8 = vpop.f32.mrb[6].mxu0  ;;  %v1141_v25 = vrot.slane %v4919_v17, %v6022_v4 }
 0x222   : > { %v670_v37 = vadd.f32 %v666_v57, %v502_v22  ;;  %v600_v23 = vpop.f32.mrb[7].mxu0 }
 0x223   : > { %v671_v38 = vadd.f32 %v667_v49, %v503_v10  ;;  %v636_v39 = vpop.f32.mrb[4].mxu1 }
 0x224   : > { %v668_v33 = vmul.f32 %v657_v3, %v636_v39  ;;  %v638_v42 = vpop.f32.mrb[5].mxu1  ;;  %v1145_v3 = vrot.slane %v4919_v17, %v6028_v20 }
 0x225   : > { %v669_v40 = vmul.f32 %v661_v35, %v638_v42  ;;  %v640_v43 = vpop.f32.mrb[6].mxu1 }
 0x226   : > { %v672_v44 = vadd.f32 %v668_v33, %v504_v9  ;;  %v641_v41 = vpop.f32.mrb[7].mxu1  ;;  %v4925_v9 = vld [vmem:[%s6279_s6 + $0x14] sm:$0xf] }
 0x227   : > { %v673_v45 = vadd.f32 %v669_v40, %v505_v56  ;;  %v759_v46 = vpop.f32.mrb[8].mxu0 }
 0x228   : > { %v830_v19 = vmul.f32 %v813_v11, %v759_v46  ;;  %v761_v48 = vpop.f32.mrb[9].mxu0 }
 0x229   : > { %v831_v62 = vmul.f32 %v817_v29, %v761_v48  ;;  %v763_v50 = vpop.f32.mrb[10].mxu0  ;;  %v1305_v29 = vrot.slane %v4925_v9, %v6022_v4 }
 0x22a   : > { %v834_v14 = vadd.f32 %v830_v19, %v670_v37  ;;  %v764_v47 = vpop.f32.mrb[11].mxu0  ;;  %v1149_v37 = vrot.slane %v4919_v17, %v6035_v13  ;;  %v1313_v50 = vrot.slane %v4925_v9, %v6035_v13 }
 0x22b   : > { %v835_v52 = vadd.f32 %v831_v62, %v671_v38  ;;  %v800_v31 = vpop.f32.mrb[8].mxu1  ;;  %v1153_v38 = vrot.slane %v4919_v17, %v6040_v6 }
 0x22c   : > { %v832_v21 = vmul.f32 %v821_v53, %v800_v31  ;;  %v802_v58 = vpop.f32.mrb[9].mxu1 }
 0x22d   : > { %v833_v60 = vmul.f32 %v825_v34, %v802_v58  ;;  %v804_v18 = vpop.f32.mrb[10].mxu1 }
 0x22e   : > { %v836_v63 = vadd.f32 %v832_v21, %v672_v44  ;;  %v805_v2 = vpop.f32.mrb[11].mxu1 }
 0x22f   : > { %v837_v0 = vadd.f32 %v833_v60, %v673_v45  ;;  %v923_v1 = vpop.f32.mrb[12].mxu0  ;;  %v1309_v45 = vrot.slane %v4925_v9, %v6028_v20 }
 0x230   : > { %v994_v7 = vmul.f32 %v977_v32, %v923_v1  ;;  %v925_v59 = vpop.f32.mrb[13].mxu0 }
 0x231   : > { %v995_v5 = vmul.f32 %v981_v61, %v925_v59  ;;  %v927_v26 = vpop.f32.mrb[14].mxu0 }
 0x232   : > { %v998_v55 = vadd.f32 %v994_v7, %v834_v14  ;;  %v928_v24 = vpop.f32.mrb[15].mxu0  ;;  %v1317_v14 = vrot.slane %v4925_v9, %v6040_v6 }
 0x233   : > { %v999_v15 = vadd.f32 %v995_v5, %v835_v52  ;;  %v964_v54 = vpop.f32.mrb[12].mxu1  ;;  %v4931_v52 = vld [vmem:[%s6279_s6 + $0x18] sm:$0xf] }
 0x234   : > { %v996_v27 = vmul.f32 %v985_v12, %v964_v54  ;;  %v966_v22 = vpop.f32.mrb[13].mxu1  ;;  %v1469_v61 = vrot.slane %v4931_v52, %v6022_v4  ;;  %v1477_v26 = vrot.slane %v4931_v52, %v6035_v13 }
 0x235   : > { %v997_v57 = vmul.f32 %v989_v16, %v966_v22  ;;  %v968_v28 = vpop.f32.mrb[14].mxu1 }
 0x236   : > { %v1000_v10 = vadd.f32 %v996_v27, %v836_v63  ;;  %v969_v30 = vpop.f32.mrb[15].mxu1 }
 0x237   : > { %v1001_v49 = vadd.f32 %v997_v57, %v837_v0  ;;  %v1087_v35 = vpop.f32.mrb[16].mxu0  ;;  %v1473_v0 = vrot.slane %v4931_v52, %v6028_v20 }
 0x238   : > { %v1158_v8 = vmul.f32 %v1141_v25, %v1087_v35  ;;  %v1089_v36 = vpop.f32.mrb[17].mxu0 }
 0x239   : > { %v1159_v23 = vmul.f32 %v1145_v3, %v1089_v36  ;;  %v1091_v39 = vpop.f32.mrb[18].mxu0 }
 0x23a   : > { %v1162_v33 = vadd.f32 %v1158_v8, %v998_v55  ;;  %v1092_v42 = vpop.f32.mrb[19].mxu0  ;;  %v1481_v55 = vrot.slane %v4931_v52, %v6040_v6 }
 0x23b   : > { %v1163_v11 = vadd.f32 %v1159_v23, %v999_v15  ;;  %v1128_v56 = vpop.f32.mrb[16].mxu1  ;;  %v4937_v15 = vld [vmem:[%s6279_s6 + $0x1c] sm:$0xf] }
 0x23c   : > { %v1160_v40 = vmul.f32 %v1149_v37, %v1128_v56  ;;  %v1130_v43 = vpop.f32.mrb[17].mxu1  ;;  %v1633_v3 = vrot.slane %v4937_v15, %v6022_v4  ;;  %v1641_v39 = vrot.slane %v4937_v15, %v6035_v13 }
 0x23d   : > { %v1161_v44 = vmul.f32 %v1153_v38, %v1130_v43  ;;  %v1132_v41 = vpop.f32.mrb[18].mxu1 }
 0x23e   : > { %v1164_v46 = vadd.f32 %v1160_v40, %v1000_v10  ;;  %v1133_v19 = vpop.f32.mrb[19].mxu1 }
 0x23f   : > { %v1165_v48 = vadd.f32 %v1161_v44, %v1001_v49  ;;  %v1251_v53 = vpop.f32.mrb[20].mxu0  ;;  %v1637_v49 = vrot.slane %v4937_v15, %v6028_v20 }
 0x240   : > { %v1322_v62 = vmul.f32 %v1305_v29, %v1251_v53  ;;  %v1253_v34 = vpop.f32.mrb[21].mxu0 }
 0x241   : > { %v1323_v51 = vmul.f32 %v1309_v45, %v1253_v34  ;;  %v1255_v47 = vpop.f32.mrb[22].mxu0 }
 0x242   : > { %v1326_v31 = vadd.f32 %v1322_v62, %v1162_v33  ;;  %v1256_v21 = vpop.f32.mrb[23].mxu0  ;;  %v1645_v33 = vrot.slane %v4937_v15, %v6040_v6 }
 0x243   : > { %v1327_v58 = vadd.f32 %v1323_v51, %v1163_v11  ;;  %v1292_v32 = vpop.f32.mrb[20].mxu1  ;;  %v4943_v11 = vld [vmem:[%s6279_s6 + $0x20] sm:$0xf] }
 0x244   : > { %v1324_v60 = vmul.f32 %v1313_v50, %v1292_v32  ;;  %v1294_v18 = vpop.f32.mrb[21].mxu1  ;;  %v1797_v45 = vrot.slane %v4943_v11, %v6022_v4  ;;  %v1805_v47 = vrot.slane %v4943_v11, %v6035_v13 }
 0x245   : > { %v1325_v63 = vmul.f32 %v1317_v14, %v1294_v18  ;;  %v1296_v2 = vpop.f32.mrb[22].mxu1 }
 0x246   : > { %v1328_v1 = vadd.f32 %v1324_v60, %v1164_v46  ;;  %v1297_v7 = vpop.f32.mrb[23].mxu1 }
 0x247   : > { %v1329_v59 = vadd.f32 %v1325_v63, %v1165_v48  ;;  %v1415_v12 = vpop.f32.mrb[24].mxu0  ;;  %v1801_v48 = vrot.slane %v4943_v11, %v6028_v20 }
 0x248   : > { %v1486_v5 = vmul.f32 %v1469_v61, %v1415_v12  ;;  %v1417_v16 = vpop.f32.mrb[25].mxu0 }
 0x249   : > { %v1487_v17 = vmul.f32 %v1473_v0, %v1417_v16  ;;  %v1419_v24 = vpop.f32.mrb[26].mxu0 }
 0x24a   : > { %v1490_v54 = vadd.f32 %v1486_v5, %v1326_v31  ;;  %v1420_v27 = vpop.f32.mrb[27].mxu0  ;;  %v1809_v31 = vrot.slane %v4943_v11, %v6040_v6 }
 0x24b   : > { %v1491_v22 = vadd.f32 %v1487_v17, %v1327_v58  ;;  %v1456_v25 = vpop.f32.mrb[24].mxu1  ;;  %v4949_v58 = vld [vmem:[%s6279_s6 + $0x24] sm:$0xf] }
 0x24c   : > { %v1488_v57 = vmul.f32 %v1477_v26, %v1456_v25  ;;  %v1458_v28 = vpop.f32.mrb[25].mxu1  ;;  %v1961_v0 = vrot.slane %v4949_v58, %v6022_v4  ;;  %v1969_v24 = vrot.slane %v4949_v58, %v6035_v13 }
 0x24d   : > { %v1489_v10 = vmul.f32 %v1481_v55, %v1458_v28  ;;  %v1460_v30 = vpop.f32.mrb[26].mxu1 }
 0x24e   : > { %v1492_v35 = vadd.f32 %v1488_v57, %v1328_v1  ;;  %v1461_v8 = vpop.f32.mrb[27].mxu1 }
 0x24f   : > { %v1493_v36 = vadd.f32 %v1489_v10, %v1329_v59  ;;  %v1579_v37 = vpop.f32.mrb[28].mxu0  ;;  %v1965_v59 = vrot.slane %v4949_v58, %v6028_v20 }
 0x250   : > { %v1650_v23 = vmul.f32 %v1633_v3, %v1579_v37  ;;  %v1581_v38 = vpop.f32.mrb[29].mxu0 }
 0x251   : > { %v1651_v9 = vmul.f32 %v1637_v49, %v1581_v38  ;;  %v1583_v42 = vpop.f32.mrb[30].mxu0 }
 0x252   : > { %v1654_v56 = vadd.f32 %v1650_v23, %v1490_v54  ;;  %v1584_v40 = vpop.f32.mrb[31].mxu0  ;;  %v1973_v54 = vrot.slane %v4949_v58, %v6040_v6 }
 0x253   : > { %v1655_v43 = vadd.f32 %v1651_v9, %v1491_v22  ;;  %v1620_v29 = vpop.f32.mrb[28].mxu1  ;;  %v4955_v22 = vld [vmem:[%s6279_s6 + $0x28] sm:$0xf] }
 0x254   : > { %v1652_v44 = vmul.f32 %v1641_v39, %v1620_v29  ;;  %v1622_v41 = vpop.f32.mrb[29].mxu1  ;;  %v2125_v49 = vrot.slane %v4955_v22, %v6022_v4  ;;  %v2133_v42 = vrot.slane %v4955_v22, %v6035_v13 }
 0x255   : > { %v1653_v46 = vmul.f32 %v1645_v33, %v1622_v41  ;;  %v1624_v19 = vpop.f32.mrb[30].mxu1 }
 0x256   : > { %v1656_v53 = vadd.f32 %v1652_v44, %v1492_v35  ;;  %v1625_v62 = vpop.f32.mrb[31].mxu1 }
 0x257   : > { %v1657_v34 = vadd.f32 %v1653_v46, %v1493_v36  ;;  %v1743_v50 = vpop.f32.mrb[32].mxu0  ;;  %v2129_v36 = vrot.slane %v4955_v22, %v6028_v20 }
 0x258   : > { %v1814_v51 = vmul.f32 %v1797_v45, %v1743_v50  ;;  %v1745_v14 = vpop.f32.mrb[33].mxu0 }
 0x259   : > { %v1815_v52 = vmul.f32 %v1801_v48, %v1745_v14  ;;  %v1747_v21 = vpop.f32.mrb[34].mxu0 }
 0x25a   : > { %v1818_v32 = vadd.f32 %v1814_v51, %v1654_v56  ;;  %v1748_v60 = vpop.f32.mrb[35].mxu0  ;;  %v2137_v56 = vrot.slane %v4955_v22, %v6040_v6 }
 0x25b   : > { %v1819_v18 = vadd.f32 %v1815_v52, %v1655_v43  ;;  %v1784_v61 = vpop.f32.mrb[32].mxu1  ;;  %v4961_v43 = vld [vmem:[%s6279_s6 + $0x2c] sm:$0xf] }
 0x25c   : > { %v1816_v63 = vmul.f32 %v1805_v47, %v1784_v61  ;;  %v1786_v2 = vpop.f32.mrb[33].mxu1  ;;  %v2289_v48 = vrot.slane %v4961_v43, %v6022_v4  ;;  %v2297_v21 = vrot.slane %v4961_v43, %v6035_v13 }
 0x25d   : > { %v1817_v1 = vmul.f32 %v1809_v31, %v1786_v2  ;;  %v1788_v7 = vpop.f32.mrb[34].mxu1 }
 0x25e   : > { %v1820_v12 = vadd.f32 %v1816_v63, %v1656_v53  ;;  %v1789_v5 = vpop.f32.mrb[35].mxu1 }
 0x25f   : > { %v1821_v16 = vadd.f32 %v1817_v1, %v1657_v34  ;;  %v1907_v26 = vpop.f32.mrb[36].mxu0  ;;  %v2293_v34 = vrot.slane %v4961_v43, %v6028_v20 }
 0x260   : > { %v1978_v17 = vmul.f32 %v1961_v0, %v1907_v26  ;;  %v1909_v55 = vpop.f32.mrb[37].mxu0 }
 0x261   : > { %v1979_v15 = vmul.f32 %v1965_v59, %v1909_v55  ;;  %v1911_v27 = vpop.f32.mrb[38].mxu0 }
 0x262   : > { %v1982_v25 = vadd.f32 %v1978_v17, %v1818_v32  ;;  %v1912_v57 = vpop.f32.mrb[39].mxu0  ;;  %v2301_v32 = vrot.slane %v4961_v43, %v6040_v6 }
 0x263   : > { %v1983_v28 = vadd.f32 %v1979_v15, %v1819_v18  ;;  %v1948_v3 = vpop.f32.mrb[36].mxu1  ;;  %v4967_v18 = vld [vmem:[%s6279_s6 + $0x30] sm:$0xf] }
 0x264   : > { %v1980_v10 = vmul.f32 %v1969_v24, %v1948_v3  ;;  %v1950_v30 = vpop.f32.mrb[37].mxu1  ;;  %v2453_v59 = vrot.slane %v4967_v18, %v6022_v4  ;;  %v2461_v27 = vrot.slane %v4967_v18, %v6035_v13 }
 0x265   : > { %v1981_v35 = vmul.f32 %v1973_v54, %v1950_v30  ;;  %v1952_v8 = vpop.f32.mrb[38].mxu1 }
 0x266   : > { %v1984_v37 = vadd.f32 %v1980_v10, %v1820_v12  ;;  %v1953_v23 = vpop.f32.mrb[39].mxu1 }
 0x267   : > { %v1985_v38 = vadd.f32 %v1981_v35, %v1821_v16  ;;  %v2071_v39 = vpop.f32.mrb[40].mxu0  ;;  %v2457_v16 = vrot.slane %v4967_v18, %v6028_v20 }
 0x268   : > { %v2142_v9 = vmul.f32 %v2125_v49, %v2071_v39  ;;  %v2073_v33 = vpop.f32.mrb[41].mxu0 }
 0x269   : > { %v2143_v11 = vmul.f32 %v2129_v36, %v2073_v33  ;;  %v2075_v40 = vpop.f32.mrb[42].mxu0 }
 0x26a   : > { %v2146_v29 = vadd.f32 %v2142_v9, %v1982_v25  ;;  %v2076_v44 = vpop.f32.mrb[43].mxu0  ;;  %v2465_v25 = vrot.slane %v4967_v18, %v6040_v6 }
 0x26b   : > { %v2147_v41 = vadd.f32 %v2143_v11, %v1983_v28  ;;  %v2112_v45 = vpop.f32.mrb[40].mxu1  ;;  %v4973_v28 = vld [vmem:[%s6279_s6 + $0x34] sm:$0xf] }
 0x26c   : > { %v2144_v46 = vmul.f32 %v2133_v42, %v2112_v45  ;;  %v2114_v19 = vpop.f32.mrb[41].mxu1  ;;  %v2595_v36 = vrot.slane %v4973_v28, %v6022_v4  ;;  %v2603_v40 = vrot.slane %v4973_v28, %v6035_v13 }
 0x26d   : > { %v2145_v53 = vmul.f32 %v2137_v56, %v2114_v19  ;;  %v2116_v62 = vpop.f32.mrb[42].mxu1 }
 0x26e   : > { %v2148_v50 = vadd.f32 %v2144_v46, %v1984_v37  ;;  %v2117_v51 = vpop.f32.mrb[43].mxu1 }
 0x26f   : > { %v2149_v14 = vadd.f32 %v2145_v53, %v1985_v38  ;;  %v2235_v47 = vpop.f32.mrb[44].mxu0  ;;  %v2599_v38 = vrot.slane %v4973_v28, %v6028_v20 }
 0x270   : > { %v2306_v52 = vmul.f32 %v2289_v48, %v2235_v47  ;;  %v2237_v31 = vpop.f32.mrb[45].mxu0 }
 0x271   : > { %v2307_v58 = vmul.f32 %v2293_v34, %v2237_v31  ;;  %v2239_v60 = vpop.f32.mrb[46].mxu0 }
 0x272   : > { %v2310_v61 = vadd.f32 %v2306_v52, %v2146_v29  ;;  %v2240_v63 = vpop.f32.mrb[47].mxu0  ;;  %v2607_v29 = vrot.slane %v4973_v28, %v6040_v6 }
 0x273   : > { %v2311_v2 = vadd.f32 %v2307_v58, %v2147_v41  ;;  %v2276_v0 = vpop.f32.mrb[44].mxu1  ;;  %v4979_v41 = vld [vmem:[%s6279_s6 + $0x38] sm:$0xf] }
 0x274   : > { %v2308_v1 = vmul.f32 %v2297_v21, %v2276_v0  ;;  %v2278_v7 = vpop.f32.mrb[45].mxu1  ;;  %v2759_v34 = vrot.slane %v4979_v41, %v6022_v4  ;;  %v2767_v60 = vrot.slane %v4979_v41, %v6035_v13 }
 0x275   : > { %v2309_v12 = vmul.f32 %v2301_v32, %v2278_v7  ;;  %v2280_v5 = vpop.f32.mrb[46].mxu1 }
 0x276   : > { %v2312_v26 = vadd.f32 %v2308_v1, %v2148_v50  ;;  %v2281_v17 = vpop.f32.mrb[47].mxu1 }
 0x277   : > { %v2313_v55 = vadd.f32 %v2309_v12, %v2149_v14  ;;  %v2399_v24 = vpop.f32.mrb[48].mxu0  ;;  %v2763_v14 = vrot.slane %v4979_v41, %v6028_v20 }
 0x278   : > { %v2470_v15 = vmul.f32 %v2453_v59, %v2399_v24  ;;  %v2401_v54 = vpop.f32.mrb[49].mxu0 }
 0x279   : > { %v2471_v22 = vmul.f32 %v2457_v16, %v2401_v54  ;;  %v2403_v57 = vpop.f32.mrb[50].mxu0 }
 0x27a   : > { %v2474_v3 = vadd.f32 %v2470_v15, %v2310_v61  ;;  %v2404_v10 = vpop.f32.mrb[51].mxu0  ;;  %v2771_v61 = vrot.slane %v4979_v41, %v6040_v6 }
 0x27b   : > { %v2475_v30 = vadd.f32 %v2471_v22, %v2311_v2  ;;  %v2440_v49 = vpop.f32.mrb[48].mxu1  ;;  %v4985_v2 = vld [vmem:[%s6279_s6 + $0x3c] sm:$0xf] }
 0x27c   : > { %v2472_v35 = vmul.f32 %v2461_v27, %v2440_v49  ;;  %v2442_v8 = vpop.f32.mrb[49].mxu1  ;;  %v2923_v16 = vrot.slane %v4985_v2, %v6022_v4  ;;  %v2931_v57 = vrot.slane %v4985_v2, %v6035_v13 }
 0x27d   : > { %v2473_v37 = vmul.f32 %v2465_v25, %v2442_v8  ;;  %v2444_v23 = vpop.f32.mrb[50].mxu1 }
 0x27e   : > { %v2476_v39 = vadd.f32 %v2472_v35, %v2312_v26  ;;  %v2445_v9 = vpop.f32.mrb[51].mxu1 }
 0x27f   : > { %v2477_v33 = vadd.f32 %v2473_v37, %v2313_v55  ;;  %v2541_v42 = vpop.f32.mrb[52].mxu0  ;;  %v2927_v55 = vrot.slane %v4985_v2, %v6028_v20 }
 0x280   : > { %v2612_v11 = vmul.f32 %v2595_v36, %v2541_v42  ;;  %v2543_v56 = vpop.f32.mrb[53].mxu0 }
 0x281   : > { %v2613_v43 = vmul.f32 %v2599_v38, %v2543_v56  ;;  %v2545_v44 = vpop.f32.mrb[54].mxu0 }
 0x282   : > { %v2616_v45 = vadd.f32 %v2612_v11, %v2474_v3  ;;  %v2546_v46 = vpop.f32.mrb[55].mxu0  ;;  %v2935_v3 = vrot.slane %v4985_v2, %v6040_v6 }
 0x283   : > { %v2617_v19 = vadd.f32 %v2613_v43, %v2475_v30  ;;  %v2582_v48 = vpop.f32.mrb[52].mxu1  ;;  %v4991_v30 = vld [vmem:[%s6279_s6 + $0x40] sm:$0xf] }
 0x284   : > { %v2614_v53 = vmul.f32 %v2603_v40, %v2582_v48  ;;  %v2584_v62 = vpop.f32.mrb[53].mxu1  ;;  %v3087_v38 = vrot.slane %v4991_v30, %v6022_v4  ;;  %v3095_v44 = vrot.slane %v4991_v30, %v6035_v13 }
 0x285   : > { %v2615_v50 = vmul.f32 %v2607_v29, %v2584_v62  ;;  %v2586_v51 = vpop.f32.mrb[54].mxu1 }
 0x286   : > { %v2618_v47 = vadd.f32 %v2614_v53, %v2476_v39  ;;  %v2587_v52 = vpop.f32.mrb[55].mxu1 }
 0x287   : > { %v2619_v31 = vadd.f32 %v2615_v50, %v2477_v33  ;;  %v2705_v21 = vpop.f32.mrb[56].mxu0  ;;  %v3091_v33 = vrot.slane %v4991_v30, %v6028_v20 }
 0x288   : > { %v2776_v58 = vmul.f32 %v2759_v34, %v2705_v21  ;;  %v2707_v32 = vpop.f32.mrb[57].mxu0 }
 0x289   : > { %v2777_v18 = vmul.f32 %v2763_v14, %v2707_v32  ;;  %v2709_v63 = vpop.f32.mrb[58].mxu0 }
 0x28a   : > { %v2780_v0 = vadd.f32 %v2776_v58, %v2616_v45  ;;  %v2710_v1 = vpop.f32.mrb[59].mxu0  ;;  %v3099_v45 = vrot.slane %v4991_v30, %v6040_v6 }
 0x28b   : > { %v2781_v7 = vadd.f32 %v2777_v18, %v2617_v19  ;;  %v2746_v59 = vpop.f32.mrb[56].mxu1  ;;  %v4997_v19 = vld [vmem:[%s6279_s6 + $0x44] sm:$0xf] }
 0x28c   : > { %v2778_v12 = vmul.f32 %v2767_v60, %v2746_v59  ;;  %v2748_v5 = vpop.f32.mrb[57].mxu1  ;;  %v3251_v14 = vrot.slane %v4997_v19, %v6022_v4  ;;  %v3259_v63 = vrot.slane %v4997_v19, %v6035_v13 }
 0x28d   : > { %v2779_v26 = vmul.f32 %v2771_v61, %v2748_v5  ;;  %v2750_v17 = vpop.f32.mrb[58].mxu1 }
 0x28e   : > { %v2782_v24 = vadd.f32 %v2778_v12, %v2618_v47  ;;  %v2751_v15 = vpop.f32.mrb[59].mxu1 }
 0x28f   : > { %v2783_v54 = vadd.f32 %v2779_v26, %v2619_v31  ;;  %v2869_v27 = vpop.f32.mrb[60].mxu0  ;;  %v3255_v31 = vrot.slane %v4997_v19, %v6028_v20 }
 0x290   : > { %v2940_v22 = vmul.f32 %v2923_v16, %v2869_v27  ;;  %v2871_v25 = vpop.f32.mrb[61].mxu0 }
 0x291   : > { %v2941_v28 = vmul.f32 %v2927_v55, %v2871_v25  ;;  %v2873_v10 = vpop.f32.mrb[62].mxu0 }
 0x292   : > { %v2944_v49 = vadd.f32 %v2940_v22, %v2780_v0  ;;  %v2874_v35 = vpop.f32.mrb[63].mxu0  ;;  %v3263_v0 = vrot.slane %v4997_v19, %v6040_v6 }
 0x293   : > { %v2945_v8 = vadd.f32 %v2941_v28, %v2781_v7  ;;  %v2910_v36 = vpop.f32.mrb[60].mxu1  ;;  %v5003_v7 = vld [vmem:[%s6279_s6 + $0x48] sm:$0xf] }
 0x294   : > { %v2942_v37 = vmul.f32 %v2931_v57, %v2910_v36  ;;  %v2912_v23 = vpop.f32.mrb[61].mxu1  ;;  %v3414_v55 = vrot.slane %v5003_v7, %v6022_v4  ;;  %v3422_v10 = vrot.slane %v5003_v7, %v6035_v13 }
 0x295   : > { %v2943_v39 = vmul.f32 %v2935_v3, %v2912_v23  ;;  %v2914_v9 = vpop.f32.mrb[62].mxu1 }
 0x296   : > { %v2946_v42 = vadd.f32 %v2942_v37, %v2782_v24  ;;  %v2915_v11 = vpop.f32.mrb[63].mxu1 }
 0x297   : > { %v2947_v56 = vadd.f32 %v2943_v39, %v2783_v54  ;;  %v3033_v40 = vpop.f32.mrb[64].mxu0  ;;  %v3418_v54 = vrot.slane %v5003_v7, %v6028_v20 }
 0x298   : > { %v3104_v43 = vmul.f32 %v3087_v38, %v3033_v40  ;;  %v3035_v29 = vpop.f32.mrb[65].mxu0 }
 0x299   : > { %v3105_v41 = vmul.f32 %v3091_v33, %v3035_v29  ;;  %v3037_v46 = vpop.f32.mrb[66].mxu0 }
 0x29a   : > { %v3108_v48 = vadd.f32 %v3104_v43, %v2944_v49  ;;  %v3038_v53 = vpop.f32.mrb[67].mxu0  ;;  %v3426_v49 = vrot.slane %v5003_v7, %v6040_v6 }
 0x29b   : > { %v3109_v62 = vadd.f32 %v3105_v41, %v2945_v8  ;;  %v3074_v34 = vpop.f32.mrb[64].mxu1  ;;  %v5009_v8 = vld [vmem:[%s6279_s6 + $0x4c] sm:$0xf] }
 0x29c   : > { %v3106_v50 = vmul.f32 %v3095_v44, %v3074_v34  ;;  %v3076_v51 = vpop.f32.mrb[65].mxu1  ;;  %v3577_v33 = vrot.slane %v5009_v8, %v6022_v4  ;;  %v3585_v46 = vrot.slane %v5009_v8, %v6035_v13 }
 0x29d   : > { %v3107_v47 = vmul.f32 %v3099_v45, %v3076_v51  ;;  %v3078_v52 = vpop.f32.mrb[66].mxu1 }
 0x29e   : > { %v3110_v21 = vadd.f32 %v3106_v50, %v2946_v42  ;;  %v3079_v58 = vpop.f32.mrb[67].mxu1 }
 0x29f   : > { %v3111_v32 = vadd.f32 %v3107_v47, %v2947_v56  ;;  %v3197_v60 = vpop.f32.mrb[68].mxu0  ;;  %v3581_v56 = vrot.slane %v5009_v8, %v6028_v20 }
 0x2a0   : > { %v3268_v18 = vmul.f32 %v3251_v14, %v3197_v60  ;;  %v3199_v61 = vpop.f32.mrb[69].mxu0 }
 0x2a1   : > { %v3269_v2 = vmul.f32 %v3255_v31, %v3199_v61  ;;  %v3201_v1 = vpop.f32.mrb[70].mxu0 }
 0x2a2   : > { %v3272_v59 = vadd.f32 %v3268_v18, %v3108_v48  ;;  %v3202_v12 = vpop.f32.mrb[71].mxu0  ;;  %v3589_v48 = vrot.slane %v5009_v8, %v6040_v6 }
 0x2a3   : > { %v3273_v5 = vadd.f32 %v3269_v2, %v3109_v62  ;;  %v3238_v16 = vpop.f32.mrb[68].mxu1  ;;  %v5015_v62 = vld [vmem:[%s6279_s6 + $0x50] sm:$0xf] }
 0x2a4   : > { %v3270_v26 = vmul.f32 %v3259_v63, %v3238_v16  ;;  %v3240_v17 = vpop.f32.mrb[69].mxu1  ;;  %v3740_v31 = vrot.slane %v5015_v62, %v6022_v4  ;;  %v3748_v1 = vrot.slane %v5015_v62, %v6035_v13 }
 0x2a5   : > { %v3271_v24 = vmul.f32 %v3263_v0, %v3240_v17  ;;  %v3242_v15 = vpop.f32.mrb[70].mxu1 }
 0x2a6   : > { %v3274_v27 = vadd.f32 %v3270_v26, %v3110_v21  ;;  %v3243_v22 = vpop.f32.mrb[71].mxu1 }
 0x2a7   : > { %v3275_v25 = vadd.f32 %v3271_v24, %v3111_v32  ;;  %v3360_v57 = vpop.f32.mrb[72].mxu0  ;;  %v3744_v32 = vrot.slane %v5015_v62, %v6028_v20 }
 0x2a8   : > { %v3431_v28 = vmul.f32 %v3414_v55, %v3360_v57  ;;  %v3362_v3 = vpop.f32.mrb[73].mxu0 }
 0x2a9   : > { %v3432_v30 = vmul.f32 %v3418_v54, %v3362_v3  ;;  %v3364_v35 = vpop.f32.mrb[74].mxu0 }
 0x2aa   : > { %v3435_v36 = vadd.f32 %v3431_v28, %v3272_v59  ;;  %v3365_v37 = vpop.f32.mrb[75].mxu0  ;;  %v3752_v59 = vrot.slane %v5015_v62, %v6040_v6 }
 0x2ab   : > { %v3436_v23 = vadd.f32 %v3432_v30, %v3273_v5  ;;  %v3401_v38 = vpop.f32.mrb[72].mxu1  ;;  %v5021_v5 = vld [vmem:[%s6279_s6 + $0x54] sm:$0xf] }
 0x2ac   : > { %v3433_v39 = vmul.f32 %v3422_v10, %v3401_v38  ;;  %v3403_v9 = vpop.f32.mrb[73].mxu1  ;;  %v3903_v54 = vrot.slane %v5021_v5, %v6022_v4  ;;  %v3911_v35 = vrot.slane %v5021_v5, %v6035_v13 }
 0x2ad   : > { %v3434_v42 = vmul.f32 %v3426_v49, %v3403_v9  ;;  %v3405_v11 = vpop.f32.mrb[74].mxu1 }
 0x2ae   : > { %v3437_v40 = vadd.f32 %v3433_v39, %v3274_v27  ;;  %v3406_v43 = vpop.f32.mrb[75].mxu1 }
 0x2af   : > { %v3438_v29 = vadd.f32 %v3434_v42, %v3275_v25  ;;  %v3523_v44 = vpop.f32.mrb[76].mxu0  ;;  %v3907_v25 = vrot.slane %v5021_v5, %v6028_v20 }
 0x2b0   : > { %v3594_v41 = vmul.f32 %v3577_v33, %v3523_v44  ;;  %v3525_v45 = vpop.f32.mrb[77].mxu0 }
 0x2b1   : > { %v3595_v19 = vmul.f32 %v3581_v56, %v3525_v45  ;;  %v3527_v53 = vpop.f32.mrb[78].mxu0 }
 0x2b2   : > { %v3598_v34 = vadd.f32 %v3594_v41, %v3435_v36  ;;  %v3528_v50 = vpop.f32.mrb[79].mxu0  ;;  %v3915_v36 = vrot.slane %v5021_v5, %v6040_v6 }
 0x2b3   : > { %v3599_v51 = vadd.f32 %v3595_v19, %v3436_v23  ;;  %v3564_v14 = vpop.f32.mrb[76].mxu1  ;;  %v5027_v23 = vld [vmem:[%s6279_s6 + $0x58] sm:$0xf] }
 0x2b4   : > { %v3596_v47 = vmul.f32 %v3585_v46, %v3564_v14  ;;  %v3566_v52 = vpop.f32.mrb[77].mxu1  ;;  %v4066_v56 = vrot.slane %v5027_v23, %v6022_v4  ;;  %v4074_v53 = vrot.slane %v5027_v23, %v6035_v13 }
 0x2b5   : > { %v3597_v21 = vmul.f32 %v3589_v48, %v3566_v52  ;;  %v3568_v58 = vpop.f32.mrb[78].mxu1 }
 0x2b6   : > { %v3600_v60 = vadd.f32 %v3596_v47, %v3437_v40  ;;  %v3569_v18 = vpop.f32.mrb[79].mxu1 }
 0x2b7   : > { %v3601_v61 = vadd.f32 %v3597_v21, %v3438_v29  ;;  %v3686_v63 = vpop.f32.mrb[80].mxu0  ;;  %v4070_v29 = vrot.slane %v5027_v23, %v6028_v20 }
 0x2b8   : > { %v3757_v2 = vmul.f32 %v3740_v31, %v3686_v63  ;;  %v3688_v0 = vpop.f32.mrb[81].mxu0 }
 0x2b9   : > { %v3758_v7 = vmul.f32 %v3744_v32, %v3688_v0  ;;  %v3690_v12 = vpop.f32.mrb[82].mxu0 }
 0x2ba   : > { %v3761_v16 = vadd.f32 %v3757_v2, %v3598_v34  ;;  %v3691_v26 = vpop.f32.mrb[83].mxu0  ;;  %v4078_v34 = vrot.slane %v5027_v23, %v6040_v6 }
 0x2bb   : > { %v3762_v17 = vadd.f32 %v3758_v7, %v3599_v51  ;;  %v3727_v55 = vpop.f32.mrb[80].mxu1  ;;  %v5033_v51 = vld [vmem:[%s6279_s6 + $0x5c] sm:$0xf] }
 0x2bc   : > { %v3759_v24 = vmul.f32 %v3748_v1, %v3727_v55  ;;  %v3729_v15 = vpop.f32.mrb[81].mxu1  ;;  %v4229_v32 = vrot.slane %v5033_v51, %v6022_v4  ;;  %v4237_v12 = vrot.slane %v5033_v51, %v6035_v13 }
 0x2bd   : > { %v3760_v27 = vmul.f32 %v3752_v59, %v3729_v15  ;;  %v3731_v22 = vpop.f32.mrb[82].mxu1 }
 0x2be   : > { %v3763_v57 = vadd.f32 %v3759_v24, %v3600_v60  ;;  %v3732_v28 = vpop.f32.mrb[83].mxu1 }
 0x2bf   : > { %v3764_v3 = vadd.f32 %v3760_v27, %v3601_v61  ;;  %v3849_v10 = vpop.f32.mrb[84].mxu0  ;;  %v4233_v61 = vrot.slane %v5033_v51, %v6028_v20 }
 0x2c0   : > { %v3920_v30 = vmul.f32 %v3903_v54, %v3849_v10  ;;  %v3851_v49 = vpop.f32.mrb[85].mxu0 }
 0x2c1   : > { %v3921_v8 = vmul.f32 %v3907_v25, %v3851_v49  ;;  %v3853_v37 = vpop.f32.mrb[86].mxu0 }
 0x2c2   : > { %v3924_v38 = vadd.f32 %v3920_v30, %v3761_v16  ;;  %v3854_v39 = vpop.f32.mrb[87].mxu0  ;;  %v4241_v16 = vrot.slane %v5033_v51, %v6040_v6 }
 0x2c3   : > { %v3925_v9 = vadd.f32 %v3921_v8, %v3762_v17  ;;  %v3890_v33 = vpop.f32.mrb[84].mxu1  ;;  %v5039_v17 = vld [vmem:[%s6279_s6 + $0x60] sm:$0xf] }
 0x2c4   : > { %v3922_v42 = vmul.f32 %v3911_v35, %v3890_v33  ;;  %v3892_v11 = vpop.f32.mrb[85].mxu1  ;;  %v4392_v25 = vrot.slane %v5039_v17, %v6022_v4  ;;  %v4400_v37 = vrot.slane %v5039_v17, %v6035_v13 }
 0x2c5   : > { %v3923_v40 = vmul.f32 %v3915_v36, %v3892_v11  ;;  %v3894_v43 = vpop.f32.mrb[86].mxu1 }
 0x2c6   : > { %v3926_v44 = vadd.f32 %v3922_v42, %v3763_v57  ;;  %v3895_v41 = vpop.f32.mrb[87].mxu1 }
 0x2c7   : > { %v3927_v45 = vadd.f32 %v3923_v40, %v3764_v3  ;;  %v4012_v46 = vpop.f32.mrb[88].mxu0  ;;  %v4396_v3 = vrot.slane %v5039_v17, %v6028_v20 }
 0x2c8   : > { %v4083_v19 = vmul.f32 %v4066_v56, %v4012_v46  ;;  %v4014_v48 = vpop.f32.mrb[89].mxu0 }
 0x2c9   : > { %v4084_v62 = vmul.f32 %v4070_v29, %v4014_v48  ;;  %v4016_v50 = vpop.f32.mrb[90].mxu0 }
 0x2ca   : > { %v4087_v14 = vadd.f32 %v4083_v19, %v3924_v38  ;;  %v4017_v47 = vpop.f32.mrb[91].mxu0  ;;  %v4404_v38 = vrot.slane %v5039_v17, %v6040_v6 }
 0x2cb   : > { %v4088_v52 = vadd.f32 %v4084_v62, %v3925_v9  ;;  %v4053_v31 = vpop.f32.mrb[88].mxu1  ;;  %v5045_v9 = vld [vmem:[%s6279_s6 + $0x64] sm:$0xf] }
 0x2cc   : > { %v4085_v21 = vmul.f32 %v4074_v53, %v4053_v31  ;;  %v4055_v58 = vpop.f32.mrb[89].mxu1  ;;  %v4555_v29 = vrot.slane %v5045_v9, %v6022_v4  ;;  %v4563_v50 = vrot.slane %v5045_v9, %v6035_v13 }
 0x2cd   : > { %v4086_v60 = vmul.f32 %v4078_v34, %v4055_v58  ;;  %v4057_v18 = vpop.f32.mrb[90].mxu1 }
 0x2ce   : > { %v4089_v63 = vadd.f32 %v4085_v21, %v3926_v44  ;;  %v4058_v2 = vpop.f32.mrb[91].mxu1 }
 0x2cf   : > { %v4090_v0 = vadd.f32 %v4086_v60, %v3927_v45  ;;  %v4175_v1 = vpop.f32.mrb[92].mxu0  ;;  %v4559_v45 = vrot.slane %v5045_v9, %v6028_v20 }
 0x2d0   : > { %v4246_v7 = vmul.f32 %v4229_v32, %v4175_v1  ;;  %v4177_v59 = vpop.f32.mrb[93].mxu0 }
 0x2d1   : > { %v4247_v5 = vmul.f32 %v4233_v61, %v4177_v59  ;;  %v4179_v26 = vpop.f32.mrb[94].mxu0 }
 0x2d2   : > { %v4250_v55 = vadd.f32 %v4246_v7, %v4087_v14  ;;  %v4180_v24 = vpop.f32.mrb[95].mxu0  ;;  %v4567_v14 = vrot.slane %v5045_v9, %v6040_v6 }
 0x2d3   : > { %v4251_v15 = vadd.f32 %v4247_v5, %v4088_v52  ;;  %v4216_v54 = vpop.f32.mrb[92].mxu1  ;;  %v5051_v52 = vld [vmem:[%s6279_s6 + $0x68] sm:$0xf] }
 0x2d4   : > { %v4248_v27 = vmul.f32 %v4237_v12, %v4216_v54  ;;  %v4218_v22 = vpop.f32.mrb[93].mxu1  ;;  %v4718_v61 = vrot.slane %v5051_v52, %v6022_v4  ;;  %v4726_v26 = vrot.slane %v5051_v52, %v6035_v13  ;;  %v6225_v4 = vld [vmem:[%s6277_s4] sm:$0xff]  ;;  %v6232_v13 = vld [vmem:[%s6277_s4 + $0x8] sm:$0xff] }
 0x2d5   : > { %v4249_v57 = vmul.f32 %v4241_v16, %v4218_v22  ;;  %v4220_v28 = vpop.f32.mrb[94].mxu1 }
 0x2d6   : > { %v4252_v10 = vadd.f32 %v4248_v27, %v4089_v63  ;;  %v4221_v30 = vpop.f32.mrb[95].mxu1  ;;  %v4747_v27 = vpop.permute.xlu0 %4746 }
 0x2d7   : > { %v4253_v49 = vadd.f32 %v4249_v57, %v4090_v0  ;;  %v4338_v35 = vpop.f32.mrb[96].mxu0  ;;  %v4722_v0 = vrot.slane %v5051_v52, %v6028_v20 }
 0x2d8   : > { %v4409_v8 = vmul.f32 %v4392_v25, %v4338_v35  ;;  %v4340_v36 = vpop.f32.mrb[97].mxu0 }
 0x2d9   : > { %v4410_v23 = vmul.f32 %v4396_v3, %v4340_v36  ;;  %v4342_v39 = vpop.f32.mrb[98].mxu0  ;;  %v6243_v36 = vld [vmem:[%s6277_s4 + $0x10] sm:$0xff] }
 0x2da   : > { %v4413_v33 = vadd.f32 %v4409_v8, %v4250_v55  ;;  %v4343_v42 = vpop.f32.mrb[99].mxu0  ;;  %v4730_v55 = vrot.slane %v5051_v52, %v6040_v6  ;;  %v6250_v39 = vld [vmem:[%s6277_s4 + $0x18] sm:$0xff] }
 0x2db   : > { %v4414_v11 = vadd.f32 %v4410_v23, %v4251_v15  ;;  %v4379_v56 = vpop.f32.mrb[96].mxu1 }
 0x2dc   : > { %v4411_v40 = vmul.f32 %v4400_v37, %v4379_v56  ;;  %v4381_v43 = vpop.f32.mrb[97].mxu1 }
 0x2dd   : > { %v4412_v44 = vmul.f32 %v4404_v38, %v4381_v43  ;;  %v4383_v41 = vpop.f32.mrb[98].mxu1 }
 0x2de   : > { %v4415_v46 = vadd.f32 %v4411_v40, %v4252_v10  ;;  %v4384_v19 = vpop.f32.mrb[99].mxu1 }
 0x2df   : > { %v4416_v48 = vadd.f32 %v4412_v44, %v4253_v49  ;;  %v4501_v53 = vpop.f32.mrb[100].mxu0 }
 0x2e0   : > { %v4572_v62 = vmul.f32 %v4555_v29, %v4501_v53  ;;  %v4503_v34 = vpop.f32.mrb[101].mxu0 }
 0x2e1   : > { %v4573_v51 = vmul.f32 %v4559_v45, %v4503_v34  ;;  %v4505_v47 = vpop.f32.mrb[102].mxu0 }
 0x2e2   : > { %v4576_v31 = vadd.f32 %v4572_v62, %v4413_v33  ;;  %v4506_v21 = vpop.f32.mrb[103].mxu0 }
 0x2e3   : > { %v4577_v58 = vadd.f32 %v4573_v51, %v4414_v11  ;;  %v4542_v32 = vpop.f32.mrb[100].mxu1 }
 0x2e4   : > { %v4574_v60 = vmul.f32 %v4563_v50, %v4542_v32  ;;  %v4544_v18 = vpop.f32.mrb[101].mxu1 }
 0x2e5   : > { %v4575_v63 = vmul.f32 %v4567_v14, %v4544_v18  ;;  %v4546_v2 = vpop.f32.mrb[102].mxu1 }
 0x2e6   : > { %v4578_v1 = vadd.f32 %v4574_v60, %v4415_v46  ;;  %v4547_v7 = vpop.f32.mrb[103].mxu1 }
 0x2e7   : > { %v4579_v59 = vadd.f32 %v4575_v63, %v4416_v48  ;;  %v4664_v12 = vpop.f32.mrb[104].mxu0 }
 0x2e8   : > { %v4735_v5 = vmul.f32 %v4718_v61, %v4664_v12  ;;  %v4666_v16 = vpop.f32.mrb[105].mxu0 }
 0x2e9   : > { %v4736_v17 = vmul.f32 %v4722_v0, %v4666_v16  ;;  %v4668_v24 = vpop.f32.mrb[106].mxu0 }
 0x2ea   : > { %v4739_v15 = vadd.f32 %v4735_v5, %v4576_v31  ;;  %v4669_v54 = vpop.f32.mrb[107].mxu0 }
 0x2eb   : > { %v4740_v20 = vadd.f32 %v4736_v17, %v4577_v58  ;;  %v4705_v22 = vpop.f32.mrb[104].mxu1  ;;  %v4810_v17 = vpop.permute.xlu1 %4809 }
 0x2ec   : > { %v6227_v25 = vadd.f32 %v4747_v27, %v4739_v15  ;;  %v4737_v57 = vmul.f32 %v4726_v26, %v4705_v22  ;;  %v4707_v6 = vpop.f32.mrb[105].mxu1 }
 0x2ed   : > { %v6234_v28 = vadd.f32 %v4747_v27, %v4740_v20  ;;  %v4738_v3 = vmul.f32 %v4730_v55, %v4707_v6  ;;  %v4709_v10 = vpop.f32.mrb[106].mxu1 }
 0x2ee   : > { %v4757_v30 = vadd.f32 %v6225_v4, %v6227_v25  ;;  %v4741_v49 = vadd.f32 %v4737_v57, %v4578_v1  ;;  %v4710_v35 = vpop.f32.mrb[107].mxu1 }
 0x2ef   : > { %v4758_v8 = vadd.f32 %v6232_v13, %v6234_v28  ;;  %v4742_v37 = vadd.f32 %v4738_v3, %v4579_v59 }
 0x2f0   : > { %v4761_v23 = vmul.f32 %v4757_v30, %v4757_v30  ;;  %v6245_v38 = vadd.f32 %v4747_v27, %v4741_v49 }
 0x2f1   : > { %v4762_v9 = vmul.f32 %v4758_v8, %v4758_v8  ;;  %v6252_v33 = vadd.f32 %v4747_v27, %v4742_v37 }
 0x2f2   : > { %v4765_v42 = vrot.slane %v4761_v23, 4  ;;  %v4759_v11 = vadd.f32 %v6243_v36, %v6245_v38 }
 0x2f3   : > { %v4771_v56 = vrot.slane %v4762_v9, 4  ;;  %v4760_v40 = vadd.f32 %v6250_v39, %v6252_v33 }
 0x2f4   : > { %v4766_v43 = vadd.f32 %v4765_v42, %v4761_v23  ;;  %v4763_v29 = vmul.f32 %v4759_v11, %v4759_v11 }
 0x2f5   : > { %v4772_v44 = vadd.f32 %v4771_v56, %v4762_v9  ;;  %v4764_v41 = vmul.f32 %v4760_v40, %v4760_v40 }
 0x2f6   : > { %v4767_v45 = vrot.slane %v4766_v43, 2  ;;  %v4777_v46 = vrot.slane %v4763_v29, 4 }
 0x2f7   : > { %v4773_v19 = vrot.slane %v4772_v44, 2  ;;  %v4783_v48 = vrot.slane %v4764_v41, 4 }
 0x2f8   : > { %v4768_v53 = vadd.f32 %v4767_v45, %v4766_v43  ;;  %v4778_v62 = vadd.f32 %v4777_v46, %v4763_v29 }
 0x2f9   : > { %v4774_v34 = vadd.f32 %v4773_v19, %v4772_v44  ;;  %v4784_v50 = vadd.f32 %v4783_v48, %v4764_v41 }
 0x2fa   : > { %v4769_v51 = vrot.slane %v4768_v53, 1  ;;  %v4779_v14 = vrot.slane %v4778_v62, 2 }
 0x2fb   : > { %v4775_v47 = vrot.slane %v4774_v34, 1  ;;  %v4785_v52 = vrot.slane %v4784_v50, 2 }
 0x2fc   : > { %v4770_v31 = vadd.f32 %v4769_v51, %v4768_v53  ;;  %v4780_v21 = vadd.f32 %v4779_v14, %v4778_v62 }
 0x2fd   : > { %v4776_v58 = vadd.f32 %v4775_v47, %v4774_v34  ;;  %v4786_v32 = vadd.f32 %v4785_v52, %v4784_v50 }
 0x2fe   : > { %v4790_v60 = vmul.f32 0.125, %v4770_v31  ;;  %v4781_v18 = vrot.slane %v4780_v21, 1 }
 0x2ff   : > { %v4791_v61 = vmul.f32 0.125, %v4776_v58  ;;  %v4787_v63 = vrot.slane %v4786_v32, 1 }
 0x300   : > { %v4794_v2 = vadd.f32 1e-05, %v4790_v60  ;;  %v4782_v0 = vadd.f32 %v4781_v18, %v4780_v21 }
 0x301   : > { %v4795_v1 = vadd.f32 1e-05, %v4791_v61  ;;  %v4788_v7 = vadd.f32 %v4787_v63, %v4786_v32 }
 0x302   : > { %5090 = vrsqrt.f32 %v4794_v2  ;;  %v4792_v59 = vmul.f32 0.125, %v4782_v0 }
 0x303   : > { %5092 = vrsqrt.f32 %v4795_v1  ;;  %v4793_v12 = vmul.f32 0.125, %v4788_v7 }
 0x304   : > { %v4796_v5 = vadd.f32 1e-05, %v4792_v59 }
 0x305   : > { %v4797_v16 = vadd.f32 1e-05, %v4793_v12 }
 0x306   : > { %5094 = vrsqrt.f32 %v4796_v5 }
 0x307   : > { %5096 = vrsqrt.f32 %v4797_v16 }
 0x30c   : > { %v5091_v26 = vpop.eup %5090 }
 0x30d   : > { %v5093_v55 = vpop.eup %5092  ;;  %v4802_v24 = vmul.f32 %v5091_v26, %v4757_v30 }
 0x30e   : > { %v4803_v15 = vmul.f32 %v5093_v55, %v4758_v8 }
 0x30f   : > { %v4812_v54 = vmul.f32 %v4810_v17, %v4802_v24 }
 0x310   : > { %v5095_v27 = vpop.eup %5094  ;;  %v4813_v20 = vmul.f32 %v4810_v17, %v4803_v15 }
 0x311   : > { %v5097_v22 = vpop.eup %5096  ;;  %v4804_v57 = vmul.f32 %v5095_v27, %v4759_v11  ;;  %v4816_v6 = vadd.f32 %v4812_v54, %v6225_v4 }
 0x312   : > { %v4805_v3 = vmul.f32 %v5097_v22, %v4760_v40  ;;  %v4817_v10 = vadd.f32 %v4813_v20, %v6232_v13 }
 0x313   : > { %v4814_v49 = vmul.f32 %v4810_v17, %v4804_v57  ;;  %v4820_v35 = vadd.f32 %v4816_v6, %v6227_v25 }
 0x314   : > { %v4815_v30 = vmul.f32 %v4810_v17, %v4805_v3  ;;  %v4821_v8 = vadd.f32 %v4817_v10, %v6234_v28 }
 0x315   : > { %v4818_v37 = vadd.f32 %v4814_v49, %v6243_v36  ;;  %4824 = vst [vmem:[%s305_s25] sm:$0xff] %v4820_v35 }
 0x316   : > { %v4819_v23 = vadd.f32 %v4815_v30, %v6250_v39  ;;  %4825 = vst [vmem:[%s305_s25 + $0x8] sm:$0xff] %v4821_v8 }
 0x317   : > { %v4822_v4 = vadd.f32 %v4818_v37, %v6245_v38 }
 0x318   : > { %v4823_v9 = vadd.f32 %v4819_v23, %v6252_v33 }
 0x319   : > { %4826 = vst [vmem:[%s305_s25 + $0x10] sm:$0xff] %v4822_v4 }
 0x31a   : > { %4827 = vst [vmem:[%s305_s25 + $0x18] sm:$0xff] %v4823_v9 }
 0x31b PF: > { %s18_s27 = sadd.s32 1, %s5104_s27  }
 0x31c   : > { %p15_p4 = scmp.ge.s32.totalorder %s18_s27, 4  }
 0x31e   :  { %17 = sbr.rel (!%p15_p4) target bundleno = 1 (0x1), region = 134 }

</bundles_post_ra>
